<compile_context>
chip_gen: v5e
topology: v5e:2x2
jax: 0.10.0
libtpu: 0.0.40
codegen_flags: <defaults>
</compile_context>

<pallas_src>
import functools

import jax
import jax.numpy as jnp
from jax import lax
from jax.experimental import pallas as pl
from jax.experimental.pallas import tpu as pltpu

INITIAL_SIGMA = 0.5
SCALE_FACTOR = 64.0


def _round_up(x, m):
    return ((x + m - 1) // m) * m


def _choose_m_tiling(m, cap):
    """(mp, tm) with mp % tm == 0 and >= 2 grid steps whenever mp >= 16 (v7x megacore)."""
    mp = _round_up(m, 8)
    if mp >= 16:
        tm = min(cap, _round_up(mp // 2, 8))
    else:
        tm = mp
    mp = _round_up(mp, tm)
    return mp, tm


# ----------------------------------------------------------------------------
# Pallas kernel 1: matmul with fused bias + optional ReLU (bf16 in/out, f32 acc).
# ----------------------------------------------------------------------------
def _matmul_bias_kernel(a_ref, w_ref, b_ref, o_ref, *, relu):
    acc = jnp.dot(a_ref[...], w_ref[...], preferred_element_type=jnp.float32)
    acc = acc + b_ref[...]
    if relu:
        acc = jnp.maximum(acc, 0.0)
    o_ref[...] = acc.astype(o_ref.dtype)


def matmul_bias(a, w, bias, *, relu=False, out_dtype=jnp.bfloat16, tm_cap=256):
    """relu?(a @ w + bias). a: (M, K), w: (K, N) pre-padded bf16, bias: (1, N) f32."""
    m, k = a.shape
    k2, n = w.shape
    assert k == k2, (k, k2)
    a = a.astype(w.dtype)
    mp, tm = _choose_m_tiling(m, tm_cap)
    if mp != m:
        a = jnp.pad(a, ((0, mp - m), (0, 0)))
    out = pl.pallas_call(
        functools.partial(_matmul_bias_kernel, relu=relu),
        out_shape=jax.ShapeDtypeStruct((mp, n), out_dtype),
        grid_spec=pltpu.PrefetchScalarGridSpec(
            num_scalar_prefetch=0,
            grid=(mp // tm,),
            in_specs=[
                pl.BlockSpec((tm, k), lambda i: (i, 0)),   # patch tile
                pl.BlockSpec((k, n), lambda i: (0, 0)),    # whole weight (constant block)
                pl.BlockSpec((1, n), lambda i: (0, 0)),    # bias row
            ],
            out_specs=pl.BlockSpec((tm, n), lambda i: (i, 0)),
        ),
        compiler_params=pltpu.CompilerParams(dimension_semantics=("parallel",)),
    )(a, w, bias)
    if mp != m:
        out = out[:m]
    return out


# ----------------------------------------------------------------------------
# Pallas kernel 2: two back-to-back matmuls (1x1-conv chains) with the
# intermediate kept in VMEM -- removes one full HBM activation round trip.
# ----------------------------------------------------------------------------
def _double_matmul_bias_kernel(a_ref, w1_ref, b1_ref, w2_ref, b2_ref, o_ref, *, relu1, relu2):
    h = jnp.dot(a_ref[...], w1_ref[...], preferred_element_type=jnp.float32)
    h = h + b1_ref[...]
    if relu1:
        h = jnp.maximum(h, 0.0)
    h = h.astype(w2_ref.dtype)
    acc = jnp.dot(h, w2_ref[...], preferred_element_type=jnp.float32)
    acc = acc + b2_ref[...]
    if relu2:
        acc = jnp.maximum(acc, 0.0)
    o_ref[...] = acc.astype(o_ref.dtype)


def double_matmul_bias(a, w1, b1, w2, b2, *, relu1=True, relu2=True,
                       out_dtype=jnp.bfloat16, tm_cap=128):
    m, k1 = a.shape
    k1b, n1 = w1.shape
    n1b, n2 = w2.shape
    assert k1 == k1b and n1 == n1b
    a = a.astype(w1.dtype)
    mp, tm = _choose_m_tiling(m, tm_cap)
    if mp != m:
        a = jnp.pad(a, ((0, mp - m), (0, 0)))
    out = pl.pallas_call(
        functools.partial(_double_matmul_bias_kernel, relu1=relu1, relu2=relu2),
        out_shape=jax.ShapeDtypeStruct((mp, n2), out_dtype),
        grid_spec=pltpu.PrefetchScalarGridSpec(
            num_scalar_prefetch=0,
            grid=(mp // tm,),
            in_specs=[
                pl.BlockSpec((tm, k1), lambda i: (i, 0)),
                pl.BlockSpec((k1, n1), lambda i: (0, 0)),
                pl.BlockSpec((1, n1), lambda i: (0, 0)),
                pl.BlockSpec((n1, n2), lambda i: (0, 0)),
                pl.BlockSpec((1, n2), lambda i: (0, 0)),
            ],
            out_specs=pl.BlockSpec((tm, n2), lambda i: (i, 0)),
        ),
        compiler_params=pltpu.CompilerParams(dimension_semantics=("parallel",)),
    )(a, w1, b1, w2, b2)
    if mp != m:
        out = out[:m]
    return out


# ----------------------------------------------------------------------------
# Convolution = NHWC im2col (bf16, K zero-pad fused into the concat) + Pallas matmul.
# Kernel sizes / padding are STATIC Python args (never traced).
# ----------------------------------------------------------------------------
def _im2col_nhwc(x, kh, kw, pad, k_padded):
    n, h, w, c = x.shape
    xp = jnp.pad(x, ((0, 0), (pad, pad), (pad, pad), (0, 0)))
    cols = []
    for dh in range(kh):
        for dw in range(kw):
            cols.append(xp[:, dh:dh + h, dw:dw + w, :])
    k = kh * kw * c
    if k_padded > k:
        cols.append(jnp.zeros((n, h, w, k_padded - k), x.dtype))
    return jnp.concatenate(cols, axis=-1).reshape(n * h * w, k_padded)


def _patches(x, kh, kw, pad, kp):
    n, h, w, c = x.shape
    if kh == 1 and kw == 1:
        p = x.reshape(n * h * w, c)
        if c < kp:                      # static shapes -> plain Python branch
            p = jnp.pad(p, ((0, 0), (0, kp - c)))
        return p, (n, h, w)
    return _im2col_nhwc(x, kh, kw, pad, kp), (n, h, w)


def conv2d(x, layer, *, kh, kw, pad, relu=True, out_dtype=jnp.bfloat16):
    p, (n, h, w) = _patches(x, kh, kw, pad, layer['w'].shape[0])
    out = matmul_bias(p, layer['w'], layer['b'], relu=relu, out_dtype=out_dtype)
    return out.reshape(n, h, w, -1)


def conv2d_fused2(x, layer1, layer2, *, kh, kw, pad, relu1=True, relu2=True,
                  out_dtype=jnp.bfloat16):
    """conv(layer1) -> ReLU -> 1x1 conv(layer2) -> ReLU in one pallas_call."""
    p, (n, h, w) = _patches(x, kh, kw, pad, layer1['w'].shape[0])
    out = double_matmul_bias(p, layer1['w'], layer1['b'], layer2['w'], layer2['b'],
                             relu1=relu1, relu2=relu2, out_dtype=out_dtype)
    return out.reshape(n, h, w, -1)


def max_pool_3x3_s2_p1(x):
    init = jnp.array(-jnp.inf, dtype=x.dtype)
    return lax.reduce_window(x, init, lax.max, (1, 3, 3, 1), (1, 2, 2, 1),
                             ((0, 0), (1, 1), (1, 1), (0, 0)))


def avg_pool_3x3_s2_p1(x):
    # PyTorch AvgPool2d(count_include_pad=True): divide by 9 everywhere.
    s = lax.reduce_window(x.astype(jnp.float32), 0.0, lax.add,
                          (1, 3, 3, 1), (1, 2, 2, 1),
                          ((0, 0), (1, 1), (1, 1), (0, 0)))
    return (s / 9.0).astype(x.dtype)


# ----------------------------------------------------------------------------
# Parameters: conv weights flattened ((kh,kw,Cpad,Opad) order), K/N padded to 128
# multiples (zeroed) and cast to bf16 ONCE.  Hyper weight sets are prepped here too.
# ----------------------------------------------------------------------------
def _prep_conv(w, b, *, c_pad=None, o_pad=None, dtype=jnp.bfloat16):
    o, c, kh, kw = w.shape
    c_pad = c if c_pad is None else c_pad
    o_pad = _round_up(o, 128) if o_pad is None else o_pad
    w = jnp.pad(w, ((0, o_pad - o), (0, c_pad - c), (0, 0), (0, 0)))
    k = c_pad * kh * kw
    kp = _round_up(k, 128)
    w_flat = jnp.transpose(w, (2, 3, 1, 0)).reshape(k, o_pad)
    w_flat = jnp.pad(w_flat, ((0, kp - k), (0, 0))).astype(dtype)
    b_row = jnp.pad(b, (0, o_pad - o)).reshape(1, o_pad).astype(jnp.float32)
    return dict(w=w_flat, b=b_row)


def init_params(key, input_channels=3):
    keys = jax.random.split(key, 12)

    def conv_w(k, o, c, kh, kw):
        fan_in = c * kh * kw
        w = jax.random.normal(k, (o, c, kh, kw), jnp.float32) * (2.0 / fan_in) ** 0.5
        b = jnp.zeros((o,), jnp.float32)
        return w, b

    p = {}
    # SharedNet.before_features
    p['conv0'] = _prep_conv(*conv_w(keys[0], 192, input_channels, 5, 5), o_pad=256)
    p['conv1'] = _prep_conv(*conv_w(keys[1], 160, 192, 1, 1), c_pad=256, o_pad=256)
    p['conv2'] = _prep_conv(*conv_w(keys[2], 96, 160, 1, 1), c_pad=256, o_pad=128)

    # TODO(synk): EmbeddingBinarySelectionLayer is not defined in the provided source;
    # stand-in: global-avg-pool -> Linear(96, 2) -> softmax, binarized on channel 1 (f32, XLA).
    p['sel_w'] = jax.random.normal(keys[3], (96, 2), jnp.float32) * (1.0 / 96.0) ** 0.5
    p['sel_b'] = jnp.zeros((2,), jnp.float32)

    # HyperNet: Linear(1, 230496) -> (96,96,5,5) weights + (96,) bias per gate value.
    # Eval/binary gating admits only TWO weight sets (h_in in {0,1}); prep both at init and
    # concatenate along N (128 + 128 = 256) so one matmul computes both gated branches.
    hw = jax.random.normal(keys[4], (230496,), jnp.float32) * 0.02
    hb = jax.random.normal(keys[5], (230496,), jnp.float32) * 0.02
    g = INITIAL_SIGMA + 1.0 / SCALE_FACTOR            # transformed gate for h_in = 1
    tot_zero = hb                                     # h_in = 0 -> 0 * W + b
    tot_gate = g * hw + hb
    lz = _prep_conv(tot_zero[:230400].reshape(96, 96, 5, 5), tot_zero[230400:],
                    c_pad=128, o_pad=128)
    lg = _prep_conv(tot_gate[:230400].reshape(96, 96, 5, 5), tot_gate[230400:],
                    c_pad=128, o_pad=128)
    p['hyper'] = dict(w=jnp.concatenate([lz['w'], lg['w']], axis=1),
                      b=jnp.concatenate([lz['b'], lg['b']], axis=1))
    p['hconv1'] = _prep_conv(*conv_w(keys[6], 96, 96, 1, 1), c_pad=128, o_pad=128)
    p['hconv2'] = _prep_conv(*conv_w(keys[7], 96, 96, 1, 1), c_pad=128, o_pad=128)

    # SharedNet.after_features
    p['conv3'] = _prep_conv(*conv_w(keys[8], 96, 96, 3, 3), c_pad=128, o_pad=128)
    p['conv4'] = _prep_conv(*conv_w(keys[9], 96, 96, 1, 1), c_pad=128, o_pad=128)
    w5, b5 = conv_w(keys[10], 10, 96, 1, 1)
    p['conv5_w'] = w5.reshape(10, 96).T               # (96, 10) f32 — applied after GAP (commutes)
    p['conv5_b'] = b5                                  # (10,) f32
    return p


# ----------------------------------------------------------------------------
# Full forward pass (eval mode).
# ----------------------------------------------------------------------------
def nin_hyperdecisionet_forward(params, x):
    """x: (B, C, H, W) NCHW.  Returns (logits, sigmas_b, sigmas_r, sigmas_b_r)."""
    h = jnp.transpose(x, (0, 2, 3, 1)).astype(jnp.bfloat16)     # NCHW -> NHWC, bf16
    b = h.shape[0]

    # ---- SharedNet.before_features ----
    h = conv2d(h, params['conv0'], kh=5, kw=5, pad=2, relu=True)                    # (B,16,16,256)
    h = conv2d_fused2(h, params['conv1'], params['conv2'], kh=1, kw=1, pad=0)       # (B,16,16,128)
    h = max_pool_3x3_s2_p1(h)                                                       # (B,8,8,128)
    # Dropout(0.5): identity in eval mode.

    # ---- binary selection layer (stand-in) ----
    pooled = jnp.mean(h, axis=(1, 2))[:, :96].astype(jnp.float32)                   # (B, 96)
    sel_logits = pooled @ params['sel_w'] + params['sel_b']                          # (B, 2)
    sigmas_r = jax.nn.softmax(sel_logits, axis=-1)
    sigmas_b_r = sigmas_r[:, 1]
    sigmas_b = (sigmas_b_r > 0.5).astype(jnp.float32)

    # ---- HyperNet, eval (binary) path ----
    # Both gated 5x5 convs in ONE matmul (weights concatenated along N); ReLU fused.
    hy = conv2d(h, params['hyper'], kh=5, kw=5, pad=2, relu=True)                   # (B,8,8,256)
    # x0 + x1 is symmetric in the per-sample {zero, gate} permutation, so sigmas_b routing
    # is dead work in eval mode: stack both branches along batch, run the tail once, sum.
    stacked = jnp.concatenate([hy[..., :128], hy[..., 128:]], axis=0)               # (2B,8,8,128)
    t = conv2d_fused2(stacked, params['hconv1'], params['hconv2'], kh=1, kw=1, pad=0)
    t = avg_pool_3x3_s2_p1(t)                                                       # (2B,4,4,128)
    # Dropout(0.5): identity in eval mode.
    h = t[:b] + t[b:]                                                               # (B,4,4,128)

    # ---- SharedNet.after_features ----
    h = conv2d_fused2(h, params['conv3'], params['conv4'], kh=3, kw=3, pad=1)       # (B,4,4,128)

    # ---- classifier: conv5 (linear 1x1) commuted past AdaptiveAvgPool2d((1,1)) ----
    pooled2 = jnp.mean(h, axis=(1, 2))[:, :96].astype(jnp.float32)                  # (B, 96)
    out = pooled2 @ params['conv5_w'] + params['conv5_b']                            # (B, 10) f32
    return out, sigmas_b, sigmas_r, sigmas_b_r


if __name__ == "__main__":
    key = jax.random.PRNGKey(0)
    params = init_params(key, input_channels=3)

    x = jax.random.normal(jax.random.PRNGKey(0), (2, 3, 16, 16), jnp.float32)

    fwd = jax.jit(nin_hyperdecisionet_forward)
    out, sigmas_b, sigmas_r, sigmas_b_r = fwd(params, x)
    jax.block_until_ready(out)

    assert out.shape == (2, 10)
    assert sigmas_r.shape == (2, 2)
    assert sigmas_b.shape == (2,)
    assert bool(jnp.all(jnp.isfinite(out)))
    print("KERNEL_OK")
</pallas_src>

<mosaic_0001>
module attributes {stable_mosaic.version = 11 : i64} {
  func.func @_matmul_bias_kernel(%arg0: i32, %arg1: memref<256x128xbf16, #tpu.memory_space<vmem>>, %arg2: memref<128x256xbf16, #tpu.memory_space<vmem>>, %arg3: memref<1x256xf32, #tpu.memory_space<vmem>>, %arg4: memref<256x256xbf16, #tpu.memory_space<vmem>>) attributes {dimension_semantics = [#tpu.dimension_semantics<parallel>], iteration_bounds = array<i64: 2>, scalar_prefetch = 0 : i64, scratch_operands = 0 : i64, tpu.core_type = #tpu.core_type<tc>, window_params = [{transform_indices = @transform_0, window_bounds = array<i64: 256, 128>}, {pipeline_mode = #tpu.pipeline_mode<synchronous>, transform_indices = @transform_1, window_bounds = array<i64: 128, 256>}, {pipeline_mode = #tpu.pipeline_mode<synchronous>, transform_indices = @transform_2, window_bounds = array<i64: 1, 256>}, {transform_indices = @transform_3, window_bounds = array<i64: 256, 256>}]} {
    %c0 = arith.constant 0 : index
    %c0_0 = arith.constant 0 : index
    %0 = vector.load %arg1[%c0, %c0_0] : memref<256x128xbf16, #tpu.memory_space<vmem>>, vector<256x128xbf16>
    %c0_1 = arith.constant 0 : index
    %c0_2 = arith.constant 0 : index
    %1 = vector.load %arg2[%c0_1, %c0_2] : memref<128x256xbf16, #tpu.memory_space<vmem>>, vector<128x256xbf16>
    %cst = arith.constant dense<0.000000e+00> : vector<256x256xf32>
    %2 = tpu.matmul %0, %1, %cst {dimension_numbers = #tpu.dot_dimension_numbers<[1], [0], [0], [1], [0, 0, 1, 1], [], []>} : vector<256x128xbf16>, vector<128x256xbf16>, vector<256x256xf32> -> vector<256x256xf32>
    %c0_3 = arith.constant 0 : index
    %c0_4 = arith.constant 0 : index
    %3 = vector.load %arg3[%c0_3, %c0_4] : memref<1x256xf32, #tpu.memory_space<vmem>>, vector<1x256xf32>
    %4 = vector.broadcast %3 : vector<1x256xf32> to vector<256x256xf32>
    %5 = arith.addf %2, %4 : vector<256x256xf32>
    %cst_5 = arith.constant 0.000000e+00 : f32
    %6 = vector.broadcast %cst_5 : f32 to vector<256x256xf32>
    %7 = arith.maximumf %5, %6 : vector<256x256xf32>
    %8 = arith.truncf %7 : vector<256x256xf32> to vector<256x256xbf16>
    %c0_6 = arith.constant 0 : index
    %c0_7 = arith.constant 0 : index
    %9 = vector.load %arg4[%c0_6, %c0_7] : memref<256x256xbf16, #tpu.memory_space<vmem>>, vector<256x256xbf16>
    tpu.vector_store %arg4[%c0_6, %c0_7], %8 {strides = array<i32>} : memref<256x256xbf16, #tpu.memory_space<vmem>>, vector<256x256xbf16>,
    return
  }
  func.func @transform_0(%arg0: i32) -> (i32, i32) {
    %c0_i32 = arith.constant 0 : i32
    %c0_i32_0 = arith.constant 0 : i32
    return %arg0, %c0_i32 : i32, i32
  }
  func.func @transform_1(%arg0: i32) -> (i32, i32) {
    %c0_i32 = arith.constant 0 : i32
    %c0_i32_0 = arith.constant 0 : i32
    %c0_i32_1 = arith.constant 0 : i32
    return %c0_i32, %c0_i32_0 : i32, i32
  }
  func.func @transform_2(%arg0: i32) -> (i32, i32) {
    %c0_i32 = arith.constant 0 : i32
    %c0_i32_0 = arith.constant 0 : i32
    %c0_i32_1 = arith.constant 0 : i32
    return %c0_i32, %c0_i32_0 : i32, i32
  }
  func.func @transform_3(%arg0: i32) -> (i32, i32) {
    %c0_i32 = arith.constant 0 : i32
    %c0_i32_0 = arith.constant 0 : i32
    return %arg0, %c0_i32 : i32, i32
  }
}

module attributes {stable_mosaic.version = 11 : i64} {
  func.func @_double_matmul_bias_kernel(%arg0: i32, %arg1: memref<128x256xbf16, #tpu.memory_space<vmem>>, %arg2: memref<256x256xbf16, #tpu.memory_space<vmem>>, %arg3: memref<1x256xf32, #tpu.memory_space<vmem>>, %arg4: memref<256x128xbf16, #tpu.memory_space<vmem>>, %arg5: memref<1x128xf32, #tpu.memory_space<vmem>>, %arg6: memref<128x128xbf16, #tpu.memory_space<vmem>>) attributes {dimension_semantics = [#tpu.dimension_semantics<parallel>], iteration_bounds = array<i64: 4>, scalar_prefetch = 0 : i64, scratch_operands = 0 : i64, tpu.core_type = #tpu.core_type<tc>, window_params = [{transform_indices = @transform_0, window_bounds = array<i64: 128, 256>}, {pipeline_mode = #tpu.pipeline_mode<synchronous>, transform_indices = @transform_1, window_bounds = array<i64: 256, 256>}, {pipeline_mode = #tpu.pipeline_mode<synchronous>, transform_indices = @transform_2, window_bounds = array<i64: 1, 256>}, {pipeline_mode = #tpu.pipeline_mode<synchronous>, transform_indices = @transform_3, window_bounds = array<i64: 256, 128>}, {pipeline_mode = #tpu.pipeline_mode<synchronous>, transform_indices = @transform_4, window_bounds = array<i64: 1, 128>}, {transform_indices = @transform_5, window_bounds = array<i64: 128, 128>}]} {
    %c0 = arith.constant 0 : index
    %c0_0 = arith.constant 0 : index
    %0 = vector.load %arg1[%c0, %c0_0] : memref<128x256xbf16, #tpu.memory_space<vmem>>, vector<128x256xbf16>
    %c0_1 = arith.constant 0 : index
    %c0_2 = arith.constant 0 : index
    %1 = vector.load %arg2[%c0_1, %c0_2] : memref<256x256xbf16, #tpu.memory_space<vmem>>, vector<256x256xbf16>
    %cst = arith.constant dense<0.000000e+00> : vector<128x256xf32>
    %2 = tpu.matmul %0, %1, %cst {dimension_numbers = #tpu.dot_dimension_numbers<[1], [0], [0], [1], [0, 0, 1, 1], [], []>} : vector<128x256xbf16>, vector<256x256xbf16>, vector<128x256xf32> -> vector<128x256xf32>
    %c0_3 = arith.constant 0 : index
    %c0_4 = arith.constant 0 : index
    %3 = vector.load %arg3[%c0_3, %c0_4] : memref<1x256xf32, #tpu.memory_space<vmem>>, vector<1x256xf32>
    %4 = vector.broadcast %3 : vector<1x256xf32> to vector<128x256xf32>
    %5 = arith.addf %2, %4 : vector<128x256xf32>
    %cst_5 = arith.constant 0.000000e+00 : f32
    %6 = vector.broadcast %cst_5 : f32 to vector<128x256xf32>
    %7 = arith.maximumf %5, %6 : vector<128x256xf32>
    %8 = arith.truncf %7 : vector<128x256xf32> to vector<128x256xbf16>
    %c0_6 = arith.constant 0 : index
    %c0_7 = arith.constant 0 : index
    %9 = vector.load %arg4[%c0_6, %c0_7] : memref<256x128xbf16, #tpu.memory_space<vmem>>, vector<256x128xbf16>
    %cst_8 = arith.constant dense<0.000000e+00> : vector<128x128xf32>
    %10 = tpu.matmul %8, %9, %cst_8 {dimension_numbers = #tpu.dot_dimension_numbers<[1], [0], [0], [1], [0, 0, 1, 1], [], []>} : vector<128x256xbf16>, vector<256x128xbf16>, vector<128x128xf32> -> vector<128x128xf32>
    %c0_9 = arith.constant 0 : index
    %c0_10 = arith.constant 0 : index
    %11 = vector.load %arg5[%c0_9, %c0_10] : memref<1x128xf32, #tpu.memory_space<vmem>>, vector<1x128xf32>
    %12 = vector.broadcast %11 : vector<1x128xf32> to vector<128x128xf32>
    %13 = arith.addf %10, %12 : vector<128x128xf32>
    %cst_11 = arith.constant 0.000000e+00 : f32
    %14 = vector.broadcast %cst_11 : f32 to vector<128x128xf32>
    %15 = arith.maximumf %13, %14 : vector<128x128xf32>
    %16 = arith.truncf %15 : vector<128x128xf32> to vector<128x128xbf16>
    %c0_12 = arith.constant 0 : index
    %c0_13 = arith.constant 0 : index
    %17 = vector.load %arg6[%c0_12, %c0_13] : memref<128x128xbf16, #tpu.memory_space<vmem>>, vector<128x128xbf16>
    tpu.vector_store %arg6[%c0_12, %c0_13], %16 {strides = array<i32>} : memref<128x128xbf16, #tpu.memory_space<vmem>>, vector<128x128xbf16>,
    return
  }
  func.func @transform_0(%arg0: i32) -> (i32, i32) {
    %c0_i32 = arith.constant 0 : i32
    %c0_i32_0 = arith.constant 0 : i32
    return %arg0, %c0_i32 : i32, i32
  }
  func.func @transform_1(%arg0: i32) -> (i32, i32) {
    %c0_i32 = arith.constant 0 : i32
    %c0_i32_0 = arith.constant 0 : i32
    %c0_i32_1 = arith.constant 0 : i32
    return %c0_i32, %c0_i32_0 : i32, i32
  }
  func.func @transform_2(%arg0: i32) -> (i32, i32) {
    %c0_i32 = arith.constant 0 : i32
    %c0_i32_0 = arith.constant 0 : i32
    %c0_i32_1 = arith.constant 0 : i32
    return %c0_i32, %c0_i32_0 : i32, i32
  }
  func.func @transform_3(%arg0: i32) -> (i32, i32) {
    %c0_i32 = arith.constant 0 : i32
    %c0_i32_0 = arith.constant 0 : i32
    %c0_i32_1 = arith.constant 0 : i32
    return %c0_i32, %c0_i32_0 : i32, i32
  }
  func.func @transform_4(%arg0: i32) -> (i32, i32) {
    %c0_i32 = arith.constant 0 : i32
    %c0_i32_0 = arith.constant 0 : i32
    %c0_i32_1 = arith.constant 0 : i32
    return %c0_i32, %c0_i32_0 : i32, i32
  }
  func.func @transform_5(%arg0: i32) -> (i32, i32) {
    %c0_i32 = arith.constant 0 : i32
    %c0_i32_0 = arith.constant 0 : i32
    return %arg0, %c0_i32 : i32, i32
  }
}

module attributes {stable_mosaic.version = 11 : i64} {
  func.func @_matmul_bias_kernel(%arg0: i32, %arg1: memref<64x3200xbf16, #tpu.memory_space<vmem>>, %arg2: memref<3200x256xbf16, #tpu.memory_space<vmem>>, %arg3: memref<1x256xf32, #tpu.memory_space<vmem>>, %arg4: memref<64x256xbf16, #tpu.memory_space<vmem>>) attributes {dimension_semantics = [#tpu.dimension_semantics<parallel>], iteration_bounds = array<i64: 2>, scalar_prefetch = 0 : i64, scratch_operands = 0 : i64, tpu.core_type = #tpu.core_type<tc>, window_params = [{transform_indices = @transform_0, window_bounds = array<i64: 64, 3200>}, {pipeline_mode = #tpu.pipeline_mode<synchronous>, transform_indices = @transform_1, window_bounds = array<i64: 3200, 256>}, {pipeline_mode = #tpu.pipeline_mode<synchronous>, transform_indices = @transform_2, window_bounds = array<i64: 1, 256>}, {transform_indices = @transform_3, window_bounds = array<i64: 64, 256>}]} {
    %c0 = arith.constant 0 : index
    %c0_0 = arith.constant 0 : index
    %0 = vector.load %arg1[%c0, %c0_0] : memref<64x3200xbf16, #tpu.memory_space<vmem>>, vector<64x3200xbf16>
    %c0_1 = arith.constant 0 : index
    %c0_2 = arith.constant 0 : index
    %1 = vector.load %arg2[%c0_1, %c0_2] : memref<3200x256xbf16, #tpu.memory_space<vmem>>, vector<3200x256xbf16>
    %cst = arith.constant dense<0.000000e+00> : vector<64x256xf32>
    %2 = tpu.matmul %0, %1, %cst {dimension_numbers = #tpu.dot_dimension_numbers<[1], [0], [0], [1], [0, 0, 1, 1], [], []>} : vector<64x3200xbf16>, vector<3200x256xbf16>, vector<64x256xf32> -> vector<64x256xf32>
    %c0_3 = arith.constant 0 : index
    %c0_4 = arith.constant 0 : index
    %3 = vector.load %arg3[%c0_3, %c0_4] : memref<1x256xf32, #tpu.memory_space<vmem>>, vector<1x256xf32>
    %4 = vector.broadcast %3 : vector<1x256xf32> to vector<64x256xf32>
    %5 = arith.addf %2, %4 : vector<64x256xf32>
    %cst_5 = arith.constant 0.000000e+00 : f32
    %6 = vector.broadcast %cst_5 : f32 to vector<64x256xf32>
    %7 = arith.maximumf %5, %6 : vector<64x256xf32>
    %8 = arith.truncf %7 : vector<64x256xf32> to vector<64x256xbf16>
    %c0_6 = arith.constant 0 : index
    %c0_7 = arith.constant 0 : index
    %9 = vector.load %arg4[%c0_6, %c0_7] : memref<64x256xbf16, #tpu.memory_space<vmem>>, vector<64x256xbf16>
    tpu.vector_store %arg4[%c0_6, %c0_7], %8 {strides = array<i32>} : memref<64x256xbf16, #tpu.memory_space<vmem>>, vector<64x256xbf16>,
    return
  }
  func.func @transform_0(%arg0: i32) -> (i32, i32) {
    %c0_i32 = arith.constant 0 : i32
    %c0_i32_0 = arith.constant 0 : i32
    return %arg0, %c0_i32 : i32, i32
  }
  func.func @transform_1(%arg0: i32) -> (i32, i32) {
    %c0_i32 = arith.constant 0 : i32
    %c0_i32_0 = arith.constant 0 : i32
    %c0_i32_1 = arith.constant 0 : i32
    return %c0_i32, %c0_i32_0 : i32, i32
  }
  func.func @transform_2(%arg0: i32) -> (i32, i32) {
    %c0_i32 = arith.constant 0 : i32
    %c0_i32_0 = arith.constant 0 : i32
    %c0_i32_1 = arith.constant 0 : i32
    return %c0_i32, %c0_i32_0 : i32, i32
  }
  func.func @transform_3(%arg0: i32) -> (i32, i32) {
    %c0_i32 = arith.constant 0 : i32
    %c0_i32_0 = arith.constant 0 : i32
    return %arg0, %c0_i32 : i32, i32
  }
}

module attributes {stable_mosaic.version = 11 : i64} {
  func.func @_double_matmul_bias_kernel(%arg0: i32, %arg1: memref<128x128xbf16, #tpu.memory_space<vmem>>, %arg2: memref<128x128xbf16, #tpu.memory_space<vmem>>, %arg3: memref<1x128xf32, #tpu.memory_space<vmem>>, %arg4: memref<128x128xbf16, #tpu.memory_space<vmem>>, %arg5: memref<1x128xf32, #tpu.memory_space<vmem>>, %arg6: memref<128x128xbf16, #tpu.memory_space<vmem>>) attributes {dimension_semantics = [#tpu.dimension_semantics<parallel>], iteration_bounds = array<i64: 2>, scalar_prefetch = 0 : i64, scratch_operands = 0 : i64, tpu.core_type = #tpu.core_type<tc>, window_params = [{transform_indices = @transform_0, window_bounds = array<i64: 128, 128>}, {pipeline_mode = #tpu.pipeline_mode<synchronous>, transform_indices = @transform_1, window_bounds = array<i64: 128, 128>}, {pipeline_mode = #tpu.pipeline_mode<synchronous>, transform_indices = @transform_2, window_bounds = array<i64: 1, 128>}, {pipeline_mode = #tpu.pipeline_mode<synchronous>, transform_indices = @transform_3, window_bounds = array<i64: 128, 128>}, {pipeline_mode = #tpu.pipeline_mode<synchronous>, transform_indices = @transform_4, window_bounds = array<i64: 1, 128>}, {transform_indices = @transform_5, window_bounds = array<i64: 128, 128>}]} {
    %c0 = arith.constant 0 : index
    %c0_0 = arith.constant 0 : index
    %0 = vector.load %arg1[%c0, %c0_0] : memref<128x128xbf16, #tpu.memory_space<vmem>>, vector<128x128xbf16>
    %c0_1 = arith.constant 0 : index
    %c0_2 = arith.constant 0 : index
    %1 = vector.load %arg2[%c0_1, %c0_2] : memref<128x128xbf16, #tpu.memory_space<vmem>>, vector<128x128xbf16>
    %cst = arith.constant dense<0.000000e+00> : vector<128x128xf32>
    %2 = tpu.matmul %0, %1, %cst {dimension_numbers = #tpu.dot_dimension_numbers<[1], [0], [0], [1], [0, 0, 1, 1], [], []>} : vector<128x128xbf16>, vector<128x128xbf16>, vector<128x128xf32> -> vector<128x128xf32>
    %c0_3 = arith.constant 0 : index
    %c0_4 = arith.constant 0 : index
    %3 = vector.load %arg3[%c0_3, %c0_4] : memref<1x128xf32, #tpu.memory_space<vmem>>, vector<1x128xf32>
    %4 = vector.broadcast %3 : vector<1x128xf32> to vector<128x128xf32>
    %5 = arith.addf %2, %4 : vector<128x128xf32>
    %cst_5 = arith.constant 0.000000e+00 : f32
    %6 = vector.broadcast %cst_5 : f32 to vector<128x128xf32>
    %7 = arith.maximumf %5, %6 : vector<128x128xf32>
    %8 = arith.truncf %7 : vector<128x128xf32> to vector<128x128xbf16>
    %c0_6 = arith.constant 0 : index
    %c0_7 = arith.constant 0 : index
    %9 = vector.load %arg4[%c0_6, %c0_7] : memref<128x128xbf16, #tpu.memory_space<vmem>>, vector<128x128xbf16>
    %cst_8 = arith.constant dense<0.000000e+00> : vector<128x128xf32>
    %10 = tpu.matmul %8, %9, %cst_8 {dimension_numbers = #tpu.dot_dimension_numbers<[1], [0], [0], [1], [0, 0, 1, 1], [], []>} : vector<128x128xbf16>, vector<128x128xbf16>, vector<128x128xf32> -> vector<128x128xf32>
    %c0_9 = arith.constant 0 : index
    %c0_10 = arith.constant 0 : index
    %11 = vector.load %arg5[%c0_9, %c0_10] : memref<1x128xf32, #tpu.memory_space<vmem>>, vector<1x128xf32>
    %12 = vector.broadcast %11 : vector<1x128xf32> to vector<128x128xf32>
    %13 = arith.addf %10, %12 : vector<128x128xf32>
    %cst_11 = arith.constant 0.000000e+00 : f32
    %14 = vector.broadcast %cst_11 : f32 to vector<128x128xf32>
    %15 = arith.maximumf %13, %14 : vector<128x128xf32>
    %16 = arith.truncf %15 : vector<128x128xf32> to vector<128x128xbf16>
    %c0_12 = arith.constant 0 : index
    %c0_13 = arith.constant 0 : index
    %17 = vector.load %arg6[%c0_12, %c0_13] : memref<128x128xbf16, #tpu.memory_space<vmem>>, vector<128x128xbf16>
    tpu.vector_store %arg6[%c0_12, %c0_13], %16 {strides = array<i32>} : memref<128x128xbf16, #tpu.memory_space<vmem>>, vector<128x128xbf16>,
    return
  }
  func.func @transform_0(%arg0: i32) -> (i32, i32) {
    %c0_i32 = arith.constant 0 : i32
    %c0_i32_0 = arith.constant 0 : i32
    return %arg0, %c0_i32 : i32, i32
  }
  func.func @transform_1(%arg0: i32) -> (i32, i32) {
    %c0_i32 = arith.constant 0 : i32
    %c0_i32_0 = arith.constant 0 : i32
    %c0_i32_1 = arith.constant 0 : i32
    return %c0_i32, %c0_i32_0 : i32, i32
  }
  func.func @transform_2(%arg0: i32) -> (i32, i32) {
    %c0_i32 = arith.constant 0 : i32
    %c0_i32_0 = arith.constant 0 : i32
    %c0_i32_1 = arith.constant 0 : i32
    return %c0_i32, %c0_i32_0 : i32, i32
  }
  func.func @transform_3(%arg0: i32) -> (i32, i32) {
    %c0_i32 = arith.constant 0 : i32
    %c0_i32_0 = arith.constant 0 : i32
    %c0_i32_1 = arith.constant 0 : i32
    return %c0_i32, %c0_i32_0 : i32, i32
  }
  func.func @transform_4(%arg0: i32) -> (i32, i32) {
    %c0_i32 = arith.constant 0 : i32
    %c0_i32_0 = arith.constant 0 : i32
    %c0_i32_1 = arith.constant 0 : i32
    return %c0_i32, %c0_i32_0 : i32, i32
  }
  func.func @transform_5(%arg0: i32) -> (i32, i32) {
    %c0_i32 = arith.constant 0 : i32
    %c0_i32_0 = arith.constant 0 : i32
    return %arg0, %c0_i32 : i32, i32
  }
}

module attributes {stable_mosaic.version = 11 : i64} {
  func.func @_double_matmul_bias_kernel(%arg0: i32, %arg1: memref<16x1152xbf16, #tpu.memory_space<vmem>>, %arg2: memref<1152x128xbf16, #tpu.memory_space<vmem>>, %arg3: memref<1x128xf32, #tpu.memory_space<vmem>>, %arg4: memref<128x128xbf16, #tpu.memory_space<vmem>>, %arg5: memref<1x128xf32, #tpu.memory_space<vmem>>, %arg6: memref<16x128xbf16, #tpu.memory_space<vmem>>) attributes {dimension_semantics = [#tpu.dimension_semantics<parallel>], iteration_bounds = array<i64: 2>, scalar_prefetch = 0 : i64, scratch_operands = 0 : i64, tpu.core_type = #tpu.core_type<tc>, window_params = [{transform_indices = @transform_0, window_bounds = array<i64: 16, 1152>}, {pipeline_mode = #tpu.pipeline_mode<synchronous>, transform_indices = @transform_1, window_bounds = array<i64: 1152, 128>}, {pipeline_mode = #tpu.pipeline_mode<synchronous>, transform_indices = @transform_2, window_bounds = array<i64: 1, 128>}, {pipeline_mode = #tpu.pipeline_mode<synchronous>, transform_indices = @transform_3, window_bounds = array<i64: 128, 128>}, {pipeline_mode = #tpu.pipeline_mode<synchronous>, transform_indices = @transform_4, window_bounds = array<i64: 1, 128>}, {transform_indices = @transform_5, window_bounds = array<i64: 16, 128>}]} {
    %c0 = arith.constant 0 : index
    %c0_0 = arith.constant 0 : index
    %0 = vector.load %arg1[%c0, %c0_0] : memref<16x1152xbf16, #tpu.memory_space<vmem>>, vector<16x1152xbf16>
    %c0_1 = arith.constant 0 : index
    %c0_2 = arith.constant 0 : index
    %1 = vector.load %arg2[%c0_1, %c0_2] : memref<1152x128xbf16, #tpu.memory_space<vmem>>, vector<1152x128xbf16>
    %cst = arith.constant dense<0.000000e+00> : vector<16x128xf32>
    %2 = tpu.matmul %0, %1, %cst {dimension_numbers = #tpu.dot_dimension_numbers<[1], [0], [0], [1], [0, 0, 1, 1], [], []>} : vector<16x1152xbf16>, vector<1152x128xbf16>, vector<16x128xf32> -> vector<16x128xf32>
    %c0_3 = arith.constant 0 : index
    %c0_4 = arith.constant 0 : index
    %3 = vector.load %arg3[%c0_3, %c0_4] : memref<1x128xf32, #tpu.memory_space<vmem>>, vector<1x128xf32>
    %4 = vector.broadcast %3 : vector<1x128xf32> to vector<16x128xf32>
    %5 = arith.addf %2, %4 : vector<16x128xf32>
    %cst_5 = arith.constant 0.000000e+00 : f32
    %6 = vector.broadcast %cst_5 : f32 to vector<16x128xf32>
    %7 = arith.maximumf %5, %6 : vector<16x128xf32>
    %8 = arith.truncf %7 : vector<16x128xf32> to vector<16x128xbf16>
    %c0_6 = arith.constant 0 : index
    %c0_7 = arith.constant 0 : index
    %9 = vector.load %arg4[%c0_6, %c0_7] : memref<128x128xbf16, #tpu.memory_space<vmem>>, vector<128x128xbf16>
    %cst_8 = arith.constant dense<0.000000e+00> : vector<16x128xf32>
    %10 = tpu.matmul %8, %9, %cst_8 {dimension_numbers = #tpu.dot_dimension_numbers<[1], [0], [0], [1], [0, 0, 1, 1], [], []>} : vector<16x128xbf16>, vector<128x128xbf16>, vector<16x128xf32> -> vector<16x128xf32>
    %c0_9 = arith.constant 0 : index
    %c0_10 = arith.constant 0 : index
    %11 = vector.load %arg5[%c0_9, %c0_10] : memref<1x128xf32, #tpu.memory_space<vmem>>, vector<1x128xf32>
    %12 = vector.broadcast %11 : vector<1x128xf32> to vector<16x128xf32>
    %13 = arith.addf %10, %12 : vector<16x128xf32>
    %cst_11 = arith.constant 0.000000e+00 : f32
    %14 = vector.broadcast %cst_11 : f32 to vector<16x128xf32>
    %15 = arith.maximumf %13, %14 : vector<16x128xf32>
    %16 = arith.truncf %15 : vector<16x128xf32> to vector<16x128xbf16>
    %c0_12 = arith.constant 0 : index
    %c0_13 = arith.constant 0 : index
    %17 = vector.load %arg6[%c0_12, %c0_13] : memref<16x128xbf16, #tpu.memory_space<vmem>>, vector<16x128xbf16>
    tpu.vector_store %arg6[%c0_12, %c0_13], %16 {strides = array<i32>} : memref<16x128xbf16, #tpu.memory_space<vmem>>, vector<16x128xbf16>,
    return
  }
  func.func @transform_0(%arg0: i32) -> (i32, i32) {
    %c0_i32 = arith.constant 0 : i32
    %c0_i32_0 = arith.constant 0 : i32
    return %arg0, %c0_i32 : i32, i32
  }
  func.func @transform_1(%arg0: i32) -> (i32, i32) {
    %c0_i32 = arith.constant 0 : i32
    %c0_i32_0 = arith.constant 0 : i32
    %c0_i32_1 = arith.constant 0 : i32
    return %c0_i32, %c0_i32_0 : i32, i32
  }
  func.func @transform_2(%arg0: i32) -> (i32, i32) {
    %c0_i32 = arith.constant 0 : i32
    %c0_i32_0 = arith.constant 0 : i32
    %c0_i32_1 = arith.constant 0 : i32
    return %c0_i32, %c0_i32_0 : i32, i32
  }
  func.func @transform_3(%arg0: i32) -> (i32, i32) {
    %c0_i32 = arith.constant 0 : i32
    %c0_i32_0 = arith.constant 0 : i32
    %c0_i32_1 = arith.constant 0 : i32
    return %c0_i32, %c0_i32_0 : i32, i32
  }
  func.func @transform_4(%arg0: i32) -> (i32, i32) {
    %c0_i32 = arith.constant 0 : i32
    %c0_i32_0 = arith.constant 0 : i32
    %c0_i32_1 = arith.constant 0 : i32
    return %c0_i32, %c0_i32_0 : i32, i32
  }
  func.func @transform_5(%arg0: i32) -> (i32, i32) {
    %c0_i32 = arith.constant 0 : i32
    %c0_i32_0 = arith.constant 0 : i32
    return %arg0, %c0_i32 : i32, i32
  }
}

</mosaic_0001>

<bundles_post_ra>
// kernel: nin_hyperdecisionet_forward.5
= control target key start
LH: loop header
LB: loop body
LE: loop exit
PB: predicated region body
PF: predicated region fallthrough
CT: control target
= control target key end

     0   :  { %s995_s12 = smov 0   ;;  %s1237_s0 = inlined_call_operand.vmem [shape: bf16[512,128], index: 0, kind: input, shape index: {}]   ;;  %s1238_s1 = inlined_call_operand.vmem [shape: bf16[128,256], index: 1, kind: input, shape index: {}]   ;;  %s1239_s2 = inlined_call_operand.vmem [shape: f32[1,256], index: 2, kind: input, shape index: {}]   ;;  %s1240_s3 = inlined_call_operand.vmem [shape: bf16[512,256], index: 3, kind: output, shape index: {}]  }
   0x1 LB: > { %s770_s13 = sadd.s32 4294967295, %s973_s12   ;;  %p774_p0 = scmp.ge.s32.totalorder %s973_s12, 1  ;;  %s973_s12 = sphi %s995_s12, %s13_s12  }
   0x2   : > { %p138_p1 = scmp.lt.s32.totalorder %s973_s12, 3 }
   0x4   : > { %p139_p2 = pnand %p774_p0, %p138_p1 }
   0x5   : > { %s775_s29 = sshll.u32 (!%p139_p2), %s770_s13, 5 }
   0x6   : > { %142 = sbr.rel (%p139_p2) target bundleno = 305 (0x131), region = 32  ;;  %p164_p3 = scmp.lt.s32.totalorder (!%p139_p2), %s775_s29, 63 }
   0xb   : > { %v902_v0 = vld [vmem:[%s1238_s1 + $0x70] sm:$0xf]  ;;  %v942_v1 = vld [vmem:[%s1238_s1 + $0x74] sm:$0xf0]  ;;  %v941_v2 = vld [vmem:[%s1238_s1 + $0x74] sm:$0xf] }
   0xc   : > { %v903_v3 = vor.u32 %v942_v1, %v902_v0  ;;  %v904_v4 = vld [vmem:[%s1238_s1 + $0x78] sm:$0xf0]  ;;  %v894_v5 = vld [vmem:[%s1238_s1 + $0x60] sm:$0xf]  ;;  %v940_v6 = vld [vmem:[%s1238_s1 + $0x64] sm:$0xf0] }
   0xd   : > { %v907_v7 = vor.u32 %v941_v2, %v904_v4  ;;  %v939_v8 = vld [vmem:[%s1238_s1 + $0x64] sm:$0xf]  ;;  %v896_v9 = vld [vmem:[%s1238_s1 + $0x68] sm:$0xf0]  ;;  %v895_v10 = vor.u32 %v940_v6, %v894_v5  ;;  %v886_v12 = vld [vmem:[%s1238_s1 + $0x50] sm:$0xf] }
   0xe   : > { %406 = vmatpush.bf16.msra.mxu0 %v903_v3  ;;  %943 = vmatpush.bf16.msra.mxu2 %v903_v3  ;;  %v899_v11 = vor.u32 %v939_v8, %v896_v9  ;;  %v938_v13 = vld [vmem:[%s1238_s1 + $0x54] sm:$0xf0]  ;;  %v937_v14 = vld [vmem:[%s1238_s1 + $0x54] sm:$0xf]  ;;  %v888_v15 = vld [vmem:[%s1238_s1 + $0x58] sm:$0xf0] }
   0xf   : > { %495 = vmatpush.bf16.msra.mxu1 %v907_v7  ;;  %951 = vmatpush.bf16.msra.mxu3 %v907_v7  ;;  %v887_v16 = vor.u32 %v938_v13, %v886_v12  ;;  %v891_v17 = vor.u32 %v937_v14, %v888_v15  ;;  %v878_v18 = vld [vmem:[%s1238_s1 + $0x40] sm:$0xf]  ;;  %v936_v19 = vld [vmem:[%s1238_s1 + $0x44] sm:$0xf0]  ;;  %v935_v20 = vld [vmem:[%s1238_s1 + $0x44] sm:$0xf] }
  0x10   : > { %v880_v21 = vld [vmem:[%s1238_s1 + $0x48] sm:$0xf0]  ;;  %v879_v22 = vor.u32 %v936_v19, %v878_v18  ;;  %v870_v24 = vld [vmem:[%s1238_s1 + $0x30] sm:$0xf]  ;;  %v934_v25 = vld [vmem:[%s1238_s1 + $0x34] sm:$0xf0] }
  0x11   : > { %v883_v23 = vor.u32 %v935_v20, %v880_v21  ;;  %v933_v26 = vld [vmem:[%s1238_s1 + $0x34] sm:$0xf]  ;;  %v872_v27 = vld [vmem:[%s1238_s1 + $0x38] sm:$0xf0]  ;;  %v871_v28 = vor.u32 %v934_v25, %v870_v24  ;;  %v862_v30 = vld [vmem:[%s1238_s1 + $0x20] sm:$0xf] }
  0x12   : > { %407 = vmatpush.bf16.msra.mxu0 %v895_v10  ;;  %944 = vmatpush.bf16.msra.mxu2 %v895_v10  ;;  %v875_v29 = vor.u32 %v933_v26, %v872_v27  ;;  %v932_v31 = vld [vmem:[%s1238_s1 + $0x24] sm:$0xf0]  ;;  %v931_v32 = vld [vmem:[%s1238_s1 + $0x24] sm:$0xf]  ;;  %v864_v33 = vld [vmem:[%s1238_s1 + $0x28] sm:$0xf0] }
  0x13   : > { %496 = vmatpush.bf16.msra.mxu1 %v899_v11  ;;  %952 = vmatpush.bf16.msra.mxu3 %v899_v11  ;;  %v863_v34 = vor.u32 %v932_v31, %v862_v30  ;;  %v867_v35 = vor.u32 %v931_v32, %v864_v33  ;;  %v854_v36 = vld [vmem:[%s1238_s1 + $0x10] sm:$0xf]  ;;  %v930_v37 = vld [vmem:[%s1238_s1 + $0x14] sm:$0xf0]  ;;  %s1242_s29 = smov (!%p164_p3, %s775_s29), 63 }
  0x14   : > { %v929_v38 = vld [vmem:[%s1238_s1 + $0x14] sm:$0xf]  ;;  %v856_v39 = vld [vmem:[%s1238_s1 + $0x18] sm:$0xf0]  ;;  %v855_v40 = vor.u32 %v930_v37, %v854_v36  ;;  %v846_v42 = vld [vmem:[%s1238_s1] sm:$0xf] }
  0x15   : > { %v859_v41 = vor.u32 %v929_v38, %v856_v39  ;;  %v928_v43 = vld [vmem:[%s1238_s1 + $0x4] sm:$0xf0]  ;;  %s776_s24 = sshll.u32 %s1242_s29, 2  ;;  %v927_v44 = vld [vmem:[%s1238_s1 + $0x4] sm:$0xf]  ;;  %s910_s8 = sshll.u32 %s1242_s29, 3 }
  0x16   : > { %408 = vmatpush.bf16.msra.mxu0 %v887_v16  ;;  %945 = vmatpush.bf16.msra.mxu2 %v887_v16  ;;  %v848_v45 = vld [vmem:[%s1238_s1 + $0x8] sm:$0xf0]  ;;  %v847_v46 = vor.u32 %v928_v43, %v846_v42  ;;  %s1107_s5 = scalar_lea.vmem %s1237_s0, %s776_s24  ;;  %v224_v0 = vld [vmem:[%s1239_s2] sm:$0x3]  ;;  %s1138_s10 = scalar_lea.vmem %s1240_s3, %s910_s8 }
  0x17   : > { %497 = vmatpush.bf16.msra.mxu1 %v891_v17  ;;  %953 = vmatpush.bf16.msra.mxu3 %v891_v17  ;;  %v851_v47 = vor.u32 %v927_v44, %v848_v45  ;;  %v911_v48 = vld [vmem:[%s1107_s5] sm:$0xff]  ;;  %v912_v50 = vld [vmem:[%s1107_s5 + $0x8] sm:$0xff]  ;;  %v913_v52 = vld [vmem:[%s1107_s5 + $0x10] sm:$0xff]  ;;  %v1128_v1 = vperm.slane %v224_v0, 0  ;;  %v1130_v2 = vperm.slane %v224_v0, 1 }
  0x18   : > { %v919_v49 = vld [vmem:[%s1107_s5 + $0x40] sm:$0xff]  ;;  %v920_v51 = vld [vmem:[%s1107_s5 + $0x48] sm:$0xff]  ;;  %v921_v53 = vld [vmem:[%s1107_s5 + $0x50] sm:$0xff] }
  0x19   : > { %v914_v54 = vld [vmem:[%s1107_s5 + $0x18] sm:$0xff]  ;;  %v915_v56 = vld [vmem:[%s1107_s5 + $0x20] sm:$0xff]  ;;  %v916_v58 = vld [vmem:[%s1107_s5 + $0x28] sm:$0xff] }
  0x1a   : > { %409 = vmatpush.bf16.msra.mxu0 %v879_v22  ;;  %946 = vmatpush.bf16.msra.mxu2 %v879_v22  ;;  %v922_v55 = vld [vmem:[%s1107_s5 + $0x58] sm:$0xff]  ;;  %v923_v57 = vld [vmem:[%s1107_s5 + $0x60] sm:$0xff]  ;;  %v924_v59 = vld [vmem:[%s1107_s5 + $0x68] sm:$0xff] }
  0x1b   : > { %498 = vmatpush.bf16.msra.mxu1 %v883_v23  ;;  %954 = vmatpush.bf16.msra.mxu3 %v883_v23  ;;  %v917_v60 = vld [vmem:[%s1107_s5 + $0x30] sm:$0xff]  ;;  %v918_v62 = vld [vmem:[%s1107_s5 + $0x38] sm:$0xff] }
  0x1c   : > { %v925_v61 = vld [vmem:[%s1107_s5 + $0x70] sm:$0xff]  ;;  %v926_v63 = vld [vmem:[%s1107_s5 + $0x78] sm:$0xff] }
  0x1e   : > { %410 = vmatpush.bf16.msra.mxu0 %v871_v28  ;;  %947 = vmatpush.bf16.msra.mxu2 %v871_v28 }
  0x1f   : > { %499 = vmatpush.bf16.msra.mxu1 %v875_v29  ;;  %955 = vmatpush.bf16.msra.mxu3 %v875_v29 }
  0x22   : > { %411 = vmatpush.bf16.msra.mxu0 %v863_v34  ;;  %948 = vmatpush.bf16.msra.mxu2 %v863_v34 }
  0x23   : > { %500 = vmatpush.bf16.msra.mxu1 %v867_v35  ;;  %956 = vmatpush.bf16.msra.mxu3 %v867_v35 }
  0x26   : > { %412 = vmatpush.bf16.msra.mxu0 %v855_v40  ;;  %949 = vmatpush.bf16.msra.mxu2 %v855_v40 }
  0x27   : > { %501 = vmatpush.bf16.msra.mxu1 %v859_v41  ;;  %957 = vmatpush.bf16.msra.mxu3 %v859_v41 }
  0x2a   : > { %413 = vmatpush.bf16.msra.mxu0 %v847_v46  ;;  %950 = vmatpush.bf16.msra.mxu2 %v847_v46 }
  0x2b   : > { %502 = vmatpush.bf16.msra.mxu1 %v851_v47  ;;  %958 = vmatpush.bf16.msra.mxu3 %v851_v47 }
  0x2d   : > { %414 = vmatmul.bf16.vlgmr.msra.gmra.mxu0 %v911_v48  ;;  %454 = vmatmul.bf16.vlgmr.msra.gmra.mxu2 %v919_v49 }
  0x2e   : > { %503 = vmatmul.bf16.vlgmr.msra.gmra.mxu1 %v911_v48  ;;  %543 = vmatmul.bf16.vlgmr.msra.gmra.mxu3 %v919_v49 }
  0x3d   : > { %419 = vmatmul.bf16.gmra.mxu0 %v912_v50  ;;  %459 = vmatmul.bf16.gmra.mxu2 %v920_v51 }
  0x3e   : > { %508 = vmatmul.bf16.gmra.mxu1 %v912_v50  ;;  %548 = vmatmul.bf16.gmra.mxu3 %v920_v51 }
  0x4d   : > { %424 = vmatmul.bf16.gmra.mxu0 %v913_v52  ;;  %464 = vmatmul.bf16.gmra.mxu2 %v921_v53 }
  0x4e   : > { %513 = vmatmul.bf16.gmra.mxu1 %v913_v52  ;;  %553 = vmatmul.bf16.gmra.mxu3 %v921_v53 }
  0x5d   : > { %429 = vmatmul.bf16.gmra.mxu0 %v914_v54  ;;  %469 = vmatmul.bf16.gmra.mxu2 %v922_v55 }
  0x5e   : > { %518 = vmatmul.bf16.gmra.mxu1 %v914_v54  ;;  %558 = vmatmul.bf16.gmra.mxu3 %v922_v55 }
  0x6d   : > { %434 = vmatmul.bf16.gmra.mxu0 %v915_v56  ;;  %474 = vmatmul.bf16.gmra.mxu2 %v923_v57 }
  0x6e   : > { %523 = vmatmul.bf16.gmra.mxu1 %v915_v56  ;;  %563 = vmatmul.bf16.gmra.mxu3 %v923_v57 }
  0x7d   : > { %439 = vmatmul.bf16.gmra.mxu0 %v916_v58  ;;  %479 = vmatmul.bf16.gmra.mxu2 %v924_v59 }
  0x7e   : > { %528 = vmatmul.bf16.gmra.mxu1 %v916_v58  ;;  %568 = vmatmul.bf16.gmra.mxu3 %v924_v59 }
  0x8d   : > { %444 = vmatmul.bf16.gmra.mxu0 %v917_v60  ;;  %484 = vmatmul.bf16.gmra.mxu2 %v925_v61 }
  0x8e   : > { %533 = vmatmul.bf16.gmra.mxu1 %v917_v60  ;;  %573 = vmatmul.bf16.gmra.mxu3 %v925_v61 }
  0x9d   : > { %449 = vmatmul.bf16.gmra.mxu0 %v918_v62  ;;  %489 = vmatmul.bf16.gmra.mxu2 %v926_v63 }
  0x9e   : > { %538 = vmatmul.bf16.gmra.mxu1 %v918_v62  ;;  %578 = vmatmul.bf16.gmra.mxu3 %v926_v63 }
  0xaa   : > { %v415_v3 = vpop.f32.mrf.mxu0 }
  0xab   : > { %v416_v4 = vadd.f32 %v415_v3, %v1128_v1  ;;  %v504_v5 = vpop.f32.mrf.mxu1 }
  0xac   : > { %v505_v6 = vadd.f32 %v504_v5, %v1130_v2 }
  0xad   : > { %v584_v7 = vmax.f32 %v416_v4, 0.0 }
  0xae   : > { %v585_v8 = vmax.f32 %v505_v6, 0.0 }
  0xb0   : > { %v648_v9 = vpack.c.bf16 %v585_v8, %v584_v7  ;;  %v455_v10 = vpop.f32.mrf.mxu2 }
  0xb1   : > { %v456_v11 = vadd.f32 %v455_v10, %v1128_v1  ;;  %v544_v12 = vpop.f32.mrf.mxu3 }
  0xb2   : > { %680 = vst [vmem:[%s1138_s10] sm:$0xff] %v648_v9  ;;  %v545_v13 = vadd.f32 %v544_v12, %v1130_v2  ;;  %v417_v14 = vpop.f32.mrf.mxu0 }
  0xb3   : > { %v616_v15 = vmax.f32 %v456_v11, 0.0  ;;  %v418_v16 = vadd.f32 %v417_v14, %v1128_v1  ;;  %v506_v17 = vpop.f32.mrf.mxu1 }
  0xb4   : > { %v617_v18 = vmax.f32 %v545_v13, 0.0  ;;  %v507_v19 = vadd.f32 %v506_v17, %v1130_v2 }
  0xb5   : > { %v586_v20 = vmax.f32 %v418_v16, 0.0 }
  0xb6   : > { %v664_v21 = vpack.c.bf16 %v617_v18, %v616_v15  ;;  %v587_v22 = vmax.f32 %v507_v19, 0.0 }
  0xb8   : > { %696 = vst [vmem:[%s1138_s10 + $0x80] sm:$0xff] %v664_v21  ;;  %v649_v23 = vpack.c.bf16 %v587_v22, %v586_v20  ;;  %v457_v24 = vpop.f32.mrf.mxu2 }
  0xb9   : > { %v458_v25 = vadd.f32 %v457_v24, %v1128_v1  ;;  %v546_v26 = vpop.f32.mrf.mxu3 }
  0xba   : > { %681 = vst [vmem:[%s1138_s10 + $0x8] sm:$0xff] %v649_v23  ;;  %v547_v27 = vadd.f32 %v546_v26, %v1130_v2  ;;  %v420_v28 = vpop.f32.mrf.mxu0 }
  0xbb   : > { %v618_v29 = vmax.f32 %v458_v25, 0.0  ;;  %v421_v30 = vadd.f32 %v420_v28, %v1128_v1  ;;  %v509_v31 = vpop.f32.mrf.mxu1 }
  0xbc   : > { %v619_v32 = vmax.f32 %v547_v27, 0.0  ;;  %v510_v33 = vadd.f32 %v509_v31, %v1130_v2 }
  0xbd   : > { %v588_v34 = vmax.f32 %v421_v30, 0.0 }
  0xbe   : > { %v665_v35 = vpack.c.bf16 %v619_v32, %v618_v29  ;;  %v589_v36 = vmax.f32 %v510_v33, 0.0 }
  0xc0   : > { %697 = vst [vmem:[%s1138_s10 + $0x88] sm:$0xff] %v665_v35  ;;  %v650_v37 = vpack.c.bf16 %v589_v36, %v588_v34  ;;  %v460_v38 = vpop.f32.mrf.mxu2 }
  0xc1   : > { %v461_v39 = vadd.f32 %v460_v38, %v1128_v1  ;;  %v549_v40 = vpop.f32.mrf.mxu3 }
  0xc2   : > { %682 = vst [vmem:[%s1138_s10 + $0x10] sm:$0xff] %v650_v37  ;;  %v550_v41 = vadd.f32 %v549_v40, %v1130_v2  ;;  %v422_v42 = vpop.f32.mrf.mxu0 }
  0xc3   : > { %v620_v43 = vmax.f32 %v461_v39, 0.0  ;;  %v423_v44 = vadd.f32 %v422_v42, %v1128_v1  ;;  %v511_v45 = vpop.f32.mrf.mxu1 }
  0xc4   : > { %v621_v46 = vmax.f32 %v550_v41, 0.0  ;;  %v512_v47 = vadd.f32 %v511_v45, %v1130_v2 }
  0xc5   : > { %v590_v48 = vmax.f32 %v423_v44, 0.0 }
  0xc6   : > { %v666_v49 = vpack.c.bf16 %v621_v46, %v620_v43  ;;  %v591_v50 = vmax.f32 %v512_v47, 0.0 }
  0xc8   : > { %698 = vst [vmem:[%s1138_s10 + $0x90] sm:$0xff] %v666_v49  ;;  %v651_v51 = vpack.c.bf16 %v591_v50, %v590_v48  ;;  %v462_v52 = vpop.f32.mrf.mxu2 }
  0xc9   : > { %v463_v53 = vadd.f32 %v462_v52, %v1128_v1  ;;  %v551_v54 = vpop.f32.mrf.mxu3 }
  0xca   : > { %683 = vst [vmem:[%s1138_s10 + $0x18] sm:$0xff] %v651_v51  ;;  %v552_v55 = vadd.f32 %v551_v54, %v1130_v2  ;;  %v425_v56 = vpop.f32.mrf.mxu0 }
  0xcb   : > { %v622_v57 = vmax.f32 %v463_v53, 0.0  ;;  %v426_v58 = vadd.f32 %v425_v56, %v1128_v1  ;;  %v514_v59 = vpop.f32.mrf.mxu1 }
  0xcc   : > { %v623_v60 = vmax.f32 %v552_v55, 0.0  ;;  %v515_v61 = vadd.f32 %v514_v59, %v1130_v2 }
  0xcd   : > { %v592_v62 = vmax.f32 %v426_v58, 0.0 }
  0xce   : > { %v667_v63 = vpack.c.bf16 %v623_v60, %v622_v57  ;;  %v593_v0 = vmax.f32 %v515_v61, 0.0 }
  0xd0   : > { %699 = vst [vmem:[%s1138_s10 + $0x98] sm:$0xff] %v667_v63  ;;  %v652_v3 = vpack.c.bf16 %v593_v0, %v592_v62  ;;  %v465_v4 = vpop.f32.mrf.mxu2 }
  0xd1   : > { %v466_v5 = vadd.f32 %v465_v4, %v1128_v1  ;;  %v554_v6 = vpop.f32.mrf.mxu3 }
  0xd2   : > { %684 = vst [vmem:[%s1138_s10 + $0x20] sm:$0xff] %v652_v3  ;;  %v555_v7 = vadd.f32 %v554_v6, %v1130_v2  ;;  %v427_v8 = vpop.f32.mrf.mxu0 }
  0xd3   : > { %v624_v9 = vmax.f32 %v466_v5, 0.0  ;;  %v428_v10 = vadd.f32 %v427_v8, %v1128_v1  ;;  %v516_v11 = vpop.f32.mrf.mxu1 }
  0xd4   : > { %v625_v12 = vmax.f32 %v555_v7, 0.0  ;;  %v517_v13 = vadd.f32 %v516_v11, %v1130_v2 }
  0xd5   : > { %v594_v14 = vmax.f32 %v428_v10, 0.0 }
  0xd6   : > { %v668_v15 = vpack.c.bf16 %v625_v12, %v624_v9  ;;  %v595_v16 = vmax.f32 %v517_v13, 0.0 }
  0xd8   : > { %700 = vst [vmem:[%s1138_s10 + $0xa0] sm:$0xff] %v668_v15  ;;  %v653_v17 = vpack.c.bf16 %v595_v16, %v594_v14  ;;  %v467_v18 = vpop.f32.mrf.mxu2 }
  0xd9   : > { %v468_v19 = vadd.f32 %v467_v18, %v1128_v1  ;;  %v556_v20 = vpop.f32.mrf.mxu3 }
  0xda   : > { %685 = vst [vmem:[%s1138_s10 + $0x28] sm:$0xff] %v653_v17  ;;  %v557_v21 = vadd.f32 %v556_v20, %v1130_v2  ;;  %v430_v22 = vpop.f32.mrf.mxu0 }
  0xdb   : > { %v626_v23 = vmax.f32 %v468_v19, 0.0  ;;  %v431_v24 = vadd.f32 %v430_v22, %v1128_v1  ;;  %v519_v25 = vpop.f32.mrf.mxu1 }
  0xdc   : > { %v627_v26 = vmax.f32 %v557_v21, 0.0  ;;  %v520_v27 = vadd.f32 %v519_v25, %v1130_v2 }
  0xdd   : > { %v596_v28 = vmax.f32 %v431_v24, 0.0 }
  0xde   : > { %v669_v29 = vpack.c.bf16 %v627_v26, %v626_v23  ;;  %v597_v30 = vmax.f32 %v520_v27, 0.0 }
  0xe0   : > { %701 = vst [vmem:[%s1138_s10 + $0xa8] sm:$0xff] %v669_v29  ;;  %v654_v31 = vpack.c.bf16 %v597_v30, %v596_v28  ;;  %v470_v32 = vpop.f32.mrf.mxu2 }
  0xe1   : > { %v471_v33 = vadd.f32 %v470_v32, %v1128_v1  ;;  %v559_v34 = vpop.f32.mrf.mxu3 }
  0xe2   : > { %686 = vst [vmem:[%s1138_s10 + $0x30] sm:$0xff] %v654_v31  ;;  %v560_v35 = vadd.f32 %v559_v34, %v1130_v2  ;;  %v432_v36 = vpop.f32.mrf.mxu0 }
  0xe3   : > { %v628_v37 = vmax.f32 %v471_v33, 0.0  ;;  %v433_v38 = vadd.f32 %v432_v36, %v1128_v1  ;;  %v521_v39 = vpop.f32.mrf.mxu1 }
  0xe4   : > { %v629_v40 = vmax.f32 %v560_v35, 0.0  ;;  %v522_v41 = vadd.f32 %v521_v39, %v1130_v2 }
  0xe5   : > { %v598_v42 = vmax.f32 %v433_v38, 0.0 }
  0xe6   : > { %v670_v43 = vpack.c.bf16 %v629_v40, %v628_v37  ;;  %v599_v44 = vmax.f32 %v522_v41, 0.0 }
  0xe8   : > { %702 = vst [vmem:[%s1138_s10 + $0xb0] sm:$0xff] %v670_v43  ;;  %v655_v45 = vpack.c.bf16 %v599_v44, %v598_v42  ;;  %v472_v46 = vpop.f32.mrf.mxu2 }
  0xe9   : > { %v473_v47 = vadd.f32 %v472_v46, %v1128_v1  ;;  %v561_v48 = vpop.f32.mrf.mxu3 }
  0xea   : > { %687 = vst [vmem:[%s1138_s10 + $0x38] sm:$0xff] %v655_v45  ;;  %v562_v49 = vadd.f32 %v561_v48, %v1130_v2  ;;  %v435_v50 = vpop.f32.mrf.mxu0 }
  0xeb   : > { %v630_v51 = vmax.f32 %v473_v47, 0.0  ;;  %v436_v52 = vadd.f32 %v435_v50, %v1128_v1  ;;  %v524_v53 = vpop.f32.mrf.mxu1 }
  0xec   : > { %v631_v54 = vmax.f32 %v562_v49, 0.0  ;;  %v525_v55 = vadd.f32 %v524_v53, %v1130_v2 }
  0xed   : > { %v600_v56 = vmax.f32 %v436_v52, 0.0 }
  0xee   : > { %v671_v57 = vpack.c.bf16 %v631_v54, %v630_v51  ;;  %v601_v58 = vmax.f32 %v525_v55, 0.0 }
  0xf0   : > { %703 = vst [vmem:[%s1138_s10 + $0xb8] sm:$0xff] %v671_v57  ;;  %v656_v59 = vpack.c.bf16 %v601_v58, %v600_v56  ;;  %v475_v60 = vpop.f32.mrf.mxu2 }
  0xf1   : > { %v476_v61 = vadd.f32 %v475_v60, %v1128_v1  ;;  %v564_v62 = vpop.f32.mrf.mxu3 }
  0xf2   : > { %688 = vst [vmem:[%s1138_s10 + $0x40] sm:$0xff] %v656_v59  ;;  %v565_v63 = vadd.f32 %v564_v62, %v1130_v2  ;;  %v437_v0 = vpop.f32.mrf.mxu0 }
  0xf3   : > { %v632_v3 = vmax.f32 %v476_v61, 0.0  ;;  %v438_v4 = vadd.f32 %v437_v0, %v1128_v1  ;;  %v526_v5 = vpop.f32.mrf.mxu1 }
  0xf4   : > { %v633_v6 = vmax.f32 %v565_v63, 0.0  ;;  %v527_v7 = vadd.f32 %v526_v5, %v1130_v2 }
  0xf5   : > { %v602_v8 = vmax.f32 %v438_v4, 0.0 }
  0xf6   : > { %v672_v9 = vpack.c.bf16 %v633_v6, %v632_v3  ;;  %v603_v10 = vmax.f32 %v527_v7, 0.0 }
  0xf8   : > { %704 = vst [vmem:[%s1138_s10 + $0xc0] sm:$0xff] %v672_v9  ;;  %v657_v11 = vpack.c.bf16 %v603_v10, %v602_v8  ;;  %v477_v12 = vpop.f32.mrf.mxu2 }
  0xf9   : > { %v478_v13 = vadd.f32 %v477_v12, %v1128_v1  ;;  %v566_v14 = vpop.f32.mrf.mxu3 }
  0xfa   : > { %689 = vst [vmem:[%s1138_s10 + $0x48] sm:$0xff] %v657_v11  ;;  %v567_v15 = vadd.f32 %v566_v14, %v1130_v2  ;;  %v440_v16 = vpop.f32.mrf.mxu0 }
  0xfb   : > { %v634_v17 = vmax.f32 %v478_v13, 0.0  ;;  %v441_v18 = vadd.f32 %v440_v16, %v1128_v1  ;;  %v529_v19 = vpop.f32.mrf.mxu1 }
  0xfc   : > { %v635_v20 = vmax.f32 %v567_v15, 0.0  ;;  %v530_v21 = vadd.f32 %v529_v19, %v1130_v2 }
  0xfd   : > { %v604_v22 = vmax.f32 %v441_v18, 0.0 }
  0xfe   : > { %v673_v23 = vpack.c.bf16 %v635_v20, %v634_v17  ;;  %v605_v24 = vmax.f32 %v530_v21, 0.0 }
 0x100   : > { %705 = vst [vmem:[%s1138_s10 + $0xc8] sm:$0xff] %v673_v23  ;;  %v658_v25 = vpack.c.bf16 %v605_v24, %v604_v22  ;;  %v480_v26 = vpop.f32.mrf.mxu2 }
 0x101   : > { %v481_v27 = vadd.f32 %v480_v26, %v1128_v1  ;;  %v569_v28 = vpop.f32.mrf.mxu3 }
 0x102   : > { %690 = vst [vmem:[%s1138_s10 + $0x50] sm:$0xff] %v658_v25  ;;  %v570_v29 = vadd.f32 %v569_v28, %v1130_v2  ;;  %v442_v30 = vpop.f32.mrf.mxu0 }
 0x103   : > { %v636_v31 = vmax.f32 %v481_v27, 0.0  ;;  %v443_v32 = vadd.f32 %v442_v30, %v1128_v1  ;;  %v531_v33 = vpop.f32.mrf.mxu1 }
 0x104   : > { %v637_v34 = vmax.f32 %v570_v29, 0.0  ;;  %v532_v35 = vadd.f32 %v531_v33, %v1130_v2 }
 0x105   : > { %v606_v36 = vmax.f32 %v443_v32, 0.0 }
 0x106   : > { %v674_v37 = vpack.c.bf16 %v637_v34, %v636_v31  ;;  %v607_v38 = vmax.f32 %v532_v35, 0.0 }
 0x108   : > { %706 = vst [vmem:[%s1138_s10 + $0xd0] sm:$0xff] %v674_v37  ;;  %v659_v39 = vpack.c.bf16 %v607_v38, %v606_v36  ;;  %v482_v40 = vpop.f32.mrf.mxu2 }
 0x109   : > { %v483_v41 = vadd.f32 %v482_v40, %v1128_v1  ;;  %v571_v42 = vpop.f32.mrf.mxu3 }
 0x10a   : > { %691 = vst [vmem:[%s1138_s10 + $0x58] sm:$0xff] %v659_v39  ;;  %v572_v43 = vadd.f32 %v571_v42, %v1130_v2  ;;  %v445_v44 = vpop.f32.mrf.mxu0 }
 0x10b   : > { %v638_v45 = vmax.f32 %v483_v41, 0.0  ;;  %v446_v46 = vadd.f32 %v445_v44, %v1128_v1  ;;  %v534_v47 = vpop.f32.mrf.mxu1 }
 0x10c   : > { %v639_v48 = vmax.f32 %v572_v43, 0.0  ;;  %v535_v49 = vadd.f32 %v534_v47, %v1130_v2 }
 0x10d   : > { %v608_v50 = vmax.f32 %v446_v46, 0.0 }
 0x10e   : > { %v675_v51 = vpack.c.bf16 %v639_v48, %v638_v45  ;;  %v609_v52 = vmax.f32 %v535_v49, 0.0 }
 0x110   : > { %707 = vst [vmem:[%s1138_s10 + $0xd8] sm:$0xff] %v675_v51  ;;  %v660_v53 = vpack.c.bf16 %v609_v52, %v608_v50  ;;  %v485_v54 = vpop.f32.mrf.mxu2 }
 0x111   : > { %v486_v55 = vadd.f32 %v485_v54, %v1128_v1  ;;  %v574_v56 = vpop.f32.mrf.mxu3 }
 0x112   : > { %692 = vst [vmem:[%s1138_s10 + $0x60] sm:$0xff] %v660_v53  ;;  %v575_v57 = vadd.f32 %v574_v56, %v1130_v2  ;;  %v447_v58 = vpop.f32.mrf.mxu0 }
 0x113   : > { %v640_v59 = vmax.f32 %v486_v55, 0.0  ;;  %v448_v60 = vadd.f32 %v447_v58, %v1128_v1  ;;  %v536_v61 = vpop.f32.mrf.mxu1 }
 0x114   : > { %v641_v62 = vmax.f32 %v575_v57, 0.0  ;;  %v537_v63 = vadd.f32 %v536_v61, %v1130_v2 }
 0x115   : > { %v610_v0 = vmax.f32 %v448_v60, 0.0 }
 0x116   : > { %v676_v3 = vpack.c.bf16 %v641_v62, %v640_v59  ;;  %v611_v4 = vmax.f32 %v537_v63, 0.0 }
 0x118   : > { %708 = vst [vmem:[%s1138_s10 + $0xe0] sm:$0xff] %v676_v3  ;;  %v661_v5 = vpack.c.bf16 %v611_v4, %v610_v0  ;;  %v487_v6 = vpop.f32.mrf.mxu2 }
 0x119   : > { %v488_v7 = vadd.f32 %v487_v6, %v1128_v1  ;;  %v576_v8 = vpop.f32.mrf.mxu3 }
 0x11a   : > { %693 = vst [vmem:[%s1138_s10 + $0x68] sm:$0xff] %v661_v5  ;;  %v577_v9 = vadd.f32 %v576_v8, %v1130_v2  ;;  %v450_v10 = vpop.f32.mrf.mxu0 }
 0x11b   : > { %v642_v11 = vmax.f32 %v488_v7, 0.0  ;;  %v451_v12 = vadd.f32 %v450_v10, %v1128_v1  ;;  %v539_v13 = vpop.f32.mrf.mxu1 }
 0x11c   : > { %v643_v14 = vmax.f32 %v577_v9, 0.0  ;;  %v540_v15 = vadd.f32 %v539_v13, %v1130_v2 }
 0x11d   : > { %v612_v16 = vmax.f32 %v451_v12, 0.0 }
 0x11e   : > { %v677_v17 = vpack.c.bf16 %v643_v14, %v642_v11  ;;  %v613_v18 = vmax.f32 %v540_v15, 0.0 }
 0x120   : > { %709 = vst [vmem:[%s1138_s10 + $0xe8] sm:$0xff] %v677_v17  ;;  %v662_v19 = vpack.c.bf16 %v613_v18, %v612_v16  ;;  %v490_v20 = vpop.f32.mrf.mxu2 }
 0x121   : > { %v491_v21 = vadd.f32 %v490_v20, %v1128_v1  ;;  %v579_v22 = vpop.f32.mrf.mxu3 }
 0x122   : > { %694 = vst [vmem:[%s1138_s10 + $0x70] sm:$0xff] %v662_v19  ;;  %v580_v23 = vadd.f32 %v579_v22, %v1130_v2  ;;  %v452_v24 = vpop.f32.mrf.mxu0 }
 0x123   : > { %v644_v25 = vmax.f32 %v491_v21, 0.0  ;;  %v453_v26 = vadd.f32 %v452_v24, %v1128_v1  ;;  %v541_v27 = vpop.f32.mrf.mxu1 }
 0x124   : > { %v645_v28 = vmax.f32 %v580_v23, 0.0  ;;  %v542_v29 = vadd.f32 %v541_v27, %v1130_v2 }
 0x125   : > { %v614_v30 = vmax.f32 %v453_v26, 0.0 }
 0x126   : > { %v678_v31 = vpack.c.bf16 %v645_v28, %v644_v25  ;;  %v615_v32 = vmax.f32 %v542_v29, 0.0 }
 0x128   : > { %710 = vst [vmem:[%s1138_s10 + $0xf0] sm:$0xff] %v678_v31  ;;  %v663_v33 = vpack.c.bf16 %v615_v32, %v614_v30  ;;  %v492_v34 = vpop.f32.mrf.mxu2 }
 0x129   : > { %v493_v35 = vadd.f32 %v492_v34, %v1128_v1  ;;  %v581_v36 = vpop.f32.mrf.mxu3 }
 0x12a   : > { %695 = vst [vmem:[%s1138_s10 + $0x78] sm:$0xff] %v663_v33  ;;  %v582_v37 = vadd.f32 %v581_v36, %v1130_v2 }
 0x12b   : > { %v646_v38 = vmax.f32 %v493_v35, 0.0 }
 0x12c   : > { %v647_v39 = vmax.f32 %v582_v37, 0.0 }
 0x12e   : > { %v679_v40 = vpack.c.bf16 %v647_v39, %v646_v38 }
 0x130   : > { %711 = vst [vmem:[%s1138_s10 + $0xf8] sm:$0xff] %v679_v40 }
 0x131 PF: > { %s13_s12 = sadd.s32 1, %s973_s12  }
 0x132   : > { %p10_p4 = scmp.ge.s32.totalorder %s13_s12, 4  }
 0x134   :  { %12 = sbr.rel (!%p10_p4) target bundleno = 1 (0x1), region = 62 }

// kernel: nin_hyperdecisionet_forward.6
= control target key start
LH: loop header
LB: loop body
LE: loop exit
PB: predicated region body
PF: predicated region fallthrough
CT: control target
= control target key end

     0   :  { %s1546_s18 = smov 0   ;;  %s1971_s0 = inlined_call_operand.vmem [shape: bf16[512,256], index: 0, kind: input, shape index: {}]   ;;  %s1972_s1 = inlined_call_operand.vmem [shape: bf16[256,256], index: 1, kind: input, shape index: {}]   ;;  %s1973_s2 = inlined_call_operand.vmem [shape: f32[1,256], index: 2, kind: input, shape index: {}]   ;;  %s1974_s3 = inlined_call_operand.vmem [shape: bf16[256,128], index: 3, kind: input, shape index: {}]   ;;  %s1975_s4 = inlined_call_operand.vmem [shape: f32[1,128], index: 4, kind: input, shape index: {}]   ;;  %s1976_s5 = inlined_call_operand.vmem [shape: bf16[512,128], index: 5, kind: output, shape index: {}]  }
   0x1 LB: > { %s1103_s19 = sadd.s32 4294967295, %s1514_s18   ;;  %p1107_p0 = scmp.ge.s32.totalorder %s1514_s18, 1  ;;  %s1514_s18 = sphi %s1546_s18, %s15_s18  }
   0x2   : > { %p189_p1 = scmp.lt.s32.totalorder %s1514_s18, 5 }
   0x4   : > { %p190_p2 = pnand %p1107_p0, %p189_p1 }
   0x5   : > { %s1108_s29 = sshll.u32 (!%p190_p2), %s1103_s19, 4 }
   0x6   : > { %193 = sbr.rel (%p190_p2) target bundleno = 510 (0x1fe), region = 40  ;;  %p219_p3 = scmp.lt.s32.totalorder (!%p190_p2), %s1108_s29, 63 }
   0xb   : > { %v1235_v0 = vld [vmem:[%s1972_s1 + $0x70] sm:$0xf]  ;;  %v1403_v1 = vld [vmem:[%s1972_s1 + $0x74] sm:$0xf0]  ;;  %v1227_v5 = vld [vmem:[%s1972_s1 + $0x60] sm:$0xf] }
   0xc   : > { %v1299_v2 = vld [vmem:[%s1972_s1 + $0xf0] sm:$0xf]  ;;  %v1236_v3 = vor.u32 %v1403_v1, %v1235_v0  ;;  %v1419_v4 = vld [vmem:[%s1972_s1 + $0xf4] sm:$0xf0]  ;;  %v1401_v6 = vld [vmem:[%s1972_s1 + $0x64] sm:$0xf0] }
   0xd   : > { %v1300_v7 = vor.u32 %v1419_v4, %v1299_v2  ;;  %v1291_v8 = vld [vmem:[%s1972_s1 + $0xe0] sm:$0xf]  ;;  %v1417_v9 = vld [vmem:[%s1972_s1 + $0xe4] sm:$0xf0]  ;;  %v1228_v10 = vor.u32 %v1401_v6, %v1227_v5  ;;  %v1219_v12 = vld [vmem:[%s1972_s1 + $0x50] sm:$0xf] }
   0xe   : > { %525 = vmatpush.bf16.msra.mxu0 %v1236_v3  ;;  %1483 = vmatpush.bf16.msra.mxu2 %v1236_v3  ;;  %v1292_v11 = vor.u32 %v1417_v9, %v1291_v8  ;;  %v1399_v13 = vld [vmem:[%s1972_s1 + $0x54] sm:$0xf0]  ;;  %v1283_v14 = vld [vmem:[%s1972_s1 + $0xd0] sm:$0xf]  ;;  %v1211_v18 = vld [vmem:[%s1972_s1 + $0x40] sm:$0xf] }
   0xf   : > { %1491 = vmatpush.bf16.msra.mxu3 %v1300_v7  ;;  %574 = vmatpush.bf16.msra.mxu1 %v1300_v7  ;;  %v1415_v15 = vld [vmem:[%s1972_s1 + $0xd4] sm:$0xf0]  ;;  %v1220_v16 = vor.u32 %v1399_v13, %v1219_v12  ;;  %v1397_v19 = vld [vmem:[%s1972_s1 + $0x44] sm:$0xf0]  ;;  %v1275_v20 = vld [vmem:[%s1972_s1 + $0xc0] sm:$0xf] }
  0x10   : > { %v1284_v17 = vor.u32 %v1415_v15, %v1283_v14  ;;  %v1413_v21 = vld [vmem:[%s1972_s1 + $0xc4] sm:$0xf0]  ;;  %v1212_v22 = vor.u32 %v1397_v19, %v1211_v18  ;;  %v1203_v24 = vld [vmem:[%s1972_s1 + $0x30] sm:$0xf]  ;;  %v1395_v25 = vld [vmem:[%s1972_s1 + $0x34] sm:$0xf0] }
  0x11   : > { %v1276_v23 = vor.u32 %v1413_v21, %v1275_v20  ;;  %v1267_v26 = vld [vmem:[%s1972_s1 + $0xb0] sm:$0xf]  ;;  %v1411_v27 = vld [vmem:[%s1972_s1 + $0xb4] sm:$0xf0]  ;;  %v1204_v28 = vor.u32 %v1395_v25, %v1203_v24  ;;  %v1195_v30 = vld [vmem:[%s1972_s1 + $0x20] sm:$0xf] }
  0x12   : > { %526 = vmatpush.bf16.msra.mxu0 %v1228_v10  ;;  %1484 = vmatpush.bf16.msra.mxu2 %v1228_v10  ;;  %v1268_v29 = vor.u32 %v1411_v27, %v1267_v26  ;;  %v1393_v31 = vld [vmem:[%s1972_s1 + $0x24] sm:$0xf0]  ;;  %s1978_s29 = smov (!%p219_p3, %s1108_s29), 63  ;;  %v1259_v32 = vld [vmem:[%s1972_s1 + $0xa0] sm:$0xf] }
  0x13   : > { %1492 = vmatpush.bf16.msra.mxu3 %v1292_v11  ;;  %575 = vmatpush.bf16.msra.mxu1 %v1292_v11  ;;  %v1409_v33 = vld [vmem:[%s1972_s1 + $0xa4] sm:$0xf0]  ;;  %v1196_v34 = vor.u32 %v1393_v31, %v1195_v30  ;;  %v1187_v36 = vld [vmem:[%s1972_s1 + $0x10] sm:$0xf]  ;;  %v1391_v37 = vld [vmem:[%s1972_s1 + $0x14] sm:$0xf0] }
  0x14   : > { %v1260_v35 = vor.u32 %v1409_v33, %v1259_v32  ;;  %s1371_s26 = sshll.u32 %s1978_s29, 3  ;;  %v1251_v38 = vld [vmem:[%s1972_s1 + $0x90] sm:$0xf]  ;;  %v1407_v39 = vld [vmem:[%s1972_s1 + $0x94] sm:$0xf0]  ;;  %v1188_v40 = vor.u32 %v1391_v37, %v1187_v36  ;;  %s1112_s30 = sshll.u32 %s1978_s29, 2 }
  0x15   : > { %v1179_v41 = vld [vmem:[%s1972_s1] sm:$0xf]  ;;  %s1649_s19 = scalar_lea.vmem %s1971_s0, %s1371_s26  ;;  %v1252_v42 = vor.u32 %v1407_v39, %v1251_v38  ;;  %v1389_v43 = vld [vmem:[%s1972_s1 + $0x4] sm:$0xf0]  ;;  %v1402_v46 = vld [vmem:[%s1972_s1 + $0x74] sm:$0xf]  ;;  %s1944_s8 = scalar_lea.vmem %s1976_s5, %s1112_s30 }
  0x16   : > { %527 = vmatpush.bf16.msra.mxu0 %v1220_v16  ;;  %1485 = vmatpush.bf16.msra.mxu2 %v1220_v16  ;;  %v1243_v44 = vld [vmem:[%s1972_s1 + $0x80] sm:$0xf]  ;;  %v1405_v45 = vld [vmem:[%s1972_s1 + $0x84] sm:$0xf0]  ;;  %v1237_v47 = vld [vmem:[%s1972_s1 + $0x78] sm:$0xf0]  ;;  %v1180_v52 = vor.u32 %v1389_v43, %v1179_v41 }
  0x17   : > { %1493 = vmatpush.bf16.msra.mxu3 %v1284_v17  ;;  %576 = vmatpush.bf16.msra.mxu1 %v1284_v17  ;;  %v1418_v48 = vld [vmem:[%s1972_s1 + $0xf4] sm:$0xf]  ;;  %v1115_v49 = vld [vmem:[%s1649_s19] sm:$0xf]  ;;  %v1373_v50 = vld [vmem:[%s1649_s19 + $0x4] sm:$0xf0]  ;;  %v1244_v56 = vor.u32 %v1405_v45, %v1243_v44  ;;  %v1240_v60 = vor.u32 %v1402_v46, %v1237_v47 }
  0x18   : > { %v1301_v51 = vld [vmem:[%s1972_s1 + $0xf8] sm:$0xf0]  ;;  %v1147_v53 = vld [vmem:[%s1649_s19 + $0x40] sm:$0xf]  ;;  %v1381_v54 = vld [vmem:[%s1649_s19 + $0x44] sm:$0xf0]  ;;  %v1683_v63 = vor.u32 %v1373_v50, %v1115_v49 }
  0x19   : > { %v1380_v55 = vld [vmem:[%s1649_s19 + $0x44] sm:$0xf]  ;;  %v1149_v57 = vld [vmem:[%s1649_s19 + $0x48] sm:$0xf0]  ;;  %v1304_v61 = vor.u32 %v1418_v48, %v1301_v51  ;;  %v1685_v0 = vor.u32 %v1381_v54, %v1147_v53  ;;  %v1398_v8 = vld [vmem:[%s1972_s1 + $0x54] sm:$0xf] }
  0x1a   : > { %528 = vmatpush.bf16.msra.mxu0 %v1212_v22  ;;  %1486 = vmatpush.bf16.msra.mxu2 %v1212_v22  ;;  %v1372_v58 = vld [vmem:[%s1649_s19 + $0x4] sm:$0xf]  ;;  %v1117_v59 = vld [vmem:[%s1649_s19 + $0x8] sm:$0xf0]  ;;  %v1696_v4 = vor.u32 %v1380_v55, %v1149_v57  ;;  %v1221_v9 = vld [vmem:[%s1972_s1 + $0x58] sm:$0xf0] }
  0x1b   : > { %1494 = vmatpush.bf16.msra.mxu3 %v1276_v23  ;;  %577 = vmatpush.bf16.msra.mxu1 %v1276_v23  ;;  %v1400_v62 = vld [vmem:[%s1972_s1 + $0x64] sm:$0xf]  ;;  %v1229_v1 = vld [vmem:[%s1972_s1 + $0x68] sm:$0xf0]  ;;  %v1698_v5 = vor.u32 %v1372_v58, %v1117_v59  ;;  %v1414_v10 = vld [vmem:[%s1972_s1 + $0xd4] sm:$0xf]  ;;  %v1224_v12 = vor.u32 %v1398_v8, %v1221_v9 }
  0x1c   : > { %v1416_v2 = vld [vmem:[%s1972_s1 + $0xe4] sm:$0xf]  ;;  %v1293_v3 = vld [vmem:[%s1972_s1 + $0xe8] sm:$0xf0]  ;;  %v1232_v6 = vor.u32 %v1400_v62, %v1229_v1  ;;  %v1285_v11 = vld [vmem:[%s1972_s1 + $0xd8] sm:$0xf0] }
  0x1d   : > { %v1296_v7 = vor.u32 %v1416_v2, %v1293_v3  ;;  %v1288_v13 = vor.u32 %v1414_v10, %v1285_v11  ;;  %v1396_v14 = vld [vmem:[%s1972_s1 + $0x44] sm:$0xf]  ;;  %v1213_v15 = vld [vmem:[%s1972_s1 + $0x48] sm:$0xf0]  ;;  %v1123_v18 = vld [vmem:[%s1649_s19 + $0x10] sm:$0xf] }
  0x1e   : > { %529 = vmatpush.bf16.msra.mxu0 %v1204_v28  ;;  %1487 = vmatpush.bf16.msra.mxu2 %v1204_v28  ;;  %v1412_v16 = vld [vmem:[%s1972_s1 + $0xc4] sm:$0xf]  ;;  %v1277_v17 = vld [vmem:[%s1972_s1 + $0xc8] sm:$0xf0]  ;;  %v1375_v19 = vld [vmem:[%s1649_s19 + $0x14] sm:$0xf0]  ;;  %v1216_v20 = vor.u32 %v1396_v14, %v1213_v15 }
  0x1f   : > { %1495 = vmatpush.bf16.msra.mxu3 %v1268_v29  ;;  %578 = vmatpush.bf16.msra.mxu1 %v1268_v29  ;;  %v1280_v21 = vor.u32 %v1412_v16, %v1277_v17  ;;  %v1394_v22 = vld [vmem:[%s1972_s1 + $0x34] sm:$0xf]  ;;  %v1205_v23 = vld [vmem:[%s1972_s1 + $0x38] sm:$0xf0]  ;;  %v1155_v26 = vld [vmem:[%s1649_s19 + $0x50] sm:$0xf] }
  0x20   : > { %v1410_v24 = vld [vmem:[%s1972_s1 + $0xb4] sm:$0xf]  ;;  %v1269_v25 = vld [vmem:[%s1972_s1 + $0xb8] sm:$0xf0]  ;;  %v1383_v27 = vld [vmem:[%s1649_s19 + $0x54] sm:$0xf0]  ;;  %v1208_v32 = vor.u32 %v1394_v22, %v1205_v23 }
  0x21   : > { %v1382_v28 = vld [vmem:[%s1649_s19 + $0x54] sm:$0xf]  ;;  %v1157_v29 = vld [vmem:[%s1649_s19 + $0x58] sm:$0xf0]  ;;  %v1272_v33 = vor.u32 %v1410_v24, %v1269_v25  ;;  %v1753_v36 = vor.u32 %v1383_v27, %v1155_v26  ;;  %v1197_v37 = vld [vmem:[%s1972_s1 + $0x28] sm:$0xf0] }
  0x22   : > { %530 = vmatpush.bf16.msra.mxu0 %v1196_v34  ;;  %1488 = vmatpush.bf16.msra.mxu2 %v1196_v34  ;;  %v1374_v30 = vld [vmem:[%s1649_s19 + $0x14] sm:$0xf]  ;;  %v1125_v31 = vld [vmem:[%s1649_s19 + $0x18] sm:$0xf0]  ;;  %v1392_v34 = vld [vmem:[%s1972_s1 + $0x24] sm:$0xf] }
  0x23   : > { %1496 = vmatpush.bf16.msra.mxu3 %v1260_v35  ;;  %579 = vmatpush.bf16.msra.mxu1 %v1260_v35  ;;  %v1751_v35 = vor.u32 %v1375_v19, %v1123_v18  ;;  %v1408_v38 = vld [vmem:[%s1972_s1 + $0xa4] sm:$0xf]  ;;  %v1261_v39 = vld [vmem:[%s1972_s1 + $0xa8] sm:$0xf0]  ;;  %v1766_v41 = vor.u32 %v1374_v30, %v1125_v31  ;;  %v1390_v44 = vld [vmem:[%s1972_s1 + $0x14] sm:$0xf] }
  0x24   : > { %v1264_v43 = vor.u32 %v1408_v38, %v1261_v39  ;;  %v1189_v45 = vld [vmem:[%s1972_s1 + $0x18] sm:$0xf0]  ;;  %v1406_v46 = vld [vmem:[%s1972_s1 + $0x94] sm:$0xf]  ;;  %v1388_v50 = vld [vmem:[%s1972_s1 + $0x4] sm:$0xf] }
  0x25   : > { %v1253_v47 = vld [vmem:[%s1972_s1 + $0x98] sm:$0xf0]  ;;  %v1192_v48 = vor.u32 %v1390_v44, %v1189_v45  ;;  %v1181_v51 = vld [vmem:[%s1972_s1 + $0x8] sm:$0xf0]  ;;  %v1377_v57 = vld [vmem:[%s1649_s19 + $0x24] sm:$0xf0] }
  0x26   : > { %531 = vmatpush.bf16.msra.mxu0 %v1188_v40  ;;  %1489 = vmatpush.bf16.msra.mxu2 %v1188_v40  ;;  %v1764_v40 = vor.u32 %v1382_v28, %v1157_v29  ;;  %v1256_v49 = vor.u32 %v1406_v46, %v1253_v47  ;;  %v1245_v53 = vld [vmem:[%s1972_s1 + $0x88] sm:$0xf0]  ;;  %v1184_v54 = vor.u32 %v1388_v50, %v1181_v51  ;;  %v1163_v58 = vld [vmem:[%s1649_s19 + $0x60] sm:$0xf]  ;;  %v1385_v59 = vld [vmem:[%s1649_s19 + $0x64] sm:$0xf0] }
  0x27   : > { %1497 = vmatpush.bf16.msra.mxu3 %v1252_v42  ;;  %580 = vmatpush.bf16.msra.mxu1 %v1252_v42  ;;  %v1200_v42 = vor.u32 %v1392_v34, %v1197_v37  ;;  %v1376_v62 = vld [vmem:[%s1649_s19 + $0x24] sm:$0xf]  ;;  %v1133_v1 = vld [vmem:[%s1649_s19 + $0x28] sm:$0xf0]  ;;  %v1804_v3 = vor.u32 %v1385_v59, %v1163_v58  ;;  %v1139_v8 = vld [vmem:[%s1649_s19 + $0x30] sm:$0xf] }
  0x28   : > { %v1379_v9 = vld [vmem:[%s1649_s19 + $0x34] sm:$0xf0]  ;;  %v1171_v10 = vld [vmem:[%s1649_s19 + $0x70] sm:$0xf]  ;;  %v1378_v14 = vld [vmem:[%s1649_s19 + $0x34] sm:$0xf] }
  0x29   : > { %v1387_v11 = vld [vmem:[%s1649_s19 + $0x74] sm:$0xf0]  ;;  %v1141_v15 = vld [vmem:[%s1649_s19 + $0x38] sm:$0xf0]  ;;  %v1140_v16 = vor.u32 %v1379_v9, %v1139_v8  ;;  %v1422_v23 = vld [vmem:[%s1974_s3 + $0x10] sm:$0xff] }
  0x2a   : > { %532 = vmatpush.bf16.msra.mxu0 %v1180_v52  ;;  %1490 = vmatpush.bf16.msra.mxu2 %v1180_v52  ;;  %v1404_v52 = vld [vmem:[%s1972_s1 + $0x84] sm:$0xf]  ;;  %v1818_v17 = vor.u32 %v1387_v11, %v1171_v10  ;;  %v1144_v19 = vor.u32 %v1378_v14, %v1141_v15  ;;  %v1423_v22 = vld [vmem:[%s1974_s3 + $0x18] sm:$0xff]  ;;  %v1421_v24 = vld [vmem:[%s1974_s3 + $0x8] sm:$0xff] }
  0x2b   : > { %1498 = vmatpush.bf16.msra.mxu3 %v1244_v56  ;;  %581 = vmatpush.bf16.msra.mxu1 %v1244_v56  ;;  %v1248_v55 = vor.u32 %v1404_v52, %v1245_v53  ;;  %v1131_v56 = vld [vmem:[%s1649_s19 + $0x20] sm:$0xf]  ;;  %v1435_v26 = vld [vmem:[%s1974_s3 + $0x78] sm:$0xff] }
  0x2c   : > { %v1132_v2 = vor.u32 %v1377_v57, %v1131_v56  ;;  %v1420_v25 = vld [vmem:[%s1974_s3] sm:$0xff]  ;;  %v1431_v8 = vld [vmem:[%s1974_s3 + $0x58] sm:$0xff] }
  0x2d   : > { %533 = vmatmul.bf16.vlgmr.msra.gmra.mxu0 %v1683_v63  ;;  %553 = vmatmul.bf16.vlgmr.msra.gmra.mxu2 %v1685_v0  ;;  %v1858_v27 = vld [vmem:[%s1973_s2] sm:$0x3] }
  0x2e   : > { %623 = vmatpush.bf16.msrb.mxu2 %v1240_v60  ;;  %602 = vmatmul.bf16.vlgmr.msra.gmra.mxu3 %v1696_v4  ;;  %v1384_v60 = vld [vmem:[%s1649_s19 + $0x64] sm:$0xf]  ;;  %v1861_v29 = vperm.slane %v1858_v27, 0 }
  0x2f   : > { %672 = vmatpush.bf16.msrb.mxu3 %v1304_v61  ;;  %582 = vmatmul.bf16.vlgmr.msra.gmra.mxu1 %v1698_v5  ;;  %v1165_v61 = vld [vmem:[%s1649_s19 + $0x68] sm:$0xf0] }
  0x30   : > { %950 = vmatpush.bf16.msrb.mxu1 %v1435_v26 }
  0x32   : > { %624 = vmatpush.bf16.msrb.mxu2 %v1232_v6  ;;  %v1806_v6 = vor.u32 %v1384_v60, %v1165_v61 }
  0x33   : > { %673 = vmatpush.bf16.msrb.mxu3 %v1296_v7  ;;  %v1136_v7 = vor.u32 %v1376_v62, %v1133_v1 }
  0x36   : > { %625 = vmatpush.bf16.msrb.mxu2 %v1224_v12  ;;  %v1386_v12 = vld [vmem:[%s1649_s19 + $0x74] sm:$0xf] }
  0x37   : > { %674 = vmatpush.bf16.msrb.mxu3 %v1288_v13  ;;  %v1173_v13 = vld [vmem:[%s1649_s19 + $0x78] sm:$0xf0] }
  0x38   : > { %v1820_v18 = vor.u32 %v1386_v12, %v1173_v13 }
  0x3a   : > { %626 = vmatpush.bf16.msrb.mxu2 %v1216_v20  ;;  %v1427_v20 = vld [vmem:[%s1974_s3 + $0x38] sm:$0xff] }
  0x3b   : > { %675 = vmatpush.bf16.msrb.mxu3 %v1280_v21  ;;  %901 = vmatpush.bf16.msrb.mxu0 %v1427_v20  ;;  %v1426_v21 = vld [vmem:[%s1974_s3 + $0x30] sm:$0xff] }
  0x3d   : > { %538 = vmatmul.bf16.gmra.mxu0 %v1751_v35  ;;  %558 = vmatmul.bf16.gmra.mxu2 %v1753_v36 }
  0x3e   : > { %627 = vmatpush.bf16.msrb.mxu2 %v1208_v32  ;;  %607 = vmatmul.bf16.gmra.mxu3 %v1764_v40  ;;  %v1434_v32 = vld [vmem:[%s1974_s3 + $0x70] sm:$0xff] }
  0x3f   : > { %676 = vmatpush.bf16.msrb.mxu3 %v1272_v33  ;;  %587 = vmatmul.bf16.gmra.mxu1 %v1766_v41 }
  0x40   : > { %902 = vmatpush.bf16.msrb.mxu0 %v1426_v21  ;;  %951 = vmatpush.bf16.msrb.mxu1 %v1434_v32  ;;  %v1430_v21 = vld [vmem:[%s1974_s3 + $0x50] sm:$0xff]  ;;  %v1429_v32 = vld [vmem:[%s1974_s3 + $0x48] sm:$0xff] }
  0x42   : > { %628 = vmatpush.bf16.msrb.mxu2 %v1200_v42 }
  0x43   : > { %677 = vmatpush.bf16.msrb.mxu3 %v1264_v43 }
  0x46   : > { %629 = vmatpush.bf16.msrb.mxu2 %v1192_v48 }
  0x47   : > { %678 = vmatpush.bf16.msrb.mxu3 %v1256_v49 }
  0x4a   : > { %630 = vmatpush.bf16.msrb.mxu2 %v1184_v54 }
  0x4b   : > { %679 = vmatpush.bf16.msrb.mxu3 %v1248_v55  ;;  %v1432_v55 = vld [vmem:[%s1974_s3 + $0x60] sm:$0xff] }
  0x4d   : > { %543 = vmatmul.bf16.gmra.mxu0 %v1132_v2  ;;  %563 = vmatmul.bf16.gmra.mxu2 %v1804_v3 }
  0x4e   : > { %612 = vmatmul.bf16.gmra.mxu3 %v1806_v6 }
  0x4f   : > { %592 = vmatmul.bf16.gmra.mxu1 %v1136_v7 }
  0x5d   : > { %548 = vmatmul.bf16.gmra.mxu0 %v1140_v16  ;;  %568 = vmatmul.bf16.gmra.mxu2 %v1818_v17 }
  0x5e   : > { %617 = vmatmul.bf16.gmra.mxu3 %v1820_v18 }
  0x5f   : > { %597 = vmatmul.bf16.gmra.mxu1 %v1144_v19 }
  0x6d   : > { %631 = vmatmul.bf16.vlgmr.msrb.gmra.mxu2 %v1683_v63  ;;  %v1425_v63 = vld [vmem:[%s1974_s3 + $0x28] sm:$0xff] }
  0x6e   : > { %680 = vmatmul.bf16.vlgmr.msrb.gmra.mxu3 %v1698_v5  ;;  %903 = vmatpush.bf16.msrb.mxu0 %v1425_v63  ;;  %v1424_v5 = vld [vmem:[%s1974_s3 + $0x20] sm:$0xff] }
  0x72   : > { %904 = vmatpush.bf16.msrb.mxu0 %v1424_v5 }
  0x76   : > { %905 = vmatpush.bf16.msrb.mxu0 %v1423_v22 }
  0x7a   : > { %906 = vmatpush.bf16.msrb.mxu0 %v1422_v23 }
  0x7d   : > { %636 = vmatmul.bf16.gmra.mxu2 %v1751_v35 }
  0x7e   : > { %685 = vmatmul.bf16.gmra.mxu3 %v1766_v41  ;;  %907 = vmatpush.bf16.msrb.mxu0 %v1421_v24 }
  0x82   : > { %908 = vmatpush.bf16.msrb.mxu0 %v1420_v25 }
  0x8d   : > { %641 = vmatmul.bf16.gmra.mxu2 %v1132_v2 }
  0x8e   : > { %690 = vmatmul.bf16.gmra.mxu3 %v1136_v7 }
  0x9d   : > { %646 = vmatmul.bf16.gmra.mxu2 %v1140_v16 }
  0x9e   : > { %695 = vmatmul.bf16.gmra.mxu3 %v1144_v19 }
  0xaa   : > { %v534_v28 = vpop.f32.mrf.mxu0 }
  0xab   : > { %v535_v31 = vadd.f32 %v534_v28, %v1861_v29 }
  0xac   : > { %v583_v30 = vpop.f32.mrf.mxu1 }
  0xad   : > { %651 = vmatmul.bf16.gmra.mxu2 %v1685_v0  ;;  %v584_v34 = vadd.f32 %v583_v30, %v535_v31  ;;  %v1433_v0 = vld [vmem:[%s1974_s3 + $0x68] sm:$0xff] }
  0xae   : > { %700 = vmatmul.bf16.gmra.mxu3 %v1696_v4  ;;  %952 = vmatpush.bf16.msrb.mxu1 %v1433_v0  ;;  %v1428_v0 = vld [vmem:[%s1974_s3 + $0x40] sm:$0xff] }
  0xaf   : > { %v721_v43 = vmax.f32 %v584_v34, 0.0 }
  0xb0   : > { %v554_v33 = vpop.f32.mrf.mxu2 }
  0xb1   : > { %v555_v35 = vadd.f32 %v554_v33, %v1861_v29  ;;  %v603_v37 = vpop.f32.mrf.mxu3 }
  0xb2   : > { %v536_v38 = vpop.f32.mrf.mxu0  ;;  %953 = vmatpush.bf16.msrb.mxu1 %v1432_v55 }
  0xb3   : > { %v604_v39 = vadd.f32 %v603_v37, %v555_v35  ;;  %v537_v41 = vadd.f32 %v536_v38, %v1861_v29 }
  0xb4   : > { %v585_v42 = vpop.f32.mrf.mxu1 }
  0xb5   : > { %v586_v44 = vadd.f32 %v585_v42, %v537_v41  ;;  %v737_v52 = vmax.f32 %v604_v39, 0.0 }
  0xb6   : > { %954 = vmatpush.bf16.msrb.mxu1 %v1431_v8 }
  0xb7   : > { %v723_v45 = vmax.f32 %v586_v44, 0.0 }
  0xb8   : > { %v556_v4 = vpop.f32.mrf.mxu2 }
  0xb9   : > { %v753_v46 = vpack.c.bf16 %v723_v45, %v721_v43  ;;  %v557_v47 = vadd.f32 %v556_v4, %v1861_v29  ;;  %v605_v48 = vpop.f32.mrf.mxu3 }
  0xba   : > { %v539_v49 = vpop.f32.mrf.mxu0  ;;  %955 = vmatpush.bf16.msrb.mxu1 %v1430_v21 }
  0xbb   : > { %v606_v50 = vadd.f32 %v605_v48, %v557_v47  ;;  %909 = vmatmul.bf16.vlgmr.msrb.gmra.mxu0 %v753_v46  ;;  %v540_v54 = vadd.f32 %v539_v49, %v1861_v29 }
  0xbc   : > { %v588_v51 = vpop.f32.mrf.mxu1 }
  0xbd   : > { %v739_v53 = vmax.f32 %v606_v50, 0.0  ;;  %656 = vmatmul.bf16.gmra.mxu2 %v1753_v36  ;;  %v589_v58 = vadd.f32 %v588_v51, %v540_v54 }
  0xbe   : > { %705 = vmatmul.bf16.gmra.mxu3 %v1764_v40  ;;  %956 = vmatpush.bf16.msrb.mxu1 %v1429_v32 }
  0xbf   : > { %v1881_v56 = vpack.c.bf16 %v739_v53, %v737_v52  ;;  %v725_v36 = vmax.f32 %v589_v58, 0.0 }
  0xc0   : > { %v559_v57 = vpop.f32.mrf.mxu2 }
  0xc1   : > { %v560_v59 = vadd.f32 %v559_v57, %v1861_v29  ;;  %v608_v60 = vpop.f32.mrf.mxu3 }
  0xc2   : > { %v541_v61 = vpop.f32.mrf.mxu0  ;;  %957 = vmatpush.bf16.msrb.mxu1 %v1428_v0 }
  0xc3   : > { %v609_v62 = vadd.f32 %v608_v60, %v560_v59  ;;  %v542_v1 = vadd.f32 %v541_v61, %v1861_v29 }
  0xc4   : > { %v590_v2 = vpop.f32.mrf.mxu1 }
  0xc5   : > { %v591_v7 = vadd.f32 %v590_v2, %v542_v1  ;;  %v741_v16 = vmax.f32 %v609_v62, 0.0  ;;  %v1913_v2 = vperm.slane %v1858_v27, 1 }
  0xc7   : > { %v727_v40 = vmax.f32 %v591_v7, 0.0 }
  0xc8   : > { %v561_v9 = vpop.f32.mrf.mxu2 }
  0xc9   : > { %v562_v10 = vadd.f32 %v561_v9, %v1861_v29  ;;  %v610_v11 = vpop.f32.mrf.mxu3  ;;  %v755_v12 = vpack.c.bf16 %v727_v40, %v725_v36 }
  0xca   : > { %v544_v13 = vpop.f32.mrf.mxu0 }
  0xcb   : > { %v611_v14 = vadd.f32 %v610_v11, %v562_v10  ;;  %914 = vmatmul.bf16.gmra.mxu0 %v755_v12  ;;  %v545_v20 = vadd.f32 %v544_v13, %v1861_v29 }
  0xcc   : > { %v593_v15 = vpop.f32.mrf.mxu1 }
  0xcd   : > { %v743_v19 = vmax.f32 %v611_v14, 0.0  ;;  %661 = vmatmul.bf16.gmra.mxu2 %v1804_v3  ;;  %v594_v22 = vadd.f32 %v593_v15, %v545_v20 }
  0xce   : > { %710 = vmatmul.bf16.gmra.mxu3 %v1806_v6 }
  0xcf   : > { %v1895_v63 = vpack.c.bf16 %v743_v19, %v741_v16  ;;  %v729_v3 = vmax.f32 %v594_v22, 0.0 }
  0xd0   : > { %v564_v5 = vpop.f32.mrf.mxu2 }
  0xd1   : > { %v565_v23 = vadd.f32 %v564_v5, %v1861_v29  ;;  %v613_v24 = vpop.f32.mrf.mxu3 }
  0xd2   : > { %v546_v25 = vpop.f32.mrf.mxu0 }
  0xd3   : > { %v614_v26 = vadd.f32 %v613_v24, %v565_v23  ;;  %v547_v28 = vadd.f32 %v546_v25, %v1861_v29 }
  0xd4   : > { %v595_v30 = vpop.f32.mrf.mxu1 }
  0xd5   : > { %v596_v31 = vadd.f32 %v595_v30, %v547_v28  ;;  %v745_v42 = vmax.f32 %v614_v26, 0.0 }
  0xd7   : > { %v731_v6 = vmax.f32 %v596_v31, 0.0 }
  0xd8   : > { %v566_v33 = vpop.f32.mrf.mxu2 }
  0xd9   : > { %v567_v34 = vadd.f32 %v566_v33, %v1861_v29  ;;  %v615_v35 = vpop.f32.mrf.mxu3  ;;  %v757_v37 = vpack.c.bf16 %v731_v6, %v729_v3 }
  0xda   : > { %v549_v38 = vpop.f32.mrf.mxu0 }
  0xdb   : > { %v616_v39 = vadd.f32 %v615_v35, %v567_v34  ;;  %919 = vmatmul.bf16.gmra.mxu0 %v757_v37  ;;  %v550_v44 = vadd.f32 %v549_v38, %v1861_v29 }
  0xdc   : > { %v598_v41 = vpop.f32.mrf.mxu1 }
  0xdd   : > { %v747_v43 = vmax.f32 %v616_v39, 0.0  ;;  %666 = vmatmul.bf16.gmra.mxu2 %v1818_v17  ;;  %v599_v46 = vadd.f32 %v598_v41, %v550_v44 }
  0xde   : > { %715 = vmatmul.bf16.gmra.mxu3 %v1820_v18 }
  0xdf   : > { %v765_v45 = vpack.c.bf16 %v747_v43, %v745_v42  ;;  %v733_v53 = vmax.f32 %v599_v46, 0.0 }
  0xe0   : > { %v569_v4 = vpop.f32.mrf.mxu2 }
  0xe1   : > { %v570_v47 = vadd.f32 %v569_v4, %v1861_v29  ;;  %v618_v48 = vpop.f32.mrf.mxu3 }
  0xe2   : > { %v551_v49 = vpop.f32.mrf.mxu0 }
  0xe3   : > { %v619_v50 = vadd.f32 %v618_v48, %v570_v47  ;;  %v552_v51 = vadd.f32 %v551_v49, %v1861_v29 }
  0xe4   : > { %v600_v52 = vpop.f32.mrf.mxu1 }
  0xe5   : > { %v601_v17 = vadd.f32 %v600_v52, %v552_v51  ;;  %v749_v60 = vmax.f32 %v619_v50, 0.0 }
  0xe7   : > { %v735_v54 = vmax.f32 %v601_v17, 0.0 }
  0xe8   : > { %v571_v55 = vpop.f32.mrf.mxu2 }
  0xe9   : > { %v572_v57 = vadd.f32 %v571_v55, %v1861_v29  ;;  %v620_v58 = vpop.f32.mrf.mxu3  ;;  %v759_v18 = vpack.c.bf16 %v735_v54, %v733_v53 }
  0xeb   : > { %v621_v59 = vadd.f32 %v620_v58, %v572_v57  ;;  %924 = vmatmul.bf16.gmra.mxu0 %v759_v18 }
  0xed   : > { %v751_v61 = vmax.f32 %v621_v59, 0.0 }
  0xef   : > { %v767_v62 = vpack.c.bf16 %v751_v61, %v749_v60 }
  0xf0   : > { %v632_v1 = vpop.f32.mrf.mxu2 }
  0xf1   : > { %v681_v36 = vpop.f32.mrf.mxu3  ;;  %v633_v7 = vadd.f32 %v632_v1, %v1913_v2 }
  0xf3   : > { %v682_v40 = vadd.f32 %v681_v36, %v633_v7 }
  0xf5   : > { %v722_v11 = vmax.f32 %v682_v40, 0.0 }
  0xf8   : > { %v634_v8 = vpop.f32.mrf.mxu2 }
  0xf9   : > { %v635_v9 = vadd.f32 %v634_v8, %v1913_v2  ;;  %v683_v10 = vpop.f32.mrf.mxu3 }
  0xfb   : > { %v684_v29 = vadd.f32 %v683_v10, %v635_v9  ;;  %929 = vmatmul.bf16.gmra.mxu0 %v1881_v56 }
  0xfd   : > { %v724_v12 = vmax.f32 %v684_v29, 0.0 }
  0xff   : > { %v754_v13 = vpack.c.bf16 %v724_v12, %v722_v11 }
 0x100   : > { %v637_v14 = vpop.f32.mrf.mxu2 }
 0x101   : > { %v686_v15 = vpop.f32.mrf.mxu3  ;;  %958 = vmatmul.bf16.vlgmr.msrb.gmra.mxu1 %v754_v13  ;;  %v638_v27 = vadd.f32 %v637_v14, %v1913_v2 }
 0x103   : > { %v687_v19 = vadd.f32 %v686_v15, %v638_v27 }
 0x105   : > { %v726_v22 = vmax.f32 %v687_v19, 0.0 }
 0x108   : > { %v639_v16 = vpop.f32.mrf.mxu2 }
 0x109   : > { %v640_v20 = vadd.f32 %v639_v16, %v1913_v2  ;;  %v688_v21 = vpop.f32.mrf.mxu3 }
 0x10b   : > { %v689_v5 = vadd.f32 %v688_v21, %v640_v20  ;;  %934 = vmatmul.bf16.gmra.mxu0 %v1895_v63 }
 0x10d   : > { %v728_v23 = vmax.f32 %v689_v5, 0.0 }
 0x10f   : > { %v756_v24 = vpack.c.bf16 %v728_v23, %v726_v22 }
 0x110   : > { %v642_v56 = vpop.f32.mrf.mxu2 }
 0x111   : > { %v691_v25 = vpop.f32.mrf.mxu3  ;;  %963 = vmatmul.bf16.gmra.mxu1 %v756_v24  ;;  %v643_v26 = vadd.f32 %v642_v56, %v1913_v2 }
 0x113   : > { %v692_v30 = vadd.f32 %v691_v25, %v643_v26 }
 0x115   : > { %v730_v6 = vmax.f32 %v692_v30, 0.0 }
 0x118   : > { %v644_v28 = vpop.f32.mrf.mxu2 }
 0x119   : > { %v645_v3 = vadd.f32 %v644_v28, %v1913_v2  ;;  %v693_v31 = vpop.f32.mrf.mxu3 }
 0x11b   : > { %v694_v32 = vadd.f32 %v693_v31, %v645_v3  ;;  %939 = vmatmul.bf16.gmra.mxu0 %v765_v45 }
 0x11d   : > { %v732_v33 = vmax.f32 %v694_v32, 0.0 }
 0x11f   : > { %v758_v34 = vpack.c.bf16 %v732_v33, %v730_v6  ;;  %v1936_v6 = vld [vmem:[%s1975_s4] ss:$0 sm:$0xff] }
 0x120   : > { %v647_v35 = vpop.f32.mrf.mxu2 }
 0x121   : > { %v696_v63 = vpop.f32.mrf.mxu3  ;;  %968 = vmatmul.bf16.gmra.mxu1 %v758_v34  ;;  %v648_v37 = vadd.f32 %v647_v35, %v1913_v2 }
 0x123   : > { %v697_v39 = vadd.f32 %v696_v63, %v648_v37 }
 0x125   : > { %v734_v44 = vmax.f32 %v697_v39, 0.0 }
 0x128   : > { %v649_v38 = vpop.f32.mrf.mxu2 }
 0x129   : > { %v650_v41 = vadd.f32 %v649_v38, %v1913_v2  ;;  %v698_v42 = vpop.f32.mrf.mxu3 }
 0x12b   : > { %v699_v43 = vadd.f32 %v698_v42, %v650_v41  ;;  %944 = vmatmul.bf16.gmra.mxu0 %v767_v62 }
 0x12d   : > { %v736_v0 = vmax.f32 %v699_v43, 0.0 }
 0x12f   : > { %v760_v4 = vpack.c.bf16 %v736_v0, %v734_v44 }
 0x130   : > { %v652_v46 = vpop.f32.mrf.mxu2 }
 0x131   : > { %v701_v45 = vpop.f32.mrf.mxu3  ;;  %973 = vmatmul.bf16.gmra.mxu1 %v760_v4  ;;  %v653_v47 = vadd.f32 %v652_v46, %v1913_v2 }
 0x133   : > { %v702_v49 = vadd.f32 %v701_v45, %v653_v47 }
 0x135   : > { %v738_v53 = vmax.f32 %v702_v49, 0.0 }
 0x138   : > { %v654_v48 = vpop.f32.mrf.mxu2  ;;  %v910_v14 = vpop.f32.mrf.mxu0 }
 0x139   : > { %v655_v50 = vadd.f32 %v654_v48, %v1913_v2  ;;  %v703_v51 = vpop.f32.mrf.mxu3  ;;  %v911_v33 = vadd.f32 %v1936_v6, %v910_v14 }
 0x13b   : > { %v704_v52 = vadd.f32 %v703_v51, %v655_v50 }
 0x13d   : > { %v740_v17 = vmax.f32 %v704_v52, 0.0 }
 0x13f   : > { %v762_v54 = vpack.c.bf16 %v740_v17, %v738_v53 }
 0x140   : > { %v657_v55 = vpop.f32.mrf.mxu2  ;;  %v912_v5 = vpop.f32.mrf.mxu0 }
 0x141   : > { %v706_v57 = vpop.f32.mrf.mxu3  ;;  %978 = vmatmul.bf16.gmra.mxu1 %v762_v54  ;;  %v658_v58 = vadd.f32 %v657_v55, %v1913_v2 }
 0x143   : > { %v707_v59 = vadd.f32 %v706_v57, %v658_v58 }
 0x145   : > { %v742_v1 = vmax.f32 %v707_v59, 0.0 }
 0x148   : > { %v659_v18 = vpop.f32.mrf.mxu2  ;;  %v915_v3 = vpop.f32.mrf.mxu0 }
 0x149   : > { %v660_v60 = vadd.f32 %v659_v18, %v1913_v2  ;;  %v708_v61 = vpop.f32.mrf.mxu3  ;;  %v916_v44 = vadd.f32 %v1936_v6, %v915_v3 }
 0x14b   : > { %v709_v62 = vadd.f32 %v708_v61, %v660_v60 }
 0x14d   : > { %v744_v36 = vmax.f32 %v709_v62, 0.0 }
 0x14f   : > { %v764_v7 = vpack.c.bf16 %v744_v36, %v742_v1 }
 0x150   : > { %v662_v8 = vpop.f32.mrf.mxu2  ;;  %v917_v31 = vpop.f32.mrf.mxu0 }
 0x151   : > { %v711_v40 = vpop.f32.mrf.mxu3  ;;  %983 = vmatmul.bf16.gmra.mxu1 %v764_v7  ;;  %v663_v9 = vadd.f32 %v662_v8, %v1913_v2  ;;  %v918_v0 = vadd.f32 %v1936_v6, %v917_v31 }
 0x153   : > { %v712_v29 = vadd.f32 %v711_v40, %v663_v9 }
 0x155   : > { %v746_v15 = vmax.f32 %v712_v29, 0.0 }
 0x158   : > { %v664_v10 = vpop.f32.mrf.mxu2  ;;  %v920_v34 = vpop.f32.mrf.mxu0 }
 0x159   : > { %v665_v11 = vadd.f32 %v664_v10, %v1913_v2  ;;  %v713_v12 = vpop.f32.mrf.mxu3  ;;  %v921_v53 = vadd.f32 %v1936_v6, %v920_v34 }
 0x15b   : > { %v714_v13 = vadd.f32 %v713_v12, %v665_v11 }
 0x15d   : > { %v748_v27 = vmax.f32 %v714_v13, 0.0 }
 0x15f   : > { %v766_v16 = vpack.c.bf16 %v748_v27, %v746_v15 }
 0x160   : > { %v667_v19 = vpop.f32.mrf.mxu2  ;;  %v922_v42 = vpop.f32.mrf.mxu0 }
 0x161   : > { %v716_v20 = vpop.f32.mrf.mxu3  ;;  %988 = vmatmul.bf16.gmra.mxu1 %v766_v16  ;;  %v668_v21 = vadd.f32 %v667_v19, %v1913_v2  ;;  %v923_v17 = vadd.f32 %v1936_v6, %v922_v42 }
 0x163   : > { %v717_v23 = vadd.f32 %v716_v20, %v668_v21 }
 0x165   : > { %v750_v26 = vmax.f32 %v717_v23, 0.0 }
 0x168   : > { %v669_v22 = vpop.f32.mrf.mxu2  ;;  %v925_v47 = vpop.f32.mrf.mxu0 }
 0x169   : > { %v670_v24 = vadd.f32 %v669_v22, %v1913_v2  ;;  %v718_v56 = vpop.f32.mrf.mxu3  ;;  %v913_v2 = vadd.f32 %v1936_v6, %v912_v5  ;;  %v926_v62 = vadd.f32 %v1936_v6, %v925_v47 }
 0x16b   : > { %v719_v25 = vadd.f32 %v718_v56, %v670_v24 }
 0x16d   : > { %v752_v28 = vmax.f32 %v719_v25, 0.0 }
 0x16f   : > { %v768_v30 = vpack.c.bf16 %v752_v28, %v750_v26 }
 0x170   : > { %v927_v52 = vpop.f32.mrf.mxu0 }
 0x171   : > { %993 = vmatmul.bf16.gmra.mxu1 %v768_v30  ;;  %v928_v1 = vadd.f32 %v1936_v6, %v927_v52 }
 0x178   : > { %v930_v60 = vpop.f32.mrf.mxu0 }
 0x179   : > { %v931_v13 = vadd.f32 %v1936_v6, %v930_v60 }
 0x17e   : > { %v959_v32 = vpop.f32.mrf.mxu1 }
 0x17f   : > { %v960_v35 = vadd.f32 %v959_v32, %v911_v33 }
 0x180   : > { %v932_v7 = vpop.f32.mrf.mxu0 }
 0x181   : > { %v999_v38 = vmax.f32 %v960_v35, 0.0  ;;  %v933_v14 = vadd.f32 %v1936_v6, %v932_v7 }
 0x186   : > { %v961_v63 = vpop.f32.mrf.mxu1 }
 0x187   : > { %v962_v37 = vadd.f32 %v961_v63, %v913_v2 }
 0x188   : > { %v935_v12 = vpop.f32.mrf.mxu0 }
 0x189   : > { %v1000_v39 = vmax.f32 %v962_v37, 0.0  ;;  %v936_v23 = vadd.f32 %v1936_v6, %v935_v12 }
 0x18b   : > { %v1439_v41 = vpack.c.bf16 %v1000_v39, %v999_v38 }
 0x18d   : > { %1440 = vst [vmem:[%s1944_s8] sm:$0xff] %v1439_v41  }
 0x18e   : > { %v964_v43 = vpop.f32.mrf.mxu1 }
 0x18f   : > { %v965_v4 = vadd.f32 %v964_v43, %v916_v44 }
 0x190   : > { %v937_v21 = vpop.f32.mrf.mxu0 }
 0x191   : > { %v1001_v48 = vmax.f32 %v965_v4, 0.0  ;;  %v938_v56 = vadd.f32 %v1936_v6, %v937_v21 }
 0x196   : > { %v966_v46 = vpop.f32.mrf.mxu1 }
 0x197   : > { %v967_v45 = vadd.f32 %v966_v46, %v918_v0 }
 0x198   : > { %v940_v24 = vpop.f32.mrf.mxu0 }
 0x199   : > { %v1002_v49 = vmax.f32 %v967_v45, 0.0  ;;  %v941_v34 = vadd.f32 %v1936_v6, %v940_v24 }
 0x19b   : > { %v1444_v50 = vpack.c.bf16 %v1002_v49, %v1001_v48 }
 0x19d   : > { %1476 = vst [vmem:[%s1944_s8 + $0x8] sm:$0xff] %v1444_v50  }
 0x19e   : > { %v969_v51 = vpop.f32.mrf.mxu1 }
 0x19f   : > { %v970_v54 = vadd.f32 %v969_v51, %v921_v53 }
 0x1a0   : > { %v942_v32 = vpop.f32.mrf.mxu0 }
 0x1a1   : > { %v1003_v58 = vmax.f32 %v970_v54, 0.0  ;;  %v943_v2 = vadd.f32 %v1936_v6, %v942_v32 }
 0x1a6   : > { %v971_v55 = vpop.f32.mrf.mxu1 }
 0x1a7   : > { %v972_v57 = vadd.f32 %v971_v55, %v923_v17 }
 0x1a8   : > { %v945_v38 = vpop.f32.mrf.mxu0 }
 0x1a9   : > { %v1004_v18 = vmax.f32 %v972_v57, 0.0  ;;  %v946_v0 = vadd.f32 %v1936_v6, %v945_v38 }
 0x1ab   : > { %v1449_v59 = vpack.c.bf16 %v1004_v18, %v1003_v58 }
 0x1ad   : > { %1477 = vst [vmem:[%s1944_s8 + $0x10] sm:$0xff] %v1449_v59  }
 0x1ae   : > { %v974_v61 = vpop.f32.mrf.mxu1 }
 0x1af   : > { %v975_v36 = vadd.f32 %v974_v61, %v926_v62 }
 0x1b0   : > { %v947_v44 = vpop.f32.mrf.mxu0 }
 0x1b1   : > { %v1005_v9 = vmax.f32 %v975_v36, 0.0  ;;  %v948_v4 = vadd.f32 %v1936_v6, %v947_v44 }
 0x1b6   : > { %v976_v8 = vpop.f32.mrf.mxu1 }
 0x1b7   : > { %v977_v40 = vadd.f32 %v976_v8, %v928_v1 }
 0x1b9   : > { %v1006_v10 = vmax.f32 %v977_v40, 0.0 }
 0x1bb   : > { %v1454_v29 = vpack.c.bf16 %v1006_v10, %v1005_v9 }
 0x1bd   : > { %1478 = vst [vmem:[%s1944_s8 + $0x18] sm:$0xff] %v1454_v29  }
 0x1be   : > { %v979_v11 = vpop.f32.mrf.mxu1 }
 0x1bf   : > { %v980_v15 = vadd.f32 %v979_v11, %v931_v13 }
 0x1c1   : > { %v1007_v19 = vmax.f32 %v980_v15, 0.0 }
 0x1c6   : > { %v981_v27 = vpop.f32.mrf.mxu1 }
 0x1c7   : > { %v982_v16 = vadd.f32 %v981_v27, %v933_v14 }
 0x1c9   : > { %v1008_v20 = vmax.f32 %v982_v16, 0.0 }
 0x1cb   : > { %v1459_v5 = vpack.c.bf16 %v1008_v20, %v1007_v19 }
 0x1cd   : > { %1479 = vst [vmem:[%s1944_s8 + $0x20] sm:$0xff] %v1459_v5  }
 0x1ce   : > { %v984_v22 = vpop.f32.mrf.mxu1 }
 0x1cf   : > { %v985_v25 = vadd.f32 %v984_v22, %v936_v23 }
 0x1d1   : > { %v1009_v30 = vmax.f32 %v985_v25, 0.0 }
 0x1d6   : > { %v986_v26 = vpop.f32.mrf.mxu1 }
 0x1d7   : > { %v987_v28 = vadd.f32 %v986_v26, %v938_v56 }
 0x1d9   : > { %v1010_v3 = vmax.f32 %v987_v28, 0.0 }
 0x1db   : > { %v1464_v31 = vpack.c.bf16 %v1010_v3, %v1009_v30 }
 0x1dd   : > { %1480 = vst [vmem:[%s1944_s8 + $0x28] sm:$0xff] %v1464_v31  }
 0x1de   : > { %v989_v33 = vpop.f32.mrf.mxu1 }
 0x1df   : > { %v990_v35 = vadd.f32 %v989_v33, %v941_v34 }
 0x1e1   : > { %v1011_v39 = vmax.f32 %v990_v35, 0.0 }
 0x1e6   : > { %v991_v63 = vpop.f32.mrf.mxu1 }
 0x1e7   : > { %v992_v37 = vadd.f32 %v991_v63, %v943_v2 }
 0x1e9   : > { %v1012_v41 = vmax.f32 %v992_v37, 0.0 }
 0x1eb   : > { %v1469_v42 = vpack.c.bf16 %v1012_v41, %v1011_v39 }
 0x1ed   : > { %1481 = vst [vmem:[%s1944_s8 + $0x30] sm:$0xff] %v1469_v42  }
 0x1ee   : > { %v994_v43 = vpop.f32.mrf.mxu1 }
 0x1ef   : > { %v995_v46 = vadd.f32 %v994_v43, %v946_v0 }
 0x1f1   : > { %v1013_v48 = vmax.f32 %v995_v46, 0.0 }
 0x1f6   : > { %v996_v45 = vpop.f32.mrf.mxu1 }
 0x1f7   : > { %v997_v47 = vadd.f32 %v996_v45, %v948_v4 }
 0x1f9   : > { %v1014_v49 = vmax.f32 %v997_v47, 0.0 }
 0x1fb   : > { %v1474_v50 = vpack.c.bf16 %v1014_v49, %v1013_v48 }
 0x1fd   : > { %1482 = vst [vmem:[%s1944_s8 + $0x38] sm:$0xff] %v1474_v50  }
 0x1fe PF: > { %s15_s18 = sadd.s32 1, %s1514_s18  }
 0x1ff   : > { %p12_p4 = scmp.ge.s32.totalorder %s15_s18, 6  }
 0x201   :  { %14 = sbr.rel (!%p12_p4) target bundleno = 1 (0x1), region = 70 }

// kernel: nin_hyperdecisionet_forward.8
= control target key start
LH: loop header
LB: loop body
LE: loop exit
PB: predicated region body
PF: predicated region fallthrough
CT: control target
= control target key end

     0   :  { %s896_s18 = smov 0   ;;  %s984_s0 = inlined_call_operand.vmem [shape: bf16[256,128], index: 0, kind: input, shape index: {}]   ;;  %s985_s1 = inlined_call_operand.vmem [shape: bf16[128,128], index: 1, kind: input, shape index: {}]   ;;  %s986_s2 = inlined_call_operand.vmem [shape: f32[1,128], index: 2, kind: input, shape index: {}]   ;;  %s987_s3 = inlined_call_operand.vmem [shape: bf16[128,128], index: 3, kind: input, shape index: {}]   ;;  %s988_s4 = inlined_call_operand.vmem [shape: f32[1,128], index: 4, kind: input, shape index: {}]   ;;  %s989_s5 = inlined_call_operand.vmem [shape: bf16[256,128], index: 5, kind: output, shape index: {}]  }
   0x1 LB: > { %s654_s19 = sadd.s32 4294967295, %s864_s18   ;;  %p658_p0 = scmp.ge.s32.totalorder %s864_s18, 1  ;;  %s864_s18 = sphi %s896_s18, %s15_s18  }
   0x2   : > { %p188_p1 = scmp.lt.s32.totalorder %s864_s18, 3 }
   0x4   : > { %p189_p2 = pnand %p658_p0, %p188_p1 }
   0x5   : > { %s659_s28 = sshll.u32 (!%p189_p2), %s654_s19, 4 }
   0x6   : > { %192 = sbr.rel (%p189_p2) target bundleno = 384 (0x180), region = 40  ;;  %p217_p3 = scmp.lt.s32.totalorder (!%p189_p2), %s659_s28, 31 }
   0xb   : > { %v776_v0 = vld [vmem:[%s985_s1 + $0x38] sm:$0xff]  ;;  %v775_v1 = vld [vmem:[%s985_s1 + $0x30] sm:$0xff]  ;;  %v774_v2 = vld [vmem:[%s985_s1 + $0x28] sm:$0xff]  ;;  %s991_s28 = smov (!%p217_p3, %s659_s28), 31 }
   0xc   : > { %360 = vmatpush.bf16.msra.mxu0 %v776_v0  ;;  %832 = vmatpush.bf16.msra.mxu2 %v776_v0  ;;  %v773_v3 = vld [vmem:[%s985_s1 + $0x20] sm:$0xff]  ;;  %v772_v4 = vld [vmem:[%s985_s1 + $0x18] sm:$0xff]  ;;  %v771_v5 = vld [vmem:[%s985_s1 + $0x10] sm:$0xff]  ;;  %s660_s10 = sshll.u32 %s991_s28, 2 }
   0xd   : > { %v770_v6 = vld [vmem:[%s985_s1 + $0x8] sm:$0xff]  ;;  %v769_v7 = vld [vmem:[%s985_s1] sm:$0xff]  ;;  %s220_s15 = scalar_lea.vmem %s984_s0, %s660_s10  ;;  %v784_v12 = vld [vmem:[%s987_s3 + $0x38] sm:$0xff]  ;;  %s971_s16 = scalar_lea.vmem %s989_s5, %s660_s10 }
   0xe   : > { %v761_v8 = vld [vmem:[%s220_s15] sm:$0xff]  ;;  %v762_v10 = vld [vmem:[%s220_s15 + $0x8] sm:$0xff]  ;;  %501 = vmatpush.bf16.msra.mxu1 %v784_v12  ;;  %v783_v13 = vld [vmem:[%s987_s3 + $0x30] sm:$0xff]  ;;  %840 = vmatpush.bf16.msra.mxu3 %v784_v12 }
   0xf   : > { %v765_v9 = vld [vmem:[%s220_s15 + $0x20] sm:$0xff]  ;;  %v766_v11 = vld [vmem:[%s220_s15 + $0x28] sm:$0xff]  ;;  %v763_v16 = vld [vmem:[%s220_s15 + $0x10] sm:$0xff] }
  0x10   : > { %361 = vmatpush.bf16.msra.mxu0 %v775_v1  ;;  %833 = vmatpush.bf16.msra.mxu2 %v775_v1  ;;  %v782_v14 = vld [vmem:[%s987_s3 + $0x28] sm:$0xff]  ;;  %v781_v15 = vld [vmem:[%s987_s3 + $0x20] sm:$0xff]  ;;  %v767_v17 = vld [vmem:[%s220_s15 + $0x30] sm:$0xff] }
  0x11   : > { %v764_v18 = vld [vmem:[%s220_s15 + $0x18] sm:$0xff]  ;;  %v779_v21 = vld [vmem:[%s987_s3 + $0x10] sm:$0xff]  ;;  %v778_v22 = vld [vmem:[%s987_s3 + $0x8] sm:$0xff] }
  0x12   : > { %502 = vmatpush.bf16.msra.mxu1 %v783_v13  ;;  %841 = vmatpush.bf16.msra.mxu3 %v783_v13  ;;  %v768_v19 = vld [vmem:[%s220_s15 + $0x38] sm:$0xff]  ;;  %v777_v23 = vld [vmem:[%s987_s3] sm:$0xff] }
  0x13   : > { %v780_v20 = vld [vmem:[%s987_s3 + $0x18] sm:$0xff]  ;;  %v856_v25 = vld [vmem:[%s986_s2] ss:$0 sm:$0xff] }
  0x14   : > { %362 = vmatpush.bf16.msra.mxu0 %v774_v2  ;;  %834 = vmatpush.bf16.msra.mxu2 %v774_v2 }
  0x16   : > { %503 = vmatpush.bf16.msra.mxu1 %v782_v14  ;;  %842 = vmatpush.bf16.msra.mxu3 %v782_v14 }
  0x18   : > { %363 = vmatpush.bf16.msra.mxu0 %v773_v3  ;;  %835 = vmatpush.bf16.msra.mxu2 %v773_v3 }
  0x1a   : > { %504 = vmatpush.bf16.msra.mxu1 %v781_v15  ;;  %843 = vmatpush.bf16.msra.mxu3 %v781_v15 }
  0x1c   : > { %364 = vmatpush.bf16.msra.mxu0 %v772_v4  ;;  %836 = vmatpush.bf16.msra.mxu2 %v772_v4 }
  0x1e   : > { %505 = vmatpush.bf16.msra.mxu1 %v780_v20  ;;  %844 = vmatpush.bf16.msra.mxu3 %v780_v20 }
  0x20   : > { %365 = vmatpush.bf16.msra.mxu0 %v771_v5  ;;  %837 = vmatpush.bf16.msra.mxu2 %v771_v5 }
  0x22   : > { %506 = vmatpush.bf16.msra.mxu1 %v779_v21  ;;  %845 = vmatpush.bf16.msra.mxu3 %v779_v21 }
  0x24   : > { %366 = vmatpush.bf16.msra.mxu0 %v770_v6  ;;  %838 = vmatpush.bf16.msra.mxu2 %v770_v6 }
  0x26   : > { %507 = vmatpush.bf16.msra.mxu1 %v778_v22  ;;  %846 = vmatpush.bf16.msra.mxu3 %v778_v22 }
  0x28   : > { %367 = vmatpush.bf16.msra.mxu0 %v769_v7  ;;  %839 = vmatpush.bf16.msra.mxu2 %v769_v7 }
  0x2a   : > { %508 = vmatpush.bf16.msra.mxu1 %v777_v23  ;;  %847 = vmatpush.bf16.msra.mxu3 %v777_v23 }
  0x2b   : > { %368 = vmatmul.bf16.vlgmr.msra.gmra.mxu0 %v761_v8  ;;  %388 = vmatmul.bf16.vlgmr.msra.gmra.mxu2 %v765_v9 }
  0x3b   : > { %373 = vmatmul.bf16.gmra.mxu0 %v762_v10  ;;  %393 = vmatmul.bf16.gmra.mxu2 %v766_v11 }
  0x4b   : > { %378 = vmatmul.bf16.gmra.mxu0 %v763_v16  ;;  %398 = vmatmul.bf16.gmra.mxu2 %v767_v17 }
  0x5b   : > { %383 = vmatmul.bf16.gmra.mxu0 %v764_v18  ;;  %403 = vmatmul.bf16.gmra.mxu2 %v768_v19  ;;  %v857_v18 = vld [vmem:[%s988_s4] ss:$0 sm:$0xff] }
  0xa8   : > { %v369_v24 = vpop.f32.mrf.mxu0 }
  0xa9   : > { %v370_v26 = vadd.f32 %v856_v25, %v369_v24 }
  0xab   : > { %v409_v29 = vmax.f32 %v370_v26, 0.0 }
  0xae   : > { %v389_v27 = vpop.f32.mrf.mxu2 }
  0xaf   : > { %v390_v32 = vadd.f32 %v856_v25, %v389_v27 }
  0xb0   : > { %v371_v28 = vpop.f32.mrf.mxu0 }
  0xb1   : > { %v372_v30 = vadd.f32 %v856_v25, %v371_v28  ;;  %v417_v37 = vmax.f32 %v390_v32, 0.0 }
  0xb3   : > { %v410_v31 = vmax.f32 %v372_v30, 0.0 }
  0xb5   : > { %v425_v33 = vpack.c.bf16 %v410_v31, %v409_v29 }
  0xb6   : > { %v391_v34 = vpop.f32.mrf.mxu2 }
  0xb7   : > { %v392_v35 = vadd.f32 %v856_v25, %v391_v34  ;;  %509 = vmatmul.bf16.vlgmr.msra.gmra.mxu1 %v425_v33 }
  0xb8   : > { %v374_v36 = vpop.f32.mrf.mxu0 }
  0xb9   : > { %v418_v38 = vmax.f32 %v392_v35, 0.0  ;;  %v375_v40 = vadd.f32 %v856_v25, %v374_v36 }
  0xbb   : > { %v429_v39 = vpack.c.bf16 %v418_v38, %v417_v37  ;;  %v411_v43 = vmax.f32 %v375_v40, 0.0 }
  0xbd   : > { %529 = vmatmul.bf16.vlgmr.msra.gmra.mxu3 %v429_v39 }
  0xbe   : > { %v394_v41 = vpop.f32.mrf.mxu2 }
  0xbf   : > { %v395_v46 = vadd.f32 %v856_v25, %v394_v41 }
  0xc0   : > { %v376_v42 = vpop.f32.mrf.mxu0 }
  0xc1   : > { %v377_v44 = vadd.f32 %v856_v25, %v376_v42  ;;  %v419_v51 = vmax.f32 %v395_v46, 0.0 }
  0xc3   : > { %v412_v45 = vmax.f32 %v377_v44, 0.0 }
  0xc5   : > { %v426_v47 = vpack.c.bf16 %v412_v45, %v411_v43 }
  0xc6   : > { %v396_v48 = vpop.f32.mrf.mxu2 }
  0xc7   : > { %v397_v49 = vadd.f32 %v856_v25, %v396_v48  ;;  %514 = vmatmul.bf16.gmra.mxu1 %v426_v47 }
  0xc8   : > { %v379_v50 = vpop.f32.mrf.mxu0 }
  0xc9   : > { %v420_v52 = vmax.f32 %v397_v49, 0.0  ;;  %v380_v54 = vadd.f32 %v856_v25, %v379_v50 }
  0xcb   : > { %v430_v53 = vpack.c.bf16 %v420_v52, %v419_v51  ;;  %v413_v57 = vmax.f32 %v380_v54, 0.0 }
  0xcd   : > { %534 = vmatmul.bf16.gmra.mxu3 %v430_v53 }
  0xce   : > { %v399_v55 = vpop.f32.mrf.mxu2 }
  0xcf   : > { %v400_v60 = vadd.f32 %v856_v25, %v399_v55 }
  0xd0   : > { %v381_v56 = vpop.f32.mrf.mxu0 }
  0xd1   : > { %v382_v58 = vadd.f32 %v856_v25, %v381_v56  ;;  %v421_v1 = vmax.f32 %v400_v60, 0.0 }
  0xd3   : > { %v414_v59 = vmax.f32 %v382_v58, 0.0 }
  0xd5   : > { %v427_v61 = vpack.c.bf16 %v414_v59, %v413_v57 }
  0xd6   : > { %v401_v62 = vpop.f32.mrf.mxu2 }
  0xd7   : > { %v402_v63 = vadd.f32 %v856_v25, %v401_v62  ;;  %519 = vmatmul.bf16.gmra.mxu1 %v427_v61 }
  0xd8   : > { %v384_v0 = vpop.f32.mrf.mxu0 }
  0xd9   : > { %v422_v2 = vmax.f32 %v402_v63, 0.0  ;;  %v385_v4 = vadd.f32 %v856_v25, %v384_v0 }
  0xdb   : > { %v431_v3 = vpack.c.bf16 %v422_v2, %v421_v1  ;;  %v415_v7 = vmax.f32 %v385_v4, 0.0 }
  0xdd   : > { %539 = vmatmul.bf16.gmra.mxu3 %v431_v3 }
  0xde   : > { %v404_v5 = vpop.f32.mrf.mxu2 }
  0xdf   : > { %v405_v10 = vadd.f32 %v856_v25, %v404_v5 }
  0xe0   : > { %v386_v6 = vpop.f32.mrf.mxu0 }
  0xe1   : > { %v387_v8 = vadd.f32 %v856_v25, %v386_v6  ;;  %v423_v14 = vmax.f32 %v405_v10, 0.0 }
  0xe3   : > { %v416_v9 = vmax.f32 %v387_v8, 0.0 }
  0xe5   : > { %v428_v11 = vpack.c.bf16 %v416_v9, %v415_v7 }
  0xe6   : > { %v406_v12 = vpop.f32.mrf.mxu2 }
  0xe7   : > { %v407_v13 = vadd.f32 %v856_v25, %v406_v12  ;;  %524 = vmatmul.bf16.gmra.mxu1 %v428_v11 }
  0xe9   : > { %v424_v15 = vmax.f32 %v407_v13, 0.0 }
  0xeb   : > { %v432_v16 = vpack.c.bf16 %v424_v15, %v423_v14 }
  0xed   : > { %544 = vmatmul.bf16.gmra.mxu3 %v432_v16 }
 0x134   : > { %v510_v17 = vpop.f32.mrf.mxu1 }
 0x135   : > { %v511_v19 = vadd.f32 %v857_v18, %v510_v17 }
 0x137   : > { %v550_v22 = vmax.f32 %v511_v19, 0.0 }
 0x13c   : > { %v512_v20 = vpop.f32.mrf.mxu1 }
 0x13d   : > { %v513_v21 = vadd.f32 %v857_v18, %v512_v20 }
 0x13f   : > { %v551_v23 = vmax.f32 %v513_v21, 0.0 }
 0x140   : > { %v530_v24 = vpop.f32.mrf.mxu3 }
 0x141   : > { %v788_v25 = vpack.c.bf16 %v551_v23, %v550_v22  ;;  %v531_v27 = vadd.f32 %v857_v18, %v530_v24 }
 0x143   : > { %789 = vst [vmem:[%s971_s16] sm:$0xff] %v788_v25   ;;  %v558_v30 = vmax.f32 %v531_v27, 0.0 }
 0x144   : > { %v515_v26 = vpop.f32.mrf.mxu1 }
 0x145   : > { %v516_v31 = vadd.f32 %v857_v18, %v515_v26 }
 0x147   : > { %v552_v36 = vmax.f32 %v516_v31, 0.0 }
 0x148   : > { %v532_v28 = vpop.f32.mrf.mxu3 }
 0x149   : > { %v533_v29 = vadd.f32 %v857_v18, %v532_v28 }
 0x14b   : > { %v559_v32 = vmax.f32 %v533_v29, 0.0 }
 0x14c   : > { %v517_v33 = vpop.f32.mrf.mxu1 }
 0x14d   : > { %v808_v34 = vpack.c.bf16 %v559_v32, %v558_v30  ;;  %v518_v35 = vadd.f32 %v857_v18, %v517_v33 }
 0x14f   : > { %828 = vst [vmem:[%s971_s16 + $0x20] sm:$0xff] %v808_v34   ;;  %v553_v37 = vmax.f32 %v518_v35, 0.0 }
 0x150   : > { %v535_v38 = vpop.f32.mrf.mxu3 }
 0x151   : > { %v793_v39 = vpack.c.bf16 %v553_v37, %v552_v36  ;;  %v536_v41 = vadd.f32 %v857_v18, %v535_v38 }
 0x153   : > { %825 = vst [vmem:[%s971_s16 + $0x8] sm:$0xff] %v793_v39   ;;  %v560_v44 = vmax.f32 %v536_v41, 0.0 }
 0x154   : > { %v520_v40 = vpop.f32.mrf.mxu1 }
 0x155   : > { %v521_v45 = vadd.f32 %v857_v18, %v520_v40 }
 0x157   : > { %v554_v50 = vmax.f32 %v521_v45, 0.0 }
 0x158   : > { %v537_v42 = vpop.f32.mrf.mxu3 }
 0x159   : > { %v538_v43 = vadd.f32 %v857_v18, %v537_v42 }
 0x15b   : > { %v561_v46 = vmax.f32 %v538_v43, 0.0 }
 0x15c   : > { %v522_v47 = vpop.f32.mrf.mxu1 }
 0x15d   : > { %v813_v48 = vpack.c.bf16 %v561_v46, %v560_v44  ;;  %v523_v49 = vadd.f32 %v857_v18, %v522_v47 }
 0x15f   : > { %829 = vst [vmem:[%s971_s16 + $0x28] sm:$0xff] %v813_v48   ;;  %v555_v51 = vmax.f32 %v523_v49, 0.0 }
 0x160   : > { %v540_v52 = vpop.f32.mrf.mxu3 }
 0x161   : > { %v798_v53 = vpack.c.bf16 %v555_v51, %v554_v50  ;;  %v541_v55 = vadd.f32 %v857_v18, %v540_v52 }
 0x163   : > { %826 = vst [vmem:[%s971_s16 + $0x10] sm:$0xff] %v798_v53   ;;  %v562_v58 = vmax.f32 %v541_v55, 0.0 }
 0x164   : > { %v525_v54 = vpop.f32.mrf.mxu1 }
 0x165   : > { %v526_v59 = vadd.f32 %v857_v18, %v525_v54 }
 0x167   : > { %v556_v0 = vmax.f32 %v526_v59, 0.0 }
 0x168   : > { %v542_v56 = vpop.f32.mrf.mxu3 }
 0x169   : > { %v543_v57 = vadd.f32 %v857_v18, %v542_v56 }
 0x16b   : > { %v563_v60 = vmax.f32 %v543_v57, 0.0 }
 0x16c   : > { %v527_v61 = vpop.f32.mrf.mxu1 }
 0x16d   : > { %v818_v62 = vpack.c.bf16 %v563_v60, %v562_v58  ;;  %v528_v63 = vadd.f32 %v857_v18, %v527_v61 }
 0x16f   : > { %830 = vst [vmem:[%s971_s16 + $0x30] sm:$0xff] %v818_v62   ;;  %v557_v1 = vmax.f32 %v528_v63, 0.0 }
 0x170   : > { %v545_v2 = vpop.f32.mrf.mxu3 }
 0x171   : > { %v803_v3 = vpack.c.bf16 %v557_v1, %v556_v0  ;;  %v546_v4 = vadd.f32 %v857_v18, %v545_v2 }
 0x173   : > { %827 = vst [vmem:[%s971_s16 + $0x18] sm:$0xff] %v803_v3   ;;  %v564_v7 = vmax.f32 %v546_v4, 0.0 }
 0x178   : > { %v547_v5 = vpop.f32.mrf.mxu3 }
 0x179   : > { %v548_v6 = vadd.f32 %v857_v18, %v547_v5 }
 0x17b   : > { %v565_v8 = vmax.f32 %v548_v6, 0.0 }
 0x17d   : > { %v823_v9 = vpack.c.bf16 %v565_v8, %v564_v7 }
 0x17f   : > { %831 = vst [vmem:[%s971_s16 + $0x38] sm:$0xff] %v823_v9  }
 0x180 PF: > { %s15_s18 = sadd.s32 1, %s864_s18  }
 0x181   : > { %p12_p4 = scmp.ge.s32.totalorder %s15_s18, 4  }
 0x183   :  { %14 = sbr.rel (!%p12_p4) target bundleno = 1 (0x1), region = 70 }

// kernel: nin_hyperdecisionet_forward.9
= control target key start
LH: loop header
LB: loop body
LE: loop exit
PB: predicated region body
PF: predicated region fallthrough
CT: control target
= control target key end

     0   :  { %s1650_s18 = smov 0   ;;  %s1937_s0 = inlined_call_operand.vmem [shape: bf16[32,1152], index: 0, kind: input, shape index: {}]   ;;  %s1938_s1 = inlined_call_operand.vmem [shape: bf16[1152,128], index: 1, kind: input, shape index: {}]   ;;  %s1939_s2 = inlined_call_operand.vmem [shape: f32[1,128], index: 2, kind: input, shape index: {}]   ;;  %s1940_s3 = inlined_call_operand.vmem [shape: bf16[128,128], index: 3, kind: input, shape index: {}]   ;;  %s1941_s4 = inlined_call_operand.vmem [shape: f32[1,128], index: 4, kind: input, shape index: {}]   ;;  %s1942_s5 = inlined_call_operand.vmem [shape: bf16[32,128], index: 5, kind: output, shape index: {}]  }
   0x1 LB: > { %s1140_s19 = sadd.s32 4294967295, %s1618_s18   ;;  %p1144_p0 = scmp.ge.s32.totalorder %s1618_s18, 1  ;;  %s1618_s18 = sphi %s1650_s18, %s15_s18  }
   0x2   : > { %p189_p1 = scmp.lt.s32.totalorder %s1618_s18, 3 }
   0x4   : > { %p190_p2 = pnand %p1144_p0, %p189_p1 }
   0x5   : > { %s1145_s21 = sshll.u32 (!%p190_p2), %s1140_s19, 1 }
   0x6   : > { %193 = sbr.rel (%p190_p2) target bundleno = 388 (0x184), region = 40  ;;  %p219_p3 = scmp.lt.s32.totalorder (!%p190_p2), %s1145_s21, 3 }
   0xb   : > { %v1523_v0 = vld [vmem:[%s1938_s1 + $0x38] sm:$0xff]  ;;  %v1522_v4 = vld [vmem:[%s1938_s1 + $0x30] sm:$0xff]  ;;  %v1521_v8 = vld [vmem:[%s1938_s1 + $0x28] sm:$0xff]  ;;  %s1944_s21 = smov (!%p219_p3, %s1145_s21), 3 }
   0xc   : > { %v1539_v1 = vld [vmem:[%s1938_s1 + $0xb8] sm:$0xff]  ;;  %867 = vmatpush.bf16.msra.mxu0 %v1523_v0  ;;  %v1538_v5 = vld [vmem:[%s1938_s1 + $0xb0] sm:$0xff]  ;;  %v1537_v9 = vld [vmem:[%s1938_s1 + $0xa8] sm:$0xff]  ;;  %s1601_s23 = smul.u32 36, %s1944_s21  ;;  %s1148_s30 = sshll.u32 %s1944_s21, 2 }
   0xd   : > { %v1531_v2 = vld [vmem:[%s1938_s1 + $0x78] sm:$0xff]  ;;  %895 = vmatpush.bf16.msra.mxu2 %v1539_v1  ;;  %v1530_v6 = vld [vmem:[%s1938_s1 + $0x70] sm:$0xff]  ;;  %v1529_v10 = vld [vmem:[%s1938_s1 + $0x68] sm:$0xff]  ;;  %s229_s9 = scalar_lea.vmem %s1942_s5, %s1148_s30 }
   0xe   : > { %v1547_v3 = vld [vmem:[%s1938_s1 + $0xf8] sm:$0xff]  ;;  %881 = vmatpush.bf16.msra.mxu1 %v1531_v2  ;;  %v1546_v7 = vld [vmem:[%s1938_s1 + $0xf0] sm:$0xff]  ;;  %v1545_v11 = vld [vmem:[%s1938_s1 + $0xe8] sm:$0xff]  ;;  %s1748_s8 = scalar_lea.vmem %s1937_s0, %s1601_s23 }
   0xf   : > { %909 = vmatpush.bf16.msra.mxu3 %v1547_v3  ;;  %v1520_v12 = vld [vmem:[%s1938_s1 + $0x20] sm:$0xff]  ;;  %v1519_v16 = vld [vmem:[%s1938_s1 + $0x18] sm:$0xff]  ;;  %v1518_v20 = vld [vmem:[%s1938_s1 + $0x10] sm:$0xff] }
  0x10   : > { %868 = vmatpush.bf16.msra.mxu0 %v1522_v4  ;;  %v1536_v13 = vld [vmem:[%s1938_s1 + $0xa0] sm:$0xff]  ;;  %v1535_v17 = vld [vmem:[%s1938_s1 + $0x98] sm:$0xff]  ;;  %v1534_v21 = vld [vmem:[%s1938_s1 + $0x90] sm:$0xff] }
  0x11   : > { %896 = vmatpush.bf16.msra.mxu2 %v1538_v5  ;;  %v1528_v14 = vld [vmem:[%s1938_s1 + $0x60] sm:$0xff]  ;;  %v1527_v18 = vld [vmem:[%s1938_s1 + $0x58] sm:$0xff]  ;;  %v1526_v22 = vld [vmem:[%s1938_s1 + $0x50] sm:$0xff] }
  0x12   : > { %882 = vmatpush.bf16.msra.mxu1 %v1530_v6  ;;  %v1544_v15 = vld [vmem:[%s1938_s1 + $0xe0] sm:$0xff]  ;;  %v1543_v19 = vld [vmem:[%s1938_s1 + $0xd8] sm:$0xff]  ;;  %v1542_v23 = vld [vmem:[%s1938_s1 + $0xd0] sm:$0xff] }
  0x13   : > { %910 = vmatpush.bf16.msra.mxu3 %v1546_v7  ;;  %v1517_v24 = vld [vmem:[%s1938_s1 + $0x8] sm:$0xff]  ;;  %v1516_v28 = vld [vmem:[%s1938_s1] sm:$0xff]  ;;  %v1555_v30 = vld [vmem:[%s1938_s1 + $0x138] sm:$0xff] }
  0x14   : > { %869 = vmatpush.bf16.msra.mxu0 %v1521_v8  ;;  %v1533_v25 = vld [vmem:[%s1938_s1 + $0x88] sm:$0xff]  ;;  %v1532_v29 = vld [vmem:[%s1938_s1 + $0x80] sm:$0xff]  ;;  %v1571_v31 = vld [vmem:[%s1938_s1 + $0x1b8] sm:$0xff] }
  0x15   : > { %897 = vmatpush.bf16.msra.mxu2 %v1537_v9  ;;  %v1525_v26 = vld [vmem:[%s1938_s1 + $0x48] sm:$0xff]  ;;  %v1524_v32 = vld [vmem:[%s1938_s1 + $0x40] sm:$0xff]  ;;  %v1563_v38 = vld [vmem:[%s1938_s1 + $0x178] sm:$0xff] }
  0x16   : > { %883 = vmatpush.bf16.msra.mxu1 %v1529_v10  ;;  %v1541_v27 = vld [vmem:[%s1938_s1 + $0xc8] sm:$0xff]  ;;  %v1540_v33 = vld [vmem:[%s1938_s1 + $0xc0] sm:$0xff]  ;;  %v1579_v39 = vld [vmem:[%s1938_s1 + $0x1f8] sm:$0xff] }
  0x17   : > { %911 = vmatpush.bf16.msra.mxu3 %v1545_v11  ;;  %v1151_v34 = vld [vmem:[%s1748_s8] sm:$0xf]  ;;  %v1511_v35 = vld [vmem:[%s1748_s8 + $0x20] sm:$0xf0]  ;;  %v1159_v36 = vld [vmem:[%s1748_s8 + $0x8] sm:$0xf] }
  0x18   : > { %870 = vmatpush.bf16.msra.mxu0 %v1520_v12  ;;  %v1512_v37 = vld [vmem:[%s1748_s8 + $0x28] sm:$0xf0]  ;;  %v1507_v40 = vld [vmem:[%s1748_s8 + $0x4] sm:$0xf]  ;;  %v1153_v41 = vld [vmem:[%s1748_s8 + $0x24] sm:$0xf0]  ;;  %v1152_v44 = vor.u32 %v1511_v35, %v1151_v34 }
  0x19   : > { %898 = vmatpush.bf16.msra.mxu2 %v1536_v13  ;;  %v1508_v42 = vld [vmem:[%s1748_s8 + $0xc] sm:$0xf]  ;;  %v1161_v43 = vld [vmem:[%s1748_s8 + $0x2c] sm:$0xf0]  ;;  %v1160_v45 = vor.u32 %v1512_v37, %v1159_v36  ;;  %v1156_v48 = vor.u32 %v1507_v40, %v1153_v41  ;;  %v1552_v56 = vld [vmem:[%s1938_s1 + $0x120] sm:$0xff] }
  0x1a   : > { %884 = vmatpush.bf16.msra.mxu1 %v1528_v14  ;;  %v1554_v46 = vld [vmem:[%s1938_s1 + $0x130] sm:$0xff]  ;;  %v1164_v49 = vor.u32 %v1508_v42, %v1161_v43  ;;  %v1553_v52 = vld [vmem:[%s1938_s1 + $0x128] sm:$0xff]  ;;  %v1568_v57 = vld [vmem:[%s1938_s1 + $0x1a0] sm:$0xff] }
  0x1b   : > { %912 = vmatpush.bf16.msra.mxu3 %v1544_v15  ;;  %v1570_v47 = vld [vmem:[%s1938_s1 + $0x1b0] sm:$0xff]  ;;  %v1569_v53 = vld [vmem:[%s1938_s1 + $0x1a8] sm:$0xff]  ;;  %v1560_v58 = vld [vmem:[%s1938_s1 + $0x160] sm:$0xff] }
  0x1c   : > { %871 = vmatpush.bf16.msra.mxu0 %v1519_v16  ;;  %v1562_v50 = vld [vmem:[%s1938_s1 + $0x170] sm:$0xff]  ;;  %v1561_v54 = vld [vmem:[%s1938_s1 + $0x168] sm:$0xff]  ;;  %v1576_v59 = vld [vmem:[%s1938_s1 + $0x1e0] sm:$0xff] }
  0x1d   : > { %899 = vmatpush.bf16.msra.mxu2 %v1535_v17  ;;  %v1578_v51 = vld [vmem:[%s1938_s1 + $0x1f0] sm:$0xff]  ;;  %v1577_v55 = vld [vmem:[%s1938_s1 + $0x1e8] sm:$0xff]  ;;  %v1551_v60 = vld [vmem:[%s1938_s1 + $0x118] sm:$0xff] }
  0x1e   : > { %885 = vmatpush.bf16.msra.mxu1 %v1527_v18  ;;  %v1567_v61 = vld [vmem:[%s1938_s1 + $0x198] sm:$0xff]  ;;  %v1550_v0 = vld [vmem:[%s1938_s1 + $0x110] sm:$0xff]  ;;  %v1549_v4 = vld [vmem:[%s1938_s1 + $0x108] sm:$0xff] }
  0x1f   : > { %913 = vmatpush.bf16.msra.mxu3 %v1543_v19  ;;  %v1559_v62 = vld [vmem:[%s1938_s1 + $0x158] sm:$0xff]  ;;  %v1566_v1 = vld [vmem:[%s1938_s1 + $0x190] sm:$0xff]  ;;  %v1565_v5 = vld [vmem:[%s1938_s1 + $0x188] sm:$0xff] }
  0x20   : > { %872 = vmatpush.bf16.msra.mxu0 %v1518_v20  ;;  %v1575_v63 = vld [vmem:[%s1938_s1 + $0x1d8] sm:$0xff]  ;;  %v1558_v2 = vld [vmem:[%s1938_s1 + $0x150] sm:$0xff]  ;;  %v1557_v6 = vld [vmem:[%s1938_s1 + $0x148] sm:$0xff] }
  0x21   : > { %900 = vmatpush.bf16.msra.mxu2 %v1534_v21  ;;  %v1574_v3 = vld [vmem:[%s1938_s1 + $0x1d0] sm:$0xff]  ;;  %v1573_v7 = vld [vmem:[%s1938_s1 + $0x1c8] sm:$0xff]  ;;  %v1548_v8 = vld [vmem:[%s1938_s1 + $0x100] sm:$0xff] }
  0x22   : > { %886 = vmatpush.bf16.msra.mxu1 %v1526_v22  ;;  %v1564_v9 = vld [vmem:[%s1938_s1 + $0x180] sm:$0xff]  ;;  %v1587_v10 = vld [vmem:[%s1938_s1 + $0x238] sm:$0xff]  ;;  %v1167_v11 = vld [vmem:[%s1748_s8 + $0x10] sm:$0xf] }
  0x23   : > { %914 = vmatpush.bf16.msra.mxu3 %v1542_v23  ;;  %v1513_v12 = vld [vmem:[%s1748_s8 + $0x30] sm:$0xf0]  ;;  %v1175_v13 = vld [vmem:[%s1748_s8 + $0x18] sm:$0xf]  ;;  %v1514_v14 = vld [vmem:[%s1748_s8 + $0x38] sm:$0xf0] }
  0x24   : > { %873 = vmatpush.bf16.msra.mxu0 %v1517_v24  ;;  %v1556_v15 = vld [vmem:[%s1938_s1 + $0x140] sm:$0xff]  ;;  %v1509_v17 = vld [vmem:[%s1748_s8 + $0x14] sm:$0xf]  ;;  %v1169_v18 = vld [vmem:[%s1748_s8 + $0x34] sm:$0xf0]  ;;  %v1168_v21 = vor.u32 %v1513_v12, %v1167_v11  ;;  %v1176_v22 = vor.u32 %v1514_v14, %v1175_v13 }
  0x25   : > { %901 = vmatpush.bf16.msra.mxu2 %v1533_v25  ;;  %v1572_v16 = vld [vmem:[%s1938_s1 + $0x1c0] sm:$0xff]  ;;  %v1510_v19 = vld [vmem:[%s1748_s8 + $0x1c] sm:$0xf]  ;;  %v1172_v23 = vor.u32 %v1509_v17, %v1169_v18  ;;  %v1586_v25 = vld [vmem:[%s1938_s1 + $0x230] sm:$0xff] }
  0x26   : > { %887 = vmatpush.bf16.msra.mxu1 %v1525_v26  ;;  %v1177_v20 = vld [vmem:[%s1748_s8 + $0x3c] sm:$0xf0]  ;;  %v1585_v26 = vld [vmem:[%s1938_s1 + $0x228] sm:$0xff]  ;;  %v1595_v35 = vld [vmem:[%s1940_s3 + $0x38] sm:$0xff] }
  0x27   : > { %915 = vmatpush.bf16.msra.mxu3 %v1541_v27  ;;  %v1180_v24 = vor.u32 %v1510_v19, %v1177_v20  ;;  %v1584_v27 = vld [vmem:[%s1938_s1 + $0x220] sm:$0xff]  ;;  %v1594_v36 = vld [vmem:[%s1940_s3 + $0x30] sm:$0xff]  ;;  %v1593_v37 = vld [vmem:[%s1940_s3 + $0x28] sm:$0xff] }
  0x28   : > { %874 = vmatpush.bf16.msra.mxu0 %v1516_v28  ;;  %v1583_v28 = vld [vmem:[%s1938_s1 + $0x218] sm:$0xff]  ;;  %v1590_v43 = vld [vmem:[%s1940_s3 + $0x10] sm:$0xff]  ;;  %v1611_v20 = vld [vmem:[%s1941_s4] ss:$0 sm:$0xff] }
  0x29   : > { %902 = vmatpush.bf16.msra.mxu2 %v1532_v29  ;;  %v1582_v29 = vld [vmem:[%s1938_s1 + $0x210] sm:$0xff]  ;;  %v1591_v40 = vld [vmem:[%s1940_s3 + $0x18] sm:$0xff] }
  0x2a   : > { %888 = vmatpush.bf16.msra.mxu1 %v1524_v32  ;;  %v1183_v32 = vld [vmem:[%s1748_s8 + $0x20] sm:$0xf] }
  0x2b   : > { %916 = vmatpush.bf16.msra.mxu3 %v1540_v33  ;;  %875 = vmatmul.bf16.vlgmr.msra.gmra.mxu0 %v1152_v44  ;;  %v1515_v33 = vld [vmem:[%s1748_s8 + $0x40] sm:$0xf0] }
  0x2c   : > { %923 = vmatpush.bf16.msrb.mxu0 %v1555_v30  ;;  %903 = vmatmul.bf16.vlgmr.msra.gmra.mxu2 %v1160_v45  ;;  %v1581_v30 = vld [vmem:[%s1938_s1 + $0x208] sm:$0xff]  ;;  %v1184_v34 = vor.u32 %v1515_v33, %v1183_v32  ;;  %v1610_v45 = vld [vmem:[%s1939_s2] ss:$0 sm:$0xff] }
  0x2d   : > { %951 = vmatpush.bf16.msrb.mxu2 %v1571_v31  ;;  %889 = vmatmul.bf16.vlgmr.msra.gmra.mxu1 %v1156_v48  ;;  %v1580_v31 = vld [vmem:[%s1938_s1 + $0x200] sm:$0xff] }
  0x2e   : > { %937 = vmatpush.bf16.msrb.mxu1 %v1563_v38  ;;  %917 = vmatmul.bf16.vlgmr.msra.gmra.mxu3 %v1164_v49  ;;  %v1592_v38 = vld [vmem:[%s1940_s3 + $0x20] sm:$0xff] }
  0x2f   : > { %965 = vmatpush.bf16.msrb.mxu3 %v1579_v39 }
  0x30   : > { %924 = vmatpush.bf16.msrb.mxu0 %v1554_v46 }
  0x31   : > { %952 = vmatpush.bf16.msrb.mxu2 %v1570_v47  ;;  %v1589_v47 = vld [vmem:[%s1940_s3 + $0x8] sm:$0xff] }
  0x32   : > { %938 = vmatpush.bf16.msrb.mxu1 %v1562_v50  ;;  %v1588_v50 = vld [vmem:[%s1940_s3] sm:$0xff] }
  0x33   : > { %966 = vmatpush.bf16.msrb.mxu3 %v1578_v51 }
  0x34   : > { %925 = vmatpush.bf16.msrb.mxu0 %v1553_v52 }
  0x35   : > { %953 = vmatpush.bf16.msrb.mxu2 %v1569_v53 }
  0x36   : > { %939 = vmatpush.bf16.msrb.mxu1 %v1561_v54 }
  0x37   : > { %967 = vmatpush.bf16.msrb.mxu3 %v1577_v55 }
  0x38   : > { %926 = vmatpush.bf16.msrb.mxu0 %v1552_v56 }
  0x39   : > { %954 = vmatpush.bf16.msrb.mxu2 %v1568_v57 }
  0x3a   : > { %940 = vmatpush.bf16.msrb.mxu1 %v1560_v58 }
  0x3b   : > { %968 = vmatpush.bf16.msrb.mxu3 %v1576_v59 }
  0x3c   : > { %927 = vmatpush.bf16.msrb.mxu0 %v1551_v60 }
  0x3d   : > { %955 = vmatpush.bf16.msrb.mxu2 %v1567_v61 }
  0x3e   : > { %941 = vmatpush.bf16.msrb.mxu1 %v1559_v62 }
  0x3f   : > { %969 = vmatpush.bf16.msrb.mxu3 %v1575_v63 }
  0x40   : > { %928 = vmatpush.bf16.msrb.mxu0 %v1550_v0 }
  0x41   : > { %956 = vmatpush.bf16.msrb.mxu2 %v1566_v1 }
  0x42   : > { %942 = vmatpush.bf16.msrb.mxu1 %v1558_v2 }
  0x43   : > { %970 = vmatpush.bf16.msrb.mxu3 %v1574_v3 }
  0x44   : > { %929 = vmatpush.bf16.msrb.mxu0 %v1549_v4 }
  0x45   : > { %957 = vmatpush.bf16.msrb.mxu2 %v1565_v5 }
  0x46   : > { %943 = vmatpush.bf16.msrb.mxu1 %v1557_v6 }
  0x47   : > { %971 = vmatpush.bf16.msrb.mxu3 %v1573_v7 }
  0x48   : > { %930 = vmatpush.bf16.msrb.mxu0 %v1548_v8 }
  0x49   : > { %958 = vmatpush.bf16.msrb.mxu2 %v1564_v9 }
  0x4a   : > { %944 = vmatpush.bf16.msrb.mxu1 %v1556_v15 }
  0x4b   : > { %972 = vmatpush.bf16.msrb.mxu3 %v1572_v16  ;;  %931 = vmatmul.bf16.vlgmr.msrb.gmra.mxu0 %v1168_v21 }
  0x4c   : > { %979 = vmatpush.bf16.msra.mxu0 %v1587_v10  ;;  %959 = vmatmul.bf16.vlgmr.msrb.gmra.mxu2 %v1176_v22 }
  0x4d   : > { %945 = vmatmul.bf16.vlgmr.msrb.gmra.mxu1 %v1172_v23 }
  0x4e   : > { %973 = vmatmul.bf16.vlgmr.msrb.gmra.mxu3 %v1180_v24  ;;  %1064 = vmatpush.bf16.msra.mxu1 %v1595_v35 }
  0x50   : > { %980 = vmatpush.bf16.msra.mxu0 %v1586_v25 }
  0x52   : > { %1065 = vmatpush.bf16.msra.mxu1 %v1594_v36 }
  0x54   : > { %981 = vmatpush.bf16.msra.mxu0 %v1585_v26 }
  0x56   : > { %1066 = vmatpush.bf16.msra.mxu1 %v1593_v37 }
  0x58   : > { %982 = vmatpush.bf16.msra.mxu0 %v1584_v27 }
  0x5a   : > { %1067 = vmatpush.bf16.msra.mxu1 %v1592_v38 }
  0x5c   : > { %983 = vmatpush.bf16.msra.mxu0 %v1583_v28 }
  0x5e   : > { %1068 = vmatpush.bf16.msra.mxu1 %v1591_v40 }
  0x60   : > { %984 = vmatpush.bf16.msra.mxu0 %v1582_v29 }
  0x62   : > { %1069 = vmatpush.bf16.msra.mxu1 %v1590_v43 }
  0x64   : > { %985 = vmatpush.bf16.msra.mxu0 %v1581_v30 }
  0x66   : > { %1070 = vmatpush.bf16.msra.mxu1 %v1589_v47 }
  0x68   : > { %986 = vmatpush.bf16.msra.mxu0 %v1580_v31 }
  0x6a   : > { %1071 = vmatpush.bf16.msra.mxu1 %v1588_v50 }
  0x6b   : > { %987 = vmatmul.bf16.vlgmr.msra.gmra.mxu0 %v1184_v34 }
  0xa8   : > { %v876_v39 = vpop.f32.mrf.mxu0 }
  0xa9   : > { %v877_v48 = vadd.f32 %v1610_v45, %v876_v39 }
  0xaa   : > { %v890_v41 = vpop.f32.mrf.mxu1 }
  0xab   : > { %v891_v52 = vadd.f32 %v890_v41, %v877_v48 }
  0xaf   : > { %v904_v42 = vpop.f32.mrf.mxu2 }
  0xb0   : > { %v878_v44 = vpop.f32.mrf.mxu0  ;;  %v905_v56 = vadd.f32 %v904_v42, %v891_v52 }
  0xb1   : > { %v918_v46 = vpop.f32.mrf.mxu3  ;;  %v879_v54 = vadd.f32 %v1610_v45, %v878_v44 }
  0xb2   : > { %v892_v49 = vpop.f32.mrf.mxu1  ;;  %v919_v59 = vadd.f32 %v918_v46, %v905_v56 }
  0xb3   : > { %v893_v57 = vadd.f32 %v892_v49, %v879_v54 }
  0xb7   : > { %v906_v51 = vpop.f32.mrf.mxu2 }
  0xb8   : > { %v907_v61 = vadd.f32 %v906_v51, %v893_v57 }
  0xb9   : > { %v920_v55 = vpop.f32.mrf.mxu3 }
  0xba   : > { %v921_v1 = vadd.f32 %v920_v55, %v907_v61 }
  0xc8   : > { %v932_v53 = vpop.f32.mrf.mxu0 }
  0xc9   : > { %v933_v63 = vadd.f32 %v932_v53, %v919_v59 }
  0xca   : > { %v946_v58 = vpop.f32.mrf.mxu1 }
  0xcb   : > { %v947_v2 = vadd.f32 %v946_v58, %v933_v63 }
  0xcf   : > { %v960_v60 = vpop.f32.mrf.mxu2 }
  0xd0   : > { %v934_v62 = vpop.f32.mrf.mxu0  ;;  %v961_v7 = vadd.f32 %v960_v60, %v947_v2 }
  0xd1   : > { %v974_v0 = vpop.f32.mrf.mxu3  ;;  %v935_v3 = vadd.f32 %v934_v62, %v921_v1 }
  0xd2   : > { %v948_v4 = vpop.f32.mrf.mxu1  ;;  %v975_v11 = vadd.f32 %v974_v0, %v961_v7 }
  0xd3   : > { %v949_v8 = vadd.f32 %v948_v4, %v935_v3 }
  0xd7   : > { %v962_v5 = vpop.f32.mrf.mxu2 }
  0xd8   : > { %v963_v9 = vadd.f32 %v962_v5, %v949_v8 }
  0xd9   : > { %v976_v10 = vpop.f32.mrf.mxu3 }
  0xda   : > { %v977_v12 = vadd.f32 %v976_v10, %v963_v9 }
  0xe8   : > { %v988_v6 = vpop.f32.mrf.mxu0 }
  0xe9   : > { %v989_v13 = vadd.f32 %v988_v6, %v975_v11 }
  0xeb   : > { %v993_v16 = vmax.f32 %v989_v13, 0.0 }
  0xf0   : > { %v990_v14 = vpop.f32.mrf.mxu0 }
  0xf1   : > { %v991_v15 = vadd.f32 %v990_v14, %v977_v12 }
  0xf3   : > { %v994_v17 = vmax.f32 %v991_v15, 0.0 }
  0xf5   : > { %v995_v18 = vpack.c.bf16 %v994_v17, %v993_v16 }
  0xf7   : > { %1072 = vmatmul.bf16.vlgmr.msra.gmra.mxu1 %v995_v18 }
 0x174   : > { %v1073_v19 = vpop.f32.mrf.mxu1 }
 0x175   : > { %v1074_v21 = vadd.f32 %v1611_v20, %v1073_v19 }
 0x177   : > { %v1078_v24 = vmax.f32 %v1074_v21, 0.0 }
 0x17c   : > { %v1075_v22 = vpop.f32.mrf.mxu1 }
 0x17d   : > { %v1076_v23 = vadd.f32 %v1611_v20, %v1075_v22 }
 0x17f   : > { %v1079_v25 = vmax.f32 %v1076_v23, 0.0 }
 0x181   : > { %v1599_v26 = vpack.c.bf16 %v1079_v25, %v1078_v24 }
 0x183   : > { %1600 = vst [vmem:[%s229_s9] sm:$0xff] %v1599_v26  }
 0x184 PF: > { %s15_s18 = sadd.s32 1, %s1618_s18  }
 0x185   : > { %p12_p4 = scmp.ge.s32.totalorder %s15_s18, 4  }
 0x187   :  { %14 = sbr.rel (!%p12_p4) target bundleno = 1 (0x1), region = 70 }

// kernel: nin_hyperdecisionet_forward.7
= control target key start
LH: loop header
LB: loop body
LE: loop exit
PB: predicated region body
PF: predicated region fallthrough
CT: control target
= control target key end

     0   :  { %s7300_s12 = smov 0   ;;  %s10700_s0 = inlined_call_operand.vmem [shape: bf16[128,3200], index: 0, kind: input, shape index: {}]   ;;  %s10701_s1 = inlined_call_operand.vmem [shape: bf16[3200,256], index: 1, kind: input, shape index: {}]   ;;  %s10702_s2 = inlined_call_operand.vmem [shape: f32[1,256], index: 2, kind: input, shape index: {}]   ;;  %s10703_s3 = inlined_call_operand.vmem [shape: bf16[128,256], index: 3, kind: output, shape index: {}]  }
   0x1 LB: > { %s4733_s13 = sadd.s32 4294967295, %s7278_s12   ;;  %p4737_p0 = scmp.ge.s32.totalorder %s7278_s12, 1  ;;  %s7278_s12 = sphi %s7300_s12, %s13_s12  }
   0x2   : > { %p139_p1 = scmp.lt.s32.totalorder %s7278_s12, 3 }
   0x4   : > { %p140_p2 = pnand %p4737_p0, %p139_p1 }
   0x6   : > { %143 = sbr.rel (%p140_p2) target bundleno = 983 (0x3d7), region = 32 }
   0xb   : > { %v5201_v0 = vld [vmem:[%s10701_s1 + $0x70] sm:$0xf]  ;;  %v6861_v1 = vld [vmem:[%s10701_s1 + $0x74] sm:$0xf0]  ;;  %v5193_v5 = vld [vmem:[%s10701_s1 + $0x60] sm:$0xf] }
   0xc   : > { %v5265_v2 = vld [vmem:[%s10701_s1 + $0xf0] sm:$0xf]  ;;  %v5202_v3 = vor.u32 %v6861_v1, %v5201_v0  ;;  %v6877_v4 = vld [vmem:[%s10701_s1 + $0xf4] sm:$0xf0]  ;;  %v6859_v6 = vld [vmem:[%s10701_s1 + $0x64] sm:$0xf0] }
   0xd   : > { %v5266_v7 = vor.u32 %v6877_v4, %v5265_v2  ;;  %v5257_v8 = vld [vmem:[%s10701_s1 + $0xe0] sm:$0xf]  ;;  %v6875_v9 = vld [vmem:[%s10701_s1 + $0xe4] sm:$0xf0]  ;;  %v5194_v10 = vor.u32 %v6859_v6, %v5193_v5  ;;  %v5185_v12 = vld [vmem:[%s10701_s1 + $0x50] sm:$0xf] }
   0xe   : > { %7246 = vmatpush.bf16.msra.mxu2 %v5202_v3  ;;  %3193 = vmatpush.bf16.msra.mxu0 %v5202_v3  ;;  %v5258_v11 = vor.u32 %v6875_v9, %v5257_v8  ;;  %v6857_v13 = vld [vmem:[%s10701_s1 + $0x54] sm:$0xf0]  ;;  %v5249_v14 = vld [vmem:[%s10701_s1 + $0xd0] sm:$0xf]  ;;  %v5177_v18 = vld [vmem:[%s10701_s1 + $0x40] sm:$0xf] }
   0xf   : > { %7254 = vmatpush.bf16.msra.mxu3 %v5266_v7  ;;  %3222 = vmatpush.bf16.msra.mxu1 %v5266_v7  ;;  %v6873_v15 = vld [vmem:[%s10701_s1 + $0xd4] sm:$0xf0]  ;;  %v5186_v16 = vor.u32 %v6857_v13, %v5185_v12  ;;  %v6855_v19 = vld [vmem:[%s10701_s1 + $0x44] sm:$0xf0]  ;;  %v5241_v20 = vld [vmem:[%s10701_s1 + $0xc0] sm:$0xf] }
  0x10   : > { %v5250_v17 = vor.u32 %v6873_v15, %v5249_v14  ;;  %v6871_v21 = vld [vmem:[%s10701_s1 + $0xc4] sm:$0xf0]  ;;  %s4738_s21 = sshll.u32 %s4733_s13, 3  ;;  %v5178_v22 = vor.u32 %v6855_v19, %v5177_v18  ;;  %v5169_v24 = vld [vmem:[%s10701_s1 + $0x30] sm:$0xf] }
  0x11   : > { %p166_p3 = scmp.lt.s32.totalorder %s4738_s21, 15  ;;  %v5242_v23 = vor.u32 %v6871_v21, %v5241_v20  ;;  %v6853_v25 = vld [vmem:[%s10701_s1 + $0x34] sm:$0xf0]  ;;  %v5233_v26 = vld [vmem:[%s10701_s1 + $0xb0] sm:$0xf] }
  0x12   : > { %7247 = vmatpush.bf16.msra.mxu2 %v5194_v10  ;;  %3194 = vmatpush.bf16.msra.mxu0 %v5194_v10  ;;  %v6869_v27 = vld [vmem:[%s10701_s1 + $0xb4] sm:$0xf0]  ;;  %v5170_v28 = vor.u32 %v6853_v25, %v5169_v24  ;;  %v5161_v30 = vld [vmem:[%s10701_s1 + $0x20] sm:$0xf]  ;;  %v6851_v31 = vld [vmem:[%s10701_s1 + $0x24] sm:$0xf0] }
  0x13   : > { %7255 = vmatpush.bf16.msra.mxu3 %v5258_v11  ;;  %3223 = vmatpush.bf16.msra.mxu1 %v5258_v11  ;;  %s10897_s21 = smov (!%p166_p3, %s4738_s21), 15  ;;  %v5234_v29 = vor.u32 %v6869_v27, %v5233_v26  ;;  %v5225_v32 = vld [vmem:[%s10701_s1 + $0xa0] sm:$0xf]  ;;  %v6867_v33 = vld [vmem:[%s10701_s1 + $0xa4] sm:$0xf0]  ;;  %v5162_v34 = vor.u32 %v6851_v31, %v5161_v30 }
  0x14   : > { %s7262_s10 = smul.u32 100, %s10897_s21  ;;  %v5226_v35 = vor.u32 %v6867_v33, %v5225_v32  ;;  %v5153_v36 = vld [vmem:[%s10701_s1 + $0x10] sm:$0xf]  ;;  %v6849_v37 = vld [vmem:[%s10701_s1 + $0x14] sm:$0xf0]  ;;  %s6745_s8 = sshll.u32 %s10897_s21, 3 }
  0x15   : > { %v5217_v38 = vld [vmem:[%s10701_s1 + $0x90] sm:$0xf]  ;;  %v6865_v39 = vld [vmem:[%s10701_s1 + $0x94] sm:$0xf0]  ;;  %v5154_v40 = vor.u32 %v6849_v37, %v5153_v36  ;;  %v5145_v41 = vld [vmem:[%s10701_s1] sm:$0xf] }
  0x16   : > { %7248 = vmatpush.bf16.msra.mxu2 %v5186_v16  ;;  %3195 = vmatpush.bf16.msra.mxu0 %v5186_v16  ;;  %v6847_v42 = vld [vmem:[%s10701_s1 + $0x4] sm:$0xf0]  ;;  %s7406_s13 = scalar_lea.vmem %s10700_s0, %s7262_s10  ;;  %v5218_v43 = vor.u32 %v6865_v39, %v5217_v38  ;;  %v5209_v44 = vld [vmem:[%s10701_s1 + $0x80] sm:$0xf]  ;;  %v5329_v46 = vld [vmem:[%s10701_s1 + $0x170] sm:$0xf] }
  0x17   : > { %7256 = vmatpush.bf16.msra.mxu3 %v5250_v17  ;;  %3224 = vmatpush.bf16.msra.mxu1 %v5250_v17  ;;  %v6863_v45 = vld [vmem:[%s10701_s1 + $0x84] sm:$0xf0]  ;;  %v6893_v47 = vld [vmem:[%s10701_s1 + $0x174] sm:$0xf0]  ;;  %v5393_v48 = vld [vmem:[%s10701_s1 + $0x1f0] sm:$0xf]  ;;  %v5146_v53 = vor.u32 %v6847_v42, %v5145_v41 }
  0x18   : > { %v6909_v49 = vld [vmem:[%s10701_s1 + $0x1f4] sm:$0xf0]  ;;  %v4945_v50 = vld [vmem:[%s7406_s13 + $0x190] sm:$0xf]  ;;  %v6808_v54 = vld [vmem:[%s7406_s13 + $0x1f0] sm:$0xf0]  ;;  %v5210_v58 = vor.u32 %v6863_v45, %v5209_v44  ;;  %v5330_v61 = vor.u32 %v6893_v47, %v5329_v46 }
  0x19   : > { %v5457_v51 = vld [vmem:[%s10701_s1 + $0x270] sm:$0xf]  ;;  %v6925_v52 = vld [vmem:[%s10701_s1 + $0x274] sm:$0xf0]  ;;  %v4745_v55 = vld [vmem:[%s7406_s13] sm:$0xf]  ;;  %v5394_v63 = vor.u32 %v6909_v49, %v5393_v48  ;;  %v7449_v3 = vor.u32 %v6808_v54, %v4945_v50 }
  0x1a   : > { %7249 = vmatpush.bf16.msra.mxu2 %v5178_v22  ;;  %3196 = vmatpush.bf16.msra.mxu0 %v5178_v22  ;;  %v6758_v56 = vld [vmem:[%s7406_s13 + $0x60] sm:$0xf0]  ;;  %v5321_v57 = vld [vmem:[%s10701_s1 + $0x160] sm:$0xf]  ;;  %v6796_v59 = vld [vmem:[%s7406_s13 + $0x194] sm:$0xf]  ;;  %v5458_v9 = vor.u32 %v6925_v52, %v5457_v51 }
  0x1b   : > { %7257 = vmatpush.bf16.msra.mxu3 %v5242_v23  ;;  %3225 = vmatpush.bf16.msra.mxu1 %v5242_v23  ;;  %v4947_v60 = vld [vmem:[%s7406_s13 + $0x1f4] sm:$0xf0]  ;;  %v6891_v62 = vld [vmem:[%s10701_s1 + $0x164] sm:$0xf0]  ;;  %v6746_v0 = vld [vmem:[%s7406_s13 + $0x4] sm:$0xf]  ;;  %v7451_v4 = vor.u32 %v6758_v56, %v4745_v55 }
  0x1c   : > { %v4747_v1 = vld [vmem:[%s7406_s13 + $0x64] sm:$0xf0]  ;;  %v5385_v2 = vld [vmem:[%s10701_s1 + $0x1e0] sm:$0xf]  ;;  %v5521_v6 = vld [vmem:[%s10701_s1 + $0x2f0] sm:$0xf]  ;;  %v7462_v8 = vor.u32 %v6796_v59, %v4947_v60  ;;  %v5322_v11 = vor.u32 %v6891_v62, %v5321_v57 }
  0x1d   : > { %v6907_v5 = vld [vmem:[%s10701_s1 + $0x1e4] sm:$0xf0]  ;;  %v6941_v7 = vld [vmem:[%s10701_s1 + $0x2f4] sm:$0xf0]  ;;  %v7464_v10 = vor.u32 %v6746_v0, %v4747_v1  ;;  %v5449_v12 = vld [vmem:[%s10701_s1 + $0x260] sm:$0xf] }
  0x1e   : > { %7250 = vmatpush.bf16.msra.mxu2 %v5170_v28  ;;  %3197 = vmatpush.bf16.msra.mxu0 %v5170_v28  ;;  %v6923_v13 = vld [vmem:[%s10701_s1 + $0x264] sm:$0xf0]  ;;  %v5386_v14 = vor.u32 %v6907_v5, %v5385_v2  ;;  %v5522_v15 = vor.u32 %v6941_v7, %v5521_v6  ;;  %v5313_v16 = vld [vmem:[%s10701_s1 + $0x150] sm:$0xf]  ;;  %v6889_v17 = vld [vmem:[%s10701_s1 + $0x154] sm:$0xf0] }
  0x1f   : > { %7258 = vmatpush.bf16.msra.mxu3 %v5234_v29  ;;  %3226 = vmatpush.bf16.msra.mxu1 %v5234_v29  ;;  %v5377_v18 = vld [vmem:[%s10701_s1 + $0x1d0] sm:$0xf]  ;;  %v6905_v19 = vld [vmem:[%s10701_s1 + $0x1d4] sm:$0xf0]  ;;  %v5513_v20 = vld [vmem:[%s10701_s1 + $0x2e0] sm:$0xf]  ;;  %v5450_v22 = vor.u32 %v6923_v13, %v5449_v12  ;;  %v5314_v23 = vor.u32 %v6889_v17, %v5313_v16 }
  0x20   : > { %v6939_v21 = vld [vmem:[%s10701_s1 + $0x2e4] sm:$0xf0]  ;;  %v5441_v24 = vld [vmem:[%s10701_s1 + $0x250] sm:$0xf]  ;;  %v6921_v25 = vld [vmem:[%s10701_s1 + $0x254] sm:$0xf0]  ;;  %v5378_v26 = vor.u32 %v6905_v19, %v5377_v18 }
  0x21   : > { %v5514_v27 = vor.u32 %v6939_v21, %v5513_v20  ;;  %v5305_v28 = vld [vmem:[%s10701_s1 + $0x140] sm:$0xf]  ;;  %v6887_v29 = vld [vmem:[%s10701_s1 + $0x144] sm:$0xf0]  ;;  %v5505_v32 = vld [vmem:[%s10701_s1 + $0x2d0] sm:$0xf] }
  0x22   : > { %7251 = vmatpush.bf16.msra.mxu2 %v5162_v34  ;;  %3198 = vmatpush.bf16.msra.mxu0 %v5162_v34  ;;  %v5369_v30 = vld [vmem:[%s10701_s1 + $0x1c0] sm:$0xf]  ;;  %v6903_v31 = vld [vmem:[%s10701_s1 + $0x1c4] sm:$0xf0]  ;;  %v6937_v33 = vld [vmem:[%s10701_s1 + $0x2d4] sm:$0xf0]  ;;  %v5442_v34 = vor.u32 %v6921_v25, %v5441_v24 }
  0x23   : > { %7259 = vmatpush.bf16.msra.mxu3 %v5226_v35  ;;  %3227 = vmatpush.bf16.msra.mxu1 %v5226_v35  ;;  %v5306_v35 = vor.u32 %v6887_v29, %v5305_v28  ;;  %v5433_v36 = vld [vmem:[%s10701_s1 + $0x240] sm:$0xf]  ;;  %v6919_v37 = vld [vmem:[%s10701_s1 + $0x244] sm:$0xf0]  ;;  %v5370_v38 = vor.u32 %v6903_v31, %v5369_v30  ;;  %v5506_v39 = vor.u32 %v6937_v33, %v5505_v32  ;;  %v6833_v41 = vld [vmem:[%s7406_s13 + $0x2b8] sm:$0xf0] }
  0x24   : > { %v5297_v42 = vld [vmem:[%s10701_s1 + $0x130] sm:$0xf]  ;;  %v6821_v45 = vld [vmem:[%s7406_s13 + $0x25c] sm:$0xf]  ;;  %v5047_v46 = vld [vmem:[%s7406_s13 + $0x2bc] sm:$0xf0]  ;;  %v5434_v50 = vor.u32 %v6919_v37, %v5433_v36 }
  0x25   : > { %v5361_v44 = vld [vmem:[%s10701_s1 + $0x1b0] sm:$0xf]  ;;  %v6901_v47 = vld [vmem:[%s10701_s1 + $0x1b4] sm:$0xf0]  ;;  %v5497_v48 = vld [vmem:[%s10701_s1 + $0x2c0] sm:$0xf]  ;;  %v7578_v6 = vor.u32 %v6821_v45, %v5047_v46 }
  0x26   : > { %7252 = vmatpush.bf16.msra.mxu2 %v5154_v40  ;;  %3199 = vmatpush.bf16.msra.mxu0 %v5154_v40  ;;  %v5045_v40 = vld [vmem:[%s7406_s13 + $0x258] sm:$0xf]  ;;  %v6935_v49 = vld [vmem:[%s10701_s1 + $0x2c4] sm:$0xf0]  ;;  %v6783_v52 = vld [vmem:[%s7406_s13 + $0x128] sm:$0xf0] }
  0x27   : > { %7260 = vmatpush.bf16.msra.mxu3 %v5218_v43  ;;  %3228 = vmatpush.bf16.msra.mxu1 %v5218_v43  ;;  %v6885_v43 = vld [vmem:[%s10701_s1 + $0x134] sm:$0xf0]  ;;  %v4845_v51 = vld [vmem:[%s7406_s13 + $0xc8] sm:$0xf]  ;;  %v6771_v56 = vld [vmem:[%s7406_s13 + $0xcc] sm:$0xf]  ;;  %v5498_v59 = vor.u32 %v6935_v49, %v5497_v48 }
  0x28   : > { %v5298_v54 = vor.u32 %v6885_v43, %v5297_v42  ;;  %v6917_v55 = vld [vmem:[%s10701_s1 + $0x234] sm:$0xf0]  ;;  %v4847_v57 = vld [vmem:[%s7406_s13 + $0x12c] sm:$0xf0]  ;;  %v5289_v60 = vld [vmem:[%s10701_s1 + $0x120] sm:$0xf]  ;;  %v7567_v0 = vor.u32 %v6783_v52, %v4845_v51 }
  0x29   : > { %v5353_v62 = vld [vmem:[%s10701_s1 + $0x1a0] sm:$0xf]  ;;  %v6899_v1 = vld [vmem:[%s10701_s1 + $0x1a4] sm:$0xf0]  ;;  %v5489_v2 = vld [vmem:[%s10701_s1 + $0x2b0] sm:$0xf] }
  0x2a   : > { %7253 = vmatpush.bf16.msra.mxu2 %v5146_v53  ;;  %3200 = vmatpush.bf16.msra.mxu0 %v5146_v53  ;;  %v5425_v53 = vld [vmem:[%s10701_s1 + $0x230] sm:$0xf]  ;;  %v6933_v5 = vld [vmem:[%s10701_s1 + $0x2b4] sm:$0xf0]  ;;  %v5417_v12 = vld [vmem:[%s10701_s1 + $0x220] sm:$0xf] }
  0x2b   : > { %7261 = vmatpush.bf16.msra.mxu3 %v5210_v58  ;;  %3229 = vmatpush.bf16.msra.mxu1 %v5210_v58  ;;  %v5362_v58 = vor.u32 %v6901_v47, %v5361_v44  ;;  %v5426_v7 = vor.u32 %v6917_v55, %v5425_v53  ;;  %v6915_v13 = vld [vmem:[%s10701_s1 + $0x224] sm:$0xf0]  ;;  %v5281_v16 = vld [vmem:[%s10701_s1 + $0x110] sm:$0xf]  ;;  %v6881_v17 = vld [vmem:[%s10701_s1 + $0x114] sm:$0xf0] }
  0x2c   : > { %v5345_v18 = vld [vmem:[%s10701_s1 + $0x190] sm:$0xf]  ;;  %v6897_v19 = vld [vmem:[%s10701_s1 + $0x194] sm:$0xf0]  ;;  %v5481_v20 = vld [vmem:[%s10701_s1 + $0x2a0] sm:$0xf] }
  0x2d   : > { %3211 = vmatmul.bf16.vlgmr.msra.gmra.mxu2 %v7449_v3  ;;  %3201 = vmatmul.bf16.vlgmr.msra.gmra.mxu0 %v7451_v4  ;;  %v6931_v21 = vld [vmem:[%s10701_s1 + $0x2a4] sm:$0xf0]  ;;  %v5409_v24 = vld [vmem:[%s10701_s1 + $0x210] sm:$0xf]  ;;  %v6913_v25 = vld [vmem:[%s10701_s1 + $0x214] sm:$0xf0] }
  0x2e   : > { %3251 = vmatpush.bf16.msrb.mxu2 %v5330_v61  ;;  %3240 = vmatmul.bf16.vlgmr.msra.gmra.mxu3 %v7462_v8  ;;  %v6883_v61 = vld [vmem:[%s10701_s1 + $0x124] sm:$0xf0]  ;;  %v5482_v28 = vor.u32 %v6931_v21, %v5481_v20  ;;  %v5337_v30 = vld [vmem:[%s10701_s1 + $0x180] sm:$0xf]  ;;  %v5473_v32 = vld [vmem:[%s10701_s1 + $0x290] sm:$0xf] }
  0x2f   : > { %3280 = vmatpush.bf16.msrb.mxu3 %v5394_v63  ;;  %3309 = vmatpush.bf16.msrb.mxu0 %v5458_v9  ;;  %v7565_v63 = vor.u32 %v6833_v41, %v5045_v40  ;;  %v7580_v9 = vor.u32 %v6771_v56, %v4847_v57  ;;  %v6879_v29 = vld [vmem:[%s10701_s1 + $0x104] sm:$0xf0]  ;;  %v6929_v33 = vld [vmem:[%s10701_s1 + $0x294] sm:$0xf0]  ;;  %v5649_v37 = vld [vmem:[%s10701_s1 + $0x3f0] sm:$0xf] }
  0x30   : > { %3230 = vmatmul.bf16.vlgmr.msra.gmra.mxu1 %v7464_v10  ;;  %v6895_v31 = vld [vmem:[%s10701_s1 + $0x184] sm:$0xf0]  ;;  %v6957_v36 = vld [vmem:[%s10701_s1 + $0x374] sm:$0xf0]  ;;  %v5401_v40 = vld [vmem:[%s10701_s1 + $0x200] sm:$0xf]  ;;  %v5474_v43 = vor.u32 %v6929_v33, %v5473_v32 }
  0x31   : > { %3338 = vmatpush.bf16.msrb.mxu1 %v5522_v15  ;;  %v5490_v15 = vor.u32 %v6933_v5, %v5489_v2  ;;  %v6911_v41 = vld [vmem:[%s10701_s1 + $0x204] sm:$0xf0]  ;;  %v5338_v42 = vor.u32 %v6895_v31, %v5337_v30  ;;  %v6759_v45 = vld [vmem:[%s7406_s13 + $0x68] sm:$0xf0]  ;;  %v5713_v46 = vld [vmem:[%s10701_s1 + $0x470] sm:$0xf] }
  0x32   : > { %3252 = vmatpush.bf16.msrb.mxu2 %v5322_v11  ;;  %v5290_v11 = vor.u32 %v6883_v61, %v5289_v60  ;;  %v4753_v44 = vld [vmem:[%s7406_s13 + $0x8] sm:$0xf]  ;;  %v6989_v47 = vld [vmem:[%s10701_s1 + $0x474] sm:$0xf0]  ;;  %v6747_v48 = vld [vmem:[%s7406_s13 + $0xc] sm:$0xf] }
  0x33   : > { %3281 = vmatpush.bf16.msrb.mxu3 %v5386_v14  ;;  %3310 = vmatpush.bf16.msrb.mxu0 %v5450_v22  ;;  %v5354_v14 = vor.u32 %v6899_v1, %v5353_v62  ;;  %v5418_v22 = vor.u32 %v6915_v13, %v5417_v12  ;;  %v4755_v49 = vld [vmem:[%s7406_s13 + $0x6c] sm:$0xf0]  ;;  %v5465_v51 = vld [vmem:[%s10701_s1 + $0x280] sm:$0xf]  ;;  %v6927_v52 = vld [vmem:[%s10701_s1 + $0x284] sm:$0xf0]  ;;  %v5714_v61 = vor.u32 %v6989_v47, %v5713_v46 }
  0x34   : > { %v4761_v55 = vld [vmem:[%s7406_s13 + $0x10] sm:$0xf]  ;;  %v6760_v56 = vld [vmem:[%s7406_s13 + $0x70] sm:$0xf0]  ;;  %v6955_v60 = vld [vmem:[%s10701_s1 + $0x364] sm:$0xf0]  ;;  %v5466_v62 = vor.u32 %v6927_v52, %v5465_v51 }
  0x35   : > { %3339 = vmatpush.bf16.msrb.mxu1 %v5514_v27  ;;  %v5346_v27 = vor.u32 %v6897_v19, %v5345_v18  ;;  %v6748_v57 = vld [vmem:[%s7406_s13 + $0x14] sm:$0xf]  ;;  %v5641_v1 = vld [vmem:[%s10701_s1 + $0x3e0] sm:$0xf]  ;;  %v6971_v2 = vld [vmem:[%s10701_s1 + $0x3e4] sm:$0xf0] }
  0x36   : > { %3253 = vmatpush.bf16.msrb.mxu2 %v5314_v23  ;;  %v5282_v23 = vor.u32 %v6881_v17, %v5281_v16  ;;  %v5777_v5 = vld [vmem:[%s10701_s1 + $0x4f0] sm:$0xf]  ;;  %v7005_v12 = vld [vmem:[%s10701_s1 + $0x4f4] sm:$0xf0]  ;;  %v5705_v13 = vld [vmem:[%s10701_s1 + $0x460] sm:$0xf]  ;;  %v5642_v18 = vor.u32 %v6971_v2, %v5641_v1 }
  0x37   : > { %3282 = vmatpush.bf16.msrb.mxu3 %v5378_v26  ;;  %3311 = vmatpush.bf16.msrb.mxu0 %v5442_v34  ;;  %v5273_v26 = vld [vmem:[%s10701_s1 + $0x100] sm:$0xf]  ;;  %v5585_v34 = vld [vmem:[%s10701_s1 + $0x370] sm:$0xf]  ;;  %v6953_v20 = vld [vmem:[%s10701_s1 + $0x354] sm:$0xf0]  ;;  %v5778_v21 = vor.u32 %v7005_v12, %v5777_v5 }
  0x38   : > { %v5569_v19 = vld [vmem:[%s10701_s1 + $0x350] sm:$0xf]  ;;  %v5561_v31 = vld [vmem:[%s10701_s1 + $0x340] sm:$0xf]  ;;  %v6951_v32 = vld [vmem:[%s10701_s1 + $0x344] sm:$0xf0] }
  0x39   : > { %3340 = vmatpush.bf16.msrb.mxu1 %v5506_v39  ;;  %v5274_v39 = vor.u32 %v6879_v29, %v5273_v26  ;;  %v7003_v26 = vld [vmem:[%s10701_s1 + $0x4e4] sm:$0xf0]  ;;  %v5570_v29 = vor.u32 %v6953_v20, %v5569_v19  ;;  %v6784_v46 = vld [vmem:[%s7406_s13 + $0x130] sm:$0xf0]  ;;  %v5753_v51 = vld [vmem:[%s10701_s1 + $0x4c0] sm:$0xf] }
  0x3a   : > { %3254 = vmatpush.bf16.msrb.mxu2 %v5306_v35  ;;  %v5410_v35 = vor.u32 %v6913_v25, %v5409_v24  ;;  %v5769_v25 = vld [vmem:[%s10701_s1 + $0x4e0] sm:$0xf]  ;;  %v6772_v52 = vld [vmem:[%s7406_s13 + $0xd4] sm:$0xf]  ;;  %v6947_v1 = vld [vmem:[%s10701_s1 + $0x324] sm:$0xf0] }
  0x3b   : > { %3283 = vmatpush.bf16.msrb.mxu3 %v5370_v38  ;;  %3312 = vmatpush.bf16.msrb.mxu0 %v5434_v50  ;;  %v6973_v38 = vld [vmem:[%s10701_s1 + $0x3f4] sm:$0xf0]  ;;  %v5586_v50 = vor.u32 %v6957_v36, %v5585_v34  ;;  %v5770_v33 = vor.u32 %v7003_v26, %v5769_v25  ;;  %v5625_v34 = vld [vmem:[%s10701_s1 + $0x3c0] sm:$0xf]  ;;  %v5745_v19 = vld [vmem:[%s10701_s1 + $0x4b0] sm:$0xf] }
  0x3c   : > { %v5650_v53 = vor.u32 %v6973_v38, %v5649_v37  ;;  %v5761_v37 = vld [vmem:[%s10701_s1 + $0x4d0] sm:$0xf]  ;;  %v7001_v38 = vld [vmem:[%s10701_s1 + $0x4d4] sm:$0xf0]  ;;  %v4863_v2 = vld [vmem:[%s7406_s13 + $0x13c] sm:$0xf0] }
  0x3d   : > { %3341 = vmatpush.bf16.msrb.mxu1 %v5498_v59  ;;  %3216 = vmatmul.bf16.gmra.mxu2 %v7565_v63  ;;  %v5577_v59 = vld [vmem:[%s10701_s1 + $0x360] sm:$0xf]  ;;  %v5762_v47 = vor.u32 %v7001_v38, %v5761_v37  ;;  %v6997_v20 = vld [vmem:[%s10701_s1 + $0x4b4] sm:$0xf0]  ;;  %v5537_v26 = vld [vmem:[%s10701_s1 + $0x310] sm:$0xf] }
  0x3e   : > { %3255 = vmatpush.bf16.msrb.mxu2 %v5298_v54  ;;  %3206 = vmatmul.bf16.gmra.mxu0 %v7567_v0  ;;  %v5402_v54 = vor.u32 %v6911_v41, %v5401_v40  ;;  %v5578_v16 = vor.u32 %v6955_v60, %v5577_v59  ;;  %v6983_v40 = vld [vmem:[%s10701_s1 + $0x444] sm:$0xf0]  ;;  %v5562_v41 = vor.u32 %v6951_v32, %v5561_v31  ;;  %v6773_v60 = vld [vmem:[%s7406_s13 + $0xdc] sm:$0xf]  ;;  %v5609_v12 = vld [vmem:[%s10701_s1 + $0x3a0] sm:$0xf] }
  0x3f   : > { %3284 = vmatpush.bf16.msrb.mxu3 %v5362_v58  ;;  %3313 = vmatpush.bf16.msrb.mxu0 %v5426_v7  ;;  %v4763_v58 = vld [vmem:[%s7406_s13 + $0x74] sm:$0xf0]  ;;  %v7687_v7 = vor.u32 %v6759_v45, %v4753_v44  ;;  %v4853_v45 = vld [vmem:[%s7406_s13 + $0xd0] sm:$0xf]  ;;  %v5746_v25 = vor.u32 %v6997_v20, %v5745_v19  ;;  %v5673_v31 = vld [vmem:[%s10701_s1 + $0x420] sm:$0xf] }
  0x40   : > { %3245 = vmatmul.bf16.gmra.mxu3 %v7578_v6  ;;  %3235 = vmatmul.bf16.gmra.mxu1 %v7580_v9  ;;  %v7702_v17 = vor.u32 %v6748_v57, %v4763_v58  ;;  %v6949_v44 = vld [vmem:[%s10701_s1 + $0x334] sm:$0xf0]  ;;  %v6785_v58 = vld [vmem:[%s7406_s13 + $0x138] sm:$0xf0]  ;;  %v6979_v32 = vld [vmem:[%s10701_s1 + $0x424] sm:$0xf0] }
  0x41   : > { %3342 = vmatpush.bf16.msrb.mxu1 %v5490_v15  ;;  %v7700_v15 = vor.u32 %v6747_v48, %v4755_v49  ;;  %v5617_v48 = vld [vmem:[%s10701_s1 + $0x3b0] sm:$0xf]  ;;  %v6965_v49 = vld [vmem:[%s10701_s1 + $0x3b4] sm:$0xf0]  ;;  %v5529_v37 = vld [vmem:[%s10701_s1 + $0x300] sm:$0xf] }
  0x42   : > { %3256 = vmatpush.bf16.msrb.mxu2 %v5290_v11  ;;  %v7689_v11 = vor.u32 %v6760_v56, %v4761_v55  ;;  %v6981_v55 = vld [vmem:[%s10701_s1 + $0x434] sm:$0xf0]  ;;  %v6943_v38 = vld [vmem:[%s10701_s1 + $0x304] sm:$0xf0]  ;;  %v5905_v20 = vld [vmem:[%s10701_s1 + $0x5f0] sm:$0xf] }
  0x43   : > { %3285 = vmatpush.bf16.msrb.mxu3 %v5354_v14  ;;  %3314 = vmatpush.bf16.msrb.mxu0 %v5418_v22  ;;  %v6987_v14 = vld [vmem:[%s10701_s1 + $0x464] sm:$0xf0]  ;;  %v5633_v22 = vld [vmem:[%s10701_s1 + $0x3d0] sm:$0xf]  ;;  %v4855_v56 = vld [vmem:[%s7406_s13 + $0x134] sm:$0xf0] }
  0x44   : > { %v5706_v24 = vor.u32 %v6987_v14, %v5705_v13  ;;  %v4861_v57 = vld [vmem:[%s7406_s13 + $0xd8] sm:$0xf]  ;;  %v6963_v13 = vld [vmem:[%s10701_s1 + $0x3a4] sm:$0xf0] }
  0x45   : > { %3343 = vmatpush.bf16.msrb.mxu1 %v5482_v28  ;;  %v6985_v28 = vld [vmem:[%s10701_s1 + $0x454] sm:$0xf0] }
  0x46   : > { %3257 = vmatpush.bf16.msrb.mxu2 %v5282_v23  ;;  %v6969_v23 = vld [vmem:[%s10701_s1 + $0x3d4] sm:$0xf0] }
  0x47   : > { %3286 = vmatpush.bf16.msrb.mxu3 %v5346_v27  ;;  %3315 = vmatpush.bf16.msrb.mxu0 %v5410_v35  ;;  %v5697_v27 = vld [vmem:[%s10701_s1 + $0x450] sm:$0xf]  ;;  %v5634_v30 = vor.u32 %v6969_v23, %v5633_v22  ;;  %v6967_v35 = vld [vmem:[%s10701_s1 + $0x3c4] sm:$0xf0]  ;;  %v7812_v23 = vor.u32 %v6773_v60, %v4863_v2  ;;  %v7021_v19 = vld [vmem:[%s10701_s1 + $0x574] sm:$0xf0] }
  0x48   : > { %v5698_v36 = vor.u32 %v6985_v28, %v5697_v27  ;;  %v6945_v27 = vld [vmem:[%s10701_s1 + $0x314] sm:$0xf0]  ;;  %v5601_v28 = vld [vmem:[%s10701_s1 + $0x390] sm:$0xf]  ;;  %v4963_v60 = vld [vmem:[%s7406_s13 + $0x204] sm:$0xf0] }
  0x49   : > { %3344 = vmatpush.bf16.msrb.mxu1 %v5474_v43  ;;  %v5553_v43 = vld [vmem:[%s10701_s1 + $0x330] sm:$0xf] }
  0x4a   : > { %3258 = vmatpush.bf16.msrb.mxu2 %v5274_v39  ;;  %v5689_v39 = vld [vmem:[%s10701_s1 + $0x440] sm:$0xf]  ;;  %v5554_v59 = vor.u32 %v6949_v44, %v5553_v43  ;;  %v5665_v43 = vld [vmem:[%s10701_s1 + $0x410] sm:$0xf] }
  0x4b   : > { %3287 = vmatpush.bf16.msrb.mxu3 %v5338_v42  ;;  %3316 = vmatpush.bf16.msrb.mxu0 %v5402_v54  ;;  %v5626_v42 = vor.u32 %v6967_v35, %v5625_v34  ;;  %v5681_v54 = vld [vmem:[%s10701_s1 + $0x430] sm:$0xf]  ;;  %v5674_v34 = vor.u32 %v6979_v32, %v5673_v31  ;;  %v5737_v35 = vld [vmem:[%s10701_s1 + $0x4a0] sm:$0xf]  ;;  %v7053_v32 = vld [vmem:[%s10701_s1 + $0x674] sm:$0xf0] }
  0x4c   : > { %v5682_v14 = vor.u32 %v6981_v55, %v5681_v54  ;;  %v4961_v54 = vld [vmem:[%s7406_s13 + $0x1a0] sm:$0xf]  ;;  %v6810_v55 = vld [vmem:[%s7406_s13 + $0x200] sm:$0xf0]  ;;  %v5969_v31 = vld [vmem:[%s10701_s1 + $0x670] sm:$0xf] }
  0x4d   : > { %3345 = vmatpush.bf16.msrb.mxu1 %v5466_v62  ;;  %3259 = vmatmul.bf16.vlgmr.msrb.gmra.mxu2 %v7687_v7  ;;  %v5545_v62 = vld [vmem:[%s10701_s1 + $0x320] sm:$0xf] }
  0x4e   : > { %3367 = vmatpush.bf16.msra.mxu2 %v5586_v50  ;;  %3317 = vmatmul.bf16.vlgmr.msrb.gmra.mxu0 %v7689_v11  ;;  %v5690_v50 = vor.u32 %v6983_v40, %v5689_v39  ;;  %v5546_v22 = vor.u32 %v6947_v1, %v5545_v62  ;;  %v5530_v40 = vor.u32 %v6943_v38, %v5529_v37  ;;  %v5053_v38 = vld [vmem:[%s7406_s13 + $0x260] sm:$0xf] }
  0x4f   : > { %3396 = vmatpush.bf16.msra.mxu3 %v5650_v53  ;;  %3425 = vmatpush.bf16.msra.mxu0 %v5714_v61  ;;  %v6999_v53 = vld [vmem:[%s10701_s1 + $0x4c4] sm:$0xf0]  ;;  %v5618_v61 = vor.u32 %v6965_v49, %v5617_v48  ;;  %v7882_v62 = vor.u32 %v6810_v55, %v4961_v54  ;;  %v7033_v54 = vld [vmem:[%s10701_s1 + $0x5d4] sm:$0xf0]  ;;  %v5961_v55 = vld [vmem:[%s10701_s1 + $0x660] sm:$0xf] }
  0x50   : > { %3288 = vmatmul.bf16.vlgmr.msrb.gmra.mxu3 %v7700_v15  ;;  %3346 = vmatmul.bf16.vlgmr.msrb.gmra.mxu1 %v7702_v17  ;;  %v5754_v5 = vor.u32 %v6999_v53, %v5753_v51  ;;  %v6975_v51 = vld [vmem:[%s10701_s1 + $0x404] sm:$0xf0]  ;;  %v6809_v53 = vld [vmem:[%s7406_s13 + $0x1f8] sm:$0xf0] }
  0x51   : > { %3454 = vmatpush.bf16.msra.mxu1 %v5778_v21  ;;  %v7810_v21 = vor.u32 %v6772_v52, %v4855_v56  ;;  %v4953_v52 = vld [vmem:[%s7406_s13 + $0x198] sm:$0xf] }
  0x52   : > { %3368 = vmatpush.bf16.msra.mxu2 %v5578_v16  ;;  %v7800_v16 = vor.u32 %v6784_v46, %v4853_v45  ;;  %v6977_v45 = vld [vmem:[%s10701_s1 + $0x414] sm:$0xf0]  ;;  %v5729_v46 = vld [vmem:[%s10701_s1 + $0x490] sm:$0xf] }
  0x53   : > { %3397 = vmatpush.bf16.msra.mxu3 %v5642_v18  ;;  %3426 = vmatpush.bf16.msra.mxu0 %v5706_v24  ;;  %v7802_v18 = vor.u32 %v6785_v58, %v4861_v57  ;;  %v5610_v24 = vor.u32 %v6963_v13, %v5609_v12  ;;  %v5666_v48 = vor.u32 %v6977_v45, %v5665_v43  ;;  %v6797_v57 = vld [vmem:[%s7406_s13 + $0x19c] sm:$0xf]  ;;  %v4955_v58 = vld [vmem:[%s7406_s13 + $0x1fc] sm:$0xf0]  ;;  %v6991_v12 = vld [vmem:[%s10701_s1 + $0x484] sm:$0xf0] }
  0x54   : > { %v7884_v1 = vor.u32 %v6797_v57, %v4955_v58  ;;  %v5055_v43 = vld [vmem:[%s7406_s13 + $0x2c4] sm:$0xf0]  ;;  %v5063_v45 = vld [vmem:[%s7406_s13 + $0x2cc] sm:$0xf0] }
  0x55   : > { %3455 = vmatpush.bf16.msra.mxu1 %v5770_v33 }
  0x56   : > { %3369 = vmatpush.bf16.msra.mxu2 %v5570_v29  ;;  %v5538_v29 = vor.u32 %v6945_v27, %v5537_v26  ;;  %v5833_v26 = vld [vmem:[%s10701_s1 + $0x560] sm:$0xf]  ;;  %v7019_v27 = vld [vmem:[%s10701_s1 + $0x564] sm:$0xf0] }
  0x57   : > { %3398 = vmatpush.bf16.msra.mxu3 %v5634_v30  ;;  %3427 = vmatpush.bf16.msra.mxu0 %v5698_v36  ;;  %v6961_v30 = vld [vmem:[%s10701_s1 + $0x394] sm:$0xf0]  ;;  %v6995_v36 = vld [vmem:[%s10701_s1 + $0x4a4] sm:$0xf0] }
  0x58   : > { %v5602_v33 = vor.u32 %v6961_v30, %v5601_v28  ;;  %v5738_v39 = vor.u32 %v6995_v36, %v5737_v35  ;;  %v5897_v28 = vld [vmem:[%s10701_s1 + $0x5e0] sm:$0xf]  ;;  %v7035_v30 = vld [vmem:[%s10701_s1 + $0x5e4] sm:$0xf0]  ;;  %v6033_v35 = vld [vmem:[%s10701_s1 + $0x6f0] sm:$0xf] }
  0x59   : > { %3456 = vmatpush.bf16.msra.mxu1 %v5762_v47  ;;  %v6993_v47 = vld [vmem:[%s10701_s1 + $0x494] sm:$0xf0] }
  0x5a   : > { %3370 = vmatpush.bf16.msra.mxu2 %v5562_v41  ;;  %v5593_v41 = vld [vmem:[%s10701_s1 + $0x380] sm:$0xf]  ;;  %v5730_v49 = vor.u32 %v6993_v47, %v5729_v46  ;;  %v7069_v36 = vld [vmem:[%s10701_s1 + $0x6f4] sm:$0xf0] }
  0x5b   : > { %3399 = vmatpush.bf16.msra.mxu3 %v5626_v42  ;;  %3428 = vmatpush.bf16.msra.mxu0 %v5690_v50  ;;  %v6959_v42 = vld [vmem:[%s10701_s1 + $0x384] sm:$0xf0]  ;;  %v5657_v50 = vld [vmem:[%s10701_s1 + $0x400] sm:$0xf]  ;;  %v6034_v37 = vor.u32 %v7069_v36, %v6033_v35  ;;  %v6750_v36 = vld [vmem:[%s7406_s13 + $0x24] sm:$0xf] }
  0x5c   : > { %v5594_v44 = vor.u32 %v6959_v42, %v5593_v41  ;;  %v5658_v56 = vor.u32 %v6975_v51, %v5657_v50  ;;  %v6835_v41 = vld [vmem:[%s7406_s13 + $0x2c8] sm:$0xf0]  ;;  %v6822_v42 = vld [vmem:[%s7406_s13 + $0x264] sm:$0xf]  ;;  %v5825_v50 = vld [vmem:[%s10701_s1 + $0x550] sm:$0xf] }
  0x5d   : > { %3457 = vmatpush.bf16.msra.mxu1 %v5754_v5  ;;  %3264 = vmatmul.bf16.gmra.mxu2 %v7800_v16  ;;  %v5721_v5 = vld [vmem:[%s10701_s1 + $0x480] sm:$0xf]  ;;  %v7017_v51 = vld [vmem:[%s10701_s1 + $0x554] sm:$0xf0] }
  0x5e   : > { %3371 = vmatpush.bf16.msra.mxu2 %v5554_v59  ;;  %3322 = vmatmul.bf16.gmra.mxu0 %v7802_v18  ;;  %v6798_v59 = vld [vmem:[%s7406_s13 + $0x1a4] sm:$0xf]  ;;  %v5722_v13 = vor.u32 %v6991_v12, %v5721_v5  ;;  %v5817_v5 = vld [vmem:[%s10701_s1 + $0x540] sm:$0xf]  ;;  %v7015_v12 = vld [vmem:[%s10701_s1 + $0x544] sm:$0xf0] }
  0x5f   : > { %3400 = vmatpush.bf16.msra.mxu3 %v5618_v61  ;;  %3429 = vmatpush.bf16.msra.mxu0 %v5682_v14  ;;  %v7880_v61 = vor.u32 %v6809_v53, %v4953_v52  ;;  %v7886_v2 = vor.u32 %v6798_v59, %v4963_v60  ;;  %v5841_v14 = vld [vmem:[%s10701_s1 + $0x570] sm:$0xf]  ;;  %v5826_v53 = vor.u32 %v7017_v51, %v5825_v50  ;;  %v6025_v59 = vld [vmem:[%s10701_s1 + $0x6e0] sm:$0xf]  ;;  %v7067_v60 = vld [vmem:[%s10701_s1 + $0x6e4] sm:$0xf0] }
  0x60   : > { %3293 = vmatmul.bf16.gmra.mxu3 %v7810_v21  ;;  %3351 = vmatmul.bf16.gmra.mxu1 %v7812_v23  ;;  %v5889_v52 = vld [vmem:[%s10701_s1 + $0x5d0] sm:$0xf]  ;;  %v4771_v35 = vld [vmem:[%s7406_s13 + $0x7c] sm:$0xf0]  ;;  %v7029_v50 = vld [vmem:[%s10701_s1 + $0x5b4] sm:$0xf0] }
  0x61   : > { %3458 = vmatpush.bf16.msra.mxu1 %v5746_v25  ;;  %v5890_v57 = vor.u32 %v7033_v54, %v5889_v52  ;;  %v5945_v51 = vld [vmem:[%s10701_s1 + $0x640] sm:$0xf]  ;;  %v7047_v52 = vld [vmem:[%s10701_s1 + $0x644] sm:$0xf0] }
  0x62   : > { %3372 = vmatpush.bf16.msra.mxu2 %v5546_v22  ;;  %v5842_v22 = vor.u32 %v7021_v19, %v5841_v14  ;;  %v5818_v14 = vor.u32 %v7015_v12, %v5817_v5  ;;  %v5881_v19 = vld [vmem:[%s10701_s1 + $0x5c0] sm:$0xf]  ;;  %v5946_v54 = vor.u32 %v7047_v52, %v5945_v51  ;;  %v7011_v5 = vld [vmem:[%s10701_s1 + $0x524] sm:$0xf0] }
  0x63   : > { %3401 = vmatpush.bf16.msra.mxu3 %v5610_v24  ;;  %3430 = vmatpush.bf16.msra.mxu0 %v5674_v34  ;;  %v7037_v24 = vld [vmem:[%s10701_s1 + $0x5f4] sm:$0xf0]  ;;  %v5970_v34 = vor.u32 %v7053_v32, %v5969_v31  ;;  %v6761_v31 = vld [vmem:[%s7406_s13 + $0x78] sm:$0xf0]  ;;  %v4777_v32 = vld [vmem:[%s7406_s13 + $0x20] sm:$0xf] }
  0x64   : > { %v5906_v25 = vor.u32 %v7037_v24, %v5905_v20  ;;  %v7031_v20 = vld [vmem:[%s10701_s1 + $0x5c4] sm:$0xf0]  ;;  %v5929_v51 = vld [vmem:[%s10701_s1 + $0x620] sm:$0xf] }
  0x65   : > { %3459 = vmatpush.bf16.msra.mxu1 %v5738_v39  ;;  %v6834_v39 = vld [vmem:[%s7406_s13 + $0x2c0] sm:$0xf0]  ;;  %v5882_v24 = vor.u32 %v7031_v20, %v5881_v19  ;;  %v5937_v19 = vld [vmem:[%s10701_s1 + $0x630] sm:$0xf]  ;;  %v4877_v20 = vld [vmem:[%s7406_s13 + $0xe8] sm:$0xf] }
  0x66   : > { %3373 = vmatpush.bf16.msra.mxu2 %v5538_v29  ;;  %v5834_v29 = vor.u32 %v7019_v27, %v5833_v26  ;;  %v7942_v46 = vor.u32 %v6834_v39, %v5053_v38  ;;  %v6017_v26 = vld [vmem:[%s10701_s1 + $0x6d0] sm:$0xf]  ;;  %v7065_v27 = vld [vmem:[%s10701_s1 + $0x6d4] sm:$0xf0]  ;;  %v7043_v52 = vld [vmem:[%s10701_s1 + $0x624] sm:$0xf0] }
  0x67   : > { %3402 = vmatpush.bf16.msra.mxu3 %v5602_v33  ;;  %3431 = vmatpush.bf16.msra.mxu0 %v5666_v48  ;;  %v5898_v33 = vor.u32 %v7035_v30, %v5897_v28  ;;  %v7946_v48 = vor.u32 %v6822_v42, %v5055_v43  ;;  %v4769_v30 = vld [vmem:[%s7406_s13 + $0x18] sm:$0xf]  ;;  %v5809_v42 = vld [vmem:[%s10701_s1 + $0x530] sm:$0xf] }
  0x68   : > { %v8010_v38 = vor.u32 %v6761_v31, %v4769_v30  ;;  %v7013_v43 = vld [vmem:[%s10701_s1 + $0x534] sm:$0xf0]  ;;  %v4879_v30 = vld [vmem:[%s7406_s13 + $0x14c] sm:$0xf0] }
  0x69   : > { %3460 = vmatpush.bf16.msra.mxu1 %v5730_v49 }
  0x6a   : > { %3374 = vmatpush.bf16.msra.mxu2 %v5530_v40  ;;  %v5061_v40 = vld [vmem:[%s7406_s13 + $0x268] sm:$0xf] }
  0x6b   : > { %3403 = vmatpush.bf16.msra.mxu3 %v5594_v44  ;;  %3432 = vmatpush.bf16.msra.mxu0 %v5658_v56  ;;  %v6823_v44 = vld [vmem:[%s7406_s13 + $0x26c] sm:$0xf]  ;;  %v7944_v47 = vor.u32 %v6835_v41, %v5061_v40  ;;  %v7051_v56 = vld [vmem:[%s10701_s1 + $0x664] sm:$0xf0] }
  0x6c   : > { %v7948_v49 = vor.u32 %v6823_v44, %v5063_v45  ;;  %v5962_v58 = vor.u32 %v7051_v56, %v5961_v55  ;;  %v5873_v44 = vld [vmem:[%s10701_s1 + $0x5b0] sm:$0xf]  ;;  %v5810_v45 = vor.u32 %v7013_v43, %v5809_v42  ;;  %v6009_v55 = vld [vmem:[%s10701_s1 + $0x6c0] sm:$0xf]  ;;  %v7063_v56 = vld [vmem:[%s10701_s1 + $0x6c4] sm:$0xf0] }
  0x6d   : > { %3269 = vmatmul.bf16.gmra.mxu2 %v7880_v61  ;;  %3461 = vmatpush.bf16.msra.mxu1 %v5722_v13  ;;  %v6026_v13 = vor.u32 %v7067_v60, %v6025_v59  ;;  %v6786_v59 = vld [vmem:[%s7406_s13 + $0x140] sm:$0xf0]  ;;  %v6010_v60 = vor.u32 %v7063_v56, %v6009_v55  ;;  %v5793_v42 = vld [vmem:[%s10701_s1 + $0x510] sm:$0xf]  ;;  %v7009_v43 = vld [vmem:[%s10701_s1 + $0x514] sm:$0xf0] }
  0x6e   : > { %3327 = vmatmul.bf16.gmra.mxu0 %v7882_v62  ;;  %3483 = vmatpush.bf16.msrb.mxu2 %v5842_v22  ;;  %10768 = vst [vmem:[#allocation2_spill] sm:$0xff] %v7948_v49  ;;  %v5953_v22 = vld [vmem:[%s10701_s1 + $0x650] sm:$0xf]  ;;  %v5993_v55 = vld [vmem:[%s10701_s1 + $0x6a0] sm:$0xf] }
  0x6f   : > { %3512 = vmatpush.bf16.msrb.mxu3 %v5906_v25  ;;  %3541 = vmatpush.bf16.msrb.mxu0 %v5970_v34  ;;  %v7049_v25 = vld [vmem:[%s10701_s1 + $0x654] sm:$0xf0]  ;;  %v6749_v34 = vld [vmem:[%s7406_s13 + $0x1c] sm:$0xf]  ;;  %v7059_v56 = vld [vmem:[%s10701_s1 + $0x6a4] sm:$0xf0] }
  0x70   : > { %3298 = vmatmul.bf16.gmra.mxu3 %v7884_v1  ;;  %3356 = vmatmul.bf16.gmra.mxu1 %v7886_v2  ;;  %v5954_v28 = vor.u32 %v7049_v25, %v5953_v22  ;;  %v8014_v40 = vor.u32 %v6749_v34, %v4771_v35  ;;  %v6787_v22 = vld [vmem:[%s7406_s13 + $0x148] sm:$0xf0]  ;;  %v7045_v25 = vld [vmem:[%s10701_s1 + $0x634] sm:$0xf0]  ;;  %v6001_v35 = vld [vmem:[%s10701_s1 + $0x6b0] sm:$0xf] }
  0x71   : > { %3570 = vmatpush.bf16.msrb.mxu1 %v6034_v37  ;;  %v4779_v37 = vld [vmem:[%s7406_s13 + $0x84] sm:$0xf0] }
  0x72   : > { %3484 = vmatpush.bf16.msrb.mxu2 %v5834_v29  ;;  %v6018_v29 = vor.u32 %v7065_v27, %v6017_v26  ;;  %v8016_v41 = vor.u32 %v6750_v36, %v4779_v37  ;;  %v6774_v26 = vld [vmem:[%s7406_s13 + $0xe4] sm:$0xf]  ;;  %v4871_v27 = vld [vmem:[%s7406_s13 + $0x144] sm:$0xf0]  ;;  %v7061_v36 = vld [vmem:[%s10701_s1 + $0x6b4] sm:$0xf0] }
  0x73   : > { %3513 = vmatpush.bf16.msrb.mxu3 %v5898_v33  ;;  %3542 = vmatpush.bf16.msrb.mxu0 %v5962_v58  ;;  %v6762_v33 = vld [vmem:[%s7406_s13 + $0x80] sm:$0xf0]  ;;  %v4869_v58 = vld [vmem:[%s7406_s13 + $0xe0] sm:$0xf]  ;;  %v6002_v37 = vor.u32 %v7061_v36, %v6001_v35  ;;  %v4979_v35 = vld [vmem:[%s7406_s13 + $0x214] sm:$0xf0] }
  0x74   : > { %v8012_v39 = vor.u32 %v6762_v33, %v4777_v32  ;;  %10769 = vst [vmem:[#allocation3_spill] sm:$0xff] %v8016_v41  ;;  %v8072_v31 = vor.u32 %v6786_v59, %v4869_v58  ;;  %v8074_v32 = vor.u32 %v6787_v22, %v4877_v20  ;;  %v8076_v33 = vor.u32 %v6774_v26, %v4871_v27  ;;  %v683_v58 = vld [vmem:[%s10702_s2] sm:$0x3]  ;;  %v4969_v59 = vld [vmem:[%s7406_s13 + $0x1a8] sm:$0xf] }
  0x75   : > { %3571 = vmatpush.bf16.msrb.mxu1 %v6026_v13  ;;  %v5865_v13 = vld [vmem:[%s10701_s1 + $0x5a0] sm:$0xf]  ;;  %v5921_v20 = vld [vmem:[%s10701_s1 + $0x610] sm:$0xf]  ;;  %v7041_v26 = vld [vmem:[%s10701_s1 + $0x614] sm:$0xf0] }
  0x76   : > { %3485 = vmatpush.bf16.msrb.mxu2 %v5826_v53  ;;  %v5874_v53 = vor.u32 %v7029_v50, %v5873_v44  ;;  %v5857_v44 = vld [vmem:[%s10701_s1 + $0x590] sm:$0xf]  ;;  %v7025_v50 = vld [vmem:[%s10701_s1 + $0x594] sm:$0xf0]  ;;  %v6799_v27 = vld [vmem:[%s7406_s13 + $0x1ac] sm:$0xf] }
  0x77   : > { %3514 = vmatpush.bf16.msrb.mxu3 %v5890_v57  ;;  %3543 = vmatpush.bf16.msrb.mxu0 %v5954_v28  ;;  %v5801_v57 = vld [vmem:[%s10701_s1 + $0x520] sm:$0xf]  ;;  %v5938_v28 = vor.u32 %v7045_v25, %v5937_v19  ;;  %v7023_v19 = vld [vmem:[%s10701_s1 + $0x584] sm:$0xf0]  ;;  %v4977_v22 = vld [vmem:[%s7406_s13 + $0x1b0] sm:$0xf] }
  0x78   : > { %v5802_v12 = vor.u32 %v7011_v5, %v5801_v57  ;;  %v5785_v57 = vld [vmem:[%s10701_s1 + $0x500] sm:$0xf]  ;;  %v5994_v5 = vor.u32 %v7059_v56, %v5993_v55  ;;  %v5985_v36 = vld [vmem:[%s10701_s1 + $0x690] sm:$0xf] }
  0x79   : > { %3572 = vmatpush.bf16.msrb.mxu1 %v6018_v29  ;;  %v6775_v29 = vld [vmem:[%s7406_s13 + $0xec] sm:$0xf] }
  0x7a   : > { %3486 = vmatpush.bf16.msrb.mxu2 %v5818_v14  ;;  %v7027_v14 = vld [vmem:[%s10701_s1 + $0x5a4] sm:$0xf0]  ;;  %v8078_v34 = vor.u32 %v6775_v29, %v4879_v30  ;;  %v6800_v29 = vld [vmem:[%s7406_s13 + $0x1b4] sm:$0xf]  ;;  %v5922_v30 = vor.u32 %v7041_v26, %v5921_v20  ;;  %v7101_v20 = vld [vmem:[%s10701_s1 + $0x7f4] sm:$0xf0] }
  0x7b   : > { %3515 = vmatpush.bf16.msrb.mxu3 %v5882_v24  ;;  %3544 = vmatpush.bf16.msrb.mxu0 %v5946_v54  ;;  %v5866_v24 = vor.u32 %v7027_v14, %v5865_v13  ;;  %v5930_v54 = vor.u32 %v7043_v52, %v5929_v51  ;;  %v5849_v14 = vld [vmem:[%s10701_s1 + $0x580] sm:$0xf]  ;;  %v8164_v55 = vor.u32 %v6800_v29, %v4979_v35  ;;  %v5069_v35 = vld [vmem:[%s7406_s13 + $0x270] sm:$0xf] }
  0x7c   : > { %10770 = vst [vmem:[#allocation4_spill] sm:$0xff] %v8078_v34  ;;  %v5850_v25 = vor.u32 %v7023_v19, %v5849_v14  ;;  %v5913_v52 = vld [vmem:[%s10701_s1 + $0x600] sm:$0xf]  ;;  %v6161_v14 = vld [vmem:[%s10701_s1 + $0x7f0] sm:$0xf] }
  0x7d   : > { %3274 = vmatmul.bf16.gmra.mxu2 %v7942_v46  ;;  %3573 = vmatpush.bf16.msrb.mxu1 %v6010_v60  ;;  %v6811_v60 = vld [vmem:[%s7406_s13 + $0x208] sm:$0xf0]  ;;  %10774 = vst [vmem:[#allocation8_spill] sm:$0xff] %v8164_v55 }
  0x7e   : > { %3332 = vmatmul.bf16.gmra.mxu0 %v7944_v47  ;;  %3487 = vmatpush.bf16.msrb.mxu2 %v5810_v45  ;;  %v5794_v45 = vor.u32 %v7009_v43, %v5793_v42  ;;  %v8149_v42 = vperm.slane %v683_v58, 0  ;;  %v8151_v43 = vor.u32 %v6811_v60, %v4969_v59  ;;  %v5977_v58 = vld [vmem:[%s10701_s1 + $0x680] sm:$0xf]  ;;  %v7055_v59 = vld [vmem:[%s10701_s1 + $0x684] sm:$0xf0] }
  0x7f   : > { %3516 = vmatpush.bf16.msrb.mxu3 %v5874_v53  ;;  %3545 = vmatpush.bf16.msrb.mxu0 %v5938_v28  ;;  %v5858_v53 = vor.u32 %v7025_v50, %v5857_v44  ;;  %v4971_v28 = vld [vmem:[%s7406_s13 + $0x20c] sm:$0xf0] }
  0x80   : > { %3303 = vmatmul.bf16.gmra.mxu3 %v7946_v48  ;;  %3361 = vmatmul.bf16.gmra.mxu1 %v7948_v49  ;;  %10771 = vst [vmem:[#allocation5_spill] sm:$0xff] %v8151_v43  ;;  %v8155_v51 = vor.u32 %v6799_v27, %v4971_v28 }
  0x81   : > { %3574 = vmatpush.bf16.msrb.mxu1 %v6002_v37  ;;  %v7057_v37 = vld [vmem:[%s10701_s1 + $0x694] sm:$0xf0] }
  0x82   : > { %3488 = vmatpush.bf16.msrb.mxu2 %v5802_v12  ;;  %v7007_v12 = vld [vmem:[%s10701_s1 + $0x504] sm:$0xf0]  ;;  %10773 = vst [vmem:[#allocation7_spill] sm:$0xff] %v8155_v51 }
  0x83   : > { %3517 = vmatpush.bf16.msrb.mxu3 %v5866_v24  ;;  %3546 = vmatpush.bf16.msrb.mxu0 %v5930_v54  ;;  %v5786_v13 = vor.u32 %v7007_v12, %v5785_v57  ;;  %v6812_v24 = vld [vmem:[%s7406_s13 + $0x210] sm:$0xf0]  ;;  %v6097_v12 = vld [vmem:[%s10701_s1 + $0x770] sm:$0xf] }
  0x84   : > { %v8153_v44 = vor.u32 %v6812_v24, %v4977_v22  ;;  %v6162_v24 = vor.u32 %v7101_v20, %v6161_v14  ;;  %v6825_v20 = vld [vmem:[%s7406_s13 + $0x27c] sm:$0xf] }
  0x85   : > { %3575 = vmatpush.bf16.msrb.mxu1 %v5994_v5  ;;  %v5978_v5 = vor.u32 %v7055_v59, %v5977_v58  ;;  %v6225_v58 = vld [vmem:[%s10701_s1 + $0x870] sm:$0xf]  ;;  %v7117_v59 = vld [vmem:[%s10701_s1 + $0x874] sm:$0xf0] }
  0x86   : > { %3489 = vmatpush.bf16.msrb.mxu2 %v5794_v45  ;;  %10772 = vst [vmem:[#allocation6_spill] sm:$0xff] %v8153_v44  ;;  %v5986_v45 = vor.u32 %v7057_v37, %v5985_v36  ;;  %v6836_v36 = vld [vmem:[%s7406_s13 + $0x2d0] sm:$0xf0]  ;;  %v5077_v37 = vld [vmem:[%s7406_s13 + $0x278] sm:$0xf]  ;;  %v6226_v14 = vor.u32 %v7117_v59, %v6225_v58 }
  0x87   : > { %3518 = vmatpush.bf16.msrb.mxu3 %v5858_v53  ;;  %3547 = vmatpush.bf16.msrb.mxu0 %v5922_v30  ;;  %v7039_v53 = vld [vmem:[%s10701_s1 + $0x604] sm:$0xf0]  ;;  %v7081_v58 = vld [vmem:[%s10701_s1 + $0x754] sm:$0xf0] }
  0x88   : > { %v5914_v56 = vor.u32 %v7039_v53, %v5913_v52  ;;  %v6089_v52 = vld [vmem:[%s10701_s1 + $0x760] sm:$0xf]  ;;  %v7083_v53 = vld [vmem:[%s10701_s1 + $0x764] sm:$0xf0] }
  0x89   : > { %3576 = vmatpush.bf16.msrb.mxu1 %v5986_v45  ;;  %v6837_v45 = vld [vmem:[%s7406_s13 + $0x2d8] sm:$0xf0] }
  0x8a   : > { %3490 = vmatpush.bf16.msrb.mxu2 %v5786_v13  ;;  %v7085_v13 = vld [vmem:[%s10701_s1 + $0x774] sm:$0xf0] }
  0x8b   : > { %3519 = vmatpush.bf16.msrb.mxu3 %v5850_v25  ;;  %3548 = vmatpush.bf16.msrb.mxu0 %v5914_v56  ;;  %v6098_v19 = vor.u32 %v7085_v13, %v6097_v12  ;;  %v6090_v56 = vor.u32 %v7083_v53, %v6089_v52  ;;  %v5071_v12 = vld [vmem:[%s7406_s13 + $0x2d4] sm:$0xf0] }
  0x8d   : > { %3375 = vmatmul.bf16.vlgmr.msra.gmra.mxu2 %v8010_v38  ;;  %3577 = vmatpush.bf16.msrb.mxu1 %v5978_v5  ;;  %v6824_v5 = vld [vmem:[%s7406_s13 + $0x274] sm:$0xf] }
  0x8e   : > { %3433 = vmatmul.bf16.vlgmr.msra.gmra.mxu0 %v8012_v39  ;;  %3599 = vmatpush.bf16.msra.mxu2 %v6098_v19 }
  0x8f   : > { %3657 = vmatpush.bf16.msra.mxu0 %v6226_v14 }
  0x90   : > { %3404 = vmatmul.bf16.vlgmr.msra.gmra.mxu3 %v8014_v40  ;;  %3462 = vmatmul.bf16.vlgmr.msra.gmra.mxu1 %v8016_v41 }
  0x91   : > { %3628 = vmatpush.bf16.msra.mxu3 %v6162_v24 }
  0x92   : > { %3600 = vmatpush.bf16.msra.mxu2 %v6090_v56 }
  0x9d   : > { %3380 = vmatmul.bf16.gmra.mxu2 %v8072_v31 }
  0x9e   : > { %3438 = vmatmul.bf16.gmra.mxu0 %v8074_v32 }
  0xa0   : > { %3409 = vmatmul.bf16.gmra.mxu3 %v8076_v33  ;;  %3467 = vmatmul.bf16.gmra.mxu1 %v8078_v34 }
  0xaa   : > { %v3202_v50 = vpop.f32.mrf.mxu0 }
  0xab   : > { %v3203_v54 = vadd.f32 %v3202_v50, %v8149_v42 }
  0xad   : > { %v3231_v57 = vpop.f32.mrf.mxu1  ;;  %3385 = vmatmul.bf16.gmra.mxu2 %v8151_v43 }
  0xae   : > { %v8173_v60 = vadd.f32 %v3231_v57, %v3203_v54  ;;  %3443 = vmatmul.bf16.gmra.mxu0 %v8153_v44  ;;  %v6153_v54 = vld [vmem:[%s10701_s1 + $0x7e0] sm:$0xf]  ;;  %v7099_v57 = vld [vmem:[%s10701_s1 + $0x7e4] sm:$0xf0] }
  0xaf   : > { %v6154_v13 = vor.u32 %v7099_v57, %v6153_v54 }
  0xb0   : > { %3414 = vmatmul.bf16.gmra.mxu3 %v8155_v51  ;;  %3472 = vmatmul.bf16.gmra.mxu1 %v8164_v55  ;;  %v3212_v22 = vpop.f32.mrf.mxu2  ;;  %v4795_v55 = vld [vmem:[%s7406_s13 + $0x94] sm:$0xf0] }
  0xb1   : > { %v3213_v25 = vadd.f32 %v3212_v22, %v8149_v42  ;;  %v3241_v26 = vpop.f32.mrf.mxu3  ;;  %v5079_v22 = vld [vmem:[%s7406_s13 + $0x2dc] sm:$0xf0]  ;;  %3629 = vmatpush.bf16.msra.mxu3 %v6154_v13 }
  0xb2   : > { %v3204_v27 = vpop.f32.mrf.mxu0  ;;  %v8232_v54 = vor.u32 %v6825_v20, %v5079_v22  ;;  %v6217_v13 = vld [vmem:[%s10701_s1 + $0x860] sm:$0xf]  ;;  %v7115_v20 = vld [vmem:[%s10701_s1 + $0x864] sm:$0xf0] }
  0xb3   : > { %v8191_v28 = vadd.f32 %v3241_v26, %v3213_v25  ;;  %v3205_v29 = vadd.f32 %v3204_v27, %v8149_v42  ;;  %v8223_v26 = vor.u32 %v6836_v36, %v5069_v35  ;;  %v8225_v27 = vor.u32 %v6837_v45, %v5077_v37  ;;  %v6289_v35 = vld [vmem:[%s10701_s1 + $0x8f0] sm:$0xf]  ;;  %v7133_v36 = vld [vmem:[%s10701_s1 + $0x8f4] sm:$0xf0] }
  0xb4   : > { %10778 = vst [vmem:[#allocation12_spill] sm:$0xff] %v8232_v54  ;;  %v6290_v37 = vor.u32 %v7133_v36, %v6289_v35  ;;  %v6081_v45 = vld [vmem:[%s10701_s1 + $0x750] sm:$0xf]  ;;  %v4785_v36 = vld [vmem:[%s7406_s13 + $0x28] sm:$0xf] }
  0xb5   : > { %v3233_v30 = vpop.f32.mrf.mxu1  ;;  %10775 = vst [vmem:[#allocation9_spill] sm:$0xff] %v8223_v26  ;;  %v6082_v59 = vor.u32 %v7081_v58, %v6081_v45  ;;  %v4793_v45 = vld [vmem:[%s7406_s13 + $0x30] sm:$0xf]  ;;  %v6764_v58 = vld [vmem:[%s7406_s13 + $0x90] sm:$0xf0] }
  0xb6   : > { %v8198_v50 = vadd.f32 %v3233_v30, %v3205_v29  ;;  %10776 = vst [vmem:[#allocation10_spill] sm:$0xff] %v8225_v27  ;;  %v8227_v30 = vor.u32 %v6824_v5, %v5071_v12  ;;  %v6145_v5 = vld [vmem:[%s10701_s1 + $0x7d0] sm:$0xf]  ;;  %v7097_v12 = vld [vmem:[%s10701_s1 + $0x7d4] sm:$0xf0]  ;;  %3686 = vmatpush.bf16.msra.mxu1 %v6290_v37 }
  0xb7   : > { %3601 = vmatpush.bf16.msra.mxu2 %v6082_v59  ;;  %v6763_v37 = vld [vmem:[%s7406_s13 + $0x88] sm:$0xf0]  ;;  %v6281_v59 = vld [vmem:[%s10701_s1 + $0x8e0] sm:$0xf] }
  0xb8   : > { %v3214_v19 = vpop.f32.mrf.mxu2  ;;  %10777 = vst [vmem:[#allocation11_spill] sm:$0xff] %v8227_v30 }
  0xb9   : > { %v3215_v24 = vadd.f32 %v3214_v19, %v8149_v42  ;;  %v3243_v25 = vpop.f32.mrf.mxu3  ;;  %v6146_v19 = vor.u32 %v7097_v12, %v6145_v5  ;;  %v6751_v12 = vld [vmem:[%s7406_s13 + $0x2c] sm:$0xf] }
  0xbb   : > { %v3207_v29 = vpop.f32.mrf.mxu0  ;;  %v8229_v52 = vadd.f32 %v3243_v25, %v3215_v24  ;;  %v6218_v25 = vor.u32 %v7115_v20, %v6217_v13  ;;  %3630 = vmatpush.bf16.msra.mxu3 %v6146_v19  ;;  %v7131_v13 = vld [vmem:[%s10701_s1 + $0x8e4] sm:$0xf0] }
  0xbc   : > { %v3208_v53 = vadd.f32 %v3207_v29, %v8149_v42  ;;  %v6282_v19 = vor.u32 %v7131_v13, %v6281_v59  ;;  %v7079_v20 = vld [vmem:[%s10701_s1 + $0x744] sm:$0xf0]  ;;  %v7113_v59 = vld [vmem:[%s10701_s1 + $0x854] sm:$0xf0] }
  0xbd   : > { %v3236_v57 = vpop.f32.mrf.mxu1  ;;  %3390 = vmatmul.bf16.gmra.mxu2 %v8223_v26  ;;  %3658 = vmatpush.bf16.msra.mxu0 %v6218_v25  ;;  %v4787_v25 = vld [vmem:[%s7406_s13 + $0x8c] sm:$0xf0]  ;;  %v8303_v26 = vor.u32 %v6763_v37, %v4785_v36  ;;  %v7129_v36 = vld [vmem:[%s10701_s1 + $0x8d4] sm:$0xf0] }
  0xbe   : > { %v8235_v56 = vadd.f32 %v3236_v57, %v3208_v53  ;;  %3448 = vmatmul.bf16.gmra.mxu0 %v8225_v27  ;;  %3687 = vmatpush.bf16.msra.mxu1 %v6282_v19  ;;  %v7093_v37 = vld [vmem:[%s10701_s1 + $0x7b4] sm:$0xf0]  ;;  %v7111_v19 = vld [vmem:[%s10701_s1 + $0x844] sm:$0xf0] }
  0xbf   : > { %10779 = vst [vmem:[#allocation13_spill] sm:$0xff] %v8303_v26 }
  0xc0   : > { %3419 = vmatmul.bf16.gmra.mxu3 %v8227_v30  ;;  %3477 = vmatmul.bf16.gmra.mxu1 %v8232_v54  ;;  %v3217_v14 = vpop.f32.mrf.mxu2  ;;  %v6752_v54 = vld [vmem:[%s7406_s13 + $0x34] sm:$0xf] }
  0xc1   : > { %v3218_v22 = vadd.f32 %v3217_v14, %v8149_v42  ;;  %v6073_v14 = vld [vmem:[%s10701_s1 + $0x740] sm:$0xf]  ;;  %v8311_v30 = vor.u32 %v6752_v54, %v4795_v55  ;;  %v7077_v55 = vld [vmem:[%s10701_s1 + $0x734] sm:$0xf0]  ;;  %v6129_v54 = vld [vmem:[%s10701_s1 + $0x7b0] sm:$0xf] }
  0xc3   : > { %v3246_v24 = vpop.f32.mrf.mxu3  ;;  %v3209_v29 = vpop.f32.mrf.mxu0  ;;  %10782 = vst [vmem:[#allocation16_spill] sm:$0xff] %v8311_v30 }
  0xc4   : > { %v8265_v53 = vadd.f32 %v3246_v24, %v3218_v22  ;;  %v3210_v57 = vadd.f32 %v3209_v29, %v8149_v42  ;;  %v6137_v22 = vld [vmem:[%s10701_s1 + $0x7c0] sm:$0xf]  ;;  %v7095_v24 = vld [vmem:[%s10701_s1 + $0x7c4] sm:$0xf0]  ;;  %v6074_v29 = vor.u32 %v7079_v20, %v6073_v14  ;;  %v8305_v14 = vor.u32 %v6764_v58, %v4793_v45 }
  0xc5   : > { %v3238_v35 = vpop.f32.mrf.mxu1  ;;  %v6201_v45 = vld [vmem:[%s10701_s1 + $0x840] sm:$0xf] }
  0xc6   : > { %v8272_v5 = vadd.f32 %v3238_v35, %v3210_v57  ;;  %v6138_v57 = vor.u32 %v7095_v24, %v6137_v22  ;;  %v6209_v35 = vld [vmem:[%s10701_s1 + $0x850] sm:$0xf]  ;;  %10780 = vst [vmem:[#allocation14_spill] sm:$0xff] %v8305_v14  ;;  %3602 = vmatpush.bf16.msra.mxu2 %v6074_v29  ;;  %v8307_v22 = vor.u32 %v6751_v12, %v4787_v25 }
  0xc7   : > { %v6210_v34 = vor.u32 %v7113_v59, %v6209_v35  ;;  %v6130_v12 = vor.u32 %v7093_v37, %v6129_v54  ;;  %v6776_v54 = vld [vmem:[%s7406_s13 + $0xf4] sm:$0xf]  ;;  %v6057_v37 = vld [vmem:[%s10701_s1 + $0x720] sm:$0xf] }
  0xc8   : > { %v3219_v13 = vpop.f32.mrf.mxu2  ;;  %3631 = vmatpush.bf16.msra.mxu3 %v6138_v57  ;;  %10781 = vst [vmem:[#allocation15_spill] sm:$0xff] %v8307_v22  ;;  %v6202_v57 = vor.u32 %v7111_v19, %v6201_v45  ;;  %v4887_v19 = vld [vmem:[%s7406_s13 + $0x154] sm:$0xf0] }
  0xc9   : > { %v3220_v41 = vadd.f32 %v3219_v13, %v8149_v42  ;;  %3659 = vmatpush.bf16.msra.mxu0 %v6210_v34  ;;  %v6273_v42 = vld [vmem:[%s10701_s1 + $0x8d0] sm:$0xf] }
  0xca   : > { %v6274_v34 = vor.u32 %v7129_v36, %v6273_v42  ;;  %v4885_v42 = vld [vmem:[%s7406_s13 + $0xf0] sm:$0xf]  ;;  %v6788_v36 = vld [vmem:[%s7406_s13 + $0x150] sm:$0xf0] }
  0xcb   : > { %v3248_v27 = vpop.f32.mrf.mxu3  ;;  %v3318_v20 = vpop.f32.mrf.mxu0 }
  0xcc   : > { %v8309_v24 = vadd.f32 %v3248_v27, %v3220_v41  ;;  %v6065_v41 = vld [vmem:[%s10701_s1 + $0x730] sm:$0xf]  ;;  %3688 = vmatpush.bf16.msra.mxu1 %v6274_v34  ;;  %3632 = vmatpush.bf16.msra.mxu3 %v6130_v12  ;;  %v4893_v34 = vld [vmem:[%s7406_s13 + $0xf8] sm:$0xf]  ;;  %v7091_v12 = vld [vmem:[%s10701_s1 + $0x7a4] sm:$0xf0] }
  0xcd   : > { %v3347_v49 = vpop.f32.mrf.mxu1  ;;  %3491 = vmatmul.bf16.vlgmr.msrb.gmra.mxu2 %v8303_v26  ;;  %v6066_v27 = vor.u32 %v7077_v55, %v6065_v41  ;;  %3660 = vmatpush.bf16.msra.mxu0 %v6202_v57  ;;  %v6789_v41 = vld [vmem:[%s7406_s13 + $0x158] sm:$0xf0]  ;;  %v6193_v57 = vld [vmem:[%s10701_s1 + $0x830] sm:$0xf] }
  0xce   : > { %3549 = vmatmul.bf16.vlgmr.msrb.gmra.mxu0 %v8305_v14  ;;  %v4895_v14 = vld [vmem:[%s7406_s13 + $0x15c] sm:$0xf0] }
  0xcf   : > { %3603 = vmatpush.bf16.msra.mxu2 %v6066_v27  ;;  %v7127_v27 = vld [vmem:[%s10701_s1 + $0x8c4] sm:$0xf0] }
  0xd0   : > { %3520 = vmatmul.bf16.vlgmr.msrb.gmra.mxu3 %v8307_v22  ;;  %3578 = vmatmul.bf16.vlgmr.msrb.gmra.mxu1 %v8311_v30  ;;  %v3260_v58 = vpop.f32.mrf.mxu2  ;;  %v6777_v30 = vld [vmem:[%s7406_s13 + $0xfc] sm:$0xf] }
  0xd1   : > { %v3261_v25 = vadd.f32 %v3260_v58, %v8173_v60  ;;  %v6265_v60 = vld [vmem:[%s10701_s1 + $0x8c0] sm:$0xf] }
  0xd2   : > { %v6266_v45 = vor.u32 %v7127_v27, %v6265_v60  ;;  %v6121_v58 = vld [vmem:[%s10701_s1 + $0x7a0] sm:$0xf] }
  0xd3   : > { %v3289_v29 = vpop.f32.mrf.mxu3  ;;  %v3320_v35 = vpop.f32.mrf.mxu0 }
  0xd4   : > { %v3290_v59 = vadd.f32 %v3289_v29, %v3261_v25  ;;  %v6122_v29 = vor.u32 %v7091_v12, %v6121_v58  ;;  %3689 = vmatpush.bf16.msra.mxu1 %v6266_v45  ;;  %v8381_v12 = vor.u32 %v6776_v54, %v4887_v19  ;;  %v7107_v45 = vld [vmem:[%s10701_s1 + $0x824] sm:$0xf0] }
  0xd5   : > { %v3349_v13 = vpop.f32.mrf.mxu1 }
  0xd6   : > { %v3319_v55 = vadd.f32 %v3318_v20, %v3290_v59  ;;  %v7075_v20 = vld [vmem:[%s10701_s1 + $0x724] sm:$0xf0]  ;;  %v7109_v59 = vld [vmem:[%s10701_s1 + $0x834] sm:$0xf0]  ;;  %3633 = vmatpush.bf16.msra.mxu3 %v6122_v29  ;;  %10785 = vst [vmem:[#allocation19_spill] sm:$0xff] %v8381_v12 }
  0xd7   : > { %v6058_v25 = vor.u32 %v7075_v20, %v6057_v37  ;;  %v6194_v26 = vor.u32 %v7109_v59, %v6193_v57  ;;  %v8377_v37 = vor.u32 %v6788_v36, %v4885_v42  ;;  %v8379_v20 = vor.u32 %v6789_v41, %v4893_v34  ;;  %v7125_v42 = vld [vmem:[%s10701_s1 + $0x8b4] sm:$0xf0]  ;;  %v6185_v36 = vld [vmem:[%s10701_s1 + $0x820] sm:$0xf] }
  0xd8   : > { %v8372_v60 = vadd.f32 %v3347_v49, %v3319_v55  ;;  %v3262_v27 = vpop.f32.mrf.mxu2  ;;  %v8383_v55 = vor.u32 %v6777_v30, %v4895_v14  ;;  %v7073_v30 = vld [vmem:[%s10701_s1 + $0x714] sm:$0xf0]  ;;  %v6186_v29 = vor.u32 %v7107_v45, %v6185_v36  ;;  %v7087_v36 = vld [vmem:[%s10701_s1 + $0x784] sm:$0xf0]  ;;  %v4987_v45 = vld [vmem:[%s7406_s13 + $0x21c] sm:$0xf0] }
  0xd9   : > { %v3263_v22 = vadd.f32 %v3262_v27, %v8198_v50  ;;  %10783 = vst [vmem:[#allocation17_spill] sm:$0xff] %v8377_v37  ;;  %3604 = vmatpush.bf16.msra.mxu2 %v6058_v25  ;;  %3661 = vmatpush.bf16.msra.mxu0 %v6194_v26  ;;  %v6257_v50 = vld [vmem:[%s10701_s1 + $0x8b0] sm:$0xf]  ;;  %v4985_v27 = vld [vmem:[%s7406_s13 + $0x1b8] sm:$0xf] }
  0xda   : > { %10784 = vst [vmem:[#allocation18_spill] sm:$0xff] %v8379_v20  ;;  %v6258_v26 = vor.u32 %v7125_v42, %v6257_v50  ;;  %v6814_v50 = vld [vmem:[%s7406_s13 + $0x220] sm:$0xf0]  ;;  %v6249_v42 = vld [vmem:[%s10701_s1 + $0x8a0] sm:$0xf] }
  0xdb   : > { %v3291_v44 = vpop.f32.mrf.mxu3  ;;  %v3323_v58 = vpop.f32.mrf.mxu0  ;;  %10786 = vst [vmem:[#allocation20_spill] sm:$0xff] %v8383_v55 }
  0xdc   : > { %v3292_v49 = vadd.f32 %v3291_v44, %v3263_v22  ;;  %v6049_v44 = vld [vmem:[%s10701_s1 + $0x710] sm:$0xf]  ;;  %3690 = vmatpush.bf16.msra.mxu1 %v6258_v26 }
  0xdd   : > { %v3352_v43 = vpop.f32.mrf.mxu1  ;;  %3496 = vmatmul.bf16.gmra.mxu2 %v8377_v37  ;;  %v6050_v14 = vor.u32 %v7073_v30, %v6049_v44  ;;  %v6113_v22 = vld [vmem:[%s10701_s1 + $0x790] sm:$0xf]  ;;  %3662 = vmatpush.bf16.msra.mxu0 %v6186_v29  ;;  %v6041_v30 = vld [vmem:[%s10701_s1 + $0x700] sm:$0xf] }
  0xde   : > { %v3321_v51 = vadd.f32 %v3320_v35, %v3292_v49  ;;  %3554 = vmatmul.bf16.gmra.mxu0 %v8379_v20  ;;  %v7089_v35 = vld [vmem:[%s10701_s1 + $0x794] sm:$0xf0]  ;;  %v4993_v49 = vld [vmem:[%s7406_s13 + $0x1c0] sm:$0xf] }
  0xdf   : > { %v6114_v54 = vor.u32 %v7089_v35, %v6113_v22  ;;  %3605 = vmatpush.bf16.msra.mxu2 %v6050_v14  ;;  %v7071_v14 = vld [vmem:[%s10701_s1 + $0x704] sm:$0xf0]  ;;  %v6105_v22 = vld [vmem:[%s10701_s1 + $0x780] sm:$0xf] }
  0xe0   : > { %3525 = vmatmul.bf16.gmra.mxu3 %v8381_v12  ;;  %3583 = vmatmul.bf16.gmra.mxu1 %v8383_v55  ;;  %v8410_v34 = vadd.f32 %v3349_v13, %v3321_v51  ;;  %v3265_v41 = vpop.f32.mrf.mxu2  ;;  %v6813_v51 = vld [vmem:[%s7406_s13 + $0x218] sm:$0xf0]  ;;  %v6042_v35 = vor.u32 %v7071_v14, %v6041_v30  ;;  %v4995_v30 = vld [vmem:[%s7406_s13 + $0x224] sm:$0xf0]  ;;  %v6241_v14 = vld [vmem:[%s10701_s1 + $0x890] sm:$0xf] }
  0xe1   : > { %v3266_v19 = vadd.f32 %v3265_v41, %v8235_v56  ;;  %3634 = vmatpush.bf16.msra.mxu3 %v6114_v54  ;;  %v7123_v56 = vld [vmem:[%s10701_s1 + $0x8a4] sm:$0xf0]  ;;  %v7105_v41 = vld [vmem:[%s10701_s1 + $0x814] sm:$0xf0]  ;;  %v6801_v54 = vld [vmem:[%s7406_s13 + $0x1bc] sm:$0xf] }
  0xe2   : > { %v6250_v44 = vor.u32 %v7123_v56, %v6249_v42  ;;  %v8449_v56 = vor.u32 %v6813_v51, %v4985_v27  ;;  %v7121_v55 = vld [vmem:[%s10701_s1 + $0x894] sm:$0xf0]  ;;  %v8461_v51 = vor.u32 %v6801_v54, %v4987_v45 }
  0xe3   : > { %v3294_v25 = vpop.f32.mrf.mxu3  ;;  %v3325_v57 = vpop.f32.mrf.mxu0  ;;  %3606 = vmatpush.bf16.msra.mxu2 %v6042_v35  ;;  %v7103_v35 = vld [vmem:[%s10701_s1 + $0x804] sm:$0xf0]  ;;  %v7149_v45 = vld [vmem:[%s10701_s1 + $0x974] sm:$0xf0] }
  0xe4   : > { %v3295_v59 = vadd.f32 %v3294_v25, %v3266_v19  ;;  %v6802_v19 = vld [vmem:[%s7406_s13 + $0x1c4] sm:$0xf]  ;;  %3691 = vmatpush.bf16.msra.mxu1 %v6250_v44  ;;  %v6106_v25 = vor.u32 %v7087_v36, %v6105_v22  ;;  %10787 = vst [vmem:[#allocation21_spill] sm:$0xff] %v8449_v56  ;;  %v8459_v22 = vor.u32 %v6814_v50, %v4993_v49  ;;  %v7119_v50 = vld [vmem:[%s10701_s1 + $0x884] sm:$0xf0] }
  0xe5   : > { %v3354_v13 = vpop.f32.mrf.mxu1  ;;  %10789 = vst [vmem:[#allocation23_spill] sm:$0xff] %v8461_v51 }
  0xe6   : > { %v3324_v26 = vadd.f32 %v3323_v58, %v3295_v59  ;;  %v6177_v58 = vld [vmem:[%s10701_s1 + $0x810] sm:$0xf]  ;;  %10788 = vst [vmem:[#allocation22_spill] sm:$0xff] %v8459_v22  ;;  %3635 = vmatpush.bf16.msra.mxu3 %v6106_v25  ;;  %v7165_v25 = vld [vmem:[%s10701_s1 + $0x9f4] sm:$0xf0] }
  0xe7   : > { %v6178_v29 = vor.u32 %v7105_v41, %v6177_v58  ;;  %v8469_v58 = vor.u32 %v6802_v19, %v4995_v30 }
  0xe8   : > { %v8447_v59 = vadd.f32 %v3352_v43, %v3324_v26  ;;  %v3267_v42 = vpop.f32.mrf.mxu2  ;;  %v6242_v43 = vor.u32 %v7121_v55, %v6241_v14  ;;  %v6169_v26 = vld [vmem:[%s10701_s1 + $0x800] sm:$0xf] }
  0xe9   : > { %v3268_v20 = vadd.f32 %v3267_v42, %v8272_v5  ;;  %3663 = vmatpush.bf16.msra.mxu0 %v6178_v29  ;;  %10790 = vst [vmem:[#allocation24_spill] sm:$0xff] %v8469_v58  ;;  %v6170_v5 = vor.u32 %v7103_v35, %v6169_v26  ;;  %v6233_v55 = vld [vmem:[%s10701_s1 + $0x880] sm:$0xf] }
  0xea   : > { %3692 = vmatpush.bf16.msra.mxu1 %v6242_v43  ;;  %v6234_v54 = vor.u32 %v7119_v50, %v6233_v55  ;;  %v5093_v55 = vld [vmem:[%s7406_s13 + $0x288] sm:$0xf]  ;;  %v6839_v50 = vld [vmem:[%s7406_s13 + $0x2e8] sm:$0xf0] }
  0xeb   : > { %v3296_v44 = vpop.f32.mrf.mxu3  ;;  %v3328_v27 = vpop.f32.mrf.mxu0 }
  0xec   : > { %v3297_v36 = vadd.f32 %v3296_v44, %v3268_v20  ;;  %v6353_v20 = vld [vmem:[%s10701_s1 + $0x970] sm:$0xf] }
  0xed   : > { %v3357_v49 = vpop.f32.mrf.mxu1  ;;  %3501 = vmatmul.bf16.gmra.mxu2 %v8449_v56  ;;  %3664 = vmatpush.bf16.msra.mxu0 %v6170_v5  ;;  %v6354_v19 = vor.u32 %v7149_v45, %v6353_v20  ;;  %v6838_v5 = vld [vmem:[%s7406_s13 + $0x2e0] sm:$0xf0]  ;;  %v7163_v45 = vld [vmem:[%s10701_s1 + $0x9e4] sm:$0xf0]  ;;  %v8527_v56 = vor.u32 %v6839_v50, %v5093_v55  ;;  %v6401_v50 = vld [vmem:[%s10701_s1 + $0x9d0] sm:$0xf] }
  0xee   : > { %v3326_v41 = vadd.f32 %v3325_v57, %v3297_v36  ;;  %3559 = vmatmul.bf16.gmra.mxu0 %v8459_v22  ;;  %v6417_v57 = vld [vmem:[%s10701_s1 + $0x9f0] sm:$0xf]  ;;  %3693 = vmatpush.bf16.msra.mxu1 %v6234_v54  ;;  %v5085_v36 = vld [vmem:[%s7406_s13 + $0x280] sm:$0xf] }
  0xef   : > { %v6418_v30 = vor.u32 %v7165_v25, %v6417_v57  ;;  %3715 = vmatpush.bf16.msrb.mxu2 %v6354_v19  ;;  %v6409_v54 = vld [vmem:[%s10701_s1 + $0x9e0] sm:$0xf]  ;;  %v7181_v57 = vld [vmem:[%s10701_s1 + $0xa74] sm:$0xf0]  ;;  %v6826_v19 = vld [vmem:[%s7406_s13 + $0x284] sm:$0xf]  ;;  %v8525_v22 = vor.u32 %v6838_v5, %v5085_v36 }
  0xf0   : > { %3530 = vmatmul.bf16.gmra.mxu3 %v8461_v51  ;;  %3588 = vmatmul.bf16.gmra.mxu1 %v8469_v58  ;;  %v8493_v29 = vadd.f32 %v3354_v13, %v3326_v41  ;;  %v3270_v42 = vpop.f32.mrf.mxu2  ;;  %v6345_v41 = vld [vmem:[%s10701_s1 + $0x960] sm:$0xf]  ;;  %v5087_v25 = vld [vmem:[%s7406_s13 + $0x2e4] sm:$0xf0]  ;;  %10792 = vst [vmem:[#allocation26_spill] sm:$0xff] %v8527_v56 }
  0xf1   : > { %v3271_v14 = vadd.f32 %v3270_v42, %v8191_v28  ;;  %3744 = vmatpush.bf16.msrb.mxu3 %v6418_v30  ;;  %v7147_v28 = vld [vmem:[%s10701_s1 + $0x964] sm:$0xf0]  ;;  %v6410_v42 = vor.u32 %v7163_v45, %v6409_v54  ;;  %10791 = vst [vmem:[#allocation25_spill] sm:$0xff] %v8525_v22  ;;  %v8529_v37 = vor.u32 %v6826_v19, %v5087_v25  ;;  %v7197_v36 = vld [vmem:[%s10701_s1 + $0xaf4] sm:$0xf0] }
  0xf2   : > { %v6346_v20 = vor.u32 %v7147_v28, %v6345_v41  ;;  %v5095_v41 = vld [vmem:[%s7406_s13 + $0x2ec] sm:$0xf0] }
  0xf3   : > { %v3299_v44 = vpop.f32.mrf.mxu3  ;;  %v3330_v43 = vpop.f32.mrf.mxu0  ;;  %10793 = vst [vmem:[#allocation27_spill] sm:$0xff] %v8529_v37 }
  0xf4   : > { %v3300_v26 = vadd.f32 %v3299_v44, %v3271_v14  ;;  %3716 = vmatpush.bf16.msrb.mxu2 %v6346_v20  ;;  %v7161_v20 = vld [vmem:[%s10701_s1 + $0x9d4] sm:$0xf0] }
  0xf5   : > { %v3359_v35 = vpop.f32.mrf.mxu1  ;;  %3745 = vmatpush.bf16.msrb.mxu3 %v6410_v42  ;;  %v6402_v25 = vor.u32 %v7161_v20, %v6401_v50  ;;  %v7179_v42 = vld [vmem:[%s10701_s1 + $0xa64] sm:$0xf0]  ;;  %v6393_v20 = vld [vmem:[%s10701_s1 + $0x9c0] sm:$0xf] }
  0xf6   : > { %v3329_v13 = vadd.f32 %v3328_v27, %v3300_v26  ;;  %v6481_v27 = vld [vmem:[%s10701_s1 + $0xa70] sm:$0xf]  ;;  %v6827_v26 = vld [vmem:[%s7406_s13 + $0x28c] sm:$0xf] }
  0xf7   : > { %v6482_v30 = vor.u32 %v7181_v57, %v6481_v27  ;;  %v8531_v45 = vor.u32 %v6827_v26, %v5095_v41  ;;  %v6473_v27 = vld [vmem:[%s10701_s1 + $0xa60] sm:$0xf] }
  0xf8   : > { %v8520_v14 = vadd.f32 %v3357_v49, %v3329_v13  ;;  %v3272_v44 = vpop.f32.mrf.mxu2  ;;  %v6474_v26 = vor.u32 %v7179_v42, %v6473_v27  ;;  %v7159_v27 = vld [vmem:[%s10701_s1 + $0x9c4] sm:$0xf0] }
  0xf9   : > { %v3273_v28 = vadd.f32 %v3272_v44, %v8229_v52  ;;  %3773 = vmatpush.bf16.msrb.mxu0 %v6482_v30  ;;  %10794 = vst [vmem:[#allocation28_spill] sm:$0xff] %v8531_v45  ;;  %v6545_v52 = vld [vmem:[%s10701_s1 + $0xaf0] sm:$0xf]  ;;  %3746 = vmatpush.bf16.msrb.mxu3 %v6402_v25  ;;  %v6394_v42 = vor.u32 %v7159_v27, %v6393_v20 }
  0xfa   : > { %v6546_v5 = vor.u32 %v7197_v36, %v6545_v52  ;;  %v4809_v52 = vld [vmem:[%s7406_s13 + $0x40] sm:$0xf]  ;;  %v6766_v36 = vld [vmem:[%s7406_s13 + $0xa0] sm:$0xf0] }
  0xfb   : > { %v3301_v58 = vpop.f32.mrf.mxu3  ;;  %v3333_v51 = vpop.f32.mrf.mxu0 }
  0xfc   : > { %v3302_v54 = vadd.f32 %v3301_v58, %v3273_v28  ;;  %v6337_v58 = vld [vmem:[%s10701_s1 + $0x950] sm:$0xf]  ;;  %3802 = vmatpush.bf16.msrb.mxu1 %v6546_v5 }
  0xfd   : > { %v3362_v49 = vpop.f32.mrf.mxu1  ;;  %3506 = vmatmul.bf16.gmra.mxu2 %v8525_v22  ;;  %3774 = vmatpush.bf16.msrb.mxu0 %v6474_v26 }
  0xfe   : > { %v3331_v13 = vadd.f32 %v3330_v43, %v3302_v54  ;;  %3564 = vmatmul.bf16.gmra.mxu0 %v8527_v56  ;;  %v7145_v43 = vld [vmem:[%s10701_s1 + $0x954] sm:$0xf0]  ;;  %3747 = vmatpush.bf16.msrb.mxu3 %v6394_v42 }
  0xff   : > { %v6338_v55 = vor.u32 %v7145_v43, %v6337_v58  ;;  %v4801_v54 = vld [vmem:[%s7406_s13 + $0x38] sm:$0xf]  ;;  %v6753_v58 = vld [vmem:[%s7406_s13 + $0x3c] sm:$0xf]  ;;  %v7195_v43 = vld [vmem:[%s10701_s1 + $0xae4] sm:$0xf0] }
 0x100   : > { %3535 = vmatmul.bf16.gmra.mxu3 %v8529_v37  ;;  %3593 = vmatmul.bf16.gmra.mxu1 %v8531_v45  ;;  %v8558_v57 = vadd.f32 %v3359_v35, %v3331_v13  ;;  %v3275_v19 = vpop.f32.mrf.mxu2  ;;  %v6765_v13 = vld [vmem:[%s7406_s13 + $0x98] sm:$0xf0] }
 0x101   : > { %v3276_v30 = vadd.f32 %v3275_v19, %v8265_v53  ;;  %3717 = vmatpush.bf16.msrb.mxu2 %v6338_v55  ;;  %v6537_v53 = vld [vmem:[%s10701_s1 + $0xae0] sm:$0xf] }
 0x102   : > { %v6329_v55 = vld [vmem:[%s10701_s1 + $0x940] sm:$0xf]  ;;  %v6538_v50 = vor.u32 %v7195_v43, %v6537_v53  ;;  %v6754_v53 = vld [vmem:[%s7406_s13 + $0x44] sm:$0xf]  ;;  %v4811_v43 = vld [vmem:[%s7406_s13 + $0xa4] sm:$0xf0] }
 0x103   : > { %v3304_v44 = vpop.f32.mrf.mxu3  ;;  %v3335_v41 = vpop.f32.mrf.mxu0  ;;  %v4803_v19 = vld [vmem:[%s7406_s13 + $0x9c] sm:$0xf0] }
 0x104   : > { %v3305_v28 = vadd.f32 %v3304_v44, %v3276_v30  ;;  %v6465_v30 = vld [vmem:[%s10701_s1 + $0xa50] sm:$0xf]  ;;  %v7177_v44 = vld [vmem:[%s10701_s1 + $0xa54] sm:$0xf0]  ;;  %3803 = vmatpush.bf16.msrb.mxu1 %v6538_v50  ;;  %v8603_v27 = vor.u32 %v6753_v58, %v4803_v19 }
 0x105   : > { %v3364_v35 = vpop.f32.mrf.mxu1  ;;  %v6466_v45 = vor.u32 %v7177_v44, %v6465_v30 }
 0x106   : > { %v3334_v5 = vadd.f32 %v3333_v51, %v3305_v28  ;;  %v7143_v51 = vld [vmem:[%s10701_s1 + $0x944] sm:$0xf0]  ;;  %10797 = vst [vmem:[#allocation31_spill] sm:$0xff] %v8603_v27 }
 0x107   : > { %v6330_v25 = vor.u32 %v7143_v51, %v6329_v55  ;;  %v8599_v55 = vor.u32 %v6765_v13, %v4801_v54  ;;  %v8601_v51 = vor.u32 %v6766_v36, %v4809_v52  ;;  %3775 = vmatpush.bf16.msrb.mxu0 %v6466_v45  ;;  %v7193_v54 = vld [vmem:[%s10701_s1 + $0xad4] sm:$0xf0]  ;;  %v6385_v13 = vld [vmem:[%s10701_s1 + $0x9b0] sm:$0xf]  ;;  %v6457_v36 = vld [vmem:[%s10701_s1 + $0xa40] sm:$0xf] }
 0x108   : > { %v8594_v26 = vadd.f32 %v3362_v49, %v3334_v5  ;;  %v3277_v28 = vpop.f32.mrf.mxu2  ;;  %v8605_v5 = vor.u32 %v6754_v53, %v4811_v43  ;;  %v7157_v52 = vld [vmem:[%s10701_s1 + $0x9b4] sm:$0xf0]  ;;  %v6790_v43 = vld [vmem:[%s7406_s13 + $0x160] sm:$0xf0] }
 0x109   : > { %v3278_v56 = vadd.f32 %v3277_v28, %v8309_v24  ;;  %10795 = vst [vmem:[#allocation29_spill] sm:$0xff] %v8599_v55  ;;  %3718 = vmatpush.bf16.msrb.mxu2 %v6330_v25  ;;  %v6529_v24 = vld [vmem:[%s10701_s1 + $0xad0] sm:$0xf]  ;;  %v6386_v19 = vor.u32 %v7157_v52, %v6385_v13  ;;  %v7175_v25 = vld [vmem:[%s10701_s1 + $0xa44] sm:$0xf0] }
 0x10a   : > { %10796 = vst [vmem:[#allocation30_spill] sm:$0xff] %v8601_v51  ;;  %v6530_v45 = vor.u32 %v7193_v54, %v6529_v24  ;;  %v6458_v44 = vor.u32 %v7175_v25, %v6457_v36  ;;  %v6791_v24 = vld [vmem:[%s7406_s13 + $0x168] sm:$0xf0]  ;;  %v6377_v13 = vld [vmem:[%s10701_s1 + $0x9a0] sm:$0xf] }
 0x10b   : > { %v3306_v22 = vpop.f32.mrf.mxu3  ;;  %v3434_v20 = vpop.f32.mrf.mxu0  ;;  %10798 = vst [vmem:[#allocation32_spill] sm:$0xff] %v8605_v5  ;;  %3748 = vmatpush.bf16.msrb.mxu3 %v6386_v19  ;;  %v7155_v52 = vld [vmem:[%s10701_s1 + $0x9a4] sm:$0xf0]  ;;  %v6449_v25 = vld [vmem:[%s10701_s1 + $0xa30] sm:$0xf] }
 0x10c   : > { %v3307_v49 = vadd.f32 %v3306_v22, %v3278_v56  ;;  %v6321_v56 = vld [vmem:[%s10701_s1 + $0x930] sm:$0xf]  ;;  %v7141_v22 = vld [vmem:[%s10701_s1 + $0x934] sm:$0xf0]  ;;  %3804 = vmatpush.bf16.msrb.mxu1 %v6530_v45  ;;  %3776 = vmatpush.bf16.msrb.mxu0 %v6458_v44  ;;  %v6778_v45 = vld [vmem:[%s7406_s13 + $0x104] sm:$0xf]  ;;  %v6378_v19 = vor.u32 %v7155_v52, %v6377_v13 }
 0x10d   : > { %v3463_v37 = vpop.f32.mrf.mxu1  ;;  %3607 = vmatmul.bf16.vlgmr.msra.gmra.mxu2 %v8599_v55  ;;  %v4903_v36 = vld [vmem:[%s7406_s13 + $0x164] sm:$0xf0] }
 0x10e   : > { %v3336_v12 = vadd.f32 %v3335_v41, %v3307_v49  ;;  %3665 = vmatmul.bf16.vlgmr.msra.gmra.mxu0 %v8601_v51  ;;  %v6322_v41 = vor.u32 %v7141_v22, %v6321_v56  ;;  %v4909_v49 = vld [vmem:[%s7406_s13 + $0x108] sm:$0xf]  ;;  %v6313_v22 = vld [vmem:[%s10701_s1 + $0x920] sm:$0xf]  ;;  %v8677_v52 = vor.u32 %v6778_v45, %v4903_v36 }
 0x10f   : > { %v7191_v56 = vld [vmem:[%s10701_s1 + $0xac4] sm:$0xf0]  ;;  %3749 = vmatpush.bf16.msrb.mxu3 %v6378_v19  ;;  %v6441_v45 = vld [vmem:[%s10701_s1 + $0xa20] sm:$0xf] }
 0x110   : > { %3636 = vmatmul.bf16.vlgmr.msra.gmra.mxu3 %v8603_v27  ;;  %3694 = vmatmul.bf16.vlgmr.msra.gmra.mxu1 %v8605_v5  ;;  %v8632_v58 = vadd.f32 %v3364_v35, %v3336_v12  ;;  %v3376_v50 = vpop.f32.mrf.mxu2  ;;  %v4901_v35 = vld [vmem:[%s7406_s13 + $0x100] sm:$0xf]  ;;  %10801 = vst [vmem:[#allocation35_spill] sm:$0xff] %v8677_v52  ;;  %v7171_v19 = vld [vmem:[%s10701_s1 + $0xa24] sm:$0xf0] }
 0x111   : > { %v3377_v42 = vadd.f32 %v3376_v50, %v8372_v60  ;;  %3719 = vmatpush.bf16.msrb.mxu2 %v6322_v41  ;;  %v6521_v60 = vld [vmem:[%s10701_s1 + $0xac0] sm:$0xf] }
 0x112   : > { %v6522_v41 = vor.u32 %v7191_v56, %v6521_v60  ;;  %v4911_v60 = vld [vmem:[%s7406_s13 + $0x16c] sm:$0xf0] }
 0x113   : > { %v3405_v30 = vpop.f32.mrf.mxu3  ;;  %v3436_v28 = vpop.f32.mrf.mxu0 }
 0x114   : > { %v3406_v53 = vadd.f32 %v3405_v30, %v3377_v42  ;;  %v7173_v42 = vld [vmem:[%s10701_s1 + $0xa34] sm:$0xf0]  ;;  %3805 = vmatpush.bf16.msrb.mxu1 %v6522_v41 }
 0x115   : > { %v3465_v12 = vpop.f32.mrf.mxu1  ;;  %v6450_v56 = vor.u32 %v7173_v42, %v6449_v25 }
 0x116   : > { %v3435_v54 = vadd.f32 %v3434_v20, %v3406_v53  ;;  %v7139_v20 = vld [vmem:[%s10701_s1 + $0x924] sm:$0xf0]  ;;  %v6779_v53 = vld [vmem:[%s7406_s13 + $0x10c] sm:$0xf] }
 0x117   : > { %v6314_v50 = vor.u32 %v7139_v20, %v6313_v22  ;;  %v8673_v22 = vor.u32 %v6790_v43, %v4901_v35  ;;  %v8675_v20 = vor.u32 %v6791_v24, %v4909_v49  ;;  %3777 = vmatpush.bf16.msrb.mxu0 %v6450_v56  ;;  %v7189_v35 = vld [vmem:[%s10701_s1 + $0xab4] sm:$0xf0]  ;;  %v6369_v49 = vld [vmem:[%s10701_s1 + $0x990] sm:$0xf]  ;;  %v5001_v56 = vld [vmem:[%s7406_s13 + $0x1c8] sm:$0xf] }
 0x118   : > { %v8668_v30 = vadd.f32 %v3463_v37, %v3435_v54  ;;  %v3378_v44 = vpop.f32.mrf.mxu2  ;;  %v8679_v54 = vor.u32 %v6779_v53, %v4911_v60  ;;  %v7153_v24 = vld [vmem:[%s10701_s1 + $0x994] sm:$0xf0] }
 0x119   : > { %v3379_v5 = vadd.f32 %v3378_v44, %v8410_v34  ;;  %10799 = vst [vmem:[#allocation33_spill] sm:$0xff] %v8673_v22  ;;  %3720 = vmatpush.bf16.msrb.mxu2 %v6314_v50  ;;  %v6513_v34 = vld [vmem:[%s10701_s1 + $0xab0] sm:$0xf]  ;;  %v6370_v50 = vor.u32 %v7153_v24, %v6369_v49  ;;  %v6442_v44 = vor.u32 %v7171_v19, %v6441_v45  ;;  %v6361_v49 = vld [vmem:[%s10701_s1 + $0x980] sm:$0xf] }
 0x11a   : > { %10800 = vst [vmem:[#allocation34_spill] sm:$0xff] %v8675_v20  ;;  %v6514_v43 = vor.u32 %v7189_v35, %v6513_v34  ;;  %v6816_v34 = vld [vmem:[%s7406_s13 + $0x230] sm:$0xf0]  ;;  %v6505_v35 = vld [vmem:[%s10701_s1 + $0xaa0] sm:$0xf] }
 0x11b   : > { %v3407_v51 = vpop.f32.mrf.mxu3  ;;  %v3439_v13 = vpop.f32.mrf.mxu0  ;;  %10802 = vst [vmem:[#allocation36_spill] sm:$0xff] %v8679_v54  ;;  %3750 = vmatpush.bf16.msrb.mxu3 %v6370_v50  ;;  %3778 = vmatpush.bf16.msrb.mxu0 %v6442_v44  ;;  %v7151_v45 = vld [vmem:[%s10701_s1 + $0x984] sm:$0xf0]  ;;  %v6803_v50 = vld [vmem:[%s7406_s13 + $0x1cc] sm:$0xf] }
 0x11c   : > { %v3408_v37 = vadd.f32 %v3407_v51, %v3379_v5  ;;  %v6305_v51 = vld [vmem:[%s10701_s1 + $0x910] sm:$0xf]  ;;  %v7137_v5 = vld [vmem:[%s10701_s1 + $0x914] sm:$0xf0]  ;;  %3806 = vmatpush.bf16.msrb.mxu1 %v6514_v43 }
 0x11d   : > { %v3468_v55 = vpop.f32.mrf.mxu1  ;;  %3612 = vmatmul.bf16.gmra.mxu2 %v8673_v22  ;;  %v5003_v19 = vld [vmem:[%s7406_s13 + $0x22c] sm:$0xf0] }
 0x11e   : > { %v3437_v27 = vadd.f32 %v3436_v28, %v3408_v37  ;;  %3670 = vmatmul.bf16.gmra.mxu0 %v8675_v20  ;;  %v6306_v28 = vor.u32 %v7137_v5, %v6305_v51  ;;  %v5009_v37 = vld [vmem:[%s7406_s13 + $0x1d0] sm:$0xf]  ;;  %v6297_v5 = vld [vmem:[%s10701_s1 + $0x900] sm:$0xf] }
 0x120   : > { %3641 = vmatmul.bf16.gmra.mxu3 %v8677_v52  ;;  %3699 = vmatmul.bf16.gmra.mxu1 %v8679_v54  ;;  %v8706_v41 = vadd.f32 %v3465_v12, %v3437_v27  ;;  %v3381_v36 = vpop.f32.mrf.mxu2  ;;  %v6815_v27 = vld [vmem:[%s7406_s13 + $0x228] sm:$0xf0]  ;;  %v7185_v54 = vld [vmem:[%s10701_s1 + $0xa94] sm:$0xf0] }
 0x121   : > { %v3382_v25 = vadd.f32 %v3381_v36, %v8447_v59  ;;  %3721 = vmatpush.bf16.msrb.mxu2 %v6306_v28  ;;  %v7187_v59 = vld [vmem:[%s10701_s1 + $0xaa4] sm:$0xf0]  ;;  %v7169_v36 = vld [vmem:[%s10701_s1 + $0xa14] sm:$0xf0] }
 0x122   : > { %v6506_v51 = vor.u32 %v7187_v59, %v6505_v35  ;;  %v7135_v28 = vld [vmem:[%s10701_s1 + $0x904] sm:$0xf0]  ;;  %v8745_v59 = vor.u32 %v6815_v27, %v5001_v56  ;;  %v8757_v27 = vor.u32 %v6803_v50, %v5003_v19  ;;  %v7213_v19 = vld [vmem:[%s10701_s1 + $0xb74] sm:$0xf0] }
 0x123   : > { %v3410_v42 = vpop.f32.mrf.mxu3  ;;  %v3441_v53 = vpop.f32.mrf.mxu0  ;;  %v6298_v24 = vor.u32 %v7135_v28, %v6297_v5  ;;  %v5011_v5 = vld [vmem:[%s7406_s13 + $0x234] sm:$0xf0]  ;;  %v6497_v28 = vld [vmem:[%s10701_s1 + $0xa90] sm:$0xf] }
 0x124   : > { %v3411_v60 = vadd.f32 %v3410_v42, %v3382_v25  ;;  %v6804_v25 = vld [vmem:[%s7406_s13 + $0x1d4] sm:$0xf]  ;;  %3807 = vmatpush.bf16.msrb.mxu1 %v6506_v51  ;;  %v6362_v42 = vor.u32 %v7151_v45, %v6361_v49  ;;  %10803 = vst [vmem:[#allocation37_spill] sm:$0xff] %v8745_v59  ;;  %v8755_v49 = vor.u32 %v6816_v34, %v5009_v37  ;;  %v7183_v34 = vld [vmem:[%s10701_s1 + $0xa84] sm:$0xf0] }
 0x125   : > { %v3470_v12 = vpop.f32.mrf.mxu1  ;;  %3722 = vmatpush.bf16.msrb.mxu2 %v6298_v24  ;;  %10805 = vst [vmem:[#allocation39_spill] sm:$0xff] %v8757_v27  ;;  %v7167_v24 = vld [vmem:[%s10701_s1 + $0xa04] sm:$0xf0] }
 0x126   : > { %v3440_v43 = vadd.f32 %v3439_v13, %v3411_v60  ;;  %v6433_v13 = vld [vmem:[%s10701_s1 + $0xa10] sm:$0xf]  ;;  %10804 = vst [vmem:[#allocation38_spill] sm:$0xff] %v8755_v49  ;;  %3751 = vmatpush.bf16.msrb.mxu3 %v6362_v42  ;;  %v7229_v42 = vld [vmem:[%s10701_s1 + $0xbf4] sm:$0xf0] }
 0x127   : > { %v6434_v44 = vor.u32 %v7169_v36, %v6433_v13  ;;  %v8765_v13 = vor.u32 %v6804_v25, %v5011_v5 }
 0x128   : > { %v8743_v60 = vadd.f32 %v3468_v55, %v3440_v43  ;;  %v3383_v35 = vpop.f32.mrf.mxu2  ;;  %v6498_v55 = vor.u32 %v7185_v54, %v6497_v28  ;;  %v6425_v43 = vld [vmem:[%s10701_s1 + $0xa00] sm:$0xf] }
 0x129   : > { %v3384_v20 = vadd.f32 %v3383_v35, %v8493_v29  ;;  %3779 = vmatpush.bf16.msrb.mxu0 %v6434_v44  ;;  %10806 = vst [vmem:[#allocation40_spill] sm:$0xff] %v8765_v13  ;;  %v6426_v29 = vor.u32 %v7167_v24, %v6425_v43  ;;  %v6489_v54 = vld [vmem:[%s10701_s1 + $0xa80] sm:$0xf] }
 0x12a   : > { %3808 = vmatpush.bf16.msrb.mxu1 %v6498_v55  ;;  %v6490_v50 = vor.u32 %v7183_v34, %v6489_v54  ;;  %v5109_v54 = vld [vmem:[%s7406_s13 + $0x298] sm:$0xf]  ;;  %v6841_v34 = vld [vmem:[%s7406_s13 + $0x2f8] sm:$0xf0] }
 0x12b   : > { %v3412_v51 = vpop.f32.mrf.mxu3  ;;  %v3444_v56 = vpop.f32.mrf.mxu0 }
 0x12c   : > { %v3413_v45 = vadd.f32 %v3412_v51, %v3384_v20  ;;  %v6609_v20 = vld [vmem:[%s10701_s1 + $0xb70] sm:$0xf] }
 0x12d   : > { %v3473_v37 = vpop.f32.mrf.mxu1  ;;  %3617 = vmatmul.bf16.gmra.mxu2 %v8745_v59  ;;  %3780 = vmatpush.bf16.msrb.mxu0 %v6426_v29  ;;  %v6610_v25 = vor.u32 %v7213_v19, %v6609_v20  ;;  %v6840_v29 = vld [vmem:[%s7406_s13 + $0x2f0] sm:$0xf0]  ;;  %v7227_v19 = vld [vmem:[%s10701_s1 + $0xbe4] sm:$0xf0]  ;;  %v8823_v59 = vor.u32 %v6841_v34, %v5109_v54  ;;  %v6657_v34 = vld [vmem:[%s10701_s1 + $0xbd0] sm:$0xf] }
 0x12e   : > { %v3442_v36 = vadd.f32 %v3441_v53, %v3413_v45  ;;  %3675 = vmatmul.bf16.gmra.mxu0 %v8755_v49  ;;  %v6673_v53 = vld [vmem:[%s10701_s1 + $0xbf0] sm:$0xf]  ;;  %3809 = vmatpush.bf16.msrb.mxu1 %v6490_v50  ;;  %v6665_v50 = vld [vmem:[%s10701_s1 + $0xbe0] sm:$0xf] }
 0x12f   : > { %v6674_v5 = vor.u32 %v7229_v42, %v6673_v53  ;;  %3831 = vmatpush.bf16.msra.mxu2 %v6610_v25  ;;  %v5101_v45 = vld [vmem:[%s7406_s13 + $0x290] sm:$0xf]  ;;  %v7245_v53 = vld [vmem:[%s10701_s1 + $0xc74] sm:$0xf0]  ;;  %v6828_v25 = vld [vmem:[%s7406_s13 + $0x294] sm:$0xf] }
 0x130   : > { %3646 = vmatmul.bf16.gmra.mxu3 %v8757_v27  ;;  %3704 = vmatmul.bf16.gmra.mxu1 %v8765_v13  ;;  %v8789_v44 = vadd.f32 %v3470_v12, %v3442_v36  ;;  %v3386_v35 = vpop.f32.mrf.mxu2  ;;  %v6601_v36 = vld [vmem:[%s10701_s1 + $0xb60] sm:$0xf]  ;;  %v5103_v42 = vld [vmem:[%s7406_s13 + $0x2f4] sm:$0xf0]  ;;  %v8821_v49 = vor.u32 %v6840_v29, %v5101_v45  ;;  %10808 = vst [vmem:[#allocation42_spill] sm:$0xff] %v8823_v59 }
 0x131   : > { %v3387_v28 = vadd.f32 %v3386_v35, %v8520_v14  ;;  %3860 = vmatpush.bf16.msra.mxu3 %v6674_v5  ;;  %v7211_v14 = vld [vmem:[%s10701_s1 + $0xb64] sm:$0xf0]  ;;  %v6666_v35 = vor.u32 %v7227_v19, %v6665_v50  ;;  %v8825_v22 = vor.u32 %v6828_v25, %v5103_v42  ;;  %v5203_v45 = vld [vmem:[%s10701_s1 + $0x78] sm:$0xf0] }
 0x132   : > { %v6602_v20 = vor.u32 %v7211_v14, %v6601_v36  ;;  %v5111_v36 = vld [vmem:[%s7406_s13 + $0x2fc] sm:$0xf0]  ;;  %10807 = vst [vmem:[#allocation41_spill] sm:$0xff] %v8821_v49 }
 0x133   : > { %v3415_v51 = vpop.f32.mrf.mxu3  ;;  %v3446_v55 = vpop.f32.mrf.mxu0  ;;  %10809 = vst [vmem:[#allocation43_spill] sm:$0xff] %v8825_v22 }
 0x134   : > { %v3416_v43 = vadd.f32 %v3415_v51, %v3387_v28  ;;  %3832 = vmatpush.bf16.msra.mxu2 %v6602_v20  ;;  %v7225_v20 = vld [vmem:[%s10701_s1 + $0xbd4] sm:$0xf0] }
 0x135   : > { %v3475_v24 = vpop.f32.mrf.mxu1  ;;  %3861 = vmatpush.bf16.msra.mxu3 %v6666_v35  ;;  %v6658_v42 = vor.u32 %v7225_v20, %v6657_v34  ;;  %v7243_v35 = vld [vmem:[%s10701_s1 + $0xc64] sm:$0xf0]  ;;  %v6649_v20 = vld [vmem:[%s10701_s1 + $0xbc0] sm:$0xf] }
 0x136   : > { %v3445_v12 = vadd.f32 %v3444_v56, %v3416_v43  ;;  %v6737_v56 = vld [vmem:[%s10701_s1 + $0xc70] sm:$0xf]  ;;  %v6829_v43 = vld [vmem:[%s7406_s13 + $0x29c] sm:$0xf] }
 0x137   : > { %v6738_v5 = vor.u32 %v7245_v53, %v6737_v56  ;;  %v8827_v19 = vor.u32 %v6829_v43, %v5111_v36  ;;  %v6729_v56 = vld [vmem:[%s10701_s1 + $0xc60] sm:$0xf] }
 0x138   : > { %v8816_v28 = vadd.f32 %v3473_v37, %v3445_v12  ;;  %v3388_v51 = vpop.f32.mrf.mxu2  ;;  %v6730_v43 = vor.u32 %v7243_v35, %v6729_v56  ;;  %v7223_v56 = vld [vmem:[%s10701_s1 + $0xbc4] sm:$0xf0] }
 0x139   : > { %v3389_v14 = vadd.f32 %v3388_v51, %v8558_v57  ;;  %3889 = vmatpush.bf16.msra.mxu0 %v6738_v5  ;;  %10810 = vst [vmem:[#allocation44_spill] sm:$0xff] %v8827_v19  ;;  %v6860_v57 = vld [vmem:[%s10701_s1 + $0x74] sm:$0xf]  ;;  %3862 = vmatpush.bf16.msra.mxu3 %v6658_v42  ;;  %v6650_v35 = vor.u32 %v7223_v56, %v6649_v20 }
 0x13a   : > { %v5206_v29 = vor.u32 %v6860_v57, %v5203_v45  ;;  %v4825_v57 = vld [vmem:[%s7406_s13 + $0x50] sm:$0xf]  ;;  %v6768_v45 = vld [vmem:[%s7406_s13 + $0xb0] sm:$0xf0] }
 0x13b   : > { %v3417_v13 = vpop.f32.mrf.mxu3  ;;  %v3449_v27 = vpop.f32.mrf.mxu0 }
 0x13c   : > { %v3418_v50 = vadd.f32 %v3417_v13, %v3389_v14  ;;  %v6593_v13 = vld [vmem:[%s10701_s1 + $0xb50] sm:$0xf]  ;;  %3918 = vmatpush.bf16.msra.mxu1 %v5206_v29 }
 0x13d   : > { %v3478_v37 = vpop.f32.mrf.mxu1  ;;  %3622 = vmatmul.bf16.gmra.mxu2 %v8821_v49  ;;  %3890 = vmatpush.bf16.msra.mxu0 %v6730_v43 }
 0x13e   : > { %v3447_v12 = vadd.f32 %v3446_v55, %v3418_v50  ;;  %3680 = vmatmul.bf16.gmra.mxu0 %v8823_v59  ;;  %v7209_v55 = vld [vmem:[%s10701_s1 + $0xb54] sm:$0xf0]  ;;  %v4817_v50 = vld [vmem:[%s7406_s13 + $0x48] sm:$0xf]  ;;  %3863 = vmatpush.bf16.msra.mxu3 %v6650_v35 }
 0x13f   : > { %v6594_v54 = vor.u32 %v7209_v55, %v6593_v13  ;;  %v6755_v13 = vld [vmem:[%s7406_s13 + $0x4c] sm:$0xf] }
 0x140   : > { %3651 = vmatmul.bf16.gmra.mxu3 %v8825_v22  ;;  %3709 = vmatmul.bf16.gmra.mxu1 %v8827_v19  ;;  %v8854_v53 = vadd.f32 %v3475_v24, %v3447_v12  ;;  %v3391_v25 = vpop.f32.mrf.mxu2  ;;  %v6767_v12 = vld [vmem:[%s7406_s13 + $0xa8] sm:$0xf0] }
 0x141   : > { %v3392_v5 = vadd.f32 %v3391_v25, %v8594_v26  ;;  %3833 = vmatpush.bf16.msra.mxu2 %v6594_v54  ;;  %v6858_v26 = vld [vmem:[%s10701_s1 + $0x64] sm:$0xf]  ;;  %v5195_v55 = vld [vmem:[%s10701_s1 + $0x68] sm:$0xf0]  ;;  %v6585_v54 = vld [vmem:[%s10701_s1 + $0xb40] sm:$0xf] }
 0x142   : > { %v5198_v34 = vor.u32 %v6858_v26, %v5195_v55  ;;  %v4819_v25 = vld [vmem:[%s7406_s13 + $0xac] sm:$0xf0]  ;;  %v6756_v26 = vld [vmem:[%s7406_s13 + $0x54] sm:$0xf]  ;;  %v4827_v55 = vld [vmem:[%s7406_s13 + $0xb4] sm:$0xf0] }
 0x143   : > { %v3420_v51 = vpop.f32.mrf.mxu3  ;;  %v3451_v36 = vpop.f32.mrf.mxu0  ;;  %v8899_v56 = vor.u32 %v6755_v13, %v4819_v25 }
 0x144   : > { %v3421_v14 = vadd.f32 %v3420_v51, %v3392_v5  ;;  %v6721_v5 = vld [vmem:[%s10701_s1 + $0xc50] sm:$0xf]  ;;  %v7241_v51 = vld [vmem:[%s10701_s1 + $0xc54] sm:$0xf0]  ;;  %3919 = vmatpush.bf16.msra.mxu1 %v5198_v34 }
 0x145   : > { %v3480_v24 = vpop.f32.mrf.mxu1  ;;  %v6722_v19 = vor.u32 %v7241_v51, %v6721_v5  ;;  %10813 = vst [vmem:[#allocation47_spill] sm:$0xff] %v8899_v56 }
 0x146   : > { %v3450_v29 = vadd.f32 %v3449_v27, %v3421_v14  ;;  %v7207_v27 = vld [vmem:[%s10701_s1 + $0xb44] sm:$0xf0] }
 0x147   : > { %v6586_v42 = vor.u32 %v7207_v27, %v6585_v54  ;;  %v8895_v54 = vor.u32 %v6767_v12, %v4817_v50  ;;  %v8897_v27 = vor.u32 %v6768_v45, %v4825_v57  ;;  %3891 = vmatpush.bf16.msra.mxu0 %v6722_v19  ;;  %v5187_v50 = vld [vmem:[%s10701_s1 + $0x58] sm:$0xf0]  ;;  %v6641_v12 = vld [vmem:[%s10701_s1 + $0xbb0] sm:$0xf]  ;;  %v7221_v57 = vld [vmem:[%s10701_s1 + $0xbb4] sm:$0xf0] }
 0x148   : > { %v8890_v43 = vadd.f32 %v3478_v37, %v3450_v29  ;;  %v3393_v14 = vpop.f32.mrf.mxu2  ;;  %v8901_v29 = vor.u32 %v6756_v26, %v4827_v55  ;;  %v6713_v45 = vld [vmem:[%s10701_s1 + $0xc40] sm:$0xf]  ;;  %v6642_v25 = vor.u32 %v7221_v57, %v6641_v12  ;;  %v6792_v55 = vld [vmem:[%s7406_s13 + $0x170] sm:$0xf0]  ;;  %v7219_v57 = vld [vmem:[%s10701_s1 + $0xba4] sm:$0xf0] }
 0x149   : > { %v3394_v59 = vadd.f32 %v3393_v14, %v8632_v58  ;;  %10811 = vst [vmem:[#allocation45_spill] sm:$0xff] %v8895_v54  ;;  %3834 = vmatpush.bf16.msra.mxu2 %v6586_v42  ;;  %v6856_v58 = vld [vmem:[%s10701_s1 + $0x54] sm:$0xf]  ;;  %v7239_v42 = vld [vmem:[%s10701_s1 + $0xc44] sm:$0xf0] }
 0x14a   : > { %10812 = vst [vmem:[#allocation46_spill] sm:$0xff] %v8897_v27  ;;  %v5190_v19 = vor.u32 %v6856_v58, %v5187_v50  ;;  %v6714_v51 = vor.u32 %v7239_v42, %v6713_v45  ;;  %3864 = vmatpush.bf16.msra.mxu3 %v6642_v25  ;;  %v6793_v58 = vld [vmem:[%s7406_s13 + $0x178] sm:$0xf0]  ;;  %v6633_v12 = vld [vmem:[%s10701_s1 + $0xba0] sm:$0xf] }
 0x14b   : > { %v3422_v49 = vpop.f32.mrf.mxu3  ;;  %v3550_v20 = vpop.f32.mrf.mxu0  ;;  %10814 = vst [vmem:[#allocation48_spill] sm:$0xff] %v8901_v29  ;;  %v4919_v45 = vld [vmem:[%s7406_s13 + $0x174] sm:$0xf0]  ;;  %v6634_v25 = vor.u32 %v7219_v57, %v6633_v12  ;;  %v6705_v42 = vld [vmem:[%s10701_s1 + $0xc30] sm:$0xf] }
 0x14c   : > { %v3423_v37 = vadd.f32 %v3422_v49, %v3394_v59  ;;  %v6577_v59 = vld [vmem:[%s10701_s1 + $0xb30] sm:$0xf]  ;;  %v7205_v49 = vld [vmem:[%s10701_s1 + $0xb34] sm:$0xf0]  ;;  %3920 = vmatpush.bf16.msra.mxu1 %v5190_v19  ;;  %3892 = vmatpush.bf16.msra.mxu0 %v6714_v51  ;;  %v6780_v19 = vld [vmem:[%s7406_s13 + $0x114] sm:$0xf] }
 0x14d   : > { %v3579_v22 = vpop.f32.mrf.mxu1  ;;  %3723 = vmatmul.bf16.vlgmr.msrb.gmra.mxu2 %v8895_v54  ;;  %v8973_v57 = vor.u32 %v6780_v19, %v4919_v45  ;;  %v6697_v19 = vld [vmem:[%s10701_s1 + $0xc20] sm:$0xf] }
 0x14e   : > { %v3452_v52 = vadd.f32 %v3451_v36, %v3423_v37  ;;  %3781 = vmatmul.bf16.vlgmr.msrb.gmra.mxu0 %v8897_v27  ;;  %v6578_v36 = vor.u32 %v7205_v49, %v6577_v59  ;;  %v4925_v37 = vld [vmem:[%s7406_s13 + $0x118] sm:$0xf]  ;;  %v5179_v59 = vld [vmem:[%s10701_s1 + $0x48] sm:$0xf0]  ;;  %v6569_v49 = vld [vmem:[%s10701_s1 + $0xb20] sm:$0xf]  ;;  %3865 = vmatpush.bf16.msra.mxu3 %v6634_v25 }
 0x14f   : > { %v7235_v25 = vld [vmem:[%s10701_s1 + $0xc24] sm:$0xf0] }
 0x150   : > { %3752 = vmatmul.bf16.vlgmr.msrb.gmra.mxu3 %v8899_v56  ;;  %3810 = vmatmul.bf16.vlgmr.msrb.gmra.mxu1 %v8901_v29  ;;  %v8928_v13 = vadd.f32 %v3480_v24, %v3452_v52  ;;  %v3492_v34 = vpop.f32.mrf.mxu2  ;;  %v4917_v24 = vld [vmem:[%s7406_s13 + $0x110] sm:$0xf] }
 0x151   : > { %v3493_v35 = vadd.f32 %v3492_v34, %v8668_v30  ;;  %3835 = vmatpush.bf16.msra.mxu2 %v6578_v36  ;;  %v6854_v30 = vld [vmem:[%s10701_s1 + $0x44] sm:$0xf] }
 0x152   : > { %v5182_v36 = vor.u32 %v6854_v30, %v5179_v59  ;;  %v4927_v30 = vld [vmem:[%s7406_s13 + $0x17c] sm:$0xf0] }
 0x153   : > { %v3521_v5 = vpop.f32.mrf.mxu3  ;;  %v3552_v14 = vpop.f32.mrf.mxu0 }
 0x154   : > { %v3522_v26 = vadd.f32 %v3521_v5, %v3493_v35  ;;  %v7237_v35 = vld [vmem:[%s10701_s1 + $0xc34] sm:$0xf0]  ;;  %3921 = vmatpush.bf16.msra.mxu1 %v5182_v36 }
 0x155   : > { %v3581_v52 = vpop.f32.mrf.mxu1  ;;  %v6706_v59 = vor.u32 %v7237_v35, %v6705_v42 }
 0x156   : > { %v3551_v50 = vadd.f32 %v3550_v20, %v3522_v26  ;;  %v7203_v20 = vld [vmem:[%s10701_s1 + $0xb24] sm:$0xf0]  ;;  %v6781_v26 = vld [vmem:[%s7406_s13 + $0x11c] sm:$0xf] }
 0x157   : > { %v6570_v34 = vor.u32 %v7203_v20, %v6569_v49  ;;  %v8969_v49 = vor.u32 %v6792_v55, %v4917_v24  ;;  %v8971_v20 = vor.u32 %v6793_v58, %v4925_v37  ;;  %3893 = vmatpush.bf16.msra.mxu0 %v6706_v59  ;;  %v5171_v24 = vld [vmem:[%s10701_s1 + $0x38] sm:$0xf0]  ;;  %v6625_v37 = vld [vmem:[%s10701_s1 + $0xb90] sm:$0xf]  ;;  %v7217_v58 = vld [vmem:[%s10701_s1 + $0xb94] sm:$0xf0] }
 0x158   : > { %v8964_v5 = vadd.f32 %v3579_v22, %v3551_v50  ;;  %v3494_v51 = vpop.f32.mrf.mxu2  ;;  %v8975_v50 = vor.u32 %v6781_v26, %v4927_v30  ;;  %v5017_v59 = vld [vmem:[%s7406_s13 + $0x1d8] sm:$0xf] }
 0x159   : > { %v3495_v29 = vadd.f32 %v3494_v51, %v8706_v41  ;;  %10815 = vst [vmem:[#allocation49_spill] sm:$0xff] %v8969_v49  ;;  %3836 = vmatpush.bf16.msra.mxu2 %v6570_v34  ;;  %v6852_v41 = vld [vmem:[%s10701_s1 + $0x34] sm:$0xf]  ;;  %v6626_v34 = vor.u32 %v7217_v58, %v6625_v37  ;;  %v6698_v51 = vor.u32 %v7235_v25, %v6697_v19  ;;  %v6617_v37 = vld [vmem:[%s10701_s1 + $0xb80] sm:$0xf] }
 0x15a   : > { %10816 = vst [vmem:[#allocation50_spill] sm:$0xff] %v8971_v20  ;;  %v5174_v55 = vor.u32 %v6852_v41, %v5171_v24  ;;  %v6818_v41 = vld [vmem:[%s7406_s13 + $0x240] sm:$0xf0]  ;;  %v7215_v19 = vld [vmem:[%s10701_s1 + $0xb84] sm:$0xf0] }
 0x15b   : > { %v3523_v27 = vpop.f32.mrf.mxu3  ;;  %v3555_v12 = vpop.f32.mrf.mxu0  ;;  %10817 = vst [vmem:[#allocation51_spill] sm:$0xff] %v8975_v50  ;;  %3866 = vmatpush.bf16.msra.mxu3 %v6626_v34  ;;  %3894 = vmatpush.bf16.msra.mxu0 %v6698_v51  ;;  %v6850_v24 = vld [vmem:[%s10701_s1 + $0x24] sm:$0xf]  ;;  %v6805_v34 = vld [vmem:[%s7406_s13 + $0x1dc] sm:$0xf] }
 0x15c   : > { %v3524_v22 = vadd.f32 %v3523_v27, %v3495_v29  ;;  %v6561_v27 = vld [vmem:[%s10701_s1 + $0xb10] sm:$0xf]  ;;  %v7201_v29 = vld [vmem:[%s10701_s1 + $0xb14] sm:$0xf0]  ;;  %3922 = vmatpush.bf16.msra.mxu1 %v5174_v55  ;;  %v5019_v25 = vld [vmem:[%s7406_s13 + $0x23c] sm:$0xf0] }
 0x15d   : > { %v3584_v54 = vpop.f32.mrf.mxu1  ;;  %3728 = vmatmul.bf16.gmra.mxu2 %v8969_v49 }
 0x15e   : > { %v3553_v56 = vadd.f32 %v3552_v14, %v3524_v22  ;;  %3786 = vmatmul.bf16.gmra.mxu0 %v8971_v20  ;;  %v6562_v14 = vor.u32 %v7201_v29, %v6561_v27  ;;  %v5025_v22 = vld [vmem:[%s7406_s13 + $0x1e0] sm:$0xf] }
 0x15f   : > { %v6553_v29 = vld [vmem:[%s10701_s1 + $0xb00] sm:$0xf] }
 0x160   : > { %3757 = vmatmul.bf16.gmra.mxu3 %v8973_v57  ;;  %3815 = vmatmul.bf16.gmra.mxu1 %v8975_v50  ;;  %v9002_v36 = vadd.f32 %v3581_v52, %v3553_v56  ;;  %v3497_v45 = vpop.f32.mrf.mxu2  ;;  %v6817_v56 = vld [vmem:[%s7406_s13 + $0x238] sm:$0xf0] }
 0x161   : > { %v3498_v42 = vadd.f32 %v3497_v45, %v8743_v60  ;;  %3837 = vmatpush.bf16.msra.mxu2 %v6562_v14  ;;  %v5163_v60 = vld [vmem:[%s10701_s1 + $0x28] sm:$0xf0]  ;;  %v7199_v14 = vld [vmem:[%s10701_s1 + $0xb04] sm:$0xf0]  ;;  %v7233_v45 = vld [vmem:[%s10701_s1 + $0xc14] sm:$0xf0] }
 0x162   : > { %v5166_v27 = vor.u32 %v6850_v24, %v5163_v60  ;;  %v6554_v58 = vor.u32 %v7199_v14, %v6553_v29  ;;  %v9041_v60 = vor.u32 %v6817_v56, %v5017_v59  ;;  %v5027_v29 = vld [vmem:[%s7406_s13 + $0x244] sm:$0xf0]  ;;  %v6848_v14 = vld [vmem:[%s10701_s1 + $0x14] sm:$0xf]  ;;  %v5155_v50 = vld [vmem:[%s10701_s1 + $0x18] sm:$0xf0]  ;;  %v9053_v56 = vor.u32 %v6805_v34, %v5019_v25 }
 0x163   : > { %v3526_v35 = vpop.f32.mrf.mxu3  ;;  %v3557_v26 = vpop.f32.mrf.mxu0  ;;  %v5267_v25 = vld [vmem:[%s10701_s1 + $0xf8] sm:$0xf0] }
 0x164   : > { %v3527_v30 = vadd.f32 %v3526_v35, %v3498_v42  ;;  %v6806_v42 = vld [vmem:[%s7406_s13 + $0x1e4] sm:$0xf]  ;;  %3923 = vmatpush.bf16.msra.mxu1 %v5166_v27  ;;  %v6618_v35 = vor.u32 %v7215_v19, %v6617_v37  ;;  %10818 = vst [vmem:[#allocation52_spill] sm:$0xff] %v9041_v60  ;;  %v9051_v37 = vor.u32 %v6818_v41, %v5025_v22  ;;  %v5147_v41 = vld [vmem:[%s10701_s1 + $0x8] sm:$0xf0] }
 0x165   : > { %v3586_v52 = vpop.f32.mrf.mxu1  ;;  %3838 = vmatpush.bf16.msra.mxu2 %v6554_v58  ;;  %10820 = vst [vmem:[#allocation54_spill] sm:$0xff] %v9053_v56  ;;  %v7231_v58 = vld [vmem:[%s10701_s1 + $0xc04] sm:$0xf0] }
 0x166   : > { %v3556_v55 = vadd.f32 %v3555_v12, %v3527_v30  ;;  %v6689_v12 = vld [vmem:[%s10701_s1 + $0xc10] sm:$0xf]  ;;  %10819 = vst [vmem:[#allocation53_spill] sm:$0xff] %v9051_v37  ;;  %3867 = vmatpush.bf16.msra.mxu3 %v6618_v35  ;;  %v5331_v35 = vld [vmem:[%s10701_s1 + $0x178] sm:$0xf0] }
 0x167   : > { %v6690_v51 = vor.u32 %v7233_v45, %v6689_v12  ;;  %v9061_v12 = vor.u32 %v6806_v42, %v5027_v29 }
 0x168   : > { %v9039_v30 = vadd.f32 %v3584_v54, %v3556_v55  ;;  %v3499_v24 = vpop.f32.mrf.mxu2  ;;  %v5158_v54 = vor.u32 %v6848_v14, %v5155_v50  ;;  %v6681_v55 = vld [vmem:[%s10701_s1 + $0xc00] sm:$0xf]  ;;  %v6846_v50 = vld [vmem:[%s10701_s1 + $0x4] sm:$0xf] }
 0x169   : > { %v3500_v20 = vadd.f32 %v3499_v24, %v8789_v44  ;;  %3895 = vmatpush.bf16.msra.mxu0 %v6690_v51  ;;  %10821 = vst [vmem:[#allocation55_spill] sm:$0xff] %v9061_v12  ;;  %v6682_v44 = vor.u32 %v7231_v58, %v6681_v55  ;;  %v5150_v34 = vor.u32 %v6846_v50, %v5147_v41  ;;  %v5125_v50 = vld [vmem:[%s7406_s13 + $0x2a8] sm:$0xf]  ;;  %v6843_v41 = vld [vmem:[%s7406_s13 + $0x308] sm:$0xf0] }
 0x16a   : > { %3924 = vmatpush.bf16.msra.mxu1 %v5158_v54 }
 0x16b   : > { %v3528_v27 = vpop.f32.mrf.mxu3  ;;  %v3560_v59 = vpop.f32.mrf.mxu0 }
 0x16c   : > { %v3529_v19 = vadd.f32 %v3528_v27, %v3500_v20  ;;  %v6876_v20 = vld [vmem:[%s10701_s1 + $0xf4] sm:$0xf] }
 0x16d   : > { %v3589_v22 = vpop.f32.mrf.mxu1  ;;  %3733 = vmatmul.bf16.gmra.mxu2 %v9041_v60  ;;  %3896 = vmatpush.bf16.msra.mxu0 %v6682_v44  ;;  %v5270_v42 = vor.u32 %v6876_v20, %v5267_v25  ;;  %v6842_v44 = vld [vmem:[%s7406_s13 + $0x300] sm:$0xf0]  ;;  %v5323_v25 = vld [vmem:[%s10701_s1 + $0x168] sm:$0xf0]  ;;  %v9119_v60 = vor.u32 %v6843_v41, %v5125_v50  ;;  %v6888_v41 = vld [vmem:[%s10701_s1 + $0x154] sm:$0xf] }
 0x16e   : > { %v3558_v45 = vadd.f32 %v3557_v26, %v3529_v19  ;;  %3791 = vmatmul.bf16.gmra.mxu0 %v9051_v37  ;;  %v6892_v26 = vld [vmem:[%s10701_s1 + $0x174] sm:$0xf]  ;;  %3925 = vmatpush.bf16.msra.mxu1 %v5150_v34  ;;  %v5117_v19 = vld [vmem:[%s7406_s13 + $0x2a0] sm:$0xf]  ;;  %v6890_v34 = vld [vmem:[%s10701_s1 + $0x164] sm:$0xf] }
 0x16f   : > { %v5334_v29 = vor.u32 %v6892_v26, %v5331_v35  ;;  %3947 = vmatpush.bf16.msrb.mxu2 %v5270_v42  ;;  %v5395_v26 = vld [vmem:[%s10701_s1 + $0x1f8] sm:$0xf0]  ;;  %v6830_v42 = vld [vmem:[%s7406_s13 + $0x2a4] sm:$0xf]  ;;  %v5119_v35 = vld [vmem:[%s7406_s13 + $0x304] sm:$0xf0]  ;;  %v9117_v37 = vor.u32 %v6842_v44, %v5117_v19 }
 0x170   : > { %3762 = vmatmul.bf16.gmra.mxu3 %v9053_v56  ;;  %3820 = vmatmul.bf16.gmra.mxu1 %v9061_v12  ;;  %v9085_v51 = vadd.f32 %v3586_v52, %v3558_v45  ;;  %v3502_v24 = vpop.f32.mrf.mxu2  ;;  %v6874_v45 = vld [vmem:[%s10701_s1 + $0xe4] sm:$0xf]  ;;  %10823 = vst [vmem:[#allocation57_spill] sm:$0xff] %v9119_v60  ;;  %v9121_v49 = vor.u32 %v6830_v42, %v5119_v35  ;;  %v5459_v19 = vld [vmem:[%s10701_s1 + $0x278] sm:$0xf0] }
 0x171   : > { %v3503_v14 = vadd.f32 %v3502_v24, %v8816_v28  ;;  %3976 = vmatpush.bf16.msrb.mxu3 %v5334_v29  ;;  %v5259_v28 = vld [vmem:[%s10701_s1 + $0xe8] sm:$0xf0]  ;;  %v5326_v24 = vor.u32 %v6890_v34, %v5323_v25  ;;  %10822 = vst [vmem:[#allocation56_spill] sm:$0xff] %v9117_v37 }
 0x172   : > { %v5262_v20 = vor.u32 %v6874_v45, %v5259_v28  ;;  %v5127_v45 = vld [vmem:[%s7406_s13 + $0x30c] sm:$0xf0] }
 0x173   : > { %v3531_v27 = vpop.f32.mrf.mxu3  ;;  %v3562_v54 = vpop.f32.mrf.mxu0 }
 0x174   : > { %v3532_v55 = vadd.f32 %v3531_v27, %v3503_v14  ;;  %3948 = vmatpush.bf16.msrb.mxu2 %v5262_v20  ;;  %v5315_v20 = vld [vmem:[%s10701_s1 + $0x158] sm:$0xf0] }
 0x175   : > { %v3591_v58 = vpop.f32.mrf.mxu1  ;;  %3977 = vmatpush.bf16.msrb.mxu3 %v5326_v24  ;;  %v5318_v35 = vor.u32 %v6888_v41, %v5315_v20  ;;  %v5387_v24 = vld [vmem:[%s10701_s1 + $0x1e8] sm:$0xf0] }
 0x176   : > { %v3561_v52 = vadd.f32 %v3560_v59, %v3532_v55  ;;  %v6908_v59 = vld [vmem:[%s10701_s1 + $0x1f4] sm:$0xf]  ;;  %v6831_v55 = vld [vmem:[%s7406_s13 + $0x2ac] sm:$0xf] }
 0x177   : > { %v5398_v29 = vor.u32 %v6908_v59, %v5395_v26  ;;  %v9123_v25 = vor.u32 %v6831_v55, %v5127_v45  ;;  %v6906_v59 = vld [vmem:[%s10701_s1 + $0x1e4] sm:$0xf]  ;;  %v5243_v20 = vld [vmem:[%s10701_s1 + $0xc8] sm:$0xf0] }
 0x178   : > { %v9112_v14 = vadd.f32 %v3589_v22, %v3561_v52  ;;  %v3504_v27 = vpop.f32.mrf.mxu2  ;;  %v5390_v55 = vor.u32 %v6906_v59, %v5387_v24  ;;  %v5307_v59 = vld [vmem:[%s10701_s1 + $0x148] sm:$0xf0] }
 0x179   : > { %v3505_v28 = vadd.f32 %v3504_v27, %v8854_v53  ;;  %4005 = vmatpush.bf16.msrb.mxu0 %v5398_v29  ;;  %10824 = vst [vmem:[#allocation58_spill] sm:$0xff] %v9123_v25  ;;  %v6924_v53 = vld [vmem:[%s10701_s1 + $0x274] sm:$0xf]  ;;  %3978 = vmatpush.bf16.msrb.mxu3 %v5318_v35 }
 0x17a   : > { %v5462_v44 = vor.u32 %v6924_v53, %v5459_v19  ;;  %v4841_v53 = vld [vmem:[%s7406_s13 + $0x60] sm:$0xf]  ;;  %v6770_v19 = vld [vmem:[%s7406_s13 + $0xc0] sm:$0xf0] }
 0x17b   : > { %v3533_v12 = vpop.f32.mrf.mxu3  ;;  %v3565_v56 = vpop.f32.mrf.mxu0 }
 0x17c   : > { %v3534_v34 = vadd.f32 %v3533_v12, %v3505_v28  ;;  %v6872_v12 = vld [vmem:[%s10701_s1 + $0xd4] sm:$0xf]  ;;  %4034 = vmatpush.bf16.msrb.mxu1 %v5462_v44 }
 0x17d   : > { %v3594_v22 = vpop.f32.mrf.mxu1  ;;  %3738 = vmatmul.bf16.gmra.mxu2 %v9117_v37  ;;  %4006 = vmatpush.bf16.msrb.mxu0 %v5390_v55 }
 0x17e   : > { %v3563_v52 = vadd.f32 %v3562_v54, %v3534_v34  ;;  %3796 = vmatmul.bf16.gmra.mxu0 %v9119_v60  ;;  %v5251_v54 = vld [vmem:[%s10701_s1 + $0xd8] sm:$0xf0]  ;;  %v4833_v34 = vld [vmem:[%s7406_s13 + $0x58] sm:$0xf] }
 0x17f   : > { %v5254_v50 = vor.u32 %v6872_v12, %v5251_v54  ;;  %v6757_v12 = vld [vmem:[%s7406_s13 + $0x5c] sm:$0xf]  ;;  %v6922_v54 = vld [vmem:[%s10701_s1 + $0x264] sm:$0xf] }
 0x180   : > { %3767 = vmatmul.bf16.gmra.mxu3 %v9121_v49  ;;  %3825 = vmatmul.bf16.gmra.mxu1 %v9123_v25  ;;  %v9150_v26 = vadd.f32 %v3591_v58, %v3563_v52  ;;  %v3507_v42 = vpop.f32.mrf.mxu2  ;;  %v6769_v52 = vld [vmem:[%s7406_s13 + $0xb8] sm:$0xf0] }
 0x181   : > { %v3508_v29 = vadd.f32 %v3507_v42, %v8890_v43  ;;  %3949 = vmatpush.bf16.msrb.mxu2 %v5254_v50  ;;  %v5451_v43 = vld [vmem:[%s10701_s1 + $0x268] sm:$0xf0]  ;;  %v6870_v50 = vld [vmem:[%s10701_s1 + $0xc4] sm:$0xf]  ;;  %v4835_v42 = vld [vmem:[%s7406_s13 + $0xbc] sm:$0xf0]  ;;  %v9189_v60 = vor.u32 %v6769_v52, %v4833_v34 }
 0x182   : > { %v5454_v41 = vor.u32 %v6922_v54, %v5451_v43  ;;  %v5246_v35 = vor.u32 %v6870_v50, %v5243_v20  ;;  %v9191_v50 = vor.u32 %v6770_v19, %v4841_v53  ;;  %v5443_v34 = vld [vmem:[%s10701_s1 + $0x258] sm:$0xf0]  ;;  %v6884_v19 = vld [vmem:[%s10701_s1 + $0x134] sm:$0xf] }
 0x183   : > { %v3536_v27 = vpop.f32.mrf.mxu3  ;;  %v3567_v45 = vpop.f32.mrf.mxu0  ;;  %10825 = vst [vmem:[#allocation59_spill] sm:$0xff] %v9189_v60 }
 0x184   : > { %v3537_v28 = vadd.f32 %v3536_v27, %v3508_v29  ;;  %v6904_v29 = vld [vmem:[%s10701_s1 + $0x1d4] sm:$0xf]  ;;  %v5379_v27 = vld [vmem:[%s10701_s1 + $0x1d8] sm:$0xf0]  ;;  %4035 = vmatpush.bf16.msrb.mxu1 %v5454_v41  ;;  %10826 = vst [vmem:[#allocation60_spill] sm:$0xff] %v9191_v50 }
 0x185   : > { %v3596_v58 = vpop.f32.mrf.mxu1  ;;  %v5382_v54 = vor.u32 %v6904_v29, %v5379_v27  ;;  %3950 = vmatpush.bf16.msrb.mxu2 %v5246_v35  ;;  %v5371_v35 = vld [vmem:[%s10701_s1 + $0x1c8] sm:$0xf0] }
 0x186   : > { %v3566_v44 = vadd.f32 %v3565_v56, %v3537_v28  ;;  %v6886_v56 = vld [vmem:[%s10701_s1 + $0x144] sm:$0xf] }
 0x187   : > { %v5310_v24 = vor.u32 %v6886_v56, %v5307_v59  ;;  %v9193_v56 = vor.u32 %v6757_v12, %v4835_v42  ;;  %4007 = vmatpush.bf16.msrb.mxu0 %v5382_v54  ;;  %v6902_v12 = vld [vmem:[%s10701_s1 + $0x1c4] sm:$0xf] }
 0x188   : > { %v9186_v55 = vadd.f32 %v3594_v22, %v3566_v44  ;;  %v3509_v28 = vpop.f32.mrf.mxu2  ;;  %v5299_v44 = vld [vmem:[%s10701_s1 + $0x138] sm:$0xf0]  ;;  %v5374_v27 = vor.u32 %v6902_v12, %v5371_v35  ;;  %v4935_v12 = vld [vmem:[%s7406_s13 + $0x184] sm:$0xf0]  ;;  %v6900_v35 = vld [vmem:[%s10701_s1 + $0x1b4] sm:$0xf] }
 0x189   : > { %v3510_v43 = vadd.f32 %v3509_v28, %v8928_v13  ;;  %3979 = vmatpush.bf16.msrb.mxu3 %v5310_v24  ;;  %v6920_v13 = vld [vmem:[%s10701_s1 + $0x254] sm:$0xf] }
 0x18a   : > { %v5446_v52 = vor.u32 %v6920_v13, %v5443_v34  ;;  %v6795_v13 = vld [vmem:[%s7406_s13 + $0x188] sm:$0xf0] }
 0x18b   : > { %v3538_v25 = vpop.f32.mrf.mxu3  ;;  %v3666_v20 = vpop.f32.mrf.mxu0  ;;  %4008 = vmatpush.bf16.msrb.mxu0 %v5374_v27 }
 0x18c   : > { %v3539_v59 = vadd.f32 %v3538_v25, %v3510_v43  ;;  %v6868_v25 = vld [vmem:[%s10701_s1 + $0xb4] sm:$0xf]  ;;  %4036 = vmatpush.bf16.msrb.mxu1 %v5446_v52  ;;  %v4933_v43 = vld [vmem:[%s7406_s13 + $0x120] sm:$0xf]  ;;  %v6782_v52 = vld [vmem:[%s7406_s13 + $0x124] sm:$0xf] }
 0x18d   : > { %v3695_v37 = vpop.f32.mrf.mxu1  ;;  %3839 = vmatmul.bf16.vlgmr.msra.gmra.mxu2 %v9189_v60 }
 0x18e   : > { %v3568_v22 = vadd.f32 %v3567_v45, %v3539_v59  ;;  %3897 = vmatmul.bf16.vlgmr.msra.gmra.mxu0 %v9191_v50  ;;  %v5235_v45 = vld [vmem:[%s10701_s1 + $0xb8] sm:$0xf0]  ;;  %v6794_v59 = vld [vmem:[%s7406_s13 + $0x180] sm:$0xf0] }
 0x18f   : > { %v5238_v53 = vor.u32 %v6868_v25, %v5235_v45  ;;  %v6918_v25 = vld [vmem:[%s10701_s1 + $0x244] sm:$0xf]  ;;  %v9259_v50 = vor.u32 %v6794_v59, %v4933_v43  ;;  %v5427_v43 = vld [vmem:[%s10701_s1 + $0x238] sm:$0xf0] }
 0x190   : > { %3868 = vmatmul.bf16.vlgmr.msra.gmra.mxu3 %v9193_v56  ;;  %3926 = vmatmul.bf16.vlgmr.msra.gmra.mxu1 %v7451_v4  ;;  %v9220_v41 = vadd.f32 %v3596_v58, %v3568_v22  ;;  %v3608_v42 = vpop.f32.mrf.mxu2  ;;  %v5302_v4 = vor.u32 %v6884_v19, %v5299_v44  ;;  %v4941_v22 = vld [vmem:[%s7406_s13 + $0x128] sm:$0xf]  ;;  %v6866_v45 = vld [vmem:[%s10701_s1 + $0xa4] sm:$0xf]  ;;  %v5227_v19 = vld [vmem:[%s10701_s1 + $0xa8] sm:$0xf0] }
 0x191   : > { %v3609_v24 = vadd.f32 %v3608_v42, %v8964_v5  ;;  %3951 = vmatpush.bf16.msrb.mxu2 %v5238_v53  ;;  %v5435_v5 = vld [vmem:[%s10701_s1 + $0x248] sm:$0xf0]  ;;  %v5230_v42 = vor.u32 %v6866_v45, %v5227_v19  ;;  %10827 = vst [vmem:[#allocation61_spill] sm:$0xff] %v9259_v50  ;;  %v9261_v45 = vor.u32 %v6795_v13, %v4941_v22  ;;  %v6864_v22 = vld [vmem:[%s10701_s1 + $0x94] sm:$0xf] }
 0x192   : > { %3980 = vmatpush.bf16.msrb.mxu3 %v5302_v4  ;;  %v5438_v53 = vor.u32 %v6918_v25, %v5435_v5  ;;  %v5291_v44 = vld [vmem:[%s10701_s1 + $0x128] sm:$0xf0] }
 0x193   : > { %v3637_v29 = vpop.f32.mrf.mxu3  ;;  %v3668_v28 = vpop.f32.mrf.mxu0  ;;  %10828 = vst [vmem:[#allocation62_spill] sm:$0xff] %v9261_v45 }
 0x194   : > { %v3638_v54 = vadd.f32 %v3637_v29, %v3609_v24  ;;  %v5363_v24 = vld [vmem:[%s10701_s1 + $0x1b8] sm:$0xf0]  ;;  %4037 = vmatpush.bf16.msrb.mxu1 %v5438_v53  ;;  %v6898_v53 = vld [vmem:[%s10701_s1 + $0x1a4] sm:$0xf] }
 0x195   : > { %v3697_v58 = vpop.f32.mrf.mxu1  ;;  %3952 = vmatpush.bf16.msrb.mxu2 %v5230_v42 }
 0x196   : > { %v3667_v34 = vadd.f32 %v3666_v20, %v3638_v54  ;;  %v6882_v20 = vld [vmem:[%s10701_s1 + $0x124] sm:$0xf]  ;;  %v5366_v54 = vor.u32 %v6900_v35, %v5363_v24 }
 0x197   : > { %v5294_v4 = vor.u32 %v6882_v20, %v5291_v44  ;;  %v9263_v20 = vor.u32 %v6782_v52, %v4935_v12  ;;  %v5283_v52 = vld [vmem:[%s10701_s1 + $0x118] sm:$0xf0] }
 0x198   : > { %v9256_v29 = vadd.f32 %v3695_v37, %v3667_v34  ;;  %v3610_v27 = vpop.f32.mrf.mxu2  ;;  %4009 = vmatpush.bf16.msrb.mxu0 %v5366_v54  ;;  %v6880_v34 = vld [vmem:[%s10701_s1 + $0x114] sm:$0xf] }
 0x199   : > { %v3611_v25 = vadd.f32 %v3610_v27, %v9002_v36  ;;  %3981 = vmatpush.bf16.msrb.mxu3 %v5294_v4  ;;  %v6916_v36 = vld [vmem:[%s10701_s1 + $0x234] sm:$0xf]  ;;  %v5355_v4 = vld [vmem:[%s10701_s1 + $0x1a8] sm:$0xf0] }
 0x19a   : > { %v5430_v59 = vor.u32 %v6916_v36, %v5427_v43  ;;  %v5358_v27 = vor.u32 %v6898_v53, %v5355_v4  ;;  %v6820_v36 = vld [vmem:[%s7406_s13 + $0x250] sm:$0xf0]  ;;  %v6914_v43 = vld [vmem:[%s10701_s1 + $0x224] sm:$0xf]  ;;  %v5275_v53 = vld [vmem:[%s10701_s1 + $0x108] sm:$0xf0] }
 0x19b   : > { %v3639_v5 = vpop.f32.mrf.mxu3  ;;  %v3671_v19 = vpop.f32.mrf.mxu0  ;;  %v5035_v4 = vld [vmem:[%s7406_s13 + $0x24c] sm:$0xf0] }
 0x19c   : > { %v3640_v44 = vadd.f32 %v3639_v5, %v3611_v25  ;;  %4038 = vmatpush.bf16.msrb.mxu1 %v5430_v59  ;;  %v5033_v5 = vld [vmem:[%s7406_s13 + $0x1e8] sm:$0xf]  ;;  %4010 = vmatpush.bf16.msrb.mxu0 %v5358_v27 }
 0x19d   : > { %v3700_v60 = vpop.f32.mrf.mxu1  ;;  %3844 = vmatmul.bf16.gmra.mxu2 %v9259_v50 }
 0x19e   : > { %v3669_v37 = vadd.f32 %v3668_v28, %v3640_v44  ;;  %3902 = vmatmul.bf16.gmra.mxu0 %v9261_v45  ;;  %v5219_v28 = vld [vmem:[%s10701_s1 + $0x98] sm:$0xf0] }
 0x19f   : > { %v5222_v13 = vor.u32 %v6864_v22, %v5219_v28  ;;  %v6862_v28 = vld [vmem:[%s10701_s1 + $0x84] sm:$0xf] }
 0x1a0   : > { %3873 = vmatmul.bf16.gmra.mxu3 %v9263_v20  ;;  %3931 = vmatmul.bf16.gmra.mxu1 %v7567_v0  ;;  %v9290_v12 = vadd.f32 %v3697_v58, %v3669_v37  ;;  %v3613_v42 = vpop.f32.mrf.mxu2  ;;  %v5286_v0 = vor.u32 %v6880_v34, %v5283_v52  ;;  %v6819_v58 = vld [vmem:[%s7406_s13 + $0x248] sm:$0xf0]  ;;  %v5041_v37 = vld [vmem:[%s7406_s13 + $0x1f0] sm:$0xf]  ;;  %v6878_v34 = vld [vmem:[%s10701_s1 + $0x104] sm:$0xf] }
 0x1a1   : > { %v3614_v35 = vadd.f32 %v3613_v42, %v9039_v30  ;;  %3953 = vmatpush.bf16.msrb.mxu2 %v5222_v13  ;;  %v5419_v30 = vld [vmem:[%s10701_s1 + $0x228] sm:$0xf0]  ;;  %v5347_v42 = vld [vmem:[%s10701_s1 + $0x198] sm:$0xf0] }
 0x1a2   : > { %3982 = vmatpush.bf16.msrb.mxu3 %v5286_v0  ;;  %v5422_v22 = vor.u32 %v6914_v43, %v5419_v30  ;;  %v5211_v13 = vld [vmem:[%s10701_s1 + $0x88] sm:$0xf0]  ;;  %v9328_v43 = vor.u32 %v6819_v58, %v5033_v5  ;;  %v6912_v30 = vld [vmem:[%s10701_s1 + $0x214] sm:$0xf]  ;;  %v6894_v58 = vld [vmem:[%s10701_s1 + $0x184] sm:$0xf] }
 0x1a3   : > { %v3642_v24 = vpop.f32.mrf.mxu3  ;;  %v3673_v54 = vpop.f32.mrf.mxu0  ;;  %v5214_v52 = vor.u32 %v6862_v28, %v5211_v13  ;;  %v6807_v0 = vld [vmem:[%s7406_s13 + $0x1ec] sm:$0xf]  ;;  %v5411_v28 = vld [vmem:[%s10701_s1 + $0x218] sm:$0xf0] }
 0x1a4   : > { %v3643_v25 = vadd.f32 %v3642_v24, %v3614_v35  ;;  %4039 = vmatpush.bf16.msrb.mxu1 %v5422_v22  ;;  %v5278_v35 = vor.u32 %v6878_v34, %v5275_v53  ;;  %10829 = vst [vmem:[#allocation63_spill] sm:$0xff] %v9328_v43  ;;  %v9337_v22 = vor.u32 %v6820_v36, %v5041_v37  ;;  %v5339_v34 = vld [vmem:[%s10701_s1 + $0x188] sm:$0xf0]  ;;  %v6910_v37 = vld [vmem:[%s10701_s1 + $0x204] sm:$0xf] }
 0x1a5   : > { %v3702_v44 = vpop.f32.mrf.mxu1  ;;  %3954 = vmatpush.bf16.msrb.mxu2 %v5214_v52  ;;  %v9339_v5 = vor.u32 %v6807_v0, %v5035_v4  ;;  %v5403_v36 = vld [vmem:[%s10701_s1 + $0x208] sm:$0xf0]  ;;  %v5523_v0 = vld [vmem:[%s10701_s1 + $0x2f8] sm:$0xf0] }
 0x1a6   : > { %v3672_v59 = vadd.f32 %v3671_v19, %v3643_v25  ;;  %v6896_v19 = vld [vmem:[%s10701_s1 + $0x194] sm:$0xf]  ;;  %10830 = vst [vmem:[#allocation64_spill] sm:$0xff] %v9337_v22  ;;  %3983 = vmatpush.bf16.msrb.mxu3 %v5278_v35  ;;  %v5587_v35 = vld [vmem:[%s10701_s1 + $0x378] sm:$0xf0] }
 0x1a7   : > { %v5350_v24 = vor.u32 %v6896_v19, %v5347_v42  ;;  %10831 = vst [vmem:[#allocation65_spill] sm:$0xff] %v9339_v5  ;;  %v5406_v42 = vor.u32 %v6910_v37, %v5403_v36  ;;  %v6845_v37 = vld [vmem:[%s7406_s13 + $0x318] sm:$0xf0] }
 0x1a8   : > { %v9326_v27 = vadd.f32 %v3700_v60, %v3672_v59  ;;  %v3615_v25 = vpop.f32.mrf.mxu2  ;;  %v5414_v60 = vor.u32 %v6912_v30, %v5411_v28 }
 0x1a9   : > { %v3616_v13 = vadd.f32 %v3615_v25, %v9085_v51  ;;  %4011 = vmatpush.bf16.msrb.mxu0 %v5350_v24  ;;  %v5342_v51 = vor.u32 %v6894_v58, %v5339_v34  ;;  %v5133_v34 = vld [vmem:[%s7406_s13 + $0x2b0] sm:$0xf] }
 0x1aa   : > { %4040 = vmatpush.bf16.msrb.mxu1 %v5414_v60 }
 0x1ab   : > { %v3644_v45 = vpop.f32.mrf.mxu3  ;;  %v3676_v59 = vpop.f32.mrf.mxu0 }
 0x1ac   : > { %v3645_v52 = vadd.f32 %v3644_v45, %v3616_v13  ;;  %v6940_v45 = vld [vmem:[%s10701_s1 + $0x2f4] sm:$0xf] }
 0x1ad   : > { %v3705_v53 = vpop.f32.mrf.mxu1  ;;  %3849 = vmatmul.bf16.gmra.mxu2 %v9328_v43  ;;  %4012 = vmatpush.bf16.msrb.mxu0 %v5342_v51  ;;  %v5526_v4 = vor.u32 %v6940_v45, %v5523_v0  ;;  %v5141_v51 = vld [vmem:[%s7406_s13 + $0x2b8] sm:$0xf]  ;;  %v5579_v45 = vld [vmem:[%s10701_s1 + $0x368] sm:$0xf0]  ;;  %v5651_v0 = vld [vmem:[%s10701_s1 + $0x3f8] sm:$0xf0] }
 0x1ae   : > { %v3674_v19 = vadd.f32 %v3673_v54, %v3645_v52  ;;  %3907 = vmatmul.bf16.gmra.mxu0 %v9337_v22  ;;  %v6956_v54 = vld [vmem:[%s10701_s1 + $0x374] sm:$0xf]  ;;  %4041 = vmatpush.bf16.msrb.mxu1 %v5406_v42 }
 0x1af   : > { %v5590_v30 = vor.u32 %v6956_v54, %v5587_v35  ;;  %4063 = vmatpush.bf16.msra.mxu2 %v5526_v4  ;;  %v6844_v52 = vld [vmem:[%s7406_s13 + $0x310] sm:$0xf0]  ;;  %v5135_v4 = vld [vmem:[%s7406_s13 + $0x314] sm:$0xf0] }
 0x1b0   : > { %3878 = vmatmul.bf16.gmra.mxu3 %v9339_v5  ;;  %3936 = vmatmul.bf16.gmra.mxu1 %v7449_v3  ;;  %v9369_v24 = vadd.f32 %v3702_v44, %v3674_v19  ;;  %v3618_v25 = vpop.f32.mrf.mxu2  ;;  %v6938_v44 = vld [vmem:[%s10701_s1 + $0x2e4] sm:$0xf]  ;;  %v6832_v54 = vld [vmem:[%s7406_s13 + $0x2b4] sm:$0xf]  ;;  %s10658_s13 = scalar_lea.vmem %s10703_s3, %s6745_s8 }
 0x1b1   : > { %v3619_v28 = vadd.f32 %v3618_v25, %v9112_v14  ;;  %4092 = vmatpush.bf16.msra.mxu3 %v5590_v30  ;;  %v5515_v14 = vld [vmem:[%s10701_s1 + $0x2e8] sm:$0xf0]  ;;  %v6954_v19 = vld [vmem:[%s10701_s1 + $0x364] sm:$0xf]  ;;  %v9403_v43 = vor.u32 %v6832_v54, %v5135_v4 }
 0x1b2   : > { %v5518_v42 = vor.u32 %v6938_v44, %v5515_v14  ;;  %v5582_v35 = vor.u32 %v6954_v19, %v5579_v45  ;;  %v9399_v44 = vor.u32 %v6844_v52, %v5133_v34  ;;  %v9401_v14 = vor.u32 %v6845_v37, %v5141_v51  ;;  %v6936_v52 = vld [vmem:[%s10701_s1 + $0x2d4] sm:$0xf]  ;;  %v5571_v37 = vld [vmem:[%s10701_s1 + $0x358] sm:$0xf0] }
 0x1b3   : > { %v3647_v13 = vpop.f32.mrf.mxu3  ;;  %v3678_v60 = vpop.f32.mrf.mxu0 }
 0x1b4   : > { %v3648_v3 = vadd.f32 %v3647_v13, %v3619_v28  ;;  %4064 = vmatpush.bf16.msra.mxu2 %v5518_v42  ;;  %v5643_v42 = vld [vmem:[%s10701_s1 + $0x3e8] sm:$0xf0] }
 0x1b5   : > { %v3707_v58 = vpop.f32.mrf.mxu1  ;;  %4093 = vmatpush.bf16.msra.mxu3 %v5582_v35 }
 0x1b6   : > { %v3677_v36 = vadd.f32 %v3676_v59, %v3648_v3  ;;  %v6972_v59 = vld [vmem:[%s10701_s1 + $0x3f4] sm:$0xf] }
 0x1b7   : > { %v5654_v25 = vor.u32 %v6972_v59, %v5651_v0 }
 0x1b8   : > { %v9396_v30 = vadd.f32 %v3705_v53, %v3677_v36  ;;  %v3620_v28 = vpop.f32.mrf.mxu2  ;;  %v5715_v53 = vld [vmem:[%s10701_s1 + $0x478] sm:$0xf0]  ;;  %v6970_v36 = vld [vmem:[%s10701_s1 + $0x3e4] sm:$0xf] }
 0x1b9   : > { %v3621_v13 = vadd.f32 %v3620_v28, %v9150_v26  ;;  %4121 = vmatpush.bf16.msra.mxu0 %v5654_v25  ;;  %v6988_v26 = vld [vmem:[%s10701_s1 + $0x474] sm:$0xf]  ;;  %v5646_v54 = vor.u32 %v6970_v36, %v5643_v42 }
 0x1ba   : > { %v5718_v34 = vor.u32 %v6988_v26, %v5715_v53  ;;  %v5499_v26 = vld [vmem:[%s10701_s1 + $0x2c8] sm:$0xf0] }
 0x1bb   : > { %v3649_v3 = vpop.f32.mrf.mxu3  ;;  %v3681_v22 = vpop.f32.mrf.mxu0  ;;  %v5563_v53 = vld [vmem:[%s10701_s1 + $0x348] sm:$0xf0] }
 0x1bc   : > { %v3650_v5 = vadd.f32 %v3649_v3, %v3621_v13  ;;  %4150 = vmatpush.bf16.msra.mxu1 %v5718_v34  ;;  %v6986_v3 = vld [vmem:[%s10701_s1 + $0x464] sm:$0xf] }
 0x1bd   : > { %v3710_v50 = vpop.f32.mrf.mxu1  ;;  %3854 = vmatmul.bf16.gmra.mxu2 %v9399_v44  ;;  %4122 = vmatpush.bf16.msra.mxu0 %v5646_v54 }
 0x1be   : > { %v3679_v19 = vadd.f32 %v3678_v60, %v3650_v5  ;;  %3912 = vmatmul.bf16.gmra.mxu0 %v9401_v14  ;;  %v5507_v5 = vld [vmem:[%s10701_s1 + $0x2d8] sm:$0xf0]  ;;  %v6952_v60 = vld [vmem:[%s10701_s1 + $0x354] sm:$0xf] }
 0x1bf   : > { %v5510_v51 = vor.u32 %v6936_v52, %v5507_v5  ;;  %v5574_v0 = vor.u32 %v6952_v60, %v5571_v37  ;;  %v6968_v5 = vld [vmem:[%s10701_s1 + $0x3d4] sm:$0xf]  ;;  %v5635_v60 = vld [vmem:[%s10701_s1 + $0x3d8] sm:$0xf0] }
 0x1c0   : > { %3883 = vmatmul.bf16.gmra.mxu3 %v9403_v43  ;;  %3941 = vmatmul.bf16.gmra.mxu1 %v7565_v63  ;;  %v9433_v45 = vadd.f32 %v3707_v58, %v3679_v19  ;;  %v3623_v59 = vpop.f32.mrf.mxu2  ;;  %v5707_v58 = vld [vmem:[%s10701_s1 + $0x468] sm:$0xf0]  ;;  %v5638_v36 = vor.u32 %v6968_v5, %v5635_v60 }
 0x1c1   : > { %v3624_v63 = vadd.f32 %v3623_v59, %v9186_v55  ;;  %4065 = vmatpush.bf16.msra.mxu2 %v5510_v51  ;;  %4094 = vmatpush.bf16.msra.mxu3 %v5574_v0  ;;  %v6934_v55 = vld [vmem:[%s10701_s1 + $0x2c4] sm:$0xf]  ;;  %v5710_v19 = vor.u32 %v6986_v3, %v5707_v58  ;;  %v5627_v58 = vld [vmem:[%s10701_s1 + $0x3c8] sm:$0xf0] }
 0x1c2   : > { %v5502_v34 = vor.u32 %v6934_v55, %v5499_v26  ;;  %4123 = vmatpush.bf16.msra.mxu0 %v5638_v36  ;;  %v6966_v3 = vld [vmem:[%s10701_s1 + $0x3c4] sm:$0xf] }
 0x1c3   : > { %v3652_v4 = vpop.f32.mrf.mxu3  ;;  %v3683_v35 = vpop.f32.mrf.mxu0  ;;  %4151 = vmatpush.bf16.msra.mxu1 %v5710_v19 }
 0x1c4   : > { %v3653_v25 = vadd.f32 %v3652_v4, %v3624_v63 }
 0x1c5   : > { %v3712_v28 = vpop.f32.mrf.mxu1  ;;  %4066 = vmatpush.bf16.msra.mxu2 %v5502_v34 }
 0x1c6   : > { %v3682_v13 = vadd.f32 %v3681_v22, %v3653_v25  ;;  %v6950_v22 = vld [vmem:[%s10701_s1 + $0x344] sm:$0xf] }
 0x1c7   : > { %v5566_v52 = vor.u32 %v6950_v22, %v5563_v53  ;;  %v5630_v22 = vor.u32 %v6966_v3, %v5627_v58 }
 0x1c8   : > { %v9460_v51 = vadd.f32 %v3710_v50, %v3682_v13  ;;  %v3625_v37 = vpop.f32.mrf.mxu2  ;;  %v6984_v50 = vld [vmem:[%s10701_s1 + $0x454] sm:$0xf] }
 0x1c9   : > { %v3626_v42 = vadd.f32 %v3625_v37, %v9220_v41  ;;  %4095 = vmatpush.bf16.msra.mxu3 %v5566_v52  ;;  %v5699_v41 = vld [vmem:[%s10701_s1 + $0x458] sm:$0xf0]  ;;  %v6932_v13 = vld [vmem:[%s10701_s1 + $0x2b4] sm:$0xf]  ;;  %4124 = vmatpush.bf16.msra.mxu0 %v5630_v22  ;;  %v6982_v37 = vld [vmem:[%s10701_s1 + $0x444] sm:$0xf] }
 0x1ca   : > { %v5702_v25 = vor.u32 %v6984_v50, %v5699_v41  ;;  %v6964_v50 = vld [vmem:[%s10701_s1 + $0x3b4] sm:$0xf]  ;;  %v5619_v41 = vld [vmem:[%s10701_s1 + $0x3b8] sm:$0xf0] }
 0x1cb   : > { %v3654_v59 = vpop.f32.mrf.mxu3  ;;  %v3782_v0 = vpop.f32.mrf.mxu0  ;;  %v6928_v22 = vld [vmem:[%s10701_s1 + $0x294] sm:$0xf] }
 0x1cc   : > { %v3655_v54 = vadd.f32 %v3654_v59, %v3626_v42  ;;  %4152 = vmatpush.bf16.msra.mxu1 %v5702_v25  ;;  %v5483_v42 = vld [vmem:[%s10701_s1 + $0x2a8] sm:$0xf0]  ;;  %v6946_v59 = vld [vmem:[%s10701_s1 + $0x324] sm:$0xf] }
 0x1cd   : > { %v3811_v63 = vpop.f32.mrf.mxu1  ;;  %3955 = vmatmul.bf16.vlgmr.msrb.gmra.mxu2 %v7464_v10  ;;  %v5491_v10 = vld [vmem:[%s10701_s1 + $0x2b8] sm:$0xf0] }
 0x1ce   : > { %v3684_v4 = vadd.f32 %v3683_v35, %v3655_v54  ;;  %4013 = vmatmul.bf16.vlgmr.msrb.gmra.mxu0 %v7700_v15  ;;  %v6948_v15 = vld [vmem:[%s10701_s1 + $0x334] sm:$0xf]  ;;  %v5494_v35 = vor.u32 %v6932_v13, %v5491_v10  ;;  %v5622_v10 = vor.u32 %v6964_v50, %v5619_v41  ;;  %v5467_v50 = vld [vmem:[%s10701_s1 + $0x288] sm:$0xf0]  ;;  %v6942_v41 = vld [vmem:[%s10701_s1 + $0x304] sm:$0xf] }
 0x1d0   : > { %3984 = vmatmul.bf16.vlgmr.msrb.gmra.mxu3 %v7687_v7  ;;  %4042 = vmatmul.bf16.vlgmr.msrb.gmra.mxu1 %v7689_v11  ;;  %v5555_v7 = vld [vmem:[%s10701_s1 + $0x338] sm:$0xf0]  ;;  %v9491_v55 = vadd.f32 %v3712_v28, %v3684_v4  ;;  %v3724_v19 = vpop.f32.mrf.mxu2  ;;  %v5691_v28 = vld [vmem:[%s10701_s1 + $0x448] sm:$0xf0] }
 0x1d1   : > { %v5558_v26 = vor.u32 %v6948_v15, %v5555_v7  ;;  %v3725_v11 = vadd.f32 %v3724_v19, %v9256_v29  ;;  %4067 = vmatpush.bf16.msra.mxu2 %v5494_v35  ;;  %v6930_v29 = vld [vmem:[%s10701_s1 + $0x2a4] sm:$0xf]  ;;  %v5694_v36 = vor.u32 %v6982_v37, %v5691_v28  ;;  %4125 = vmatpush.bf16.msra.mxu0 %v5622_v10  ;;  %v5531_v10 = vld [vmem:[%s10701_s1 + $0x308] sm:$0xf0] }
 0x1d2   : > { %v5486_v54 = vor.u32 %v6930_v29, %v5483_v42 }
 0x1d3   : > { %v3753_v53 = vpop.f32.mrf.mxu3  ;;  %v3784_v34 = vpop.f32.mrf.mxu0  ;;  %4096 = vmatpush.bf16.msra.mxu3 %v5558_v26  ;;  %4153 = vmatpush.bf16.msra.mxu1 %v5694_v36 }
 0x1d4   : > { %v3754_v52 = vadd.f32 %v3753_v53, %v3725_v11  ;;  %v6962_v53 = vld [vmem:[%s10701_s1 + $0x3a4] sm:$0xf] }
 0x1d5   : > { %v3813_v5 = vpop.f32.mrf.mxu1  ;;  %4068 = vmatpush.bf16.msra.mxu2 %v5486_v54 }
 0x1d6   : > { %v3783_v60 = vadd.f32 %v3782_v0, %v3754_v52  ;;  %v5547_v0 = vld [vmem:[%s10701_s1 + $0x328] sm:$0xf0] }
 0x1d7   : > { %v5550_v4 = vor.u32 %v6946_v59, %v5547_v0  ;;  %v6978_v0 = vld [vmem:[%s10701_s1 + $0x424] sm:$0xf] }
 0x1d8   : > { %v9518_v25 = vadd.f32 %v3811_v63, %v3783_v60  ;;  %v3726_v13 = vpop.f32.mrf.mxu2  ;;  %v6980_v63 = vld [vmem:[%s10701_s1 + $0x434] sm:$0xf] }
 0x1d9   : > { %v3727_v15 = vadd.f32 %v3726_v13, %v9290_v12  ;;  %4097 = vmatpush.bf16.msra.mxu3 %v5550_v4  ;;  %v5683_v12 = vld [vmem:[%s10701_s1 + $0x438] sm:$0xf0] }
 0x1da   : > { %v5686_v26 = vor.u32 %v6980_v63, %v5683_v12  ;;  %v6976_v12 = vld [vmem:[%s10701_s1 + $0x414] sm:$0xf] }
 0x1db   : > { %v3755_v35 = vpop.f32.mrf.mxu3  ;;  %v3787_v7 = vpop.f32.mrf.mxu0 }
 0x1dc   : > { %v3756_v3 = vadd.f32 %v3755_v35, %v3727_v15  ;;  %4154 = vmatpush.bf16.msra.mxu1 %v5686_v26  ;;  %v6960_v15 = vld [vmem:[%s10701_s1 + $0x394] sm:$0xf]  ;;  %v5603_v35 = vld [vmem:[%s10701_s1 + $0x398] sm:$0xf0] }
 0x1dd   : > { %v3816_v58 = vpop.f32.mrf.mxu1  ;;  %3960 = vmatmul.bf16.gmra.mxu2 %v7580_v9  ;;  %v5475_v9 = vld [vmem:[%s10701_s1 + $0x298] sm:$0xf0] }
 0x1de   : > { %v3785_v19 = vadd.f32 %v3784_v34, %v3756_v3  ;;  %4018 = vmatmul.bf16.gmra.mxu0 %v7810_v21  ;;  %v6944_v21 = vld [vmem:[%s10701_s1 + $0x314] sm:$0xf]  ;;  %v5478_v11 = vor.u32 %v6928_v22, %v5475_v9  ;;  %v5611_v34 = vld [vmem:[%s10701_s1 + $0x3a8] sm:$0xf0]  ;;  %v5606_v3 = vor.u32 %v6960_v15, %v5603_v35  ;;  %v5667_v26 = vld [vmem:[%s10701_s1 + $0x418] sm:$0xf0] }
 0x1df   : > { %v5614_v28 = vor.u32 %v6962_v53, %v5611_v34 }
 0x1e0   : > { %3989 = vmatmul.bf16.gmra.mxu3 %v7800_v16  ;;  %4047 = vmatmul.bf16.gmra.mxu1 %v7802_v18  ;;  %v5539_v16 = vld [vmem:[%s10701_s1 + $0x318] sm:$0xf0]  ;;  %v9549_v52 = vadd.f32 %v3813_v5, %v3785_v19  ;;  %v3729_v60 = vpop.f32.mrf.mxu2  ;;  %v5675_v5 = vld [vmem:[%s10701_s1 + $0x428] sm:$0xf0] }
 0x1e1   : > { %v5542_v37 = vor.u32 %v6944_v21, %v5539_v16  ;;  %v3730_v18 = vadd.f32 %v3729_v60, %v9326_v27  ;;  %4069 = vmatpush.bf16.msra.mxu2 %v5478_v11  ;;  %4126 = vmatpush.bf16.msra.mxu0 %v5614_v28  ;;  %v5678_v4 = vor.u32 %v6978_v0, %v5675_v5  ;;  %v6926_v27 = vld [vmem:[%s10701_s1 + $0x284] sm:$0xf]  ;;  %v5595_v16 = vld [vmem:[%s10701_s1 + $0x388] sm:$0xf0] }
 0x1e2   : > { %v5470_v13 = vor.u32 %v6926_v27, %v5467_v50  ;;  %v5670_v21 = vor.u32 %v6976_v12, %v5667_v26 }
 0x1e3   : > { %v3758_v29 = vpop.f32.mrf.mxu3  ;;  %v3789_v36 = vpop.f32.mrf.mxu0  ;;  %4098 = vmatpush.bf16.msra.mxu3 %v5542_v37  ;;  %4155 = vmatpush.bf16.msra.mxu1 %v5678_v4  ;;  %v5659_v37 = vld [vmem:[%s10701_s1 + $0x408] sm:$0xf0] }
 0x1e4   : > { %v3759_v42 = vadd.f32 %v3758_v29, %v3730_v18  ;;  %v7004_v29 = vld [vmem:[%s10701_s1 + $0x4f4] sm:$0xf] }
 0x1e5   : > { %v3818_v59 = vpop.f32.mrf.mxu1  ;;  %4070 = vmatpush.bf16.msra.mxu2 %v5470_v13  ;;  %4127 = vmatpush.bf16.msra.mxu0 %v5606_v3  ;;  %v7002_v13 = vld [vmem:[%s10701_s1 + $0x4e4] sm:$0xf]  ;;  %v7036_v3 = vld [vmem:[%s10701_s1 + $0x5f4] sm:$0xf] }
 0x1e6   : > { %v3788_v54 = vadd.f32 %v3787_v7, %v3759_v42  ;;  %v5534_v7 = vor.u32 %v6942_v41, %v5531_v10  ;;  %v5779_v42 = vld [vmem:[%s10701_s1 + $0x4f8] sm:$0xf0]  ;;  %v7018_v10 = vld [vmem:[%s10701_s1 + $0x564] sm:$0xf] }
 0x1e7   : > { %4156 = vmatpush.bf16.msra.mxu1 %v5670_v21  ;;  %v5782_v0 = vor.u32 %v7004_v29, %v5779_v42  ;;  %v7034_v42 = vld [vmem:[%s10701_s1 + $0x5e4] sm:$0xf] }
 0x1e8   : > { %v9576_v19 = vadd.f32 %v3816_v58, %v3788_v54  ;;  %v3731_v63 = vpop.f32.mrf.mxu2  ;;  %4099 = vmatpush.bf16.msra.mxu3 %v5534_v7  ;;  %v6958_v58 = vld [vmem:[%s10701_s1 + $0x384] sm:$0xf]  ;;  %v5835_v7 = vld [vmem:[%s10701_s1 + $0x568] sm:$0xf0] }
 0x1e9   : > { %v3732_v22 = vadd.f32 %v3731_v63, %v9369_v24  ;;  %v5598_v34 = vor.u32 %v6958_v58, %v5595_v16  ;;  %v6974_v24 = vld [vmem:[%s10701_s1 + $0x404] sm:$0xf]  ;;  %4179 = vmatpush.bf16.msrb.mxu2 %v5782_v0  ;;  %v5907_v63 = vld [vmem:[%s10701_s1 + $0x5f8] sm:$0xf0]  ;;  %v5899_v0 = vld [vmem:[%s10701_s1 + $0x5e8] sm:$0xf0] }
 0x1ea   : > { %v5662_v18 = vor.u32 %v6974_v24, %v5659_v37  ;;  %v5827_v24 = vld [vmem:[%s10701_s1 + $0x558] sm:$0xf0] }
 0x1eb   : > { %v3760_v9 = vpop.f32.mrf.mxu3  ;;  %v3792_v11 = vpop.f32.mrf.mxu0  ;;  %4128 = vmatpush.bf16.msra.mxu0 %v5598_v34  ;;  %v7000_v34 = vld [vmem:[%s10701_s1 + $0x4d4] sm:$0xf] }
 0x1ec   : > { %v3761_v53 = vadd.f32 %v3760_v9, %v3732_v22  ;;  %4157 = vmatpush.bf16.msra.mxu1 %v5662_v18  ;;  %v5838_v22 = vor.u32 %v7018_v10, %v5835_v7  ;;  %v5910_v9 = vor.u32 %v7036_v3, %v5907_v63  ;;  %v5819_v10 = vld [vmem:[%s10701_s1 + $0x548] sm:$0xf0]  ;;  %v7032_v63 = vld [vmem:[%s10701_s1 + $0x5d4] sm:$0xf] }
 0x1ed   : > { %v3821_v60 = vpop.f32.mrf.mxu1  ;;  %3965 = vmatmul.bf16.gmra.mxu2 %v7462_v8  ;;  %v7020_v8 = vld [vmem:[%s10701_s1 + $0x574] sm:$0xf] }
 0x1ee   : > { %v3790_v28 = vadd.f32 %v3789_v36, %v3761_v53  ;;  %4023 = vmatmul.bf16.gmra.mxu0 %v7884_v1  ;;  %v5971_v53 = vld [vmem:[%s10701_s1 + $0x678] sm:$0xf0] }
 0x1ef   : > { %4237 = vmatpush.bf16.msrb.mxu0 %v5910_v9 }
 0x1f0   : > { %3994 = vmatmul.bf16.gmra.mxu3 %v7880_v61  ;;  %4052 = vmatmul.bf16.gmra.mxu1 %v7882_v62  ;;  %v5843_v61 = vld [vmem:[%s10701_s1 + $0x578] sm:$0xf0]  ;;  %v9613_v1 = vadd.f32 %v3818_v59, %v3790_v28  ;;  %v3734_v36 = vpop.f32.mrf.mxu2  ;;  %v5771_v59 = vld [vmem:[%s10701_s1 + $0x4e8] sm:$0xf0] }
 0x1f1   : > { %v5846_v5 = vor.u32 %v7020_v8, %v5843_v61  ;;  %v3735_v54 = vadd.f32 %v3734_v36, %v9396_v30  ;;  %v5774_v35 = vor.u32 %v7002_v13, %v5771_v59  ;;  %v5902_v61 = vor.u32 %v7034_v42, %v5899_v0  ;;  %v5755_v13 = vld [vmem:[%s10701_s1 + $0x4c8] sm:$0xf0]  ;;  %v7014_v59 = vld [vmem:[%s10701_s1 + $0x544] sm:$0xf] }
 0x1f2   : > { %v5822_v3 = vor.u32 %v7014_v59, %v5819_v10  ;;  %v7046_v42 = vld [vmem:[%s10701_s1 + $0x644] sm:$0xf]  ;;  %v5947_v0 = vld [vmem:[%s10701_s1 + $0x648] sm:$0xf0] }
 0x1f3   : > { %v3763_v4 = vpop.f32.mrf.mxu3  ;;  %v3794_v27 = vpop.f32.mrf.mxu0  ;;  %4208 = vmatpush.bf16.msrb.mxu3 %v5846_v5  ;;  %4180 = vmatpush.bf16.msrb.mxu2 %v5774_v35 }
 0x1f4   : > { %v3764_v62 = vadd.f32 %v3763_v4, %v3735_v54  ;;  %4238 = vmatpush.bf16.msrb.mxu0 %v5902_v61  ;;  %v7050_v54 = vld [vmem:[%s10701_s1 + $0x664] sm:$0xf]  ;;  %v5963_v4 = vld [vmem:[%s10701_s1 + $0x668] sm:$0xf0]  ;;  %v5950_v61 = vor.u32 %v7046_v42, %v5947_v0 }
 0x1f5   : > { %v3823_v50 = vpop.f32.mrf.mxu1  ;;  %v7006_v42 = vld [vmem:[%s10701_s1 + $0x504] sm:$0xf]  ;;  %v5787_v0 = vld [vmem:[%s10701_s1 + $0x508] sm:$0xf0] }
 0x1f6   : > { %v3793_v41 = vadd.f32 %v3792_v11, %v3764_v62 }
 0x1f7   : > { %4209 = vmatpush.bf16.msrb.mxu3 %v5838_v22 }
 0x1f8   : > { %v9625_v30 = vadd.f32 %v3821_v60, %v3793_v41  ;;  %v3736_v15 = vpop.f32.mrf.mxu2  ;;  %v5966_v41 = vor.u32 %v7050_v54, %v5963_v4 }
 0x1f9   : > { %v3737_v12 = vadd.f32 %v3736_v15, %v9433_v45  ;;  %v7052_v45 = vld [vmem:[%s10701_s1 + $0x674] sm:$0xf] }
 0x1fb   : > { %v3765_v26 = vpop.f32.mrf.mxu3  ;;  %v3797_v21 = vpop.f32.mrf.mxu0 }
 0x1fc   : > { %v3766_v11 = vadd.f32 %v3765_v26, %v3737_v12  ;;  %v5891_v12 = vld [vmem:[%s10701_s1 + $0x5d8] sm:$0xf0] }
 0x1fd   : > { %v3826_v58 = vpop.f32.mrf.mxu1  ;;  %3970 = vmatmul.bf16.gmra.mxu2 %v7578_v6  ;;  %v5894_v22 = vor.u32 %v7032_v63, %v5891_v12  ;;  %v5939_v63 = vld [vmem:[%s10701_s1 + $0x638] sm:$0xf0] }
 0x1fe   : > { %v3795_v16 = vadd.f32 %v3794_v27, %v3766_v11  ;;  %4028 = vmatmul.bf16.gmra.mxu0 %v7946_v48  ;;  %v5974_v48 = vor.u32 %v7052_v45, %v5971_v53  ;;  %v6998_v27 = vld [vmem:[%s10701_s1 + $0x4c4] sm:$0xf]  ;;  %v7048_v11 = vld [vmem:[%s10701_s1 + $0x654] sm:$0xf]  ;;  %v5811_v53 = vld [vmem:[%s10701_s1 + $0x538] sm:$0xf0] }
 0x1ff   : > { %v5758_v7 = vor.u32 %v6998_v27, %v5755_v13  ;;  %4239 = vmatpush.bf16.msrb.mxu0 %v5894_v22  ;;  %v5875_v13 = vld [vmem:[%s10701_s1 + $0x5b8] sm:$0xf0] }
 0x200   : > { %3999 = vmatmul.bf16.gmra.mxu3 %v7942_v46  ;;  %4057 = vmatmul.bf16.gmra.mxu1 %v7944_v47  ;;  %v9650_v60 = vadd.f32 %v3823_v50, %v3795_v16  ;;  %v3739_v6 = vpop.f32.mrf.mxu2  ;;  %v5763_v46 = vld [vmem:[%s10701_s1 + $0x4d8] sm:$0xf0]  ;;  %v7016_v47 = vld [vmem:[%s10701_s1 + $0x554] sm:$0xf] }
 0x201   : > { %v3740_v37 = vadd.f32 %v3739_v6, %v9460_v51  ;;  %v5766_v18 = vor.u32 %v7000_v34, %v5763_v46  ;;  %v5830_v29 = vor.u32 %v7016_v47, %v5827_v24  ;;  %4266 = vmatpush.bf16.msrb.mxu1 %v5974_v48  ;;  %v6996_v16 = vld [vmem:[%s10701_s1 + $0x4b4] sm:$0xf]  ;;  %v7030_v47 = vld [vmem:[%s10701_s1 + $0x5c4] sm:$0xf]  ;;  %v5883_v24 = vld [vmem:[%s10701_s1 + $0x5c8] sm:$0xf0] }
 0x203   : > { %v3768_v28 = vpop.f32.mrf.mxu3  ;;  %v3799_v8 = vpop.f32.mrf.mxu0  ;;  %4181 = vmatpush.bf16.msrb.mxu2 %v5766_v18  ;;  %4210 = vmatpush.bf16.msrb.mxu3 %v5830_v29 }
 0x204   : > { %v3769_v36 = vadd.f32 %v3768_v28, %v3740_v37  ;;  %v5886_v28 = vor.u32 %v7030_v47, %v5883_v24  ;;  %v6990_v47 = vld [vmem:[%s10701_s1 + $0x484] sm:$0xf]  ;;  %v5723_v24 = vld [vmem:[%s10701_s1 + $0x488] sm:$0xf0] }
 0x205   : > { %v3828_v5 = vpop.f32.mrf.mxu1  ;;  %4267 = vmatpush.bf16.msrb.mxu1 %v5966_v41  ;;  %v7028_v41 = vld [vmem:[%s10701_s1 + $0x5b4] sm:$0xf] }
 0x206   : > { %v3798_v51 = vadd.f32 %v3797_v21, %v3769_v36  ;;  %4240 = vmatpush.bf16.msrb.mxu0 %v5886_v28  ;;  %v6994_v36 = vld [vmem:[%s10701_s1 + $0x4a4] sm:$0xf] }
 0x207   : > { %4182 = vmatpush.bf16.msrb.mxu2 %v5758_v7  ;;  %4211 = vmatpush.bf16.msrb.mxu3 %v5822_v3  ;;  %v7044_v3 = vld [vmem:[%s10701_s1 + $0x634] sm:$0xf] }
 0x208   : > { %v9677_v62 = vadd.f32 %v3826_v58, %v3798_v51  ;;  %v3741_v50 = vpop.f32.mrf.mxu2  ;;  %v5955_v58 = vld [vmem:[%s10701_s1 + $0x658] sm:$0xf0]  ;;  %v7010_v51 = vld [vmem:[%s10701_s1 + $0x524] sm:$0xf] }
 0x209   : > { %v3742_v15 = vadd.f32 %v3741_v50, %v9491_v55  ;;  %v5803_v50 = vld [vmem:[%s10701_s1 + $0x528] sm:$0xf0] }
 0x20a   : > { %v5806_v10 = vor.u32 %v7010_v51, %v5803_v50  ;;  %v5923_v51 = vld [vmem:[%s10701_s1 + $0x618] sm:$0xf0]  ;;  %v5851_v50 = vld [vmem:[%s10701_s1 + $0x588] sm:$0xf0] }
 0x20b   : > { %v3770_v35 = vpop.f32.mrf.mxu3  ;;  %v3898_v26 = vpop.f32.mrf.mxu0 }
 0x20c   : > { %v3771_v9 = vadd.f32 %v3770_v35, %v3742_v15  ;;  %v5878_v15 = vor.u32 %v7028_v41, %v5875_v13 }
 0x20d   : > { %v9695_v21 = vpop.f32.mrf.mxu1  ;;  %4071 = vmatmul.bf16.vlgmr.msra.gmra.mxu2 %v7702_v17 }
 0x20e   : > { %v3800_v55 = vadd.f32 %v3799_v8, %v3771_v9  ;;  %4129 = vmatmul.bf16.vlgmr.msra.gmra.mxu0 %v8014_v40  ;;  %v5958_v40 = vor.u32 %v7048_v11, %v5955_v58  ;;  %v7026_v11 = vld [vmem:[%s10701_s1 + $0x5a4] sm:$0xf]  ;;  %v5867_v58 = vld [vmem:[%s10701_s1 + $0x5a8] sm:$0xf0] }
 0x20f   : > { %4241 = vmatpush.bf16.msrb.mxu0 %v5878_v15 }
 0x210   : > { %4100 = vmatmul.bf16.vlgmr.msra.gmra.mxu3 %v8010_v38  ;;  %4158 = vmatmul.bf16.vlgmr.msra.gmra.mxu1 %v8012_v39  ;;  %v9710_v45 = vadd.f32 %v3828_v5, %v3800_v55  ;;  %v3840_v17 = vpop.f32.mrf.mxu2  ;;  %v5747_v38 = vld [vmem:[%s10701_s1 + $0x4b8] sm:$0xf0]  ;;  %v7012_v39 = vld [vmem:[%s10701_s1 + $0x534] sm:$0xf]  ;;  %v5739_v5 = vld [vmem:[%s10701_s1 + $0x4a8] sm:$0xf0] }
 0x211   : > { %v3841_v34 = vadd.f32 %v3840_v17, %v9518_v25  ;;  %v5750_v48 = vor.u32 %v6996_v16, %v5747_v38  ;;  %v5814_v46 = vor.u32 %v7012_v39, %v5811_v53  ;;  %4268 = vmatpush.bf16.msrb.mxu1 %v5958_v40  ;;  %v5742_v27 = vor.u32 %v6994_v36, %v5739_v5  ;;  %v5795_v55 = vld [vmem:[%s10701_s1 + $0x518] sm:$0xf0]  ;;  %v7042_v39 = vld [vmem:[%s10701_s1 + $0x624] sm:$0xf]  ;;  %v5931_v53 = vld [vmem:[%s10701_s1 + $0x628] sm:$0xf0] }
 0x212   : > { %v5870_v40 = vor.u32 %v7026_v11, %v5867_v58  ;;  %v5790_v5 = vor.u32 %v7006_v42, %v5787_v0 }
 0x213   : > { %v3869_v6 = vpop.f32.mrf.mxu3  ;;  %v3900_v37 = vpop.f32.mrf.mxu0  ;;  %4183 = vmatpush.bf16.msrb.mxu2 %v5750_v48  ;;  %4212 = vmatpush.bf16.msrb.mxu3 %v5814_v46  ;;  %v7024_v48 = vld [vmem:[%s10701_s1 + $0x594] sm:$0xf]  ;;  %v5859_v46 = vld [vmem:[%s10701_s1 + $0x598] sm:$0xf0] }
 0x214   : > { %v3870_v18 = vadd.f32 %v3869_v6, %v3841_v34  ;;  %4242 = vmatpush.bf16.msrb.mxu0 %v5870_v40  ;;  %v5934_v6 = vor.u32 %v7042_v39, %v5931_v53  ;;  %v7066_v40 = vld [vmem:[%s10701_s1 + $0x6e4] sm:$0xf]  ;;  %v6091_v53 = vld [vmem:[%s10701_s1 + $0x768] sm:$0xf0] }
 0x215   : > { %v9728_v29 = vpop.f32.mrf.mxu1  ;;  %4269 = vmatpush.bf16.msrb.mxu1 %v5950_v61 }
 0x216   : > { %v9730_v25 = vadd.f32 %v3898_v26, %v3870_v18  ;;  %v5942_v26 = vor.u32 %v7044_v3, %v5939_v63  ;;  %v5726_v18 = vor.u32 %v6990_v47, %v5723_v24  ;;  %v10833_v63 = vld [vmem:[#allocation5_spill] sm:$0xff] }
 0x217   : > { %4184 = vmatpush.bf16.msrb.mxu2 %v5742_v27  ;;  %4213 = vmatpush.bf16.msrb.mxu3 %v5806_v10  ;;  %v7022_v27 = vld [vmem:[%s10701_s1 + $0x584] sm:$0xf]  ;;  %v5915_v10 = vld [vmem:[%s10701_s1 + $0x608] sm:$0xf0] }
 0x218   : > { %v3842_v8 = vpop.f32.mrf.mxu2 }
 0x219   : > { %v3843_v54 = vadd.f32 %v3842_v8, %v9549_v52  ;;  %4270 = vmatpush.bf16.msrb.mxu1 %v5942_v26  ;;  %v7040_v8 = vld [vmem:[%s10701_s1 + $0x614] sm:$0xf] }
 0x21a   : > { %v7068_v26 = vld [vmem:[%s10701_s1 + $0x6f4] sm:$0xf] }
 0x21b   : > { %v3871_v4 = vpop.f32.mrf.mxu3  ;;  %v3903_v59 = vpop.f32.mrf.mxu0 }
 0x21c   : > { %v3872_v35 = vadd.f32 %v3871_v4, %v3843_v54  ;;  %v5926_v4 = vor.u32 %v7040_v8, %v5923_v51  ;;  %v10837_v51 = vld [vmem:[#allocation9_spill] sm:$0xff] }
 0x21d   : > { %v9757_v52 = vpop.f32.mrf.mxu1  ;;  %4076 = vmatmul.bf16.gmra.mxu2 %v7812_v23  ;;  %v6992_v23 = vld [vmem:[%s10701_s1 + $0x494] sm:$0xf]  ;;  %4271 = vmatpush.bf16.msrb.mxu1 %v5934_v6 }
 0x21e   : > { %v9759_v7 = vadd.f32 %v3900_v37, %v3872_v35  ;;  %4134 = vmatmul.bf16.gmra.mxu0 %v8076_v33  ;;  %v5862_v37 = vor.u32 %v7024_v48, %v5859_v46  ;;  %v10832_v35 = vld [vmem:[#allocation7_spill] sm:$0xff]  ;;  %v7100_v6 = vld [vmem:[%s10701_s1 + $0x7f4] sm:$0xf]  ;;  %v6163_v48 = vld [vmem:[%s10701_s1 + $0x7f8] sm:$0xf0] }
 0x21f   : > { %v6166_v47 = vor.u32 %v7100_v6, %v6163_v48 }
 0x220   : > { %4105 = vmatmul.bf16.gmra.mxu3 %v8072_v31  ;;  %4163 = vmatmul.bf16.gmra.mxu1 %v8074_v32  ;;  %v3845_v12 = vpop.f32.mrf.mxu2  ;;  %v5731_v31 = vld [vmem:[%s10701_s1 + $0x498] sm:$0xf0]  ;;  %v7008_v32 = vld [vmem:[%s10701_s1 + $0x514] sm:$0xf] }
 0x221   : > { %v3846_v33 = vadd.f32 %v3845_v12, %v9576_v19  ;;  %v5734_v9 = vor.u32 %v6992_v23, %v5731_v31  ;;  %v5798_v17 = vor.u32 %v7008_v32, %v5795_v55  ;;  %4243 = vmatpush.bf16.msrb.mxu0 %v5862_v37  ;;  %4272 = vmatpush.bf16.msrb.mxu1 %v5926_v4  ;;  %v10834_v12 = vld [vmem:[#allocation6_spill] sm:$0xff]  ;;  %v6035_v23 = vld [vmem:[%s10701_s1 + $0x6f8] sm:$0xf0]  ;;  %v7064_v4 = vld [vmem:[%s10701_s1 + $0x6d4] sm:$0xf] }
 0x222   : > { %v6038_v32 = vor.u32 %v7068_v26, %v6035_v23 }
 0x223   : > { %v3874_v22 = vpop.f32.mrf.mxu3  ;;  %v3905_v16 = vpop.f32.mrf.mxu0  ;;  %4185 = vmatpush.bf16.msrb.mxu2 %v5734_v9  ;;  %4214 = vmatpush.bf16.msrb.mxu3 %v5798_v17 }
 0x224   : > { %v3875_v38 = vadd.f32 %v3874_v22, %v3846_v33  ;;  %v6099_v33 = vld [vmem:[%s10701_s1 + $0x778] sm:$0xf0] }
 0x225   : > { %v9790_v19 = vpop.f32.mrf.mxu1 }
 0x226   : > { %v9798_v34 = vadd.f32 %v3903_v59, %v3875_v38  ;;  %v7038_v59 = vld [vmem:[%s10701_s1 + $0x604] sm:$0xf]  ;;  %v6027_v38 = vld [vmem:[%s10701_s1 + $0x6e8] sm:$0xf0] }
 0x227   : > { %4186 = vmatpush.bf16.msrb.mxu2 %v5726_v18  ;;  %4215 = vmatpush.bf16.msrb.mxu3 %v5790_v5  ;;  %v5918_v3 = vor.u32 %v7038_v59, %v5915_v10  ;;  %v6030_v39 = vor.u32 %v7066_v40, %v6027_v38  ;;  %v7116_v5 = vld [vmem:[%s10701_s1 + $0x874] sm:$0xf]  ;;  %v6083_v59 = vld [vmem:[%s10701_s1 + $0x758] sm:$0xf0]  ;;  %v7098_v10 = vld [vmem:[%s10701_s1 + $0x7e4] sm:$0xf] }
 0x228   : > { %v3847_v28 = vpop.f32.mrf.mxu2  ;;  %v6075_v40 = vld [vmem:[%s10701_s1 + $0x748] sm:$0xf0] }
 0x229   : > { %v3848_v61 = vadd.f32 %v3847_v28, %v9613_v1  ;;  %v5854_v1 = vor.u32 %v7022_v27, %v5851_v50  ;;  %4273 = vmatpush.bf16.msrb.mxu1 %v5918_v3  ;;  %v6019_v27 = vld [vmem:[%s10701_s1 + $0x6d8] sm:$0xf0]  ;;  %v7080_v50 = vld [vmem:[%s10701_s1 + $0x754] sm:$0xf] }
 0x22a   : > { %v6086_v3 = vor.u32 %v7080_v50, %v6083_v59  ;;  %v7076_v50 = vld [vmem:[%s10701_s1 + $0x734] sm:$0xf] }
 0x22b   : > { %v3876_v36 = vpop.f32.mrf.mxu3  ;;  %v3908_v54 = vpop.f32.mrf.mxu0  ;;  %4244 = vmatpush.bf16.msrb.mxu0 %v5854_v1  ;;  %4295 = vmatpush.bf16.msra.mxu2 %v6038_v32  ;;  %v6022_v1 = vor.u32 %v7064_v4, %v6019_v27  ;;  %v7060_v4 = vld [vmem:[%s10701_s1 + $0x6b4] sm:$0xf]  ;;  %v6003_v27 = vld [vmem:[%s10701_s1 + $0x6b8] sm:$0xf0] }
 0x22c   : > { %v3877_v41 = vadd.f32 %v3876_v36, %v3848_v61  ;;  %v10835_v61 = vld [vmem:[#allocation2_spill] sm:$0xff]  ;;  %v10836_v36 = vld [vmem:[#allocation11_spill] sm:$0xff]  ;;  %v6006_v59 = vor.u32 %v7060_v4, %v6003_v27  ;;  %v6195_v4 = vld [vmem:[%s10701_s1 + $0x838] sm:$0xf0] }
 0x22d   : > { %v9831_v13 = vpop.f32.mrf.mxu1  ;;  %4081 = vmatmul.bf16.gmra.mxu2 %v7886_v2  ;;  %v7084_v2 = vld [vmem:[%s10701_s1 + $0x774] sm:$0xf]  ;;  %v10845_v27 = vld [vmem:[#allocation17_spill] sm:$0xff] }
 0x22e   : > { %v9839_v15 = vadd.f32 %v3905_v16, %v3877_v41  ;;  %4139 = vmatmul.bf16.gmra.mxu0 %v10832_v35  ;;  %v6102_v55 = vor.u32 %v7084_v2, %v6099_v33  ;;  %v10838_v41 = vld [vmem:[#allocation10_spill] sm:$0xff] }
 0x22f   : > { %4296 = vmatpush.bf16.msra.mxu2 %v6030_v39  ;;  %4353 = vmatpush.bf16.msra.mxu0 %v6166_v47  ;;  %v7096_v39 = vld [vmem:[%s10701_s1 + $0x7d4] sm:$0xf] }
 0x230   : > { %4110 = vmatmul.bf16.gmra.mxu3 %v10833_v63  ;;  %4168 = vmatmul.bf16.gmra.mxu1 %v10834_v12  ;;  %v3850_v31 = vpop.f32.mrf.mxu2  ;;  %v6155_v63 = vld [vmem:[%s10701_s1 + $0x7e8] sm:$0xf0] }
 0x231   : > { %v3851_v22 = vadd.f32 %v3850_v31, %v9625_v30  ;;  %4324 = vmatpush.bf16.msra.mxu3 %v6102_v55  ;;  %v7082_v30 = vld [vmem:[%s10701_s1 + $0x764] sm:$0xf]  ;;  %v6158_v23 = vor.u32 %v7098_v10, %v6155_v63  ;;  %v6067_v10 = vld [vmem:[%s10701_s1 + $0x738] sm:$0xf0] }
 0x232   : > { %v6094_v46 = vor.u32 %v7082_v30, %v6091_v53  ;;  %v6147_v53 = vld [vmem:[%s10701_s1 + $0x7d8] sm:$0xf0]  ;;  %v6070_v63 = vor.u32 %v7076_v50, %v6067_v10 }
 0x233   : > { %v3879_v9 = vpop.f32.mrf.mxu3  ;;  %v3910_v11 = vpop.f32.mrf.mxu0  ;;  %4297 = vmatpush.bf16.msra.mxu2 %v6022_v1  ;;  %4354 = vmatpush.bf16.msra.mxu0 %v6158_v23  ;;  %v6150_v48 = vor.u32 %v7096_v39, %v6147_v53  ;;  %v10842_v1 = vld [vmem:[#allocation14_spill] sm:$0xff] }
 0x234   : > { %v3880_v58 = vadd.f32 %v3879_v9, %v3851_v22  ;;  %v7114_v22 = vld [vmem:[%s10701_s1 + $0x864] sm:$0xf]  ;;  %v6219_v9 = vld [vmem:[%s10701_s1 + $0x868] sm:$0xf0] }
 0x235   : > { %v9858_v16 = vpop.f32.mrf.mxu1  ;;  %4325 = vmatpush.bf16.msra.mxu3 %v6094_v46  ;;  %v6222_v55 = vor.u32 %v7114_v22, %v6219_v9 }
 0x236   : > { %v9860_v17 = vadd.f32 %v3908_v54, %v3880_v58  ;;  %v7078_v58 = vld [vmem:[%s10701_s1 + $0x744] sm:$0xf] }
 0x237   : > { %v6078_v30 = vor.u32 %v7078_v58, %v6075_v40  ;;  %4355 = vmatpush.bf16.msra.mxu0 %v6150_v48  ;;  %v5995_v40 = vld [vmem:[%s10701_s1 + $0x6a8] sm:$0xf0]  ;;  %v7092_v48 = vld [vmem:[%s10701_s1 + $0x7b4] sm:$0xf] }
 0x238   : > { %v3852_v24 = vpop.f32.mrf.mxu2 }
 0x239   : > { %v3853_v37 = vadd.f32 %v3852_v24, %v9650_v60  ;;  %v6227_v60 = vld [vmem:[%s10701_s1 + $0x878] sm:$0xf0]  ;;  %4326 = vmatpush.bf16.msra.mxu3 %v6086_v3 }
 0x23a   : > { %v6230_v54 = vor.u32 %v7116_v5, %v6227_v60  ;;  %v10840_v5 = vld [vmem:[#allocation15_spill] sm:$0xff]  ;;  %v6211_v60 = vld [vmem:[%s10701_s1 + $0x858] sm:$0xf0] }
 0x23b   : > { %v3881_v28 = vpop.f32.mrf.mxu3  ;;  %v3913_v18 = vpop.f32.mrf.mxu0 }
 0x23c   : > { %v3882_v42 = vadd.f32 %v3881_v28, %v3853_v37  ;;  %4382 = vmatpush.bf16.msra.mxu1 %v6230_v54  ;;  %v7271_v37 = vld [vmem:[%s10702_s2] sm:$0x3] }
 0x23d   : > { %v9881_v0 = vpop.f32.mrf.mxu1  ;;  %4086 = vmatmul.bf16.gmra.mxu2 %v10835_v61  ;;  %4327 = vmatpush.bf16.msra.mxu3 %v6078_v30  ;;  %v9946_v28 = vperm.slane %v7271_v37, 1  ;;  %v6059_v30 = vld [vmem:[%s10701_s1 + $0x728] sm:$0xf0] }
 0x23e   : > { %v9883_v8 = vadd.f32 %v3910_v11, %v3882_v42  ;;  %4144 = vmatmul.bf16.gmra.mxu0 %v10836_v36  ;;  %v6011_v11 = vld [vmem:[%s10701_s1 + $0x6c8] sm:$0xf0] }
 0x23f   : > { %v10839_v36 = vld [vmem:[#allocation3_spill] sm:$0xff]  ;;  %v3930_v39 = vadd.f32 %v9728_v29, %v9946_v28  ;;  %v3933_v10 = vadd.f32 %v9757_v52, %v9946_v28 }
 0x240   : > { %4115 = vmatmul.bf16.gmra.mxu3 %v10837_v51  ;;  %4173 = vmatmul.bf16.gmra.mxu1 %v10838_v41  ;;  %v3855_v35 = vpop.f32.mrf.mxu2  ;;  %v10841_v51 = vld [vmem:[#allocation13_spill] sm:$0xff]  ;;  %v3928_v41 = vadd.f32 %v9695_v21, %v9946_v28 }
 0x241   : > { %v3856_v12 = vadd.f32 %v3855_v35, %v9677_v62  ;;  %v7062_v62 = vld [vmem:[%s10701_s1 + $0x6c4] sm:$0xf]  ;;  %4383 = vmatpush.bf16.msra.mxu1 %v6222_v55  ;;  %4328 = vmatpush.bf16.msra.mxu3 %v6070_v63  ;;  %v6203_v55 = vld [vmem:[%s10701_s1 + $0x848] sm:$0xf0]  ;;  %v6051_v63 = vld [vmem:[%s10701_s1 + $0x718] sm:$0xf0] }
 0x242   : > { %v6014_v38 = vor.u32 %v7062_v62, %v6011_v11  ;;  %v7094_v35 = vld [vmem:[%s10701_s1 + $0x7c4] sm:$0xf] }
 0x243   : > { %v3884_v26 = vpop.f32.mrf.mxu3  ;;  %v3915_v31 = vpop.f32.mrf.mxu0  ;;  %v7110_v62 = vld [vmem:[%s10701_s1 + $0x844] sm:$0xf] }
 0x244   : > { %v3885_v32 = vadd.f32 %v3884_v26, %v3856_v12  ;;  %4298 = vmatpush.bf16.msra.mxu2 %v6014_v38  ;;  %v6139_v12 = vld [vmem:[%s10701_s1 + $0x7c8] sm:$0xf0]  ;;  %v7058_v11 = vld [vmem:[%s10701_s1 + $0x6a4] sm:$0xf]  ;;  %v6206_v58 = vor.u32 %v7110_v62, %v6203_v55 }
 0x245   : > { %v9914_v2 = vpop.f32.mrf.mxu1  ;;  %v6142_v23 = vor.u32 %v7094_v35, %v6139_v12  ;;  %v7074_v38 = vld [vmem:[%s10701_s1 + $0x724] sm:$0xf]  ;;  %v5998_v53 = vor.u32 %v7058_v11, %v5995_v40 }
 0x246   : > { %v9916_v33 = vadd.f32 %v3913_v18, %v3885_v32  ;;  %v10846_v35 = vld [vmem:[#allocation18_spill] sm:$0xff] }
 0x247   : > { %4356 = vmatpush.bf16.msra.mxu0 %v6142_v23  ;;  %v7090_v12 = vld [vmem:[%s10701_s1 + $0x7a4] sm:$0xf] }
 0x248   : > { %v3857_v6 = vpop.f32.mrf.mxu2  ;;  %4299 = vmatpush.bf16.msra.mxu2 %v6006_v59  ;;  %v7072_v59 = vld [vmem:[%s10701_s1 + $0x714] sm:$0xf] }
 0x249   : > { %v3858_v46 = vadd.f32 %v3857_v6, %v9710_v45  ;;  %v7112_v45 = vld [vmem:[%s10701_s1 + $0x854] sm:$0xf]  ;;  %v6062_v6 = vor.u32 %v7074_v38, %v6059_v30  ;;  %v6054_v52 = vor.u32 %v7072_v59, %v6051_v63  ;;  %v7054_v30 = vld [vmem:[%s10701_s1 + $0x684] sm:$0xf]  ;;  %v10848_v63 = vld [vmem:[#allocation23_spill] sm:$0xff] }
 0x24a   : > { %v6214_v54 = vor.u32 %v7112_v45, %v6211_v60  ;;  %v7102_v59 = vld [vmem:[%s10701_s1 + $0x804] sm:$0xf] }
 0x24b   : > { %v3886_v47 = vpop.f32.mrf.mxu3  ;;  %v4014_v24 = vpop.f32.mrf.mxu0  ;;  %4329 = vmatpush.bf16.msra.mxu3 %v6062_v6 }
 0x24c   : > { %v3887_v18 = vadd.f32 %v3886_v47, %v3858_v46  ;;  %4384 = vmatpush.bf16.msra.mxu1 %v6214_v54  ;;  %v6131_v46 = vld [vmem:[%s10701_s1 + $0x7b8] sm:$0xf0]  ;;  %4300 = vmatpush.bf16.msra.mxu2 %v5998_v53  ;;  %v10844_v54 = vld [vmem:[#allocation19_spill] sm:$0xff]  ;;  %v7070_v53 = vld [vmem:[%s10701_s1 + $0x704] sm:$0xf] }
 0x24d   : > { %v4043_v42 = vpop.f32.mrf.mxu1  ;;  %4187 = vmatmul.bf16.vlgmr.msrb.gmra.mxu2 %v10839_v36  ;;  %v6134_v37 = vor.u32 %v7092_v48, %v6131_v46  ;;  %v6043_v48 = vld [vmem:[%s10701_s1 + $0x708] sm:$0xf0]  ;;  %v7088_v46 = vld [vmem:[%s10701_s1 + $0x794] sm:$0xf] }
 0x24e   : > { %v9948_v61 = vadd.f32 %v3915_v31, %v3887_v18  ;;  %4245 = vmatmul.bf16.vlgmr.msrb.gmra.mxu0 %v10840_v5 }
 0x24f   : > { %4357 = vmatpush.bf16.msra.mxu0 %v6134_v37  ;;  %4330 = vmatpush.bf16.msra.mxu3 %v6054_v52  ;;  %v3935_v37 = vadd.f32 %v9790_v19, %v9946_v28  ;;  %v6291_v52 = vld [vmem:[%s10701_s1 + $0x8f8] sm:$0xf0] }
 0x250   : > { %4216 = vmatmul.bf16.vlgmr.msrb.gmra.mxu3 %v10841_v51  ;;  %4274 = vmatmul.bf16.vlgmr.msrb.gmra.mxu1 %v10842_v1  ;;  %v3956_v3 = vpop.f32.mrf.mxu2  ;;  %v10843_v51 = vld [vmem:[#allocation4_spill] sm:$0xff]  ;;  %v5987_v1 = vld [vmem:[%s10701_s1 + $0x698] sm:$0xf0] }
 0x251   : > { %v3957_v26 = vadd.f32 %v3956_v3, %v3928_v41  ;;  %4385 = vmatpush.bf16.msra.mxu1 %v6206_v58  ;;  %v7056_v41 = vld [vmem:[%s10701_s1 + $0x694] sm:$0xf]  ;;  %v7106_v58 = vld [vmem:[%s10701_s1 + $0x824] sm:$0xf] }
 0x252   : > { %v5990_v3 = vor.u32 %v7056_v41, %v5987_v1 }
 0x253   : > { %v3985_v21 = vpop.f32.mrf.mxu3  ;;  %v4016_v31 = vpop.f32.mrf.mxu0 }
 0x254   : > { %v3986_v32 = vadd.f32 %v3985_v21, %v3957_v26  ;;  %v6123_v26 = vld [vmem:[%s10701_s1 + $0x7a8] sm:$0xf0]  ;;  %4301 = vmatpush.bf16.msra.mxu2 %v5990_v3  ;;  %v10847_v3 = vld [vmem:[#allocation8_spill] sm:$0xff] }
 0x255   : > { %v4045_v22 = vpop.f32.mrf.mxu1 }
 0x256   : > { %v4015_v9 = vadd.f32 %v4014_v24, %v3986_v32 }
 0x258   : > { %v10006_v47 = vadd.f32 %v4043_v42, %v4015_v9  ;;  %v3958_v24 = vpop.f32.mrf.mxu2  ;;  %v7108_v42 = vld [vmem:[%s10701_s1 + $0x834] sm:$0xf] }
 0x259   : > { %v3959_v18 = vadd.f32 %v3958_v24, %v3930_v39  ;;  %v6198_v50 = vor.u32 %v7108_v42, %v6195_v4  ;;  %v5979_v39 = vld [vmem:[%s10701_s1 + $0x688] sm:$0xf0]  ;;  %v6115_v24 = vld [vmem:[%s10701_s1 + $0x798] sm:$0xf0] }
 0x25a   : > { %v5982_v6 = vor.u32 %v7054_v30, %v5979_v39 }
 0x25b   : > { %v3987_v36 = vpop.f32.mrf.mxu3  ;;  %v4019_v29 = vpop.f32.mrf.mxu0  ;;  %4386 = vmatpush.bf16.msra.mxu1 %v6198_v50 }
 0x25c   : > { %v3988_v5 = vadd.f32 %v3987_v36, %v3959_v18  ;;  %v6046_v18 = vor.u32 %v7070_v53, %v6043_v48  ;;  %v6118_v36 = vor.u32 %v7088_v46, %v6115_v24  ;;  %4302 = vmatpush.bf16.msra.mxu2 %v5982_v6  ;;  %v7130_v48 = vld [vmem:[%s10701_s1 + $0x8e4] sm:$0xf] }
 0x25d   : > { %v4048_v45 = vpop.f32.mrf.mxu1  ;;  %4192 = vmatmul.bf16.gmra.mxu2 %v10843_v51  ;;  %v6179_v51 = vld [vmem:[%s10701_s1 + $0x818] sm:$0xf0]  ;;  %v7146_v46 = vld [vmem:[%s10701_s1 + $0x964] sm:$0xf] }
 0x25e   : > { %v4017_v60 = vadd.f32 %v4016_v31, %v3988_v5  ;;  %4250 = vmatmul.bf16.gmra.mxu0 %v10844_v54  ;;  %v6126_v31 = vor.u32 %v7090_v12, %v6123_v26  ;;  %4331 = vmatpush.bf16.msra.mxu3 %v6046_v18  ;;  %v10849_v26 = vld [vmem:[#allocation21_spill] sm:$0xff]  ;;  %v7164_v18 = vld [vmem:[%s10701_s1 + $0x9f4] sm:$0xf] }
 0x260   : > { %4221 = vmatmul.bf16.gmra.mxu3 %v10845_v27  ;;  %4279 = vmatmul.bf16.gmra.mxu1 %v10846_v35  ;;  %v10038_v21 = vadd.f32 %v4045_v22, %v4017_v60  ;;  %v3961_v23 = vpop.f32.mrf.mxu2  ;;  %v6187_v22 = vld [vmem:[%s10701_s1 + $0x828] sm:$0xf0]  ;;  %v7104_v60 = vld [vmem:[%s10701_s1 + $0x814] sm:$0xf] }
 0x261   : > { %v3962_v32 = vadd.f32 %v3961_v23, %v3933_v10  ;;  %4358 = vmatpush.bf16.msra.mxu0 %v6126_v31  ;;  %v6190_v38 = vor.u32 %v7106_v58, %v6187_v22  ;;  %v6182_v19 = vor.u32 %v7104_v60, %v6179_v51  ;;  %v6107_v27 = vld [vmem:[%s10701_s1 + $0x788] sm:$0xf0]  ;;  %v7132_v23 = vld [vmem:[%s10701_s1 + $0x8f4] sm:$0xf] }
 0x262   : > { %v6171_v10 = vld [vmem:[%s10701_s1 + $0x808] sm:$0xf0]  ;;  %v7148_v31 = vld [vmem:[%s10701_s1 + $0x974] sm:$0xf] }
 0x263   : > { %v3990_v9 = vpop.f32.mrf.mxu3  ;;  %v4021_v62 = vpop.f32.mrf.mxu0  ;;  %4387 = vmatpush.bf16.msra.mxu1 %v6190_v38  ;;  %v6174_v12 = vor.u32 %v7102_v59, %v6171_v10  ;;  %v10851_v59 = vld [vmem:[#allocation12_spill] sm:$0xff]  ;;  %v10852_v10 = vld [vmem:[#allocation27_spill] sm:$0xff] }
 0x264   : > { %v3991_v55 = vadd.f32 %v3990_v9, %v3962_v32  ;;  %v3938_v32 = vadd.f32 %v9831_v13, %v9946_v28  ;;  %v10850_v9 = vld [vmem:[#allocation22_spill] sm:$0xff] }
 0x265   : > { %v4050_v11 = vpop.f32.mrf.mxu1  ;;  %4359 = vmatpush.bf16.msra.mxu0 %v6118_v36  ;;  %v6419_v36 = vld [vmem:[%s10701_s1 + $0x9f8] sm:$0xf0] }
 0x266   : > { %v4020_v40 = vadd.f32 %v4019_v29, %v3991_v55  ;;  %v6355_v55 = vld [vmem:[%s10701_s1 + $0x978] sm:$0xf0]  ;;  %v6422_v51 = vor.u32 %v7164_v18, %v6419_v36  ;;  %v7142_v18 = vld [vmem:[%s10701_s1 + $0x944] sm:$0xf]  ;;  %v6331_v36 = vld [vmem:[%s10701_s1 + $0x948] sm:$0xf0] }
 0x267   : > { %4388 = vmatpush.bf16.msra.mxu1 %v6182_v19 }
 0x268   : > { %v10066_v29 = vadd.f32 %v4048_v45, %v4020_v40  ;;  %v3963_v5 = vpop.f32.mrf.mxu2  ;;  %v7086_v45 = vld [vmem:[%s10701_s1 + $0x784] sm:$0xf]  ;;  %v6358_v40 = vor.u32 %v7148_v31, %v6355_v55 }
 0x269   : > { %v3964_v54 = vadd.f32 %v3963_v5, %v3935_v37  ;;  %v6110_v41 = vor.u32 %v7086_v45, %v6107_v27  ;;  %v6347_v37 = vld [vmem:[%s10701_s1 + $0x968] sm:$0xf0]  ;;  %v3940_v5 = vadd.f32 %v9858_v16, %v9946_v28  ;;  %v7180_v16 = vld [vmem:[%s10701_s1 + $0xa74] sm:$0xf] }
 0x26a   : > { %4440 = vmatpush.bf16.msrb.mxu3 %v6358_v40  ;;  %v6350_v60 = vor.u32 %v7146_v46, %v6347_v37  ;;  %v7126_v46 = vld [vmem:[%s10701_s1 + $0x8c4] sm:$0xf]  ;;  %v6267_v37 = vld [vmem:[%s10701_s1 + $0x8c8] sm:$0xf0] }
 0x26b   : > { %v3992_v42 = vpop.f32.mrf.mxu3  ;;  %v4024_v4 = vpop.f32.mrf.mxu0  ;;  %4360 = vmatpush.bf16.msra.mxu0 %v6110_v41  ;;  %4389 = vmatpush.bf16.msra.mxu1 %v6174_v12  ;;  %v6275_v12 = vld [vmem:[%s10701_s1 + $0x8d8] sm:$0xf0] }
 0x26c   : > { %v3993_v50 = vadd.f32 %v3992_v42, %v3964_v54 }
 0x26d   : > { %v4053_v1 = vpop.f32.mrf.mxu1  ;;  %4197 = vmatmul.bf16.gmra.mxu2 %v10847_v3 }
 0x26e   : > { %v4022_v35 = vadd.f32 %v4021_v62, %v3993_v50  ;;  %4255 = vmatmul.bf16.gmra.mxu0 %v10848_v63  ;;  %v6294_v62 = vor.u32 %v7132_v23, %v6291_v52  ;;  %4441 = vmatpush.bf16.msrb.mxu3 %v6350_v60  ;;  %v7128_v63 = vld [vmem:[%s10701_s1 + $0x8d4] sm:$0xf]  ;;  %v3943_v23 = vadd.f32 %v9881_v0, %v9946_v28  ;;  %v10854_v52 = vld [vmem:[#allocation26_spill] sm:$0xff] }
 0x26f   : > { %4469 = vmatpush.bf16.msrb.mxu0 %v6422_v51  ;;  %v6278_v31 = vor.u32 %v7128_v63, %v6275_v12  ;;  %v6270_v60 = vor.u32 %v7126_v46, %v6267_v37  ;;  %v6334_v51 = vor.u32 %v7142_v18, %v6331_v36  ;;  %v10857_v63 = vld [vmem:[#allocation29_spill] sm:$0xff]  ;;  %v6251_v18 = vld [vmem:[%s10701_s1 + $0x8a8] sm:$0xf0]  ;;  %v7138_v36 = vld [vmem:[%s10701_s1 + $0x924] sm:$0xf] }
 0x270   : > { %4226 = vmatmul.bf16.gmra.mxu3 %v10849_v26  ;;  %4284 = vmatmul.bf16.gmra.mxu1 %v10850_v9  ;;  %v10104_v58 = vadd.f32 %v4050_v11, %v4022_v35  ;;  %v3966_v22 = vpop.f32.mrf.mxu2  ;;  %v6283_v11 = vld [vmem:[%s10701_s1 + $0x8e8] sm:$0xf0]  ;;  %v10853_v35 = vld [vmem:[#allocation25_spill] sm:$0xff]  ;;  %v7144_v26 = vld [vmem:[%s10701_s1 + $0x954] sm:$0xf] }
 0x271   : > { %v3967_v38 = vadd.f32 %v3966_v22, %v3938_v32  ;;  %4411 = vmatpush.bf16.msrb.mxu2 %v6294_v62  ;;  %v6286_v24 = vor.u32 %v7130_v48, %v6283_v11  ;;  %v6339_v32 = vld [vmem:[%s10701_s1 + $0x958] sm:$0xf0]  ;;  %v7162_v9 = vld [vmem:[%s10701_s1 + $0x9e4] sm:$0xf]  ;;  %v6411_v62 = vld [vmem:[%s10701_s1 + $0x9e8] sm:$0xf0] }
 0x272   : > { %v6342_v0 = vor.u32 %v7144_v26, %v6339_v32  ;;  %v6414_v40 = vor.u32 %v7162_v9, %v6411_v62  ;;  %v7178_v11 = vld [vmem:[%s10701_s1 + $0xa64] sm:$0xf]  ;;  %v7124_v26 = vld [vmem:[%s10701_s1 + $0x8b4] sm:$0xf]  ;;  %v6323_v9 = vld [vmem:[%s10701_s1 + $0x938] sm:$0xf0] }
 0x273   : > { %v3995_v30 = vpop.f32.mrf.mxu3  ;;  %v4026_v39 = vpop.f32.mrf.mxu0  ;;  %v7158_v62 = vld [vmem:[%s10701_s1 + $0x9c4] sm:$0xf] }
 0x274   : > { %v3996_v53 = vadd.f32 %v3995_v30, %v3967_v38  ;;  %4442 = vmatpush.bf16.msrb.mxu3 %v6342_v0  ;;  %4470 = vmatpush.bf16.msrb.mxu0 %v6414_v40 }
 0x275   : > { %v4055_v6 = vpop.f32.mrf.mxu1  ;;  %4412 = vmatpush.bf16.msrb.mxu2 %v6286_v24 }
 0x276   : > { %v4025_v13 = vadd.f32 %v4024_v4, %v3996_v53 }
 0x278   : > { %v10126_v54 = vadd.f32 %v4053_v1, %v4025_v13  ;;  %v3968_v42 = vpop.f32.mrf.mxu2  ;;  %v6483_v1 = vld [vmem:[%s10701_s1 + $0xa78] sm:$0xf0]  ;;  %4443 = vmatpush.bf16.msrb.mxu3 %v6334_v51 }
 0x279   : > { %v3969_v19 = vadd.f32 %v3968_v42, %v3940_v5  ;;  %v6486_v3 = vor.u32 %v7180_v16, %v6483_v1  ;;  %4413 = vmatpush.bf16.msrb.mxu2 %v6278_v31  ;;  %v3945_v5 = vadd.f32 %v9914_v2, %v9946_v28  ;;  %v7160_v42 = vld [vmem:[%s10701_s1 + $0x9d4] sm:$0xf]  ;;  %v10858_v31 = vld [vmem:[#allocation30_spill] sm:$0xff] }
 0x27a   : > { %v10855_v1 = vld [vmem:[#allocation16_spill] sm:$0xff] }
 0x27b   : > { %v3997_v4 = vpop.f32.mrf.mxu3  ;;  %v4029_v45 = vpop.f32.mrf.mxu0  ;;  %4498 = vmatpush.bf16.msrb.mxu1 %v6486_v3  ;;  %v6467_v3 = vld [vmem:[%s10701_s1 + $0xa58] sm:$0xf0] }
 0x27c   : > { %v3998_v27 = vadd.f32 %v3997_v4, %v3969_v19  ;;  %v6403_v19 = vld [vmem:[%s10701_s1 + $0x9d8] sm:$0xf0] }
 0x27d   : > { %v4058_v50 = vpop.f32.mrf.mxu1  ;;  %4202 = vmatmul.bf16.gmra.mxu2 %v10851_v59 }
 0x27e   : > { %v4027_v41 = vadd.f32 %v4026_v39, %v3998_v27  ;;  %4260 = vmatmul.bf16.gmra.mxu0 %v10852_v10  ;;  %v6406_v27 = vor.u32 %v7160_v42, %v6403_v19  ;;  %4414 = vmatpush.bf16.msrb.mxu2 %v6270_v60  ;;  %v7156_v42 = vld [vmem:[%s10701_s1 + $0x9b4] sm:$0xf]  ;;  %v6387_v19 = vld [vmem:[%s10701_s1 + $0x9b8] sm:$0xf0] }
 0x280   : > { %4231 = vmatmul.bf16.gmra.mxu3 %v10853_v35  ;;  %4289 = vmatmul.bf16.gmra.mxu1 %v10854_v52  ;;  %v10158_v55 = vadd.f32 %v4055_v6, %v4027_v41  ;;  %v3971_v22 = vpop.f32.mrf.mxu2  ;;  %v6475_v6 = vld [vmem:[%s10701_s1 + $0xa68] sm:$0xf0]  ;;  %v7140_v52 = vld [vmem:[%s10701_s1 + $0x934] sm:$0xf] }
 0x281   : > { %v3972_v38 = vadd.f32 %v3971_v22, %v3943_v23  ;;  %v6478_v24 = vor.u32 %v7178_v11, %v6475_v6  ;;  %4471 = vmatpush.bf16.msrb.mxu0 %v6406_v27  ;;  %v10856_v35 = vld [vmem:[#allocation31_spill] sm:$0xff]  ;;  %v6259_v23 = vld [vmem:[%s10701_s1 + $0x8b8] sm:$0xf0] }
 0x282   : > { %v6262_v32 = vor.u32 %v7124_v26, %v6259_v23  ;;  %v6395_v22 = vld [vmem:[%s10701_s1 + $0x9c8] sm:$0xf0]  ;;  %v7120_v26 = vld [vmem:[%s10701_s1 + $0x894] sm:$0xf]  ;;  %v6243_v23 = vld [vmem:[%s10701_s1 + $0x898] sm:$0xf0] }
 0x283   : > { %v4000_v30 = vpop.f32.mrf.mxu3  ;;  %v4031_v39 = vpop.f32.mrf.mxu0  ;;  %4499 = vmatpush.bf16.msrb.mxu1 %v6478_v24  ;;  %v7174_v24 = vld [vmem:[%s10701_s1 + $0xa44] sm:$0xf] }
 0x284   : > { %v4001_v53 = vadd.f32 %v4000_v30, %v3972_v38  ;;  %v6326_v38 = vor.u32 %v7140_v52, %v6323_v9  ;;  %v6398_v30 = vor.u32 %v7158_v62, %v6395_v22  ;;  %4415 = vmatpush.bf16.msrb.mxu2 %v6262_v32  ;;  %v7136_v52 = vld [vmem:[%s10701_s1 + $0x914] sm:$0xf]  ;;  %v6246_v32 = vor.u32 %v7120_v26, %v6243_v23  ;;  %v6307_v9 = vld [vmem:[%s10701_s1 + $0x918] sm:$0xf0]  ;;  %v7154_v62 = vld [vmem:[%s10701_s1 + $0x9a4] sm:$0xf] }
 0x285   : > { %v4060_v13 = vpop.f32.mrf.mxu1  ;;  %v6379_v22 = vld [vmem:[%s10701_s1 + $0x9a8] sm:$0xf0] }
 0x286   : > { %v4030_v48 = vadd.f32 %v4029_v45, %v4001_v53  ;;  %4444 = vmatpush.bf16.msrb.mxu3 %v6326_v38  ;;  %4472 = vmatpush.bf16.msrb.mxu0 %v6398_v30  ;;  %v6310_v30 = vor.u32 %v7136_v52, %v6307_v9  ;;  %v6427_v26 = vld [vmem:[%s10701_s1 + $0xa08] sm:$0xf0]  ;;  %v10863_v52 = vld [vmem:[#allocation24_spill] sm:$0xff]  ;;  %v10865_v9 = vld [vmem:[#allocation37_spill] sm:$0xff] }
 0x288   : > { %v10186_v4 = vadd.f32 %v4058_v50, %v4030_v48  ;;  %v3973_v45 = vpop.f32.mrf.mxu2  ;;  %v7176_v50 = vld [vmem:[%s10701_s1 + $0xa54] sm:$0xf] }
 0x289   : > { %v3974_v41 = vadd.f32 %v3973_v45, %v3945_v5  ;;  %v6470_v12 = vor.u32 %v7176_v50, %v6467_v3  ;;  %v6315_v5 = vld [vmem:[%s10701_s1 + $0x928] sm:$0xf0]  ;;  %v10859_v50 = vld [vmem:[#allocation20_spill] sm:$0xff] }
 0x28a   : > { %v6318_v51 = vor.u32 %v7138_v36, %v6315_v5  ;;  %v10860_v3 = vld [vmem:[#allocation35_spill] sm:$0xff]  ;;  %v7134_v36 = vld [vmem:[%s10701_s1 + $0x904] sm:$0xf] }
 0x28b   : > { %v4002_v59 = vpop.f32.mrf.mxu3  ;;  %v4130_v2 = vpop.f32.mrf.mxu0  ;;  %4500 = vmatpush.bf16.msrb.mxu1 %v6470_v12 }
 0x28c   : > { %v4003_v28 = vadd.f32 %v4002_v59, %v3974_v41  ;;  %v6390_v41 = vor.u32 %v7156_v42, %v6387_v19  ;;  %4445 = vmatpush.bf16.msrb.mxu3 %v6318_v51  ;;  %v7152_v51 = vld [vmem:[%s10701_s1 + $0x994] sm:$0xf]  ;;  %v6371_v42 = vld [vmem:[%s10701_s1 + $0x998] sm:$0xf0] }
 0x28d   : > { %v4159_v10 = vpop.f32.mrf.mxu1  ;;  %4303 = vmatmul.bf16.vlgmr.msra.gmra.mxu2 %v10855_v1 }
 0x28e   : > { %v4032_v16 = vadd.f32 %v4031_v39, %v4003_v28  ;;  %4361 = vmatmul.bf16.vlgmr.msra.gmra.mxu0 %v10856_v35 }
 0x28f   : > { %4473 = vmatpush.bf16.msrb.mxu0 %v6390_v41 }
 0x290   : > { %4332 = vmatmul.bf16.vlgmr.msra.gmra.mxu3 %v10857_v63  ;;  %4390 = vmatmul.bf16.vlgmr.msra.gmra.mxu1 %v10858_v31  ;;  %v10216_v0 = vadd.f32 %v4060_v13, %v4032_v16  ;;  %v4072_v40 = vpop.f32.mrf.mxu2  ;;  %v6459_v13 = vld [vmem:[%s10701_s1 + $0xa48] sm:$0xf0]  ;;  %v10861_v63 = vld [vmem:[#allocation33_spill] sm:$0xff]  ;;  %v10862_v31 = vld [vmem:[#allocation34_spill] sm:$0xff] }
 0x291   : > { %v4073_v39 = vadd.f32 %v4072_v40, %v10006_v47  ;;  %v7122_v47 = vld [vmem:[%s10701_s1 + $0x8a4] sm:$0xf]  ;;  %v6462_v37 = vor.u32 %v7174_v24, %v6459_v13  ;;  %4446 = vmatpush.bf16.msrb.mxu3 %v6310_v30 }
 0x292   : > { %v6254_v60 = vor.u32 %v7122_v47, %v6251_v18  ;;  %v7170_v13 = vld [vmem:[%s10701_s1 + $0xa24] sm:$0xf]  ;;  %v6235_v18 = vld [vmem:[%s10701_s1 + $0x888] sm:$0xf0] }
 0x293   : > { %v4101_v53 = vpop.f32.mrf.mxu3  ;;  %v4132_v48 = vpop.f32.mrf.mxu0  ;;  %4501 = vmatpush.bf16.msrb.mxu1 %v6462_v37  ;;  %v10866_v30 = vld [vmem:[#allocation38_spill] sm:$0xff] }
 0x294   : > { %v4102_v11 = vadd.f32 %v4101_v53, %v4073_v39  ;;  %4416 = vmatpush.bf16.msrb.mxu2 %v6254_v60  ;;  %v6382_v39 = vor.u32 %v7154_v62, %v6379_v22  ;;  %v6299_v60 = vld [vmem:[%s10701_s1 + $0x908] sm:$0xf0]  ;;  %v7196_v62 = vld [vmem:[%s10701_s1 + $0xaf4] sm:$0xf]  ;;  %v6547_v22 = vld [vmem:[%s10701_s1 + $0xaf8] sm:$0xf0] }
 0x295   : > { %v4161_v6 = vpop.f32.mrf.mxu1  ;;  %v6302_v19 = vor.u32 %v7134_v36, %v6299_v60  ;;  %v7194_v36 = vld [vmem:[%s10701_s1 + $0xae4] sm:$0xf]  ;;  %v6603_v60 = vld [vmem:[%s10701_s1 + $0xb68] sm:$0xf0] }
 0x296   : > { %v4131_v46 = vadd.f32 %v4130_v2, %v4102_v11  ;;  %4474 = vmatpush.bf16.msrb.mxu0 %v6382_v39  ;;  %v6550_v39 = vor.u32 %v7196_v62, %v6547_v22  ;;  %v7226_v62 = vld [vmem:[%s10701_s1 + $0xbe4] sm:$0xf]  ;;  %v6667_v22 = vld [vmem:[%s10701_s1 + $0xbe8] sm:$0xf0] }
 0x297   : > { %4447 = vmatpush.bf16.msrb.mxu3 %v6302_v19 }
 0x298   : > { %v10243_v45 = vadd.f32 %v4159_v10, %v4131_v46  ;;  %v4074_v27 = vpop.f32.mrf.mxu2  ;;  %v7172_v10 = vld [vmem:[%s10701_s1 + $0xa34] sm:$0xf]  ;;  %4417 = vmatpush.bf16.msrb.mxu2 %v6246_v32 }
 0x299   : > { %v4075_v59 = vadd.f32 %v4074_v27, %v10038_v21  ;;  %v6451_v21 = vld [vmem:[%s10701_s1 + $0xa38] sm:$0xf0]  ;;  %v6374_v27 = vor.u32 %v7152_v51, %v6371_v42  ;;  %v7228_v51 = vld [vmem:[%s10701_s1 + $0xbf4] sm:$0xf] }
 0x29a   : > { %v6454_v12 = vor.u32 %v7172_v10, %v6451_v21  ;;  %v6363_v10 = vld [vmem:[%s10701_s1 + $0x988] sm:$0xf0]  ;;  %v6675_v42 = vld [vmem:[%s10701_s1 + $0xbf8] sm:$0xf0] }
 0x29b   : > { %v4103_v2 = vpop.f32.mrf.mxu3  ;;  %v4135_v28 = vpop.f32.mrf.mxu0  ;;  %4475 = vmatpush.bf16.msrb.mxu0 %v6374_v27  ;;  %v6678_v27 = vor.u32 %v7228_v51, %v6675_v42  ;;  %v7224_v42 = vld [vmem:[%s10701_s1 + $0xbd4] sm:$0xf] }
 0x29c   : > { %v4104_v16 = vadd.f32 %v4103_v2, %v4075_v59  ;;  %4502 = vmatpush.bf16.msrb.mxu1 %v6454_v12  ;;  %v7168_v2 = vld [vmem:[%s10701_s1 + $0xa14] sm:$0xf] }
 0x29d   : > { %v4164_v1 = vpop.f32.mrf.mxu1  ;;  %4308 = vmatmul.bf16.gmra.mxu2 %v10859_v50 }
 0x29e   : > { %v4133_v35 = vadd.f32 %v4132_v48, %v4104_v16  ;;  %4366 = vmatmul.bf16.gmra.mxu0 %v10860_v3 }
 0x2a0   : > { %4337 = vmatmul.bf16.gmra.mxu3 %v10861_v63  ;;  %4395 = vmatmul.bf16.gmra.mxu1 %v10862_v31  ;;  %v10274_v40 = vadd.f32 %v4161_v6, %v4133_v35  ;;  %v4077_v38 = vpop.f32.mrf.mxu2  ;;  %v6443_v6 = vld [vmem:[%s10701_s1 + $0xa28] sm:$0xf0] }
 0x2a1   : > { %v4078_v53 = vadd.f32 %v4077_v38, %v10066_v29  ;;  %v6446_v37 = vor.u32 %v7170_v13, %v6443_v6  ;;  %v7118_v29 = vld [vmem:[%s10701_s1 + $0x884] sm:$0xf]  ;;  %v10864_v31 = vld [vmem:[#allocation39_spill] sm:$0xff]  ;;  %v7212_v38 = vld [vmem:[%s10701_s1 + $0xb74] sm:$0xf] }
 0x2a2   : > { %v6238_v5 = vor.u32 %v7118_v29, %v6235_v18 }
 0x2a3   : > { %v4106_v48 = vpop.f32.mrf.mxu3  ;;  %v4137_v11 = vpop.f32.mrf.mxu0  ;;  %4503 = vmatpush.bf16.msrb.mxu1 %v6446_v37 }
 0x2a4   : > { %v4107_v46 = vadd.f32 %v4106_v48, %v4078_v53  ;;  %4418 = vmatpush.bf16.msrb.mxu2 %v6238_v5  ;;  %v6611_v53 = vld [vmem:[%s10701_s1 + $0xb78] sm:$0xf0]  ;;  %v7210_v5 = vld [vmem:[%s10701_s1 + $0xb64] sm:$0xf] }
 0x2a5   : > { %v4166_v24 = vpop.f32.mrf.mxu1  ;;  %v6606_v19 = vor.u32 %v7210_v5, %v6603_v60  ;;  %v7206_v5 = vld [vmem:[%s10701_s1 + $0xb44] sm:$0xf] }
 0x2a6   : > { %v4136_v47 = vadd.f32 %v4135_v28, %v4107_v46  ;;  %v6435_v28 = vld [vmem:[%s10701_s1 + $0xa18] sm:$0xf0]  ;;  %v6614_v46 = vor.u32 %v7212_v38, %v6611_v53  ;;  %v6670_v53 = vor.u32 %v7226_v62, %v6667_v22  ;;  %v7222_v62 = vld [vmem:[%s10701_s1 + $0xbc4] sm:$0xf]  ;;  %v6651_v22 = vld [vmem:[%s10701_s1 + $0xbc8] sm:$0xf0] }
 0x2a7   : > { %v6438_v50 = vor.u32 %v7168_v2, %v6435_v28 }
 0x2a8   : > { %v10301_v41 = vadd.f32 %v4164_v1, %v4136_v47  ;;  %v4079_v59 = vpop.f32.mrf.mxu2  ;;  %v7150_v1 = vld [vmem:[%s10701_s1 + $0x984] sm:$0xf]  ;;  %4527 = vmatpush.bf16.msra.mxu2 %v6550_v39  ;;  %4556 = vmatpush.bf16.msra.mxu3 %v6614_v46 }
 0x2a9   : > { %v4080_v16 = vadd.f32 %v4079_v59, %v10104_v58  ;;  %4504 = vmatpush.bf16.msrb.mxu1 %v6438_v50  ;;  %v6366_v63 = vor.u32 %v7150_v1, %v6363_v10  ;;  %v7166_v58 = vld [vmem:[%s10701_s1 + $0xa04] sm:$0xf]  ;;  %v10867_v10 = vld [vmem:[#allocation28_spill] sm:$0xff] }
 0x2aa   : > { %v6430_v32 = vor.u32 %v7166_v58, %v6427_v26  ;;  %v7192_v26 = vld [vmem:[%s10701_s1 + $0xad4] sm:$0xf] }
 0x2ab   : > { %v4108_v35 = vpop.f32.mrf.mxu3  ;;  %v4140_v3 = vpop.f32.mrf.mxu0  ;;  %4476 = vmatpush.bf16.msrb.mxu0 %v6366_v63  ;;  %v7244_v63 = vld [vmem:[%s10701_s1 + $0xc74] sm:$0xf] }
 0x2ac   : > { %v4109_v21 = vadd.f32 %v4108_v35, %v4080_v16  ;;  %4557 = vmatpush.bf16.msra.mxu3 %v6606_v19  ;;  %v6659_v19 = vld [vmem:[%s10701_s1 + $0xbd8] sm:$0xf0] }
 0x2ad   : > { %v4169_v12 = vpop.f32.mrf.mxu1  ;;  %4313 = vmatmul.bf16.gmra.mxu2 %v10863_v52  ;;  %4505 = vmatpush.bf16.msrb.mxu1 %v6430_v32  ;;  %v7208_v52 = vld [vmem:[%s10701_s1 + $0xb54] sm:$0xf] }
 0x2ae   : > { %v4138_v23 = vadd.f32 %v4137_v11, %v4109_v21  ;;  %4371 = vmatmul.bf16.gmra.mxu0 %v10864_v31  ;;  %v10868_v21 = vld [vmem:[#allocation43_spill] sm:$0xff]  ;;  %v10870_v31 = vld [vmem:[#allocation42_spill] sm:$0xff] }
 0x2af   : > { %4585 = vmatpush.bf16.msra.mxu0 %v6678_v27 }
 0x2b0   : > { %4342 = vmatmul.bf16.gmra.mxu3 %v10865_v9  ;;  %4400 = vmatmul.bf16.gmra.mxu1 %v10866_v30  ;;  %v10338_v48 = vadd.f32 %v4166_v24, %v4138_v23  ;;  %v4082_v11 = vpop.f32.mrf.mxu2  ;;  %v6539_v24 = vld [vmem:[%s10701_s1 + $0xae8] sm:$0xf0]  ;;  %v6531_v23 = vld [vmem:[%s10701_s1 + $0xad8] sm:$0xf0] }
 0x2b1   : > { %v4083_v13 = vadd.f32 %v4082_v11, %v10126_v54  ;;  %v6542_v54 = vor.u32 %v7194_v36, %v6539_v24  ;;  %v6534_v32 = vor.u32 %v7192_v26, %v6531_v23  ;;  %v6595_v9 = vld [vmem:[%s10701_s1 + $0xb58] sm:$0xf0]  ;;  %v6523_v24 = vld [vmem:[%s10701_s1 + $0xac8] sm:$0xf0]  ;;  %v7188_v26 = vld [vmem:[%s10701_s1 + $0xab4] sm:$0xf] }
 0x2b2   : > { %v6598_v39 = vor.u32 %v7208_v52, %v6595_v9  ;;  %v6515_v23 = vld [vmem:[%s10701_s1 + $0xab8] sm:$0xf0]  ;;  %v7204_v52 = vld [vmem:[%s10701_s1 + $0xb34] sm:$0xf] }
 0x2b3   : > { %v4111_v6 = vpop.f32.mrf.mxu3  ;;  %v4142_v47 = vpop.f32.mrf.mxu0  ;;  %4528 = vmatpush.bf16.msra.mxu2 %v6542_v54  ;;  %4586 = vmatpush.bf16.msra.mxu0 %v6670_v53  ;;  %v6587_v54 = vld [vmem:[%s10701_s1 + $0xb48] sm:$0xf0]  ;;  %v6579_v9 = vld [vmem:[%s10701_s1 + $0xb38] sm:$0xf0] }
 0x2b4   : > { %v4112_v37 = vadd.f32 %v4111_v6, %v4083_v13  ;;  %4558 = vmatpush.bf16.msra.mxu3 %v6598_v39  ;;  %v6590_v51 = vor.u32 %v7206_v5, %v6587_v54  ;;  %v6582_v53 = vor.u32 %v7204_v52, %v6579_v9  ;;  %v7202_v5 = vld [vmem:[%s10701_s1 + $0xb24] sm:$0xf]  ;;  %v6571_v54 = vld [vmem:[%s10701_s1 + $0xb28] sm:$0xf0] }
 0x2b5   : > { %v4171_v29 = vpop.f32.mrf.mxu1  ;;  %v6635_v9 = vld [vmem:[%s10701_s1 + $0xba8] sm:$0xf0] }
 0x2b6   : > { %v4141_v18 = vadd.f32 %v4140_v3, %v4112_v37 }
 0x2b7   : > { %4529 = vmatpush.bf16.msra.mxu2 %v6534_v32  ;;  %v6518_v32 = vor.u32 %v7188_v26, %v6515_v23  ;;  %v6499_v26 = vld [vmem:[%s10701_s1 + $0xa98] sm:$0xf0]  ;;  %v10877_v23 = vld [vmem:[#allocation50_spill] sm:$0xff] }
 0x2b8   : > { %v10359_v59 = vadd.f32 %v4169_v12, %v4141_v18  ;;  %v4084_v2 = vpop.f32.mrf.mxu2  ;;  %v6739_v12 = vld [vmem:[%s10701_s1 + $0xc78] sm:$0xf0]  ;;  %v7242_v18 = vld [vmem:[%s10701_s1 + $0xc64] sm:$0xf]  ;;  %4559 = vmatpush.bf16.msra.mxu3 %v6590_v51  ;;  %v6574_v51 = vor.u32 %v7202_v5, %v6571_v54  ;;  %v6555_v5 = vld [vmem:[%s10701_s1 + $0xb08] sm:$0xf0] }
 0x2b9   : > { %v4085_v28 = vadd.f32 %v4084_v2, %v10158_v55  ;;  %v10869_v55 = vld [vmem:[#allocation41_spill] sm:$0xff]  ;;  %v6742_v58 = vor.u32 %v7244_v63, %v6739_v12  ;;  %v10871_v63 = vld [vmem:[#allocation32_spill] sm:$0xff]  ;;  %v10872_v12 = vld [vmem:[#allocation47_spill] sm:$0xff] }
 0x2ba   : > { %v7216_v54 = vld [vmem:[%s10701_s1 + $0xb94] sm:$0xf] }
 0x2bb   : > { %v4113_v16 = vpop.f32.mrf.mxu3  ;;  %v4145_v35 = vpop.f32.mrf.mxu0  ;;  %4614 = vmatpush.bf16.msra.mxu1 %v6742_v58 }
 0x2bc   : > { %v4114_v50 = vadd.f32 %v4113_v16, %v4085_v28  ;;  %v6662_v28 = vor.u32 %v7224_v42, %v6659_v19  ;;  %4560 = vmatpush.bf16.msra.mxu3 %v6582_v53  ;;  %v7220_v42 = vld [vmem:[%s10701_s1 + $0xbb4] sm:$0xf]  ;;  %v6643_v19 = vld [vmem:[%s10701_s1 + $0xbb8] sm:$0xf0] }
 0x2bd   : > { %v4174_v3 = vpop.f32.mrf.mxu1  ;;  %4318 = vmatmul.bf16.gmra.mxu2 %v10867_v10 }
 0x2be   : > { %v4143_v1 = vadd.f32 %v4142_v47, %v4114_v50  ;;  %4376 = vmatmul.bf16.gmra.mxu0 %v10868_v21 }
 0x2bf   : > { %4587 = vmatpush.bf16.msra.mxu0 %v6662_v28 }
 0x2c0   : > { %4347 = vmatmul.bf16.gmra.mxu3 %v10869_v55  ;;  %4405 = vmatmul.bf16.gmra.mxu1 %v10870_v31  ;;  %v10390_v38 = vadd.f32 %v4171_v29, %v4143_v1  ;;  %v4087_v30 = vpop.f32.mrf.mxu2  ;;  %v6731_v29 = vld [vmem:[%s10701_s1 + $0xc68] sm:$0xf0]  ;;  %v10873_v55 = vld [vmem:[#allocation45_spill] sm:$0xff]  ;;  %v10874_v31 = vld [vmem:[#allocation46_spill] sm:$0xff] }
 0x2c1   : > { %v4088_v11 = vadd.f32 %v4087_v30, %v10186_v4  ;;  %v7190_v4 = vld [vmem:[%s10701_s1 + $0xac4] sm:$0xf]  ;;  %v6734_v36 = vor.u32 %v7242_v18, %v6731_v29  ;;  %4561 = vmatpush.bf16.msra.mxu3 %v6574_v51 }
 0x2c2   : > { %v6526_v60 = vor.u32 %v7190_v4, %v6523_v24  ;;  %v7238_v4 = vld [vmem:[%s10701_s1 + $0xc44] sm:$0xf]  ;;  %v6507_v24 = vld [vmem:[%s10701_s1 + $0xaa8] sm:$0xf0] }
 0x2c3   : > { %v4116_v46 = vpop.f32.mrf.mxu3  ;;  %v4147_v13 = vpop.f32.mrf.mxu0  ;;  %4615 = vmatpush.bf16.msra.mxu1 %v6734_v36 }
 0x2c4   : > { %v4117_v6 = vadd.f32 %v4116_v46, %v4088_v11  ;;  %4530 = vmatpush.bf16.msra.mxu2 %v6526_v60  ;;  %v6654_v11 = vor.u32 %v7222_v62, %v6651_v22 }
 0x2c5   : > { %v4176_v47 = vpop.f32.mrf.mxu1 }
 0x2c6   : > { %v4146_v37 = vadd.f32 %v4145_v35, %v4117_v6  ;;  %4588 = vmatpush.bf16.msra.mxu0 %v6654_v11 }
 0x2c8   : > { %v10417_v27 = vadd.f32 %v4174_v3, %v4146_v37  ;;  %v4089_v2 = vpop.f32.mrf.mxu2  ;;  %v7240_v3 = vld [vmem:[%s10701_s1 + $0xc54] sm:$0xf]  ;;  %4531 = vmatpush.bf16.msra.mxu2 %v6518_v32  ;;  %v7218_v32 = vld [vmem:[%s10701_s1 + $0xba4] sm:$0xf] }
 0x2c9   : > { %v4090_v16 = vadd.f32 %v4089_v2, %v10216_v0  ;;  %v6723_v0 = vld [vmem:[%s10701_s1 + $0xc58] sm:$0xf0]  ;;  %v6638_v53 = vor.u32 %v7218_v32, %v6635_v9 }
 0x2ca   : > { %v6726_v58 = vor.u32 %v7240_v3, %v6723_v0  ;;  %v10875_v3 = vld [vmem:[#allocation36_spill] sm:$0xff]  ;;  %v10876_v0 = vld [vmem:[#allocation49_spill] sm:$0xff] }
 0x2cb   : > { %v4118_v35 = vpop.f32.mrf.mxu3  ;;  %v4246_v50 = vpop.f32.mrf.mxu0 }
 0x2cc   : > { %v4119_v1 = vadd.f32 %v4118_v35, %v4090_v16  ;;  %4616 = vmatpush.bf16.msra.mxu1 %v6726_v58  ;;  %v6646_v16 = vor.u32 %v7220_v42, %v6643_v19  ;;  %v7184_v58 = vld [vmem:[%s10701_s1 + $0xa94] sm:$0xf] }
 0x2cd   : > { %v4275_v10 = vpop.f32.mrf.mxu1  ;;  %4419 = vmatmul.bf16.vlgmr.msrb.gmra.mxu2 %v10871_v63  ;;  %v6502_v52 = vor.u32 %v7184_v58, %v6499_v26  ;;  %v10878_v26 = vld [vmem:[#allocation40_spill] sm:$0xff] }
 0x2ce   : > { %v4148_v21 = vadd.f32 %v4147_v13, %v4119_v1  ;;  %4477 = vmatmul.bf16.vlgmr.msrb.gmra.mxu0 %v10872_v12 }
 0x2cf   : > { %4589 = vmatpush.bf16.msra.mxu0 %v6646_v16  ;;  %v7232_v16 = vld [vmem:[%s10701_s1 + $0xc14] sm:$0xf] }
 0x2d0   : > { %4448 = vmatmul.bf16.vlgmr.msrb.gmra.mxu3 %v10873_v55  ;;  %4506 = vmatmul.bf16.vlgmr.msrb.gmra.mxu1 %v10874_v31  ;;  %v10448_v30 = vadd.f32 %v4176_v47, %v4148_v21  ;;  %v4188_v39 = vpop.f32.mrf.mxu2  ;;  %v6715_v47 = vld [vmem:[%s10701_s1 + $0xc48] sm:$0xf0]  ;;  %v6563_v31 = vld [vmem:[%s10701_s1 + $0xb18] sm:$0xf0] }
 0x2d1   : > { %v4189_v46 = vadd.f32 %v4188_v39, %v10243_v45  ;;  %v7186_v45 = vld [vmem:[%s10701_s1 + $0xaa4] sm:$0xf]  ;;  %v6718_v36 = vor.u32 %v7238_v4, %v6715_v47 }
 0x2d2   : > { %v6510_v60 = vor.u32 %v7186_v45, %v6507_v24  ;;  %v6491_v45 = vld [vmem:[%s10701_s1 + $0xa88] sm:$0xf0] }
 0x2d3   : > { %v4217_v13 = vpop.f32.mrf.mxu3  ;;  %v4248_v6 = vpop.f32.mrf.mxu0  ;;  %4617 = vmatpush.bf16.msra.mxu1 %v6718_v36  ;;  %4590 = vmatpush.bf16.msra.mxu0 %v6638_v53  ;;  %v7198_v36 = vld [vmem:[%s10701_s1 + $0xb04] sm:$0xf] }
 0x2d4   : > { %v4218_v37 = vadd.f32 %v4217_v13, %v4189_v46  ;;  %4532 = vmatpush.bf16.msra.mxu2 %v6510_v60  ;;  %v6627_v60 = vld [vmem:[%s10701_s1 + $0xb98] sm:$0xf0]  ;;  %v6558_v51 = vor.u32 %v7198_v36, %v6555_v5  ;;  %v10882_v36 = vld [vmem:[#allocation44_spill] sm:$0xff] }
 0x2d5   : > { %v4277_v18 = vpop.f32.mrf.mxu1  ;;  %v6630_v42 = vor.u32 %v7216_v54, %v6627_v60 }
 0x2d6   : > { %v4247_v29 = vadd.f32 %v4246_v50, %v4218_v37 }
 0x2d7   : > { %4591 = vmatpush.bf16.msra.mxu0 %v6630_v42 }
 0x2d8   : > { %v10475_v2 = vadd.f32 %v4275_v10, %v4247_v29  ;;  %v4190_v28 = vpop.f32.mrf.mxu2  ;;  %v7236_v10 = vld [vmem:[%s10701_s1 + $0xc34] sm:$0xf]  ;;  %4533 = vmatpush.bf16.msra.mxu2 %v6502_v52  ;;  %v7234_v29 = vld [vmem:[%s10701_s1 + $0xc24] sm:$0xf] }
 0x2d9   : > { %v4191_v35 = vadd.f32 %v4190_v28, %v10274_v40  ;;  %v6707_v40 = vld [vmem:[%s10701_s1 + $0xc38] sm:$0xf0]  ;;  %v10880_v52 = vld [vmem:[#allocation52_spill] sm:$0xff] }
 0x2da   : > { %v6710_v55 = vor.u32 %v7236_v10, %v6707_v40 }
 0x2db   : > { %v4219_v50 = vpop.f32.mrf.mxu3  ;;  %v4251_v1 = vpop.f32.mrf.mxu0 }
 0x2dc   : > { %v4220_v21 = vadd.f32 %v4219_v50, %v4191_v35  ;;  %4618 = vmatpush.bf16.msra.mxu1 %v6710_v55  ;;  %v6691_v35 = vld [vmem:[%s10701_s1 + $0xc18] sm:$0xf0]  ;;  %v6683_v55 = vld [vmem:[%s10701_s1 + $0xc08] sm:$0xf0] }
 0x2dd   : > { %v4280_v63 = vpop.f32.mrf.mxu1  ;;  %4424 = vmatmul.bf16.gmra.mxu2 %v10875_v3  ;;  %v6619_v3 = vld [vmem:[%s10701_s1 + $0xb88] sm:$0xf0] }
 0x2de   : > { %v4249_v12 = vadd.f32 %v4248_v6, %v4220_v21  ;;  %4482 = vmatmul.bf16.gmra.mxu0 %v8973_v57  ;;  %v7200_v57 = vld [vmem:[%s10701_s1 + $0xb14] sm:$0xf]  ;;  %v6694_v21 = vor.u32 %v7232_v16, %v6691_v35 }
 0x2df   : > { %v6566_v39 = vor.u32 %v7200_v57, %v6563_v31  ;;  %v10879_v57 = vld [vmem:[#allocation54_spill] sm:$0xff]  ;;  %v10881_v31 = vld [vmem:[#allocation53_spill] sm:$0xff] }
 0x2e0   : > { %4453 = vmatmul.bf16.gmra.mxu3 %v10876_v0  ;;  %4511 = vmatmul.bf16.gmra.mxu1 %v10877_v23  ;;  %v10506_v62 = vadd.f32 %v4277_v18, %v4249_v12  ;;  %v4193_v22 = vpop.f32.mrf.mxu2  ;;  %v6699_v18 = vld [vmem:[%s10701_s1 + $0xc28] sm:$0xf0] }
 0x2e1   : > { %v4194_v11 = vadd.f32 %v4193_v22, %v10301_v41  ;;  %4562 = vmatpush.bf16.msra.mxu3 %v6566_v39  ;;  %v6702_v47 = vor.u32 %v7234_v29, %v6699_v18  ;;  %v7182_v41 = vld [vmem:[%s10701_s1 + $0xa84] sm:$0xf] }
 0x2e2   : > { %v6494_v24 = vor.u32 %v7182_v41, %v6491_v45 }
 0x2e3   : > { %v4222_v46 = vpop.f32.mrf.mxu3  ;;  %v4253_v13 = vpop.f32.mrf.mxu0  ;;  %4619 = vmatpush.bf16.msra.mxu1 %v6702_v47 }
 0x2e4   : > { %v4223_v6 = vadd.f32 %v4222_v46, %v4194_v11  ;;  %4534 = vmatpush.bf16.msra.mxu2 %v6494_v24  ;;  %v10884_v24 = vld [vmem:[#allocation57_spill] sm:$0xff] }
 0x2e5   : > { %v4282_v37 = vpop.f32.mrf.mxu1  ;;  %4563 = vmatpush.bf16.msra.mxu3 %v6558_v51 }
 0x2e6   : > { %v4252_v4 = vadd.f32 %v4251_v1, %v4223_v6 }
 0x2e7   : > { %4620 = vmatpush.bf16.msra.mxu1 %v6694_v21 }
 0x2e8   : > { %v10533_v19 = vadd.f32 %v4280_v63, %v4252_v4  ;;  %v4195_v28 = vpop.f32.mrf.mxu2  ;;  %v7214_v63 = vld [vmem:[%s10701_s1 + $0xb84] sm:$0xf] }
 0x2e9   : > { %v4196_v50 = vadd.f32 %v4195_v28, %v10338_v48  ;;  %v6622_v40 = vor.u32 %v7214_v63, %v6619_v3  ;;  %v7230_v48 = vld [vmem:[%s10701_s1 + $0xc04] sm:$0xf] }
 0x2ea   : > { %v6686_v23 = vor.u32 %v7230_v48, %v6683_v55 }
 0x2eb   : > { %v4224_v1 = vpop.f32.mrf.mxu3  ;;  %v4256_v12 = vpop.f32.mrf.mxu0  ;;  %4592 = vmatpush.bf16.msra.mxu0 %v6622_v40  ;;  %v10887_v40 = vld [vmem:[#allocation60_spill] sm:$0xff] }
 0x2ec   : > { %v4225_v10 = vadd.f32 %v4224_v1, %v4196_v50  ;;  %4621 = vmatpush.bf16.msra.mxu1 %v6686_v23 }
 0x2ed   : > { %v4285_v0 = vpop.f32.mrf.mxu1  ;;  %4429 = vmatmul.bf16.gmra.mxu2 %v10878_v26 }
 0x2ee   : > { %v4254_v58 = vadd.f32 %v4253_v13, %v4225_v10  ;;  %4487 = vmatmul.bf16.gmra.mxu0 %v10879_v57  ;;  %v10885_v10 = vld [vmem:[#allocation48_spill] sm:$0xff] }
 0x2f0   : > { %4458 = vmatmul.bf16.gmra.mxu3 %v10880_v52  ;;  %4516 = vmatmul.bf16.gmra.mxu1 %v10881_v31  ;;  %v10558_v32 = vadd.f32 %v4282_v37, %v4254_v58  ;;  %v4198_v9 = vpop.f32.mrf.mxu2 }
 0x2f1   : > { %v4199_v22 = vadd.f32 %v4198_v9, %v10359_v59  ;;  %v10883_v59 = vld [vmem:[#allocation56_spill] sm:$0xff] }
 0x2f3   : > { %v4227_v39 = vpop.f32.mrf.mxu3  ;;  %v4258_v53 = vpop.f32.mrf.mxu0 }
 0x2f4   : > { %v4228_v11 = vadd.f32 %v4227_v39, %v4199_v22 }
 0x2f5   : > { %v4287_v46 = vpop.f32.mrf.mxu1 }
 0x2f6   : > { %v4257_v13 = vadd.f32 %v4256_v12, %v4228_v11 }
 0x2f8   : > { %v10561_v6 = vadd.f32 %v4285_v0, %v4257_v13  ;;  %v4200_v29 = vpop.f32.mrf.mxu2  ;;  %v10890_v13 = vld [vmem:[#allocation62_spill] sm:$0xff] }
 0x2f9   : > { %v4201_v18 = vadd.f32 %v4200_v29, %v10390_v38 }
 0x2fb   : > { %v4229_v4 = vpop.f32.mrf.mxu3  ;;  %v4261_v47 = vpop.f32.mrf.mxu0 }
 0x2fc   : > { %v4230_v41 = vadd.f32 %v4229_v4, %v4201_v18 }
 0x2fd   : > { %v4290_v45 = vpop.f32.mrf.mxu1  ;;  %4434 = vmatmul.bf16.gmra.mxu2 %v10882_v36 }
 0x2fe   : > { %v4259_v37 = vadd.f32 %v4258_v53, %v4230_v41  ;;  %4492 = vmatmul.bf16.gmra.mxu0 %v9121_v49 }
 0x300   : > { %4463 = vmatmul.bf16.gmra.mxu3 %v10883_v59  ;;  %4521 = vmatmul.bf16.gmra.mxu1 %v10884_v24  ;;  %v10568_v5 = vadd.f32 %v4287_v46, %v4259_v37  ;;  %v4203_v54 = vpop.f32.mrf.mxu2  ;;  %v10888_v46 = vld [vmem:[#allocation51_spill] sm:$0xff] }
 0x301   : > { %v4204_v60 = vadd.f32 %v4203_v54, %v10417_v27  ;;  %v10886_v27 = vld [vmem:[#allocation59_spill] sm:$0xff] }
 0x303   : > { %v4232_v51 = vpop.f32.mrf.mxu3  ;;  %v4263_v38 = vpop.f32.mrf.mxu0 }
 0x304   : > { %v4233_v42 = vadd.f32 %v4232_v51, %v4204_v60 }
 0x305   : > { %v4292_v28 = vpop.f32.mrf.mxu1 }
 0x306   : > { %v4262_v16 = vadd.f32 %v4261_v47, %v4233_v42  ;;  %v10891_v42 = vld [vmem:[#allocation55_spill] sm:$0xff] }
 0x308   : > { %v10571_v35 = vadd.f32 %v4290_v45, %v4262_v16  ;;  %v4205_v50 = vpop.f32.mrf.mxu2  ;;  %v10894_v16 = vld [vmem:[#allocation64_spill] sm:$0xff] }
 0x309   : > { %v4206_v1 = vadd.f32 %v4205_v50, %v10448_v30 }
 0x30b   : > { %v4234_v49 = vpop.f32.mrf.mxu3  ;;  %v4362_v21 = vpop.f32.mrf.mxu0 }
 0x30c   : > { %v4235_v12 = vadd.f32 %v4234_v49, %v4206_v1 }
 0x30d   : > { %v4391_v63 = vpop.f32.mrf.mxu1  ;;  %4535 = vmatmul.bf16.vlgmr.msra.gmra.mxu2 %v10885_v10 }
 0x30e   : > { %v4264_v3 = vadd.f32 %v4263_v38, %v4235_v12  ;;  %4593 = vmatmul.bf16.vlgmr.msra.gmra.mxu0 %v9193_v56 }
 0x310   : > { %4564 = vmatmul.bf16.vlgmr.msra.gmra.mxu3 %v10886_v27  ;;  %4622 = vmatmul.bf16.vlgmr.msra.gmra.mxu1 %v10887_v40  ;;  %v10578_v0 = vadd.f32 %v4292_v28, %v4264_v3  ;;  %v4304_v48 = vpop.f32.mrf.mxu2  ;;  %v10892_v28 = vld [vmem:[#allocation65_spill] sm:$0xff] }
 0x311   : > { %v4305_v55 = vadd.f32 %v4304_v48, %v10475_v2  ;;  %v10889_v2 = vld [vmem:[#allocation61_spill] sm:$0xff] }
 0x313   : > { %v4333_v58 = vpop.f32.mrf.mxu3  ;;  %v4364_v30 = vpop.f32.mrf.mxu0 }
 0x314   : > { %v4334_v26 = vadd.f32 %v4333_v58, %v4305_v55 }
 0x315   : > { %v4393_v57 = vpop.f32.mrf.mxu1 }
 0x316   : > { %v4363_v23 = vadd.f32 %v4362_v21, %v4334_v26 }
 0x318   : > { %v10581_v52 = vadd.f32 %v4391_v63, %v4363_v23  ;;  %v4306_v31 = vpop.f32.mrf.mxu2 }
 0x319   : > { %v4307_v9 = vadd.f32 %v4306_v31, %v10506_v62 }
 0x31b   : > { %v4335_v56 = vpop.f32.mrf.mxu3  ;;  %v4367_v22 = vpop.f32.mrf.mxu0 }
 0x31c   : > { %v4336_v39 = vadd.f32 %v4335_v56, %v4307_v9 }
 0x31d   : > { %v4396_v53 = vpop.f32.mrf.mxu1  ;;  %4540 = vmatmul.bf16.gmra.mxu2 %v10888_v46 }
 0x31e   : > { %v4365_v11 = vadd.f32 %v4364_v30, %v4336_v39  ;;  %4598 = vmatmul.bf16.gmra.mxu0 %v9263_v20 }
 0x320   : > { %4569 = vmatmul.bf16.gmra.mxu3 %v10889_v2  ;;  %4627 = vmatmul.bf16.gmra.mxu1 %v10890_v13  ;;  %v10588_v29 = vadd.f32 %v4393_v57, %v4365_v11  ;;  %v4309_v18 = vpop.f32.mrf.mxu2  ;;  %v10895_v57 = vld [vmem:[#allocation58_spill] sm:$0xff] }
 0x321   : > { %v4310_v4 = vadd.f32 %v4309_v18, %v10533_v19  ;;  %v10893_v19 = vld [vmem:[#allocation63_spill] sm:$0xff] }
 0x323   : > { %v4338_v47 = vpop.f32.mrf.mxu3  ;;  %v4369_v62 = vpop.f32.mrf.mxu0 }
 0x324   : > { %v4339_v41 = vadd.f32 %v4338_v47, %v4310_v4 }
 0x325   : > { %v4398_v45 = vpop.f32.mrf.mxu1 }
 0x326   : > { %v4368_v37 = vadd.f32 %v4367_v22, %v4339_v41 }
 0x328   : > { %v10591_v36 = vadd.f32 %v4396_v53, %v4368_v37  ;;  %v4311_v59 = vpop.f32.mrf.mxu2 }
 0x329   : > { %v4312_v24 = vadd.f32 %v4311_v59, %v10558_v32 }
 0x32b   : > { %v4340_v20 = vpop.f32.mrf.mxu3  ;;  %v4372_v54 = vpop.f32.mrf.mxu0 }
 0x32c   : > { %v4341_v60 = vadd.f32 %v4340_v20, %v4312_v24 }
 0x32d   : > { %v4401_v51 = vpop.f32.mrf.mxu1  ;;  %4545 = vmatmul.bf16.gmra.mxu2 %v10891_v42 }
 0x32e   : > { %v4370_v38 = vadd.f32 %v4369_v62, %v4341_v60  ;;  %4603 = vmatmul.bf16.gmra.mxu0 %v10892_v28 }
 0x330   : > { %4574 = vmatmul.bf16.gmra.mxu3 %v10893_v19  ;;  %4632 = vmatmul.bf16.gmra.mxu1 %v10894_v16  ;;  %v10598_v50 = vadd.f32 %v4398_v45, %v4370_v38  ;;  %v4314_v1 = vpop.f32.mrf.mxu2 }
 0x331   : > { %v4315_v49 = vadd.f32 %v4314_v1, %v10561_v6 }
 0x333   : > { %v4343_v21 = vpop.f32.mrf.mxu3  ;;  %v4374_v32 = vpop.f32.mrf.mxu0 }
 0x334   : > { %v4344_v12 = vadd.f32 %v4343_v21, %v4315_v49 }
 0x335   : > { %v4403_v63 = vpop.f32.mrf.mxu1 }
 0x336   : > { %v4373_v3 = vadd.f32 %v4372_v54, %v4344_v12 }
 0x338   : > { %v10601_v10 = vadd.f32 %v4401_v51, %v4373_v3  ;;  %v4316_v27 = vpop.f32.mrf.mxu2 }
 0x339   : > { %v4317_v40 = vadd.f32 %v4316_v27, %v10568_v5 }
 0x33b   : > { %v4345_v48 = vpop.f32.mrf.mxu3  ;;  %v4377_v55 = vpop.f32.mrf.mxu0 }
 0x33c   : > { %v4346_v58 = vadd.f32 %v4345_v48, %v4317_v40 }
 0x33d   : > { %v4406_v30 = vpop.f32.mrf.mxu1  ;;  %4550 = vmatmul.bf16.gmra.mxu2 %v10895_v57 }
 0x33e   : > { %v4375_v26 = vadd.f32 %v4374_v32, %v4346_v58  ;;  %4608 = vmatmul.bf16.gmra.mxu0 %v9403_v43 }
 0x340   : > { %4579 = vmatmul.bf16.gmra.mxu3 %v9399_v44  ;;  %4637 = vmatmul.bf16.gmra.mxu1 %v9401_v14  ;;  %v10608_v6 = vadd.f32 %v4403_v63, %v4375_v26  ;;  %v4319_v23 = vpop.f32.mrf.mxu2 }
 0x341   : > { %v4320_v31 = vadd.f32 %v4319_v23, %v10571_v35 }
 0x343   : > { %v4348_v9 = vpop.f32.mrf.mxu3  ;;  %v4379_v5 = vpop.f32.mrf.mxu0 }
 0x344   : > { %v4349_v56 = vadd.f32 %v4348_v9, %v4320_v31 }
 0x345   : > { %v4408_v22 = vpop.f32.mrf.mxu1 }
 0x346   : > { %v4378_v39 = vadd.f32 %v4377_v55, %v4349_v56 }
 0x348   : > { %v10611_v53 = vadd.f32 %v4406_v30, %v4378_v39  ;;  %v4321_v11 = vpop.f32.mrf.mxu2 }
 0x349   : > { %v4322_v46 = vadd.f32 %v4321_v11, %v10578_v0 }
 0x34b   : > { %v4350_v43 = vpop.f32.mrf.mxu3  ;;  %v4478_v2 = vpop.f32.mrf.mxu0 }
 0x34c   : > { %v4351_v44 = vadd.f32 %v4350_v43, %v4322_v46 }
 0x34d   : > { %v4507_v13 = vpop.f32.mrf.mxu1 }
 0x34e   : > { %v4380_v14 = vadd.f32 %v4379_v5, %v4351_v44 }
 0x350   : > { %v10614_v18 = vadd.f32 %v4408_v22, %v4380_v14  ;;  %v4420_v4 = vpop.f32.mrf.mxu2 }
 0x351   : > { %v4421_v40 = vadd.f32 %v4420_v4, %v10581_v52 }
 0x353   : > { %v4449_v47 = vpop.f32.mrf.mxu3  ;;  %v4480_v35 = vpop.f32.mrf.mxu0 }
 0x354   : > { %v4450_v55 = vadd.f32 %v4449_v47, %v4421_v40 }
 0x355   : > { %v4509_v62 = vpop.f32.mrf.mxu1 }
 0x356   : > { %v4479_v57 = vadd.f32 %v4478_v2, %v4450_v55 }
 0x358   : > { %v4422_v41 = vpop.f32.mrf.mxu2  ;;  %v4508_v5 = vadd.f32 %v4507_v13, %v4479_v57 }
 0x359   : > { %v4423_v23 = vadd.f32 %v4422_v41, %v10588_v29  ;;  %v4643_v29 = vmax.f32 %v9730_v25, 0.0 }
 0x35b   : > { %v4451_v45 = vpop.f32.mrf.mxu3  ;;  %v4483_v37 = vpop.f32.mrf.mxu0 }
 0x35c   : > { %v4452_v9 = vadd.f32 %v4451_v45, %v4423_v23 }
 0x35d   : > { %v4512_v59 = vpop.f32.mrf.mxu1 }
 0x35e   : > { %v4481_v52 = vadd.f32 %v4480_v35, %v4452_v9  ;;  %v4645_v9 = vmax.f32 %v9759_v7, 0.0 }
 0x360   : > { %v4425_v24 = vpop.f32.mrf.mxu2  ;;  %v4510_v40 = vadd.f32 %v4509_v62, %v4481_v52 }
 0x361   : > { %v4426_v46 = vadd.f32 %v4425_v24, %v10591_v36 }
 0x363   : > { %v4454_v20 = vpop.f32.mrf.mxu3  ;;  %v10616_v54 = vpop.f32.mrf.mxu0 }
 0x364   : > { %v4455_v4 = vadd.f32 %v4454_v20, %v4426_v46 }
 0x365   : > { %v10618_v0 = vpop.f32.mrf.mxu1 }
 0x366   : > { %v4484_v35 = vadd.f32 %v4483_v37, %v4455_v4 }
 0x368   : > { %v4427_v60 = vpop.f32.mrf.mxu2  ;;  %v4513_v23 = vadd.f32 %v4512_v59, %v4484_v35 }
 0x369   : > { %v4428_v24 = vadd.f32 %v4427_v60, %v10598_v50 }
 0x36b   : > { %v4456_v51 = vpop.f32.mrf.mxu3  ;;  %v10620_v38 = vpop.f32.mrf.mxu0 }
 0x36c   : > { %v4457_v25 = vadd.f32 %v4456_v51, %v4428_v24 }
 0x36d   : > { %v10622_v42 = vpop.f32.mrf.mxu1 }
 0x370   : > { %v4430_v28 = vpop.f32.mrf.mxu2 }
 0x371   : > { %v4431_v37 = vadd.f32 %v4430_v28, %v10601_v10 }
 0x373   : > { %v10624_v19 = vpop.f32.mrf.mxu3  ;;  %v10626_v16 = vpop.f32.mrf.mxu0 }
 0x374   : > { %v4460_v51 = vadd.f32 %v10624_v19, %v4431_v37 }
 0x375   : > { %v10628_v1 = vpop.f32.mrf.mxu1 }
 0x376   : > { %v4489_v10 = vadd.f32 %v10620_v38, %v4460_v51 }
 0x378   : > { %v10630_v49 = vpop.f32.mrf.mxu2 }
 0x379   : > { %v4433_v28 = vadd.f32 %v10630_v49, %v10608_v6 }
 0x37b   : > { %v10632_v21 = vpop.f32.mrf.mxu3  ;;  %v10634_v32 = vpop.f32.mrf.mxu0 }
 0x37d   : > { %v10636_v12 = vpop.f32.mrf.mxu1 }
 0x380   : > { %v10638_v63 = vpop.f32.mrf.mxu2 }
 0x381   : > { %v4436_v49 = vadd.f32 %v10638_v63, %v10611_v53 }
 0x383   : > { %v10640_v3 = vpop.f32.mrf.mxu3  ;;  %v10642_v27 = vpop.f32.mrf.mxu0 }
 0x385   : > { %v10645_v48 = vpop.f32.mrf.mxu1 }
 0x388   : > { %v10647_v58 = vpop.f32.mrf.mxu2 }
 0x389   : > { %v4438_v63 = vadd.f32 %v10647_v58, %v10614_v18 }
 0x38b   : > { %v10649_v30 = vpop.f32.mrf.mxu3  ;;  %v4594_v26 = vpop.f32.mrf.mxu0 }
 0x38d   : > { %v4623_v31 = vpop.f32.mrf.mxu1 }
 0x390   : > { %v4536_v56 = vpop.f32.mrf.mxu2 }
 0x391   : > { %v4537_v22 = vadd.f32 %v4536_v56, %v4508_v5 }
 0x393   : > { %v4565_v39 = vpop.f32.mrf.mxu3  ;;  %v4596_v11 = vpop.f32.mrf.mxu0 }
 0x394   : > { %v4566_v43 = vadd.f32 %v4565_v39, %v4537_v22  ;;  %v4486_v39 = vadd.f32 %v10616_v54, %v4457_v25  ;;  %v4651_v25 = vmax.f32 %v9860_v17, 0.0 }
 0x395   : > { %v4625_v44 = vpop.f32.mrf.mxu1 }
 0x396   : > { %v4595_v14 = vadd.f32 %v4594_v26, %v4566_v43  ;;  %v4515_v43 = vadd.f32 %v10618_v0, %v4486_v39  ;;  %v4653_v39 = vmax.f32 %v9883_v8, 0.0 }
 0x398   : > { %v4624_v47 = vadd.f32 %v4623_v31, %v4595_v14  ;;  %v4538_v2 = vpop.f32.mrf.mxu2 }
 0x399   : > { %v4539_v45 = vadd.f32 %v4538_v2, %v4510_v40 }
 0x39a   : > { %v4644_v41 = vmax.f32 %v4624_v47, 0.0 }
 0x39b   : > { %v4567_v13 = vpop.f32.mrf.mxu3  ;;  %v4599_v36 = vpop.f32.mrf.mxu0 }
 0x39c   : > { %v4659_v20 = vpack.c.bf16 %v4644_v41, %v4643_v29  ;;  %v4568_v55 = vadd.f32 %v4567_v13, %v4539_v45  ;;  %v4462_v29 = vadd.f32 %v10632_v21, %v4433_v28  ;;  %v4518_v41 = vadd.f32 %v10622_v42, %v4489_v10 }
 0x39d   : > { %v4628_v26 = vpop.f32.mrf.mxu1  ;;  %v4649_v13 = vmax.f32 %v9839_v15, 0.0  ;;  %v4657_v28 = vmax.f32 %v9948_v61, 0.0 }
 0x39e   : > { %4667 = vst [vmem:[%s10658_s13] sm:$0xff] %v4659_v20  ;;  %v4597_v62 = vadd.f32 %v4596_v11, %v4568_v55  ;;  %v4491_v6 = vadd.f32 %v10626_v16, %v4462_v29  ;;  %v4465_v55 = vadd.f32 %v10640_v3, %v4436_v49 }
 0x3a0   : > { %v4626_v57 = vadd.f32 %v4625_v44, %v4597_v62  ;;  %v4541_v31 = vpop.f32.mrf.mxu2  ;;  %v4647_v44 = vmax.f32 %v9798_v34, 0.0  ;;  %v4494_v53 = vadd.f32 %v10634_v32, %v4465_v55 }
 0x3a1   : > { %v4542_v56 = vadd.f32 %v4541_v31, %v4513_v23 }
 0x3a2   : > { %v4646_v5 = vmax.f32 %v4626_v57, 0.0 }
 0x3a3   : > { %v4570_v22 = vpop.f32.mrf.mxu3  ;;  %v4601_v52 = vpop.f32.mrf.mxu0 }
 0x3a4   : > { %v4660_v50 = vpack.c.bf16 %v4646_v5, %v4645_v9  ;;  %v4571_v60 = vadd.f32 %v4570_v22, %v4542_v56  ;;  %v4523_v22 = vadd.f32 %v10636_v12, %v4494_v53 }
 0x3a5   : > { %v4630_v11 = vpop.f32.mrf.mxu1 }
 0x3a6   : > { %4668 = vst [vmem:[%s10658_s13 + $0x8] sm:$0xff] %v4660_v50  ;;  %v4600_v46 = vadd.f32 %v4599_v36, %v4571_v60 }
 0x3a8   : > { %v4629_v59 = vadd.f32 %v4628_v26, %v4600_v46  ;;  %v4543_v7 = vpop.f32.mrf.mxu2  ;;  %v4520_v26 = vadd.f32 %v10628_v1, %v4491_v6  ;;  %v4467_v1 = vadd.f32 %v10649_v30, %v4438_v63 }
 0x3a9   : > { %v4544_v4 = vadd.f32 %v4543_v7, %v4515_v43 }
 0x3aa   : > { %v4648_v14 = vmax.f32 %v4629_v59, 0.0  ;;  %v4655_v59 = vmax.f32 %v9916_v33, 0.0 }
 0x3ab   : > { %v4572_v54 = vpop.f32.mrf.mxu3  ;;  %v4604_v19 = vpop.f32.mrf.mxu0 }
 0x3ac   : > { %v4661_v47 = vpack.c.bf16 %v4648_v14, %v4647_v44  ;;  %v4573_v40 = vadd.f32 %v4572_v54, %v4544_v4 }
 0x3ad   : > { %v4633_v34 = vpop.f32.mrf.mxu1 }
 0x3ae   : > { %4669 = vst [vmem:[%s10658_s13 + $0x10] sm:$0xff] %v4661_v47  ;;  %v4602_v2 = vadd.f32 %v4601_v52, %v4573_v40  ;;  %v4496_v52 = vadd.f32 %v10642_v27, %v4467_v1 }
 0x3b0   : > { %v4631_v0 = vadd.f32 %v4630_v11, %v4602_v2  ;;  %v4546_v45 = vpop.f32.mrf.mxu2  ;;  %v4525_v30 = vadd.f32 %v10645_v48, %v4496_v52 }
 0x3b1   : > { %v4547_v38 = vadd.f32 %v4546_v45, %v4518_v41 }
 0x3b2   : > { %v4650_v36 = vmax.f32 %v4631_v0, 0.0 }
 0x3b3   : > { %v4575_v35 = vpop.f32.mrf.mxu3  ;;  %v4606_v62 = vpop.f32.mrf.mxu0 }
 0x3b4   : > { %v4662_v24 = vpack.c.bf16 %v4650_v36, %v4649_v13  ;;  %v4576_v20 = vadd.f32 %v4575_v35, %v4547_v38 }
 0x3b5   : > { %v4635_v31 = vpop.f32.mrf.mxu1 }
 0x3b6   : > { %4670 = vst [vmem:[%s10658_s13 + $0x18] sm:$0xff] %v4662_v24  ;;  %v4605_v21 = vadd.f32 %v4604_v19, %v4576_v20 }
 0x3b8   : > { %v4634_v42 = vadd.f32 %v4633_v34, %v4605_v21  ;;  %v4548_v15 = vpop.f32.mrf.mxu2 }
 0x3b9   : > { %v4549_v23 = vadd.f32 %v4548_v15, %v4520_v26 }
 0x3ba   : > { %v4652_v57 = vmax.f32 %v4634_v42, 0.0 }
 0x3bb   : > { %v4577_v16 = vpop.f32.mrf.mxu3  ;;  %v4609_v32 = vpop.f32.mrf.mxu0 }
 0x3bc   : > { %v4663_v9 = vpack.c.bf16 %v4652_v57, %v4651_v25  ;;  %v4578_v5 = vadd.f32 %v4577_v16, %v4549_v23 }
 0x3bd   : > { %v4638_v46 = vpop.f32.mrf.mxu1 }
 0x3be   : > { %4671 = vst [vmem:[%s10658_s13 + $0x20] sm:$0xff] %v4663_v9  ;;  %v4607_v3 = vadd.f32 %v4606_v62, %v4578_v5 }
 0x3c0   : > { %v4636_v56 = vadd.f32 %v4635_v31, %v4607_v3  ;;  %v4551_v17 = vpop.f32.mrf.mxu2 }
 0x3c1   : > { %v4552_v50 = vadd.f32 %v4551_v17, %v4523_v22 }
 0x3c2   : > { %v4654_v37 = vmax.f32 %v4636_v56, 0.0 }
 0x3c3   : > { %v4580_v60 = vpop.f32.mrf.mxu3  ;;  %v4611_v4 = vpop.f32.mrf.mxu0 }
 0x3c4   : > { %v4664_v18 = vpack.c.bf16 %v4654_v37, %v4653_v39  ;;  %v4581_v58 = vadd.f32 %v4580_v60, %v4552_v50 }
 0x3c5   : > { %v4640_v54 = vpop.f32.mrf.mxu1 }
 0x3c6   : > { %4672 = vst [vmem:[%s10658_s13 + $0x28] sm:$0xff] %v4664_v18  ;;  %v4610_v11 = vadd.f32 %v4609_v32, %v4581_v58 }
 0x3c8   : > { %v4639_v51 = vadd.f32 %v4638_v46, %v4610_v11  ;;  %v4553_v12 = vpop.f32.mrf.mxu2 }
 0x3c9   : > { %v4554_v43 = vadd.f32 %v4553_v12, %v4525_v30 }
 0x3ca   : > { %v4656_v8 = vmax.f32 %v4639_v51, 0.0 }
 0x3cb   : > { %v4582_v7 = vpop.f32.mrf.mxu3 }
 0x3cc   : > { %v4665_v44 = vpack.c.bf16 %v4656_v8, %v4655_v59  ;;  %v4583_v14 = vadd.f32 %v4582_v7, %v4554_v43 }
 0x3ce   : > { %4673 = vst [vmem:[%s10658_s13 + $0x30] sm:$0xff] %v4665_v44  ;;  %v4612_v27 = vadd.f32 %v4611_v4, %v4583_v14 }
 0x3d0   : > { %v4641_v10 = vadd.f32 %v4640_v54, %v4612_v27 }
 0x3d2   : > { %v4658_v47 = vmax.f32 %v4641_v10, 0.0 }
 0x3d4   : > { %v4666_v40 = vpack.c.bf16 %v4658_v47, %v4657_v28 }
 0x3d6   : > { %4674 = vst [vmem:[%s10658_s13 + $0x38] sm:$0xff] %v4666_v40 }
 0x3d7 PF: > { %s13_s12 = sadd.s32 1, %s7278_s12  }
 0x3d8   : > { %p10_p4 = scmp.ge.s32.totalorder %s13_s12, 4  }
 0x3da   :  { %12 = sbr.rel (!%p10_p4) target bundleno = 1 (0x1), region = 62 }

</bundles_post_ra>
